<compile_context>
chip_gen: v5e
topology: v5e:2x2
jax: 0.10.0
libtpu: 0.0.40
codegen_flags: <defaults>
</compile_context>

<pallas_src>
import functools

import jax
import jax.numpy as jnp
from jax import lax
from jax.experimental import pallas as pl
from jax.experimental.pallas import tpu as pltpu

LN_EPS = 1e-5
_F32 = jnp.float32
_BF16 = jnp.bfloat16

_ENC_KEYS = ("wqkv", "bqkv", "wo", "bo", "w1", "b1", "w2", "b2",
             "ln1w", "ln1b", "ln2w", "ln2b")
_DEC_KEYS = ("wqkv_s", "bqkv_s", "wo_s", "bo_s",
             "wq_c", "bq_c", "wkv_c", "bkv_c", "wo_c", "bo_c",
             "w1", "b1", "w2", "b2",
             "ln1w", "ln1b", "ln2w", "ln2b", "ln3w", "ln3b")


# --------------------------------------------------------------------------------------
# Shared math helpers (pure jnp: usable both inside Pallas kernels and in the reference)
# --------------------------------------------------------------------------------------
def _layer_norm(z, w, b):
    mu = jnp.mean(z, axis=-1, keepdims=True)
    var = jnp.mean((z - mu) ** 2, axis=-1, keepdims=True)
    return (z - mu) * lax.rsqrt(var + LN_EPS) * w + b


def _mha_kernel(q, k, v, attn_scr, *, num_heads):
    """Multi-head attention on one sequence tile (kernel-side).

    q: (Sq, E) f32, k/v: (Sk, E) f32. Head outputs are stored into column slices of the
    VMEM scratch `attn_scr` (Sq, E) (no concatenate / transpose); returns the full tile.
    Batch/sequence parallelism is carried by the pallas grid, so only the (small, static)
    head axis is unrolled here.
    """
    E = q.shape[-1]
    dh = E // num_heads
    scale = 1.0 / float(dh) ** 0.5
    qb, kb, vb = q.astype(_BF16), k.astype(_BF16), v.astype(_BF16)
    for h in range(num_heads):
        c0 = h * dh
        qh = qb[:, c0:c0 + dh]
        kh = kb[:, c0:c0 + dh]
        vh = vb[:, c0:c0 + dh]
        # q @ k^T without an explicit transpose: contract the last dim of both operands.
        s = lax.dot_general(qh, kh, (((1,), (1,)), ((), ())),
                            preferred_element_type=_F32) * scale
        m = jnp.max(s, axis=-1, keepdims=True)
        e = jnp.exp(s - m)
        # EUP approximate reciprocal instead of a VALU divide.
        p = e * pl.reciprocal(jnp.sum(e, axis=-1, keepdims=True), approx=True)
        attn_scr[:, c0:c0 + dh] = jnp.dot(p.astype(_BF16), vh,
                                          preferred_element_type=_F32)
    return attn_scr[...]


# --------------------------------------------------------------------------------------
# Encoder kernel: grid = (row_tiles, L); one row tile = one whole sequence (batch-major)
# --------------------------------------------------------------------------------------
def _encoder_kernel(x_ref, wqkv_ref, bqkv_ref, wo_ref, bo_ref,
                    w1_ref, b1_ref, w2_ref, b2_ref,
                    ln1w_ref, ln1b_ref, ln2w_ref, ln2b_ref,
                    out_ref, h_scr, attn_scr, *, num_heads):
    E = x_ref.shape[-1]
    l = pl.program_id(1)

    @pl.when(l == 0)
    def _():
        h_scr[...] = x_ref[...].astype(_F32)     # activation tile stays in VMEM across layers

    x = h_scr[...]
    xb = x.astype(_BF16)

    # ---- self attention ----
    qkv = jnp.dot(xb, wqkv_ref[...], preferred_element_type=_F32) + bqkv_ref[...]
    attn = _mha_kernel(qkv[:, :E], qkv[:, E:2 * E], qkv[:, 2 * E:], attn_scr,
                       num_heads=num_heads)
    attn = jnp.dot(attn.astype(_BF16), wo_ref[...],
                   preferred_element_type=_F32) + bo_ref[...]
    z = _layer_norm(x + attn, ln1w_ref[...], ln1b_ref[...])

    # ---- feed forward ----
    h1 = jnp.maximum(jnp.dot(z.astype(_BF16), w1_ref[...],
                             preferred_element_type=_F32) + b1_ref[...], 0.0)
    h2 = jnp.dot(h1.astype(_BF16), w2_ref[...],
                 preferred_element_type=_F32) + b2_ref[...]
    y = _layer_norm(z + h2, ln2w_ref[...], ln2b_ref[...])

    h_scr[...] = y

    @pl.when(l == pl.num_programs(1) - 1)
    def _():
        out_ref[...] = y.astype(out_ref.dtype)


def encoder_forward(x_slab, params, *, seq_len, num_heads):
    """x_slab: (B*S, E) batch-major slab. Runs the full num_layers encoder stack."""
    BS, E = x_slab.shape
    L = params["wqkv"].shape[0]
    assert BS % seq_len == 0 and seq_len % 8 == 0 and E % 128 == 0
    n_tiles = BS // seq_len

    stacked = [params[k] for k in _ENC_KEYS]
    in_specs = [pl.BlockSpec((seq_len, E), lambda i, l: (i, 0))] + [
        pl.BlockSpec((None,) + a.shape[1:], lambda i, l: (l, 0, 0)) for a in stacked
    ]

    return pl.pallas_call(
        functools.partial(_encoder_kernel, num_heads=num_heads),
        out_shape=jax.ShapeDtypeStruct((BS, E), _F32),
        grid_spec=pltpu.PrefetchScalarGridSpec(
            num_scalar_prefetch=0,
            grid=(n_tiles, L),
            in_specs=in_specs,
            out_specs=pl.BlockSpec((seq_len, E), lambda i, l: (i, 0)),
            scratch_shapes=[pltpu.VMEM((seq_len, E), _F32),   # resident activations
                            pltpu.VMEM((seq_len, E), _F32)],  # attention head outputs
        ),
        compiler_params=pltpu.CompilerParams(
            dimension_semantics=("parallel", "arbitrary"),
            vmem_limit_bytes=32 * 1024 * 1024),
    )(x_slab, *stacked)


# --------------------------------------------------------------------------------------
# Decoder kernel: self-attn + cross-attn (vs. memory) + FFN, fused over layers,
# with the final vocab projection folded into the last layer iteration.
# --------------------------------------------------------------------------------------
def _decoder_kernel(x_ref, mem_ref,
                    wqkv_s_ref, bqkv_s_ref, wo_s_ref, bo_s_ref,
                    wq_c_ref, bq_c_ref, wkv_c_ref, bkv_c_ref, wo_c_ref, bo_c_ref,
                    w1_ref, b1_ref, w2_ref, b2_ref,
                    ln1w_ref, ln1b_ref, ln2w_ref, ln2b_ref, ln3w_ref, ln3b_ref,
                    wout_ref, bout_ref,
                    out_ref, h_scr, attn_scr, *, num_heads):
    E = x_ref.shape[-1]
    l = pl.program_id(1)

    @pl.when(l == 0)
    def _():
        h_scr[...] = x_ref[...].astype(_F32)

    x = h_scr[...]
    xb = x.astype(_BF16)
    memb = mem_ref[...].astype(_BF16)

    # ---- self attention ----
    qkv = jnp.dot(xb, wqkv_s_ref[...], preferred_element_type=_F32) + bqkv_s_ref[...]
    sa = _mha_kernel(qkv[:, :E], qkv[:, E:2 * E], qkv[:, 2 * E:], attn_scr,
                     num_heads=num_heads)
    sa = jnp.dot(sa.astype(_BF16), wo_s_ref[...],
                 preferred_element_type=_F32) + bo_s_ref[...]
    z1 = _layer_norm(x + sa, ln1w_ref[...], ln1b_ref[...])

    # ---- cross attention (queries from tgt, keys/values from encoder memory) ----
    qc = jnp.dot(z1.astype(_BF16), wq_c_ref[...],
                 preferred_element_type=_F32) + bq_c_ref[...]
    kv = jnp.dot(memb, wkv_c_ref[...], preferred_element_type=_F32) + bkv_c_ref[...]
    ca = _mha_kernel(qc, kv[:, :E], kv[:, E:], attn_scr, num_heads=num_heads)
    ca = jnp.dot(ca.astype(_BF16), wo_c_ref[...],
                 preferred_element_type=_F32) + bo_c_ref[...]
    z2 = _layer_norm(z1 + ca, ln2w_ref[...], ln2b_ref[...])

    # ---- feed forward ----
    h1 = jnp.maximum(jnp.dot(z2.astype(_BF16), w1_ref[...],
                             preferred_element_type=_F32) + b1_ref[...], 0.0)
    h2 = jnp.dot(h1.astype(_BF16), w2_ref[...],
                 preferred_element_type=_F32) + b2_ref[...]
    y = _layer_norm(z2 + h2, ln3w_ref[...], ln3b_ref[...])

    h_scr[...] = y

    @pl.when(l == pl.num_programs(1) - 1)
    def _():
        logits = jnp.dot(y.astype(_BF16), wout_ref[...],
                         preferred_element_type=_F32) + bout_ref[...]
        out_ref[...] = logits.astype(out_ref.dtype)


def decoder_forward(tgt_slab, mem_slab, params, wout, bout, *,
                    tgt_seq, mem_seq, num_heads):
    BS, E = tgt_slab.shape
    V = wout.shape[-1]
    L = params["wqkv_s"].shape[0]
    assert BS % tgt_seq == 0 and tgt_seq % 8 == 0 and mem_seq % 8 == 0
    assert E % 128 == 0 and V % 128 == 0
    n_tiles = BS // tgt_seq
    assert mem_slab.shape == (n_tiles * mem_seq, E)

    stacked = [params[k] for k in _DEC_KEYS]
    in_specs = (
        [pl.BlockSpec((tgt_seq, E), lambda i, l: (i, 0)),
         pl.BlockSpec((mem_seq, E), lambda i, l: (i, 0))]
        + [pl.BlockSpec((None,) + a.shape[1:], lambda i, l: (l, 0, 0)) for a in stacked]
        + [pl.BlockSpec((E, V), lambda i, l: (0, 0)),
           pl.BlockSpec((1, V), lambda i, l: (0, 0))]
    )

    return pl.pallas_call(
        functools.partial(_decoder_kernel, num_heads=num_heads),
        out_shape=jax.ShapeDtypeStruct((BS, V), _F32),
        grid_spec=pltpu.PrefetchScalarGridSpec(
            num_scalar_prefetch=0,
            grid=(n_tiles, L),
            in_specs=in_specs,
            out_specs=pl.BlockSpec((tgt_seq, V), lambda i, l: (i, 0)),
            scratch_shapes=[pltpu.VMEM((tgt_seq, E), _F32),
                            pltpu.VMEM((tgt_seq, E), _F32)],
        ),
        compiler_params=pltpu.CompilerParams(
            dimension_semantics=("parallel", "arbitrary"),
            vmem_limit_bytes=32 * 1024 * 1024),
    )(tgt_slab, mem_slab, *stacked, wout, bout)


# --------------------------------------------------------------------------------------
# Full BasicModel forward (Pallas path)
# --------------------------------------------------------------------------------------
def _embed(emb, ids):
    """ids: (S, B) int -> batch-major slab (B*S, E). Gather done in the JAX wrapper."""
    S, B = ids.shape
    e = jnp.take(emb, ids, axis=0)                       # (S, B, E)
    return jnp.transpose(e, (1, 0, 2)).reshape(B * S, emb.shape[-1])


def basic_model_forward(params, oa_ids, is_ids, tgt_ids, *, num_heads):
    emb = params["embed"]
    S_src, B = oa_ids.shape
    S_tgt = tgt_ids.shape[0]

    oa_slab = _embed(emb, oa_ids)
    is_slab = _embed(emb, is_ids)
    tgt_slab = _embed(emb, tgt_ids)

    oa_enc = encoder_forward(oa_slab, params["oa_enc"], seq_len=S_src, num_heads=num_heads)
    is_enc = encoder_forward(is_slab, params["is_enc"], seq_len=S_src, num_heads=num_heads)
    memory = oa_enc + is_enc                              # combined context

    logits = decoder_forward(tgt_slab, memory, params["dec"],
                             params["wout"], params["bout"],
                             tgt_seq=S_tgt, mem_seq=S_src, num_heads=num_heads)
    V = logits.shape[-1]
    return jnp.transpose(logits.reshape(B, S_tgt, V), (1, 0, 2))   # (S_tgt, B, V)


# --------------------------------------------------------------------------------------
# Pure-JAX reference (identical bf16/f32 op placement) for the correctness check
# --------------------------------------------------------------------------------------
def _ref_dot(a, w):
    return jnp.dot(a.astype(_BF16), w, preferred_element_type=_F32)


def _ref_mha(q, k, v, num_heads):
    E = q.shape[-1]
    dh = E // num_heads
    scale = 1.0 / float(dh) ** 0.5
    outs = []
    for h in range(num_heads):
        c = slice(h * dh, (h + 1) * dh)
        s = jnp.dot(q[:, c].astype(_BF16), k[:, c].astype(_BF16).T,
                    preferred_element_type=_F32) * scale
        m = jnp.max(s, axis=-1, keepdims=True)
        e = jnp.exp(s - m)
        p = e / jnp.sum(e, axis=-1, keepdims=True)
        outs.append(jnp.dot(p.astype(_BF16), v[:, c].astype(_BF16),
                            preferred_element_type=_F32))
    return jnp.concatenate(outs, axis=-1)


def _encoder_ref(x_slab, p, *, seq_len, num_heads):
    BS, E = x_slab.shape
    L = p["wqkv"].shape[0]
    h = x_slab
    for l in range(L):
        rows = []
        for b in range(BS // seq_len):
            x = h[b * seq_len:(b + 1) * seq_len]
            qkv = _ref_dot(x, p["wqkv"][l]) + p["bqkv"][l]
            a = _ref_mha(qkv[:, :E], qkv[:, E:2 * E], qkv[:, 2 * E:], num_heads)
            a = _ref_dot(a, p["wo"][l]) + p["bo"][l]
            z = _layer_norm(x + a, p["ln1w"][l], p["ln1b"][l])
            h1 = jnp.maximum(_ref_dot(z, p["w1"][l]) + p["b1"][l], 0.0)
            h2 = _ref_dot(h1, p["w2"][l]) + p["b2"][l]
            rows.append(_layer_norm(z + h2, p["ln2w"][l], p["ln2b"][l]))
        h = jnp.concatenate(rows, axis=0)
    return h


def _decoder_ref(tgt_slab, mem_slab, p, wout, bout, *, tgt_seq, mem_seq, num_heads):
    BS, E = tgt_slab.shape
    L = p["wqkv_s"].shape[0]
    h = tgt_slab
    for l in range(L):
        rows = []
        for b in range(BS // tgt_seq):
            x = h[b * tgt_seq:(b + 1) * tgt_seq]
            mem = mem_slab[b * mem_seq:(b + 1) * mem_seq]
            qkv = _ref_dot(x, p["wqkv_s"][l]) + p["bqkv_s"][l]
            sa = _ref_mha(qkv[:, :E], qkv[:, E:2 * E], qkv[:, 2 * E:], num_heads)
            sa = _ref_dot(sa, p["wo_s"][l]) + p["bo_s"][l]
            z1 = _layer_norm(x + sa, p["ln1w"][l], p["ln1b"][l])
            qc = _ref_dot(z1, p["wq_c"][l]) + p["bq_c"][l]
            kv = _ref_dot(mem, p["wkv_c"][l]) + p["bkv_c"][l]
            ca = _ref_mha(qc, kv[:, :E], kv[:, E:], num_heads)
            ca = _ref_dot(ca, p["wo_c"][l]) + p["bo_c"][l]
            z2 = _layer_norm(z1 + ca, p["ln2w"][l], p["ln2b"][l])
            h1 = jnp.maximum(_ref_dot(z2, p["w1"][l]) + p["b1"][l], 0.0)
            h2 = _ref_dot(h1, p["w2"][l]) + p["b2"][l]
            rows.append(_layer_norm(z2 + h2, p["ln3w"][l], p["ln3b"][l]))
        h = jnp.concatenate(rows, axis=0)
    return _ref_dot(h, wout) + bout


def basic_model_ref(params, oa_ids, is_ids, tgt_ids, *, num_heads):
    emb = params["embed"]
    S_src, B = oa_ids.shape
    S_tgt = tgt_ids.shape[0]
    oa = _encoder_ref(_embed(emb, oa_ids), params["oa_enc"], seq_len=S_src, num_heads=num_heads)
    iz = _encoder_ref(_embed(emb, is_ids), params["is_enc"], seq_len=S_src, num_heads=num_heads)
    memory = oa + iz
    logits = _decoder_ref(_embed(emb, tgt_ids), memory, params["dec"],
                          params["wout"], params["bout"],
                          tgt_seq=S_tgt, mem_seq=S_src, num_heads=num_heads)
    V = logits.shape[-1]
    return jnp.transpose(logits.reshape(B, S_tgt, V), (1, 0, 2))


# --------------------------------------------------------------------------------------
# Synthetic parameters (shapes match the PyTorch module; big matrices stored in bf16)
# --------------------------------------------------------------------------------------
def init_params(key, embed_dim, num_heads, ff_dim, num_layers, vocab_size):
    E, F, L, V = embed_dim, ff_dim, num_layers, vocab_size
    ws, bscale = 0.05, 0.02
    keys = iter(jax.random.split(key, 64))

    def w(shape):   # matmul weights (pre-transposed: y = x @ W + b), bf16 for the MXU
        return (ws * jax.random.normal(next(keys), shape, _F32)).astype(_BF16)

    def b(shape):   # biases / LN params stay f32
        return bscale * jax.random.normal(next(keys), shape, _F32)

    def enc():
        return {
            "wqkv": w((L, E, 3 * E)), "bqkv": b((L, 1, 3 * E)),
            "wo": w((L, E, E)), "bo": b((L, 1, E)),
            "w1": w((L, E, F)), "b1": b((L, 1, F)),
            "w2": w((L, F, E)), "b2": b((L, 1, E)),
            "ln1w": jnp.ones((L, 1, E), _F32), "ln1b": jnp.zeros((L, 1, E), _F32),
            "ln2w": jnp.ones((L, 1, E), _F32), "ln2b": jnp.zeros((L, 1, E), _F32),
        }

    def dec():
        return {
            "wqkv_s": w((L, E, 3 * E)), "bqkv_s": b((L, 1, 3 * E)),
            "wo_s": w((L, E, E)), "bo_s": b((L, 1, E)),
            "wq_c": w((L, E, E)), "bq_c": b((L, 1, E)),
            "wkv_c": w((L, E, 2 * E)), "bkv_c": b((L, 1, 2 * E)),
            "wo_c": w((L, E, E)), "bo_c": b((L, 1, E)),
            "w1": w((L, E, F)), "b1": b((L, 1, F)),
            "w2": w((L, F, E)), "b2": b((L, 1, E)),
            "ln1w": jnp.ones((L, 1, E), _F32), "ln1b": jnp.zeros((L, 1, E), _F32),
            "ln2w": jnp.ones((L, 1, E), _F32), "ln2b": jnp.zeros((L, 1, E), _F32),
            "ln3w": jnp.ones((L, 1, E), _F32), "ln3b": jnp.zeros((L, 1, E), _F32),
        }

    return {
        "embed": ws * jax.random.normal(next(keys), (V, E), _F32),
        "oa_enc": enc(),
        "is_enc": enc(),
        "dec": dec(),
        "wout": w((E, V)),
        "bout": b((1, V)),
    }


if __name__ == "__main__":
    # Small, lane-dense shapes consistent with the module's forward
    # (token ids are seq-first (S, B), like the PyTorch model).
    EMBED_DIM, NUM_HEADS, FF_DIM, NUM_LAYERS, VOCAB_SIZE = 128, 4, 256, 2, 256
    SRC_SEQ, TGT_SEQ, BATCH = 16, 16, 4

    key = jax.random.PRNGKey(0)
    key, pkey, k1, k2, k3 = jax.random.split(key, 5)
    params = init_params(pkey, EMBED_DIM, NUM_HEADS, FF_DIM, NUM_LAYERS, VOCAB_SIZE)

    oa_ids = jax.random.randint(k1, (SRC_SEQ, BATCH), 0, VOCAB_SIZE)
    is_ids = jax.random.randint(k2, (SRC_SEQ, BATCH), 0, VOCAB_SIZE)
    tgt_ids = jax.random.randint(k3, (TGT_SEQ, BATCH), 0, VOCAB_SIZE)

    fwd = jax.jit(functools.partial(basic_model_forward, num_heads=NUM_HEADS))
    out = jax.block_until_ready(fwd(params, oa_ids, is_ids, tgt_ids))

    assert out.shape == (TGT_SEQ, BATCH, VOCAB_SIZE)
    assert bool(jnp.all(jnp.isfinite(out)))

    ref = jax.block_until_ready(
        basic_model_ref(params, oa_ids, is_ids, tgt_ids, num_heads=NUM_HEADS))
    max_err = float(jnp.max(jnp.abs(out - ref)))
    assert max_err < 3e-2, f"mismatch vs pure-JAX reference: {max_err}"

    print("KERNEL_OK")
</pallas_src>

<mosaic_0001>
module attributes {stable_mosaic.version = 11 : i64} {
  func.func @_encoder_kernel(%arg0: i32, %arg1: i32, %arg2: memref<16x128xf32, #tpu.memory_space<vmem>>, %arg3: memref<1x128x384xbf16, #tpu.memory_space<vmem>>, %arg4: memref<1x1x384xf32, #tpu.memory_space<vmem>>, %arg5: memref<1x128x128xbf16, #tpu.memory_space<vmem>>, %arg6: memref<1x1x128xf32, #tpu.memory_space<vmem>>, %arg7: memref<1x128x256xbf16, #tpu.memory_space<vmem>>, %arg8: memref<1x1x256xf32, #tpu.memory_space<vmem>>, %arg9: memref<1x256x128xbf16, #tpu.memory_space<vmem>>, %arg10: memref<1x1x128xf32, #tpu.memory_space<vmem>>, %arg11: memref<1x1x128xf32, #tpu.memory_space<vmem>>, %arg12: memref<1x1x128xf32, #tpu.memory_space<vmem>>, %arg13: memref<1x1x128xf32, #tpu.memory_space<vmem>>, %arg14: memref<1x1x128xf32, #tpu.memory_space<vmem>>, %arg15: memref<16x128xf32, #tpu.memory_space<vmem>>, %arg16: memref<16x128xf32, #tpu.memory_space<vmem>>, %arg17: memref<16x128xf32, #tpu.memory_space<vmem>>) attributes {dimension_semantics = [#tpu.dimension_semantics<parallel>, #tpu.dimension_semantics<arbitrary>], iteration_bounds = array<i64: 4, 2>, scalar_prefetch = 0 : i64, scratch_operands = 2 : i64, tpu.core_type = #tpu.core_type<tc>, window_params = [{transform_indices = @transform_0, window_bounds = array<i64: 16, 128>}, {transform_indices = @transform_1, window_bounds = array<i64: 1, 128, 384>}, {transform_indices = @transform_2, window_bounds = array<i64: 1, 1, 384>}, {transform_indices = @transform_3, window_bounds = array<i64: 1, 128, 128>}, {transform_indices = @transform_4, window_bounds = array<i64: 1, 1, 128>}, {transform_indices = @transform_5, window_bounds = array<i64: 1, 128, 256>}, {transform_indices = @transform_6, window_bounds = array<i64: 1, 1, 256>}, {transform_indices = @transform_7, window_bounds = array<i64: 1, 256, 128>}, {transform_indices = @transform_8, window_bounds = array<i64: 1, 1, 128>}, {transform_indices = @transform_9, window_bounds = array<i64: 1, 1, 128>}, {transform_indices = @transform_10, window_bounds = array<i64: 1, 1, 128>}, {transform_indices = @transform_11, window_bounds = array<i64: 1, 1, 128>}, {transform_indices = @transform_12, window_bounds = array<i64: 1, 1, 128>}, {transform_indices = @transform_13, window_bounds = array<i64: 16, 128>}]} {
    %c0_i32 = arith.constant 0 : i32
    %0 = arith.cmpi eq, %arg1, %c0_i32 : i32
    %1 = arith.extui %0 : i1 to i32
    %c0_i32_0 = arith.constant 0 : i32
    %2 = arith.cmpi ne, %1, %c0_i32_0 : i32
    scf.if %2 {
      %c0_82 = arith.constant 0 : index
      %c0_83 = arith.constant 0 : index
      %179 = vector.load %arg2[%c0_82, %c0_83] : memref<16x128xf32, #tpu.memory_space<vmem>>, vector<16x128xf32>
      %c0_84 = arith.constant 0 : index
      %c0_85 = arith.constant 0 : index
      %180 = vector.load %arg16[%c0_84, %c0_85] : memref<16x128xf32, #tpu.memory_space<vmem>>, vector<16x128xf32>
      tpu.vector_store %arg16[%c0_84, %c0_85], %179 {strides = array<i32>} : memref<16x128xf32, #tpu.memory_space<vmem>>, vector<16x128xf32>,
    } else {
    }
    %c0 = arith.constant 0 : index
    %c0_1 = arith.constant 0 : index
    %3 = vector.load %arg16[%c0, %c0_1] : memref<16x128xf32, #tpu.memory_space<vmem>>, vector<16x128xf32>
    %4 = arith.truncf %3 : vector<16x128xf32> to vector<16x128xbf16>
    %c0_2 = arith.constant 0 : index
    %c0_3 = arith.constant 0 : index
    %c0_4 = arith.constant 0 : index
    %5 = vector.load %arg3[%c0_2, %c0_3, %c0_4] : memref<1x128x384xbf16, #tpu.memory_space<vmem>>, vector<1x128x384xbf16>
    %6 = vector.shape_cast %5 : vector<1x128x384xbf16> to vector<128x384xbf16>
    %cst = arith.constant dense<0.000000e+00> : vector<16x384xf32>
    %7 = tpu.matmul %4, %6, %cst {dimension_numbers = #tpu.dot_dimension_numbers<[1], [0], [0], [1], [0, 0, 1, 1], [], []>} : vector<16x128xbf16>, vector<128x384xbf16>, vector<16x384xf32> -> vector<16x384xf32>
    %c0_5 = arith.constant 0 : index
    %c0_6 = arith.constant 0 : index
    %c0_7 = arith.constant 0 : index
    %8 = vector.load %arg4[%c0_5, %c0_6, %c0_7] : memref<1x1x384xf32, #tpu.memory_space<vmem>>, vector<1x1x384xf32>
    %9 = vector.shape_cast %8 : vector<1x1x384xf32> to vector<1x384xf32>
    %10 = vector.broadcast %9 : vector<1x384xf32> to vector<16x384xf32>
    %11 = arith.addf %7, %10 : vector<16x384xf32>
    %12 = vector.extract_strided_slice %11 {offsets = [0, 0], sizes = [16, 128], strides = [1, 1]} : vector<16x384xf32> to vector<16x128xf32>
    %13 = vector.extract_strided_slice %11 {offsets = [0, 128], sizes = [16, 128], strides = [1, 1]} : vector<16x384xf32> to vector<16x128xf32>
    %14 = vector.extract_strided_slice %11 {offsets = [0, 256], sizes = [16, 128], strides = [1, 1]} : vector<16x384xf32> to vector<16x128xf32>
    %15 = arith.truncf %12 : vector<16x128xf32> to vector<16x128xbf16>
    %16 = arith.truncf %13 : vector<16x128xf32> to vector<16x128xbf16>
    %17 = arith.truncf %14 : vector<16x128xf32> to vector<16x128xbf16>
    %18 = vector.extract_strided_slice %15 {offsets = [0, 0], sizes = [16, 32], strides = [1, 1]} : vector<16x128xbf16> to vector<16x32xbf16>
    %19 = vector.extract_strided_slice %16 {offsets = [0, 0], sizes = [16, 32], strides = [1, 1]} : vector<16x128xbf16> to vector<16x32xbf16>
    %20 = vector.extract_strided_slice %17 {offsets = [0, 0], sizes = [16, 32], strides = [1, 1]} : vector<16x128xbf16> to vector<16x32xbf16>
    %cst_8 = arith.constant dense<0.000000e+00> : vector<16x16xf32>
    %21 = tpu.matmul %18, %19, %cst_8 {dimension_numbers = #tpu.dot_dimension_numbers<[1], [1], [0], [0], [0, 0, 1, 0], [], []>} : vector<16x32xbf16>, vector<16x32xbf16>, vector<16x16xf32> -> vector<16x16xf32>
    %cst_9 = arith.constant 0.176776692 : f32
    %22 = vector.broadcast %cst_9 : f32 to vector<16x16xf32>
    %23 = arith.mulf %21, %22 : vector<16x16xf32>
    %cst_10 = arith.constant dense<0xFF800000> : vector<16xf32>
    %24 = vector.multi_reduction <maximumf>, %23, %cst_10 [1] : vector<16x16xf32> to vector<16xf32>
    %25 = vector.shape_cast %24 : vector<16xf32> to vector<16x1xf32>
    %26 = vector.broadcast %25 : vector<16x1xf32> to vector<16x16xf32>
    %27 = arith.subf %23, %26 : vector<16x16xf32>
    %28 = math.exp %27 : vector<16x16xf32>
    %cst_11 = arith.constant dense<0.000000e+00> : vector<16xf32>
    %29 = vector.multi_reduction <add>, %28, %cst_11 [1] : vector<16x16xf32> to vector<16xf32>
    %30 = vector.shape_cast %29 : vector<16xf32> to vector<16x1xf32>
    %31 = tpu.reciprocal %30 {approx = true} : vector<16x1xf32> -> vector<16x1xf32>
    %32 = vector.broadcast %31 : vector<16x1xf32> to vector<16x16xf32>
    %33 = arith.mulf %28, %32 : vector<16x16xf32>
    %34 = arith.truncf %33 : vector<16x16xf32> to vector<16x16xbf16>
    %cst_12 = arith.constant dense<0.000000e+00> : vector<16x32xf32>
    %35 = tpu.matmul %34, %20, %cst_12 {dimension_numbers = #tpu.dot_dimension_numbers<[1], [0], [0], [1], [0, 0, 1, 1], [], []>} : vector<16x16xbf16>, vector<16x32xbf16>, vector<16x32xf32> -> vector<16x32xf32>
    %c0_13 = arith.constant 0 : index
    %c0_14 = arith.constant 0 : index
    %36 = vector.load %arg17[%c0_13, %c0_14] : memref<16x128xf32, #tpu.memory_space<vmem>>, vector<16x32xf32>
    tpu.vector_store %arg17[%c0_13, %c0_14], %35 {strides = array<i32>} : memref<16x128xf32, #tpu.memory_space<vmem>>, vector<16x32xf32>,
    %37 = vector.extract_strided_slice %15 {offsets = [0, 32], sizes = [16, 32], strides = [1, 1]} : vector<16x128xbf16> to vector<16x32xbf16>
    %38 = vector.extract_strided_slice %16 {offsets = [0, 32], sizes = [16, 32], strides = [1, 1]} : vector<16x128xbf16> to vector<16x32xbf16>
    %39 = vector.extract_strided_slice %17 {offsets = [0, 32], sizes = [16, 32], strides = [1, 1]} : vector<16x128xbf16> to vector<16x32xbf16>
    %cst_15 = arith.constant dense<0.000000e+00> : vector<16x16xf32>
    %40 = tpu.matmul %37, %38, %cst_15 {dimension_numbers = #tpu.dot_dimension_numbers<[1], [1], [0], [0], [0, 0, 1, 0], [], []>} : vector<16x32xbf16>, vector<16x32xbf16>, vector<16x16xf32> -> vector<16x16xf32>
    %cst_16 = arith.constant 0.176776692 : f32
    %41 = vector.broadcast %cst_16 : f32 to vector<16x16xf32>
    %42 = arith.mulf %40, %41 : vector<16x16xf32>
    %cst_17 = arith.constant dense<0xFF800000> : vector<16xf32>
    %43 = vector.multi_reduction <maximumf>, %42, %cst_17 [1] : vector<16x16xf32> to vector<16xf32>
    %44 = vector.shape_cast %43 : vector<16xf32> to vector<16x1xf32>
    %45 = vector.broadcast %44 : vector<16x1xf32> to vector<16x16xf32>
    %46 = arith.subf %42, %45 : vector<16x16xf32>
    %47 = math.exp %46 : vector<16x16xf32>
    %cst_18 = arith.constant dense<0.000000e+00> : vector<16xf32>
    %48 = vector.multi_reduction <add>, %47, %cst_18 [1] : vector<16x16xf32> to vector<16xf32>
    %49 = vector.shape_cast %48 : vector<16xf32> to vector<16x1xf32>
    %50 = tpu.reciprocal %49 {approx = true} : vector<16x1xf32> -> vector<16x1xf32>
    %51 = vector.broadcast %50 : vector<16x1xf32> to vector<16x16xf32>
    %52 = arith.mulf %47, %51 : vector<16x16xf32>
    %53 = arith.truncf %52 : vector<16x16xf32> to vector<16x16xbf16>
    %cst_19 = arith.constant dense<0.000000e+00> : vector<16x32xf32>
    %54 = tpu.matmul %53, %39, %cst_19 {dimension_numbers = #tpu.dot_dimension_numbers<[1], [0], [0], [1], [0, 0, 1, 1], [], []>} : vector<16x16xbf16>, vector<16x32xbf16>, vector<16x32xf32> -> vector<16x32xf32>
    %c0_20 = arith.constant 0 : index
    %c32 = arith.constant 32 : index
    %55 = vector.load %arg17[%c0_20, %c32] : memref<16x128xf32, #tpu.memory_space<vmem>>, vector<16x32xf32>
    tpu.vector_store %arg17[%c0_20, %c32], %54 {strides = array<i32>} : memref<16x128xf32, #tpu.memory_space<vmem>>, vector<16x32xf32>,
    %56 = vector.extract_strided_slice %15 {offsets = [0, 64], sizes = [16, 32], strides = [1, 1]} : vector<16x128xbf16> to vector<16x32xbf16>
    %57 = vector.extract_strided_slice %16 {offsets = [0, 64], sizes = [16, 32], strides = [1, 1]} : vector<16x128xbf16> to vector<16x32xbf16>
    %58 = vector.extract_strided_slice %17 {offsets = [0, 64], sizes = [16, 32], strides = [1, 1]} : vector<16x128xbf16> to vector<16x32xbf16>
    %cst_21 = arith.constant dense<0.000000e+00> : vector<16x16xf32>
    %59 = tpu.matmul %56, %57, %cst_21 {dimension_numbers = #tpu.dot_dimension_numbers<[1], [1], [0], [0], [0, 0, 1, 0], [], []>} : vector<16x32xbf16>, vector<16x32xbf16>, vector<16x16xf32> -> vector<16x16xf32>
    %cst_22 = arith.constant 0.176776692 : f32
    %60 = vector.broadcast %cst_22 : f32 to vector<16x16xf32>
    %61 = arith.mulf %59, %60 : vector<16x16xf32>
    %cst_23 = arith.constant dense<0xFF800000> : vector<16xf32>
    %62 = vector.multi_reduction <maximumf>, %61, %cst_23 [1] : vector<16x16xf32> to vector<16xf32>
    %63 = vector.shape_cast %62 : vector<16xf32> to vector<16x1xf32>
    %64 = vector.broadcast %63 : vector<16x1xf32> to vector<16x16xf32>
    %65 = arith.subf %61, %64 : vector<16x16xf32>
    %66 = math.exp %65 : vector<16x16xf32>
    %cst_24 = arith.constant dense<0.000000e+00> : vector<16xf32>
    %67 = vector.multi_reduction <add>, %66, %cst_24 [1] : vector<16x16xf32> to vector<16xf32>
    %68 = vector.shape_cast %67 : vector<16xf32> to vector<16x1xf32>
    %69 = tpu.reciprocal %68 {approx = true} : vector<16x1xf32> -> vector<16x1xf32>
    %70 = vector.broadcast %69 : vector<16x1xf32> to vector<16x16xf32>
    %71 = arith.mulf %66, %70 : vector<16x16xf32>
    %72 = arith.truncf %71 : vector<16x16xf32> to vector<16x16xbf16>
    %cst_25 = arith.constant dense<0.000000e+00> : vector<16x32xf32>
    %73 = tpu.matmul %72, %58, %cst_25 {dimension_numbers = #tpu.dot_dimension_numbers<[1], [0], [0], [1], [0, 0, 1, 1], [], []>} : vector<16x16xbf16>, vector<16x32xbf16>, vector<16x32xf32> -> vector<16x32xf32>
    %c0_26 = arith.constant 0 : index
    %c64 = arith.constant 64 : index
    %74 = vector.load %arg17[%c0_26, %c64] : memref<16x128xf32, #tpu.memory_space<vmem>>, vector<16x32xf32>
    tpu.vector_store %arg17[%c0_26, %c64], %73 {strides = array<i32>} : memref<16x128xf32, #tpu.memory_space<vmem>>, vector<16x32xf32>,
    %75 = vector.extract_strided_slice %15 {offsets = [0, 96], sizes = [16, 32], strides = [1, 1]} : vector<16x128xbf16> to vector<16x32xbf16>
    %76 = vector.extract_strided_slice %16 {offsets = [0, 96], sizes = [16, 32], strides = [1, 1]} : vector<16x128xbf16> to vector<16x32xbf16>
    %77 = vector.extract_strided_slice %17 {offsets = [0, 96], sizes = [16, 32], strides = [1, 1]} : vector<16x128xbf16> to vector<16x32xbf16>
    %cst_27 = arith.constant dense<0.000000e+00> : vector<16x16xf32>
    %78 = tpu.matmul %75, %76, %cst_27 {dimension_numbers = #tpu.dot_dimension_numbers<[1], [1], [0], [0], [0, 0, 1, 0], [], []>} : vector<16x32xbf16>, vector<16x32xbf16>, vector<16x16xf32> -> vector<16x16xf32>
    %cst_28 = arith.constant 0.176776692 : f32
    %79 = vector.broadcast %cst_28 : f32 to vector<16x16xf32>
    %80 = arith.mulf %78, %79 : vector<16x16xf32>
    %cst_29 = arith.constant dense<0xFF800000> : vector<16xf32>
    %81 = vector.multi_reduction <maximumf>, %80, %cst_29 [1] : vector<16x16xf32> to vector<16xf32>
    %82 = vector.shape_cast %81 : vector<16xf32> to vector<16x1xf32>
    %83 = vector.broadcast %82 : vector<16x1xf32> to vector<16x16xf32>
    %84 = arith.subf %80, %83 : vector<16x16xf32>
    %85 = math.exp %84 : vector<16x16xf32>
    %cst_30 = arith.constant dense<0.000000e+00> : vector<16xf32>
    %86 = vector.multi_reduction <add>, %85, %cst_30 [1] : vector<16x16xf32> to vector<16xf32>
    %87 = vector.shape_cast %86 : vector<16xf32> to vector<16x1xf32>
    %88 = tpu.reciprocal %87 {approx = true} : vector<16x1xf32> -> vector<16x1xf32>
    %89 = vector.broadcast %88 : vector<16x1xf32> to vector<16x16xf32>
    %90 = arith.mulf %85, %89 : vector<16x16xf32>
    %91 = arith.truncf %90 : vector<16x16xf32> to vector<16x16xbf16>
    %cst_31 = arith.constant dense<0.000000e+00> : vector<16x32xf32>
    %92 = tpu.matmul %91, %77, %cst_31 {dimension_numbers = #tpu.dot_dimension_numbers<[1], [0], [0], [1], [0, 0, 1, 1], [], []>} : vector<16x16xbf16>, vector<16x32xbf16>, vector<16x32xf32> -> vector<16x32xf32>
    %c0_32 = arith.constant 0 : index
    %c96 = arith.constant 96 : index
    %93 = vector.load %arg17[%c0_32, %c96] : memref<16x128xf32, #tpu.memory_space<vmem>>, vector<16x32xf32>
    tpu.vector_store %arg17[%c0_32, %c96], %92 {strides = array<i32>} : memref<16x128xf32, #tpu.memory_space<vmem>>, vector<16x32xf32>,
    %c0_33 = arith.constant 0 : index
    %c0_34 = arith.constant 0 : index
    %94 = vector.load %arg17[%c0_33, %c0_34] : memref<16x128xf32, #tpu.memory_space<vmem>>, vector<16x128xf32>
    %95 = arith.truncf %94 : vector<16x128xf32> to vector<16x128xbf16>
    %c0_35 = arith.constant 0 : index
    %c0_36 = arith.constant 0 : index
    %c0_37 = arith.constant 0 : index
    %96 = vector.load %arg5[%c0_35, %c0_36, %c0_37] : memref<1x128x128xbf16, #tpu.memory_space<vmem>>, vector<1x128x128xbf16>
    %97 = vector.shape_cast %96 : vector<1x128x128xbf16> to vector<128x128xbf16>
    %cst_38 = arith.constant dense<0.000000e+00> : vector<16x128xf32>
    %98 = tpu.matmul %95, %97, %cst_38 {dimension_numbers = #tpu.dot_dimension_numbers<[1], [0], [0], [1], [0, 0, 1, 1], [], []>} : vector<16x128xbf16>, vector<128x128xbf16>, vector<16x128xf32> -> vector<16x128xf32>
    %c0_39 = arith.constant 0 : index
    %c0_40 = arith.constant 0 : index
    %c0_41 = arith.constant 0 : index
    %99 = vector.load %arg6[%c0_39, %c0_40, %c0_41] : memref<1x1x128xf32, #tpu.memory_space<vmem>>, vector<1x1x128xf32>
    %100 = vector.shape_cast %99 : vector<1x1x128xf32> to vector<1x128xf32>
    %101 = vector.broadcast %100 : vector<1x128xf32> to vector<16x128xf32>
    %102 = arith.addf %98, %101 : vector<16x128xf32>
    %103 = arith.addf %3, %102 : vector<16x128xf32>
    %c0_42 = arith.constant 0 : index
    %c0_43 = arith.constant 0 : index
    %c0_44 = arith.constant 0 : index
    %104 = vector.load %arg11[%c0_42, %c0_43, %c0_44] : memref<1x1x128xf32, #tpu.memory_space<vmem>>, vector<1x1x128xf32>
    %105 = vector.shape_cast %104 : vector<1x1x128xf32> to vector<1x128xf32>
    %c0_45 = arith.constant 0 : index
    %c0_46 = arith.constant 0 : index
    %c0_47 = arith.constant 0 : index
    %106 = vector.load %arg12[%c0_45, %c0_46, %c0_47] : memref<1x1x128xf32, #tpu.memory_space<vmem>>, vector<1x1x128xf32>
    %107 = vector.shape_cast %106 : vector<1x1x128xf32> to vector<1x128xf32>
    %cst_48 = arith.constant dense<0.000000e+00> : vector<16xf32>
    %108 = vector.multi_reduction <add>, %103, %cst_48 [1] : vector<16x128xf32> to vector<16xf32>
    %109 = vector.shape_cast %108 : vector<16xf32> to vector<16x1xf32>
    %cst_49 = arith.constant 1.280000e+02 : f32
    %110 = vector.broadcast %cst_49 : f32 to vector<16x1xf32>
    %111 = arith.divf %109, %110 : vector<16x1xf32>
    %112 = vector.broadcast %111 : vector<16x1xf32> to vector<16x128xf32>
    %113 = arith.subf %103, %112 : vector<16x128xf32>
    %114 = arith.mulf %113, %113 : vector<16x128xf32>
    %cst_50 = arith.constant dense<0.000000e+00> : vector<16xf32>
    %115 = vector.multi_reduction <add>, %114, %cst_50 [1] : vector<16x128xf32> to vector<16xf32>
    %116 = vector.shape_cast %115 : vector<16xf32> to vector<16x1xf32>
    %cst_51 = arith.constant 1.280000e+02 : f32
    %117 = vector.broadcast %cst_51 : f32 to vector<16x1xf32>
    %118 = arith.divf %116, %117 : vector<16x1xf32>
    %119 = vector.broadcast %111 : vector<16x1xf32> to vector<16x128xf32>
    %120 = arith.subf %103, %119 : vector<16x128xf32>
    %cst_52 = arith.constant 9.99999974E-6 : f32
    %121 = vector.broadcast %cst_52 : f32 to vector<16x1xf32>
    %122 = arith.addf %118, %121 : vector<16x1xf32>
    %123 = math.rsqrt %122 : vector<16x1xf32>
    %124 = vector.broadcast %123 : vector<16x1xf32> to vector<16x128xf32>
    %125 = arith.mulf %120, %124 : vector<16x128xf32>
    %126 = vector.broadcast %105 : vector<1x128xf32> to vector<16x128xf32>
    %127 = arith.mulf %125, %126 : vector<16x128xf32>
    %128 = vector.broadcast %107 : vector<1x128xf32> to vector<16x128xf32>
    %129 = arith.addf %127, %128 : vector<16x128xf32>
    %130 = arith.truncf %129 : vector<16x128xf32> to vector<16x128xbf16>
    %c0_53 = arith.constant 0 : index
    %c0_54 = arith.constant 0 : index
    %c0_55 = arith.constant 0 : index
    %131 = vector.load %arg7[%c0_53, %c0_54, %c0_55] : memref<1x128x256xbf16, #tpu.memory_space<vmem>>, vector<1x128x256xbf16>
    %132 = vector.shape_cast %131 : vector<1x128x256xbf16> to vector<128x256xbf16>
    %cst_56 = arith.constant dense<0.000000e+00> : vector<16x256xf32>
    %133 = tpu.matmul %130, %132, %cst_56 {dimension_numbers = #tpu.dot_dimension_numbers<[1], [0], [0], [1], [0, 0, 1, 1], [], []>} : vector<16x128xbf16>, vector<128x256xbf16>, vector<16x256xf32> -> vector<16x256xf32>
    %c0_57 = arith.constant 0 : index
    %c0_58 = arith.constant 0 : index
    %c0_59 = arith.constant 0 : index
    %134 = vector.load %arg8[%c0_57, %c0_58, %c0_59] : memref<1x1x256xf32, #tpu.memory_space<vmem>>, vector<1x1x256xf32>
    %135 = vector.shape_cast %134 : vector<1x1x256xf32> to vector<1x256xf32>
    %136 = vector.broadcast %135 : vector<1x256xf32> to vector<16x256xf32>
    %137 = arith.addf %133, %136 : vector<16x256xf32>
    %cst_60 = arith.constant 0.000000e+00 : f32
    %138 = vector.broadcast %cst_60 : f32 to vector<16x256xf32>
    %139 = arith.maximumf %137, %138 : vector<16x256xf32>
    %140 = arith.truncf %139 : vector<16x256xf32> to vector<16x256xbf16>
    %c0_61 = arith.constant 0 : index
    %c0_62 = arith.constant 0 : index
    %c0_63 = arith.constant 0 : index
    %141 = vector.load %arg9[%c0_61, %c0_62, %c0_63] : memref<1x256x128xbf16, #tpu.memory_space<vmem>>, vector<1x256x128xbf16>
    %142 = vector.shape_cast %141 : vector<1x256x128xbf16> to vector<256x128xbf16>
    %cst_64 = arith.constant dense<0.000000e+00> : vector<16x128xf32>
    %143 = tpu.matmul %140, %142, %cst_64 {dimension_numbers = #tpu.dot_dimension_numbers<[1], [0], [0], [1], [0, 0, 1, 1], [], []>} : vector<16x256xbf16>, vector<256x128xbf16>, vector<16x128xf32> -> vector<16x128xf32>
    %c0_65 = arith.constant 0 : index
    %c0_66 = arith.constant 0 : index
    %c0_67 = arith.constant 0 : index
    %144 = vector.load %arg10[%c0_65, %c0_66, %c0_67] : memref<1x1x128xf32, #tpu.memory_space<vmem>>, vector<1x1x128xf32>
    %145 = vector.shape_cast %144 : vector<1x1x128xf32> to vector<1x128xf32>
    %146 = vector.broadcast %145 : vector<1x128xf32> to vector<16x128xf32>
    %147 = arith.addf %143, %146 : vector<16x128xf32>
    %148 = arith.addf %129, %147 : vector<16x128xf32>
    %c0_68 = arith.constant 0 : index
    %c0_69 = arith.constant 0 : index
    %c0_70 = arith.constant 0 : index
    %149 = vector.load %arg13[%c0_68, %c0_69, %c0_70] : memref<1x1x128xf32, #tpu.memory_space<vmem>>, vector<1x1x128xf32>
    %150 = vector.shape_cast %149 : vector<1x1x128xf32> to vector<1x128xf32>
    %c0_71 = arith.constant 0 : index
    %c0_72 = arith.constant 0 : index
    %c0_73 = arith.constant 0 : index
    %151 = vector.load %arg14[%c0_71, %c0_72, %c0_73] : memref<1x1x128xf32, #tpu.memory_space<vmem>>, vector<1x1x128xf32>
    %152 = vector.shape_cast %151 : vector<1x1x128xf32> to vector<1x128xf32>
    %cst_74 = arith.constant dense<0.000000e+00> : vector<16xf32>
    %153 = vector.multi_reduction <add>, %148, %cst_74 [1] : vector<16x128xf32> to vector<16xf32>
    %154 = vector.shape_cast %153 : vector<16xf32> to vector<16x1xf32>
    %cst_75 = arith.constant 1.280000e+02 : f32
    %155 = vector.broadcast %cst_75 : f32 to vector<16x1xf32>
    %156 = arith.divf %154, %155 : vector<16x1xf32>
    %157 = vector.broadcast %156 : vector<16x1xf32> to vector<16x128xf32>
    %158 = arith.subf %148, %157 : vector<16x128xf32>
    %159 = arith.mulf %158, %158 : vector<16x128xf32>
    %cst_76 = arith.constant dense<0.000000e+00> : vector<16xf32>
    %160 = vector.multi_reduction <add>, %159, %cst_76 [1] : vector<16x128xf32> to vector<16xf32>
    %161 = vector.shape_cast %160 : vector<16xf32> to vector<16x1xf32>
    %cst_77 = arith.constant 1.280000e+02 : f32
    %162 = vector.broadcast %cst_77 : f32 to vector<16x1xf32>
    %163 = arith.divf %161, %162 : vector<16x1xf32>
    %164 = vector.broadcast %156 : vector<16x1xf32> to vector<16x128xf32>
    %165 = arith.subf %148, %164 : vector<16x128xf32>
    %cst_78 = arith.constant 9.99999974E-6 : f32
    %166 = vector.broadcast %cst_78 : f32 to vector<16x1xf32>
    %167 = arith.addf %163, %166 : vector<16x1xf32>
    %168 = math.rsqrt %167 : vector<16x1xf32>
    %169 = vector.broadcast %168 : vector<16x1xf32> to vector<16x128xf32>
    %170 = arith.mulf %165, %169 : vector<16x128xf32>
    %171 = vector.broadcast %150 : vector<1x128xf32> to vector<16x128xf32>
    %172 = arith.mulf %170, %171 : vector<16x128xf32>
    %173 = vector.broadcast %152 : vector<1x128xf32> to vector<16x128xf32>
    %174 = arith.addf %172, %173 : vector<16x128xf32>
    %c0_79 = arith.constant 0 : index
    %c0_80 = arith.constant 0 : index
    %175 = vector.load %arg16[%c0_79, %c0_80] : memref<16x128xf32, #tpu.memory_space<vmem>>, vector<16x128xf32>
    tpu.vector_store %arg16[%c0_79, %c0_80], %174 {strides = array<i32>} : memref<16x128xf32, #tpu.memory_space<vmem>>, vector<16x128xf32>,
    %c1_i32 = arith.constant 1 : i32
    %176 = arith.cmpi eq, %arg1, %c1_i32 : i32
    %177 = arith.extui %176 : i1 to i32
    %c0_i32_81 = arith.constant 0 : i32
    %178 = arith.cmpi ne, %177, %c0_i32_81 : i32
    scf.if %178 {
      %c0_82 = arith.constant 0 : index
      %c0_83 = arith.constant 0 : index
      %179 = vector.load %arg15[%c0_82, %c0_83] : memref<16x128xf32, #tpu.memory_space<vmem>>, vector<16x128xf32>
      tpu.vector_store %arg15[%c0_82, %c0_83], %174 {strides = array<i32>} : memref<16x128xf32, #tpu.memory_space<vmem>>, vector<16x128xf32>,
    } else {
    }
    return
  }
  func.func @transform_0(%arg0: i32, %arg1: i32) -> (i32, i32) {
    %c0_i32 = arith.constant 0 : i32
    %c0_i32_0 = arith.constant 0 : i32
    return %arg0, %c0_i32 : i32, i32
  }
  func.func @transform_1(%arg0: i32, %arg1: i32) -> (i32, i32, i32) {
    %c0_i32 = arith.constant 0 : i32
    %c0_i32_0 = arith.constant 0 : i32
    %c0_i32_1 = arith.constant 0 : i32
    return %arg1, %c0_i32, %c0_i32_0 : i32, i32, i32
  }
  func.func @transform_2(%arg0: i32, %arg1: i32) -> (i32, i32, i32) {
    %c0_i32 = arith.constant 0 : i32
    %c0_i32_0 = arith.constant 0 : i32
    %c0_i32_1 = arith.constant 0 : i32
    return %arg1, %c0_i32, %c0_i32_0 : i32, i32, i32
  }
  func.func @transform_3(%arg0: i32, %arg1: i32) -> (i32, i32, i32) {
    %c0_i32 = arith.constant 0 : i32
    %c0_i32_0 = arith.constant 0 : i32
    %c0_i32_1 = arith.constant 0 : i32
    return %arg1, %c0_i32, %c0_i32_0 : i32, i32, i32
  }
  func.func @transform_4(%arg0: i32, %arg1: i32) -> (i32, i32, i32) {
    %c0_i32 = arith.constant 0 : i32
    %c0_i32_0 = arith.constant 0 : i32
    %c0_i32_1 = arith.constant 0 : i32
    return %arg1, %c0_i32, %c0_i32_0 : i32, i32, i32
  }
  func.func @transform_5(%arg0: i32, %arg1: i32) -> (i32, i32, i32) {
    %c0_i32 = arith.constant 0 : i32
    %c0_i32_0 = arith.constant 0 : i32
    %c0_i32_1 = arith.constant 0 : i32
    return %arg1, %c0_i32, %c0_i32_0 : i32, i32, i32
  }
  func.func @transform_6(%arg0: i32, %arg1: i32) -> (i32, i32, i32) {
    %c0_i32 = arith.constant 0 : i32
    %c0_i32_0 = arith.constant 0 : i32
    %c0_i32_1 = arith.constant 0 : i32
    return %arg1, %c0_i32, %c0_i32_0 : i32, i32, i32
  }
  func.func @transform_7(%arg0: i32, %arg1: i32) -> (i32, i32, i32) {
    %c0_i32 = arith.constant 0 : i32
    %c0_i32_0 = arith.constant 0 : i32
    %c0_i32_1 = arith.constant 0 : i32
    return %arg1, %c0_i32, %c0_i32_0 : i32, i32, i32
  }
  func.func @transform_8(%arg0: i32, %arg1: i32) -> (i32, i32, i32) {
    %c0_i32 = arith.constant 0 : i32
    %c0_i32_0 = arith.constant 0 : i32
    %c0_i32_1 = arith.constant 0 : i32
    return %arg1, %c0_i32, %c0_i32_0 : i32, i32, i32
  }
  func.func @transform_9(%arg0: i32, %arg1: i32) -> (i32, i32, i32) {
    %c0_i32 = arith.constant 0 : i32
    %c0_i32_0 = arith.constant 0 : i32
    %c0_i32_1 = arith.constant 0 : i32
    return %arg1, %c0_i32, %c0_i32_0 : i32, i32, i32
  }
  func.func @transform_10(%arg0: i32, %arg1: i32) -> (i32, i32, i32) {
    %c0_i32 = arith.constant 0 : i32
    %c0_i32_0 = arith.constant 0 : i32
    %c0_i32_1 = arith.constant 0 : i32
    return %arg1, %c0_i32, %c0_i32_0 : i32, i32, i32
  }
  func.func @transform_11(%arg0: i32, %arg1: i32) -> (i32, i32, i32) {
    %c0_i32 = arith.constant 0 : i32
    %c0_i32_0 = arith.constant 0 : i32
    %c0_i32_1 = arith.constant 0 : i32
    return %arg1, %c0_i32, %c0_i32_0 : i32, i32, i32
  }
  func.func @transform_12(%arg0: i32, %arg1: i32) -> (i32, i32, i32) {
    %c0_i32 = arith.constant 0 : i32
    %c0_i32_0 = arith.constant 0 : i32
    %c0_i32_1 = arith.constant 0 : i32
    return %arg1, %c0_i32, %c0_i32_0 : i32, i32, i32
  }
  func.func @transform_13(%arg0: i32, %arg1: i32) -> (i32, i32) {
    %c0_i32 = arith.constant 0 : i32
    %c0_i32_0 = arith.constant 0 : i32
    return %arg0, %c0_i32 : i32, i32
  }
}

module attributes {stable_mosaic.version = 11 : i64} {
  func.func @_encoder_kernel(%arg0: i32, %arg1: i32, %arg2: memref<16x128xf32, #tpu.memory_space<vmem>>, %arg3: memref<1x128x384xbf16, #tpu.memory_space<vmem>>, %arg4: memref<1x1x384xf32, #tpu.memory_space<vmem>>, %arg5: memref<1x128x128xbf16, #tpu.memory_space<vmem>>, %arg6: memref<1x1x128xf32, #tpu.memory_space<vmem>>, %arg7: memref<1x128x256xbf16, #tpu.memory_space<vmem>>, %arg8: memref<1x1x256xf32, #tpu.memory_space<vmem>>, %arg9: memref<1x256x128xbf16, #tpu.memory_space<vmem>>, %arg10: memref<1x1x128xf32, #tpu.memory_space<vmem>>, %arg11: memref<1x1x128xf32, #tpu.memory_space<vmem>>, %arg12: memref<1x1x128xf32, #tpu.memory_space<vmem>>, %arg13: memref<1x1x128xf32, #tpu.memory_space<vmem>>, %arg14: memref<1x1x128xf32, #tpu.memory_space<vmem>>, %arg15: memref<16x128xf32, #tpu.memory_space<vmem>>, %arg16: memref<16x128xf32, #tpu.memory_space<vmem>>, %arg17: memref<16x128xf32, #tpu.memory_space<vmem>>) attributes {dimension_semantics = [#tpu.dimension_semantics<parallel>, #tpu.dimension_semantics<arbitrary>], iteration_bounds = array<i64: 4, 2>, scalar_prefetch = 0 : i64, scratch_operands = 2 : i64, tpu.core_type = #tpu.core_type<tc>, window_params = [{transform_indices = @transform_0, window_bounds = array<i64: 16, 128>}, {transform_indices = @transform_1, window_bounds = array<i64: 1, 128, 384>}, {transform_indices = @transform_2, window_bounds = array<i64: 1, 1, 384>}, {transform_indices = @transform_3, window_bounds = array<i64: 1, 128, 128>}, {transform_indices = @transform_4, window_bounds = array<i64: 1, 1, 128>}, {transform_indices = @transform_5, window_bounds = array<i64: 1, 128, 256>}, {transform_indices = @transform_6, window_bounds = array<i64: 1, 1, 256>}, {transform_indices = @transform_7, window_bounds = array<i64: 1, 256, 128>}, {transform_indices = @transform_8, window_bounds = array<i64: 1, 1, 128>}, {transform_indices = @transform_9, window_bounds = array<i64: 1, 1, 128>}, {transform_indices = @transform_10, window_bounds = array<i64: 1, 1, 128>}, {transform_indices = @transform_11, window_bounds = array<i64: 1, 1, 128>}, {transform_indices = @transform_12, window_bounds = array<i64: 1, 1, 128>}, {transform_indices = @transform_13, window_bounds = array<i64: 16, 128>}]} {
    %c0_i32 = arith.constant 0 : i32
    %0 = arith.cmpi eq, %arg1, %c0_i32 : i32
    %1 = arith.extui %0 : i1 to i32
    %c0_i32_0 = arith.constant 0 : i32
    %2 = arith.cmpi ne, %1, %c0_i32_0 : i32
    scf.if %2 {
      %c0_82 = arith.constant 0 : index
      %c0_83 = arith.constant 0 : index
      %179 = vector.load %arg2[%c0_82, %c0_83] : memref<16x128xf32, #tpu.memory_space<vmem>>, vector<16x128xf32>
      %c0_84 = arith.constant 0 : index
      %c0_85 = arith.constant 0 : index
      %180 = vector.load %arg16[%c0_84, %c0_85] : memref<16x128xf32, #tpu.memory_space<vmem>>, vector<16x128xf32>
      tpu.vector_store %arg16[%c0_84, %c0_85], %179 {strides = array<i32>} : memref<16x128xf32, #tpu.memory_space<vmem>>, vector<16x128xf32>,
    } else {
    }
    %c0 = arith.constant 0 : index
    %c0_1 = arith.constant 0 : index
    %3 = vector.load %arg16[%c0, %c0_1] : memref<16x128xf32, #tpu.memory_space<vmem>>, vector<16x128xf32>
    %4 = arith.truncf %3 : vector<16x128xf32> to vector<16x128xbf16>
    %c0_2 = arith.constant 0 : index
    %c0_3 = arith.constant 0 : index
    %c0_4 = arith.constant 0 : index
    %5 = vector.load %arg3[%c0_2, %c0_3, %c0_4] : memref<1x128x384xbf16, #tpu.memory_space<vmem>>, vector<1x128x384xbf16>
    %6 = vector.shape_cast %5 : vector<1x128x384xbf16> to vector<128x384xbf16>
    %cst = arith.constant dense<0.000000e+00> : vector<16x384xf32>
    %7 = tpu.matmul %4, %6, %cst {dimension_numbers = #tpu.dot_dimension_numbers<[1], [0], [0], [1], [0, 0, 1, 1], [], []>} : vector<16x128xbf16>, vector<128x384xbf16>, vector<16x384xf32> -> vector<16x384xf32>
    %c0_5 = arith.constant 0 : index
    %c0_6 = arith.constant 0 : index
    %c0_7 = arith.constant 0 : index
    %8 = vector.load %arg4[%c0_5, %c0_6, %c0_7] : memref<1x1x384xf32, #tpu.memory_space<vmem>>, vector<1x1x384xf32>
    %9 = vector.shape_cast %8 : vector<1x1x384xf32> to vector<1x384xf32>
    %10 = vector.broadcast %9 : vector<1x384xf32> to vector<16x384xf32>
    %11 = arith.addf %7, %10 : vector<16x384xf32>
    %12 = vector.extract_strided_slice %11 {offsets = [0, 0], sizes = [16, 128], strides = [1, 1]} : vector<16x384xf32> to vector<16x128xf32>
    %13 = vector.extract_strided_slice %11 {offsets = [0, 128], sizes = [16, 128], strides = [1, 1]} : vector<16x384xf32> to vector<16x128xf32>
    %14 = vector.extract_strided_slice %11 {offsets = [0, 256], sizes = [16, 128], strides = [1, 1]} : vector<16x384xf32> to vector<16x128xf32>
    %15 = arith.truncf %12 : vector<16x128xf32> to vector<16x128xbf16>
    %16 = arith.truncf %13 : vector<16x128xf32> to vector<16x128xbf16>
    %17 = arith.truncf %14 : vector<16x128xf32> to vector<16x128xbf16>
    %18 = vector.extract_strided_slice %15 {offsets = [0, 0], sizes = [16, 32], strides = [1, 1]} : vector<16x128xbf16> to vector<16x32xbf16>
    %19 = vector.extract_strided_slice %16 {offsets = [0, 0], sizes = [16, 32], strides = [1, 1]} : vector<16x128xbf16> to vector<16x32xbf16>
    %20 = vector.extract_strided_slice %17 {offsets = [0, 0], sizes = [16, 32], strides = [1, 1]} : vector<16x128xbf16> to vector<16x32xbf16>
    %cst_8 = arith.constant dense<0.000000e+00> : vector<16x16xf32>
    %21 = tpu.matmul %18, %19, %cst_8 {dimension_numbers = #tpu.dot_dimension_numbers<[1], [1], [0], [0], [0, 0, 1, 0], [], []>} : vector<16x32xbf16>, vector<16x32xbf16>, vector<16x16xf32> -> vector<16x16xf32>
    %cst_9 = arith.constant 0.176776692 : f32
    %22 = vector.broadcast %cst_9 : f32 to vector<16x16xf32>
    %23 = arith.mulf %21, %22 : vector<16x16xf32>
    %cst_10 = arith.constant dense<0xFF800000> : vector<16xf32>
    %24 = vector.multi_reduction <maximumf>, %23, %cst_10 [1] : vector<16x16xf32> to vector<16xf32>
    %25 = vector.shape_cast %24 : vector<16xf32> to vector<16x1xf32>
    %26 = vector.broadcast %25 : vector<16x1xf32> to vector<16x16xf32>
    %27 = arith.subf %23, %26 : vector<16x16xf32>
    %28 = math.exp %27 : vector<16x16xf32>
    %cst_11 = arith.constant dense<0.000000e+00> : vector<16xf32>
    %29 = vector.multi_reduction <add>, %28, %cst_11 [1] : vector<16x16xf32> to vector<16xf32>
    %30 = vector.shape_cast %29 : vector<16xf32> to vector<16x1xf32>
    %31 = tpu.reciprocal %30 {approx = true} : vector<16x1xf32> -> vector<16x1xf32>
    %32 = vector.broadcast %31 : vector<16x1xf32> to vector<16x16xf32>
    %33 = arith.mulf %28, %32 : vector<16x16xf32>
    %34 = arith.truncf %33 : vector<16x16xf32> to vector<16x16xbf16>
    %cst_12 = arith.constant dense<0.000000e+00> : vector<16x32xf32>
    %35 = tpu.matmul %34, %20, %cst_12 {dimension_numbers = #tpu.dot_dimension_numbers<[1], [0], [0], [1], [0, 0, 1, 1], [], []>} : vector<16x16xbf16>, vector<16x32xbf16>, vector<16x32xf32> -> vector<16x32xf32>
    %c0_13 = arith.constant 0 : index
    %c0_14 = arith.constant 0 : index
    %36 = vector.load %arg17[%c0_13, %c0_14] : memref<16x128xf32, #tpu.memory_space<vmem>>, vector<16x32xf32>
    tpu.vector_store %arg17[%c0_13, %c0_14], %35 {strides = array<i32>} : memref<16x128xf32, #tpu.memory_space<vmem>>, vector<16x32xf32>,
    %37 = vector.extract_strided_slice %15 {offsets = [0, 32], sizes = [16, 32], strides = [1, 1]} : vector<16x128xbf16> to vector<16x32xbf16>
    %38 = vector.extract_strided_slice %16 {offsets = [0, 32], sizes = [16, 32], strides = [1, 1]} : vector<16x128xbf16> to vector<16x32xbf16>
    %39 = vector.extract_strided_slice %17 {offsets = [0, 32], sizes = [16, 32], strides = [1, 1]} : vector<16x128xbf16> to vector<16x32xbf16>
    %cst_15 = arith.constant dense<0.000000e+00> : vector<16x16xf32>
    %40 = tpu.matmul %37, %38, %cst_15 {dimension_numbers = #tpu.dot_dimension_numbers<[1], [1], [0], [0], [0, 0, 1, 0], [], []>} : vector<16x32xbf16>, vector<16x32xbf16>, vector<16x16xf32> -> vector<16x16xf32>
    %cst_16 = arith.constant 0.176776692 : f32
    %41 = vector.broadcast %cst_16 : f32 to vector<16x16xf32>
    %42 = arith.mulf %40, %41 : vector<16x16xf32>
    %cst_17 = arith.constant dense<0xFF800000> : vector<16xf32>
    %43 = vector.multi_reduction <maximumf>, %42, %cst_17 [1] : vector<16x16xf32> to vector<16xf32>
    %44 = vector.shape_cast %43 : vector<16xf32> to vector<16x1xf32>
    %45 = vector.broadcast %44 : vector<16x1xf32> to vector<16x16xf32>
    %46 = arith.subf %42, %45 : vector<16x16xf32>
    %47 = math.exp %46 : vector<16x16xf32>
    %cst_18 = arith.constant dense<0.000000e+00> : vector<16xf32>
    %48 = vector.multi_reduction <add>, %47, %cst_18 [1] : vector<16x16xf32> to vector<16xf32>
    %49 = vector.shape_cast %48 : vector<16xf32> to vector<16x1xf32>
    %50 = tpu.reciprocal %49 {approx = true} : vector<16x1xf32> -> vector<16x1xf32>
    %51 = vector.broadcast %50 : vector<16x1xf32> to vector<16x16xf32>
    %52 = arith.mulf %47, %51 : vector<16x16xf32>
    %53 = arith.truncf %52 : vector<16x16xf32> to vector<16x16xbf16>
    %cst_19 = arith.constant dense<0.000000e+00> : vector<16x32xf32>
    %54 = tpu.matmul %53, %39, %cst_19 {dimension_numbers = #tpu.dot_dimension_numbers<[1], [0], [0], [1], [0, 0, 1, 1], [], []>} : vector<16x16xbf16>, vector<16x32xbf16>, vector<16x32xf32> -> vector<16x32xf32>
    %c0_20 = arith.constant 0 : index
    %c32 = arith.constant 32 : index
    %55 = vector.load %arg17[%c0_20, %c32] : memref<16x128xf32, #tpu.memory_space<vmem>>, vector<16x32xf32>
    tpu.vector_store %arg17[%c0_20, %c32], %54 {strides = array<i32>} : memref<16x128xf32, #tpu.memory_space<vmem>>, vector<16x32xf32>,
    %56 = vector.extract_strided_slice %15 {offsets = [0, 64], sizes = [16, 32], strides = [1, 1]} : vector<16x128xbf16> to vector<16x32xbf16>
    %57 = vector.extract_strided_slice %16 {offsets = [0, 64], sizes = [16, 32], strides = [1, 1]} : vector<16x128xbf16> to vector<16x32xbf16>
    %58 = vector.extract_strided_slice %17 {offsets = [0, 64], sizes = [16, 32], strides = [1, 1]} : vector<16x128xbf16> to vector<16x32xbf16>
    %cst_21 = arith.constant dense<0.000000e+00> : vector<16x16xf32>
    %59 = tpu.matmul %56, %57, %cst_21 {dimension_numbers = #tpu.dot_dimension_numbers<[1], [1], [0], [0], [0, 0, 1, 0], [], []>} : vector<16x32xbf16>, vector<16x32xbf16>, vector<16x16xf32> -> vector<16x16xf32>
    %cst_22 = arith.constant 0.176776692 : f32
    %60 = vector.broadcast %cst_22 : f32 to vector<16x16xf32>
    %61 = arith.mulf %59, %60 : vector<16x16xf32>
    %cst_23 = arith.constant dense<0xFF800000> : vector<16xf32>
    %62 = vector.multi_reduction <maximumf>, %61, %cst_23 [1] : vector<16x16xf32> to vector<16xf32>
    %63 = vector.shape_cast %62 : vector<16xf32> to vector<16x1xf32>
    %64 = vector.broadcast %63 : vector<16x1xf32> to vector<16x16xf32>
    %65 = arith.subf %61, %64 : vector<16x16xf32>
    %66 = math.exp %65 : vector<16x16xf32>
    %cst_24 = arith.constant dense<0.000000e+00> : vector<16xf32>
    %67 = vector.multi_reduction <add>, %66, %cst_24 [1] : vector<16x16xf32> to vector<16xf32>
    %68 = vector.shape_cast %67 : vector<16xf32> to vector<16x1xf32>
    %69 = tpu.reciprocal %68 {approx = true} : vector<16x1xf32> -> vector<16x1xf32>
    %70 = vector.broadcast %69 : vector<16x1xf32> to vector<16x16xf32>
    %71 = arith.mulf %66, %70 : vector<16x16xf32>
    %72 = arith.truncf %71 : vector<16x16xf32> to vector<16x16xbf16>
    %cst_25 = arith.constant dense<0.000000e+00> : vector<16x32xf32>
    %73 = tpu.matmul %72, %58, %cst_25 {dimension_numbers = #tpu.dot_dimension_numbers<[1], [0], [0], [1], [0, 0, 1, 1], [], []>} : vector<16x16xbf16>, vector<16x32xbf16>, vector<16x32xf32> -> vector<16x32xf32>
    %c0_26 = arith.constant 0 : index
    %c64 = arith.constant 64 : index
    %74 = vector.load %arg17[%c0_26, %c64] : memref<16x128xf32, #tpu.memory_space<vmem>>, vector<16x32xf32>
    tpu.vector_store %arg17[%c0_26, %c64], %73 {strides = array<i32>} : memref<16x128xf32, #tpu.memory_space<vmem>>, vector<16x32xf32>,
    %75 = vector.extract_strided_slice %15 {offsets = [0, 96], sizes = [16, 32], strides = [1, 1]} : vector<16x128xbf16> to vector<16x32xbf16>
    %76 = vector.extract_strided_slice %16 {offsets = [0, 96], sizes = [16, 32], strides = [1, 1]} : vector<16x128xbf16> to vector<16x32xbf16>
    %77 = vector.extract_strided_slice %17 {offsets = [0, 96], sizes = [16, 32], strides = [1, 1]} : vector<16x128xbf16> to vector<16x32xbf16>
    %cst_27 = arith.constant dense<0.000000e+00> : vector<16x16xf32>
    %78 = tpu.matmul %75, %76, %cst_27 {dimension_numbers = #tpu.dot_dimension_numbers<[1], [1], [0], [0], [0, 0, 1, 0], [], []>} : vector<16x32xbf16>, vector<16x32xbf16>, vector<16x16xf32> -> vector<16x16xf32>
    %cst_28 = arith.constant 0.176776692 : f32
    %79 = vector.broadcast %cst_28 : f32 to vector<16x16xf32>
    %80 = arith.mulf %78, %79 : vector<16x16xf32>
    %cst_29 = arith.constant dense<0xFF800000> : vector<16xf32>
    %81 = vector.multi_reduction <maximumf>, %80, %cst_29 [1] : vector<16x16xf32> to vector<16xf32>
    %82 = vector.shape_cast %81 : vector<16xf32> to vector<16x1xf32>
    %83 = vector.broadcast %82 : vector<16x1xf32> to vector<16x16xf32>
    %84 = arith.subf %80, %83 : vector<16x16xf32>
    %85 = math.exp %84 : vector<16x16xf32>
    %cst_30 = arith.constant dense<0.000000e+00> : vector<16xf32>
    %86 = vector.multi_reduction <add>, %85, %cst_30 [1] : vector<16x16xf32> to vector<16xf32>
    %87 = vector.shape_cast %86 : vector<16xf32> to vector<16x1xf32>
    %88 = tpu.reciprocal %87 {approx = true} : vector<16x1xf32> -> vector<16x1xf32>
    %89 = vector.broadcast %88 : vector<16x1xf32> to vector<16x16xf32>
    %90 = arith.mulf %85, %89 : vector<16x16xf32>
    %91 = arith.truncf %90 : vector<16x16xf32> to vector<16x16xbf16>
    %cst_31 = arith.constant dense<0.000000e+00> : vector<16x32xf32>
    %92 = tpu.matmul %91, %77, %cst_31 {dimension_numbers = #tpu.dot_dimension_numbers<[1], [0], [0], [1], [0, 0, 1, 1], [], []>} : vector<16x16xbf16>, vector<16x32xbf16>, vector<16x32xf32> -> vector<16x32xf32>
    %c0_32 = arith.constant 0 : index
    %c96 = arith.constant 96 : index
    %93 = vector.load %arg17[%c0_32, %c96] : memref<16x128xf32, #tpu.memory_space<vmem>>, vector<16x32xf32>
    tpu.vector_store %arg17[%c0_32, %c96], %92 {strides = array<i32>} : memref<16x128xf32, #tpu.memory_space<vmem>>, vector<16x32xf32>,
    %c0_33 = arith.constant 0 : index
    %c0_34 = arith.constant 0 : index
    %94 = vector.load %arg17[%c0_33, %c0_34] : memref<16x128xf32, #tpu.memory_space<vmem>>, vector<16x128xf32>
    %95 = arith.truncf %94 : vector<16x128xf32> to vector<16x128xbf16>
    %c0_35 = arith.constant 0 : index
    %c0_36 = arith.constant 0 : index
    %c0_37 = arith.constant 0 : index
    %96 = vector.load %arg5[%c0_35, %c0_36, %c0_37] : memref<1x128x128xbf16, #tpu.memory_space<vmem>>, vector<1x128x128xbf16>
    %97 = vector.shape_cast %96 : vector<1x128x128xbf16> to vector<128x128xbf16>
    %cst_38 = arith.constant dense<0.000000e+00> : vector<16x128xf32>
    %98 = tpu.matmul %95, %97, %cst_38 {dimension_numbers = #tpu.dot_dimension_numbers<[1], [0], [0], [1], [0, 0, 1, 1], [], []>} : vector<16x128xbf16>, vector<128x128xbf16>, vector<16x128xf32> -> vector<16x128xf32>
    %c0_39 = arith.constant 0 : index
    %c0_40 = arith.constant 0 : index
    %c0_41 = arith.constant 0 : index
    %99 = vector.load %arg6[%c0_39, %c0_40, %c0_41] : memref<1x1x128xf32, #tpu.memory_space<vmem>>, vector<1x1x128xf32>
    %100 = vector.shape_cast %99 : vector<1x1x128xf32> to vector<1x128xf32>
    %101 = vector.broadcast %100 : vector<1x128xf32> to vector<16x128xf32>
    %102 = arith.addf %98, %101 : vector<16x128xf32>
    %103 = arith.addf %3, %102 : vector<16x128xf32>
    %c0_42 = arith.constant 0 : index
    %c0_43 = arith.constant 0 : index
    %c0_44 = arith.constant 0 : index
    %104 = vector.load %arg11[%c0_42, %c0_43, %c0_44] : memref<1x1x128xf32, #tpu.memory_space<vmem>>, vector<1x1x128xf32>
    %105 = vector.shape_cast %104 : vector<1x1x128xf32> to vector<1x128xf32>
    %c0_45 = arith.constant 0 : index
    %c0_46 = arith.constant 0 : index
    %c0_47 = arith.constant 0 : index
    %106 = vector.load %arg12[%c0_45, %c0_46, %c0_47] : memref<1x1x128xf32, #tpu.memory_space<vmem>>, vector<1x1x128xf32>
    %107 = vector.shape_cast %106 : vector<1x1x128xf32> to vector<1x128xf32>
    %cst_48 = arith.constant dense<0.000000e+00> : vector<16xf32>
    %108 = vector.multi_reduction <add>, %103, %cst_48 [1] : vector<16x128xf32> to vector<16xf32>
    %109 = vector.shape_cast %108 : vector<16xf32> to vector<16x1xf32>
    %cst_49 = arith.constant 1.280000e+02 : f32
    %110 = vector.broadcast %cst_49 : f32 to vector<16x1xf32>
    %111 = arith.divf %109, %110 : vector<16x1xf32>
    %112 = vector.broadcast %111 : vector<16x1xf32> to vector<16x128xf32>
    %113 = arith.subf %103, %112 : vector<16x128xf32>
    %114 = arith.mulf %113, %113 : vector<16x128xf32>
    %cst_50 = arith.constant dense<0.000000e+00> : vector<16xf32>
    %115 = vector.multi_reduction <add>, %114, %cst_50 [1] : vector<16x128xf32> to vector<16xf32>
    %116 = vector.shape_cast %115 : vector<16xf32> to vector<16x1xf32>
    %cst_51 = arith.constant 1.280000e+02 : f32
    %117 = vector.broadcast %cst_51 : f32 to vector<16x1xf32>
    %118 = arith.divf %116, %117 : vector<16x1xf32>
    %119 = vector.broadcast %111 : vector<16x1xf32> to vector<16x128xf32>
    %120 = arith.subf %103, %119 : vector<16x128xf32>
    %cst_52 = arith.constant 9.99999974E-6 : f32
    %121 = vector.broadcast %cst_52 : f32 to vector<16x1xf32>
    %122 = arith.addf %118, %121 : vector<16x1xf32>
    %123 = math.rsqrt %122 : vector<16x1xf32>
    %124 = vector.broadcast %123 : vector<16x1xf32> to vector<16x128xf32>
    %125 = arith.mulf %120, %124 : vector<16x128xf32>
    %126 = vector.broadcast %105 : vector<1x128xf32> to vector<16x128xf32>
    %127 = arith.mulf %125, %126 : vector<16x128xf32>
    %128 = vector.broadcast %107 : vector<1x128xf32> to vector<16x128xf32>
    %129 = arith.addf %127, %128 : vector<16x128xf32>
    %130 = arith.truncf %129 : vector<16x128xf32> to vector<16x128xbf16>
    %c0_53 = arith.constant 0 : index
    %c0_54 = arith.constant 0 : index
    %c0_55 = arith.constant 0 : index
    %131 = vector.load %arg7[%c0_53, %c0_54, %c0_55] : memref<1x128x256xbf16, #tpu.memory_space<vmem>>, vector<1x128x256xbf16>
    %132 = vector.shape_cast %131 : vector<1x128x256xbf16> to vector<128x256xbf16>
    %cst_56 = arith.constant dense<0.000000e+00> : vector<16x256xf32>
    %133 = tpu.matmul %130, %132, %cst_56 {dimension_numbers = #tpu.dot_dimension_numbers<[1], [0], [0], [1], [0, 0, 1, 1], [], []>} : vector<16x128xbf16>, vector<128x256xbf16>, vector<16x256xf32> -> vector<16x256xf32>
    %c0_57 = arith.constant 0 : index
    %c0_58 = arith.constant 0 : index
    %c0_59 = arith.constant 0 : index
    %134 = vector.load %arg8[%c0_57, %c0_58, %c0_59] : memref<1x1x256xf32, #tpu.memory_space<vmem>>, vector<1x1x256xf32>
    %135 = vector.shape_cast %134 : vector<1x1x256xf32> to vector<1x256xf32>
    %136 = vector.broadcast %135 : vector<1x256xf32> to vector<16x256xf32>
    %137 = arith.addf %133, %136 : vector<16x256xf32>
    %cst_60 = arith.constant 0.000000e+00 : f32
    %138 = vector.broadcast %cst_60 : f32 to vector<16x256xf32>
    %139 = arith.maximumf %137, %138 : vector<16x256xf32>
    %140 = arith.truncf %139 : vector<16x256xf32> to vector<16x256xbf16>
    %c0_61 = arith.constant 0 : index
    %c0_62 = arith.constant 0 : index
    %c0_63 = arith.constant 0 : index
    %141 = vector.load %arg9[%c0_61, %c0_62, %c0_63] : memref<1x256x128xbf16, #tpu.memory_space<vmem>>, vector<1x256x128xbf16>
    %142 = vector.shape_cast %141 : vector<1x256x128xbf16> to vector<256x128xbf16>
    %cst_64 = arith.constant dense<0.000000e+00> : vector<16x128xf32>
    %143 = tpu.matmul %140, %142, %cst_64 {dimension_numbers = #tpu.dot_dimension_numbers<[1], [0], [0], [1], [0, 0, 1, 1], [], []>} : vector<16x256xbf16>, vector<256x128xbf16>, vector<16x128xf32> -> vector<16x128xf32>
    %c0_65 = arith.constant 0 : index
    %c0_66 = arith.constant 0 : index
    %c0_67 = arith.constant 0 : index
    %144 = vector.load %arg10[%c0_65, %c0_66, %c0_67] : memref<1x1x128xf32, #tpu.memory_space<vmem>>, vector<1x1x128xf32>
    %145 = vector.shape_cast %144 : vector<1x1x128xf32> to vector<1x128xf32>
    %146 = vector.broadcast %145 : vector<1x128xf32> to vector<16x128xf32>
    %147 = arith.addf %143, %146 : vector<16x128xf32>
    %148 = arith.addf %129, %147 : vector<16x128xf32>
    %c0_68 = arith.constant 0 : index
    %c0_69 = arith.constant 0 : index
    %c0_70 = arith.constant 0 : index
    %149 = vector.load %arg13[%c0_68, %c0_69, %c0_70] : memref<1x1x128xf32, #tpu.memory_space<vmem>>, vector<1x1x128xf32>
    %150 = vector.shape_cast %149 : vector<1x1x128xf32> to vector<1x128xf32>
    %c0_71 = arith.constant 0 : index
    %c0_72 = arith.constant 0 : index
    %c0_73 = arith.constant 0 : index
    %151 = vector.load %arg14[%c0_71, %c0_72, %c0_73] : memref<1x1x128xf32, #tpu.memory_space<vmem>>, vector<1x1x128xf32>
    %152 = vector.shape_cast %151 : vector<1x1x128xf32> to vector<1x128xf32>
    %cst_74 = arith.constant dense<0.000000e+00> : vector<16xf32>
    %153 = vector.multi_reduction <add>, %148, %cst_74 [1] : vector<16x128xf32> to vector<16xf32>
    %154 = vector.shape_cast %153 : vector<16xf32> to vector<16x1xf32>
    %cst_75 = arith.constant 1.280000e+02 : f32
    %155 = vector.broadcast %cst_75 : f32 to vector<16x1xf32>
    %156 = arith.divf %154, %155 : vector<16x1xf32>
    %157 = vector.broadcast %156 : vector<16x1xf32> to vector<16x128xf32>
    %158 = arith.subf %148, %157 : vector<16x128xf32>
    %159 = arith.mulf %158, %158 : vector<16x128xf32>
    %cst_76 = arith.constant dense<0.000000e+00> : vector<16xf32>
    %160 = vector.multi_reduction <add>, %159, %cst_76 [1] : vector<16x128xf32> to vector<16xf32>
    %161 = vector.shape_cast %160 : vector<16xf32> to vector<16x1xf32>
    %cst_77 = arith.constant 1.280000e+02 : f32
    %162 = vector.broadcast %cst_77 : f32 to vector<16x1xf32>
    %163 = arith.divf %161, %162 : vector<16x1xf32>
    %164 = vector.broadcast %156 : vector<16x1xf32> to vector<16x128xf32>
    %165 = arith.subf %148, %164 : vector<16x128xf32>
    %cst_78 = arith.constant 9.99999974E-6 : f32
    %166 = vector.broadcast %cst_78 : f32 to vector<16x1xf32>
    %167 = arith.addf %163, %166 : vector<16x1xf32>
    %168 = math.rsqrt %167 : vector<16x1xf32>
    %169 = vector.broadcast %168 : vector<16x1xf32> to vector<16x128xf32>
    %170 = arith.mulf %165, %169 : vector<16x128xf32>
    %171 = vector.broadcast %150 : vector<1x128xf32> to vector<16x128xf32>
    %172 = arith.mulf %170, %171 : vector<16x128xf32>
    %173 = vector.broadcast %152 : vector<1x128xf32> to vector<16x128xf32>
    %174 = arith.addf %172, %173 : vector<16x128xf32>
    %c0_79 = arith.constant 0 : index
    %c0_80 = arith.constant 0 : index
    %175 = vector.load %arg16[%c0_79, %c0_80] : memref<16x128xf32, #tpu.memory_space<vmem>>, vector<16x128xf32>
    tpu.vector_store %arg16[%c0_79, %c0_80], %174 {strides = array<i32>} : memref<16x128xf32, #tpu.memory_space<vmem>>, vector<16x128xf32>,
    %c1_i32 = arith.constant 1 : i32
    %176 = arith.cmpi eq, %arg1, %c1_i32 : i32
    %177 = arith.extui %176 : i1 to i32
    %c0_i32_81 = arith.constant 0 : i32
    %178 = arith.cmpi ne, %177, %c0_i32_81 : i32
    scf.if %178 {
      %c0_82 = arith.constant 0 : index
      %c0_83 = arith.constant 0 : index
      %179 = vector.load %arg15[%c0_82, %c0_83] : memref<16x128xf32, #tpu.memory_space<vmem>>, vector<16x128xf32>
      tpu.vector_store %arg15[%c0_82, %c0_83], %174 {strides = array<i32>} : memref<16x128xf32, #tpu.memory_space<vmem>>, vector<16x128xf32>,
    } else {
    }
    return
  }
  func.func @transform_0(%arg0: i32, %arg1: i32) -> (i32, i32) {
    %c0_i32 = arith.constant 0 : i32
    %c0_i32_0 = arith.constant 0 : i32
    return %arg0, %c0_i32 : i32, i32
  }
  func.func @transform_1(%arg0: i32, %arg1: i32) -> (i32, i32, i32) {
    %c0_i32 = arith.constant 0 : i32
    %c0_i32_0 = arith.constant 0 : i32
    %c0_i32_1 = arith.constant 0 : i32
    return %arg1, %c0_i32, %c0_i32_0 : i32, i32, i32
  }
  func.func @transform_2(%arg0: i32, %arg1: i32) -> (i32, i32, i32) {
    %c0_i32 = arith.constant 0 : i32
    %c0_i32_0 = arith.constant 0 : i32
    %c0_i32_1 = arith.constant 0 : i32
    return %arg1, %c0_i32, %c0_i32_0 : i32, i32, i32
  }
  func.func @transform_3(%arg0: i32, %arg1: i32) -> (i32, i32, i32) {
    %c0_i32 = arith.constant 0 : i32
    %c0_i32_0 = arith.constant 0 : i32
    %c0_i32_1 = arith.constant 0 : i32
    return %arg1, %c0_i32, %c0_i32_0 : i32, i32, i32
  }
  func.func @transform_4(%arg0: i32, %arg1: i32) -> (i32, i32, i32) {
    %c0_i32 = arith.constant 0 : i32
    %c0_i32_0 = arith.constant 0 : i32
    %c0_i32_1 = arith.constant 0 : i32
    return %arg1, %c0_i32, %c0_i32_0 : i32, i32, i32
  }
  func.func @transform_5(%arg0: i32, %arg1: i32) -> (i32, i32, i32) {
    %c0_i32 = arith.constant 0 : i32
    %c0_i32_0 = arith.constant 0 : i32
    %c0_i32_1 = arith.constant 0 : i32
    return %arg1, %c0_i32, %c0_i32_0 : i32, i32, i32
  }
  func.func @transform_6(%arg0: i32, %arg1: i32) -> (i32, i32, i32) {
    %c0_i32 = arith.constant 0 : i32
    %c0_i32_0 = arith.constant 0 : i32
    %c0_i32_1 = arith.constant 0 : i32
    return %arg1, %c0_i32, %c0_i32_0 : i32, i32, i32
  }
  func.func @transform_7(%arg0: i32, %arg1: i32) -> (i32, i32, i32) {
    %c0_i32 = arith.constant 0 : i32
    %c0_i32_0 = arith.constant 0 : i32
    %c0_i32_1 = arith.constant 0 : i32
    return %arg1, %c0_i32, %c0_i32_0 : i32, i32, i32
  }
  func.func @transform_8(%arg0: i32, %arg1: i32) -> (i32, i32, i32) {
    %c0_i32 = arith.constant 0 : i32
    %c0_i32_0 = arith.constant 0 : i32
    %c0_i32_1 = arith.constant 0 : i32
    return %arg1, %c0_i32, %c0_i32_0 : i32, i32, i32
  }
  func.func @transform_9(%arg0: i32, %arg1: i32) -> (i32, i32, i32) {
    %c0_i32 = arith.constant 0 : i32
    %c0_i32_0 = arith.constant 0 : i32
    %c0_i32_1 = arith.constant 0 : i32
    return %arg1, %c0_i32, %c0_i32_0 : i32, i32, i32
  }
  func.func @transform_10(%arg0: i32, %arg1: i32) -> (i32, i32, i32) {
    %c0_i32 = arith.constant 0 : i32
    %c0_i32_0 = arith.constant 0 : i32
    %c0_i32_1 = arith.constant 0 : i32
    return %arg1, %c0_i32, %c0_i32_0 : i32, i32, i32
  }
  func.func @transform_11(%arg0: i32, %arg1: i32) -> (i32, i32, i32) {
    %c0_i32 = arith.constant 0 : i32
    %c0_i32_0 = arith.constant 0 : i32
    %c0_i32_1 = arith.constant 0 : i32
    return %arg1, %c0_i32, %c0_i32_0 : i32, i32, i32
  }
  func.func @transform_12(%arg0: i32, %arg1: i32) -> (i32, i32, i32) {
    %c0_i32 = arith.constant 0 : i32
    %c0_i32_0 = arith.constant 0 : i32
    %c0_i32_1 = arith.constant 0 : i32
    return %arg1, %c0_i32, %c0_i32_0 : i32, i32, i32
  }
  func.func @transform_13(%arg0: i32, %arg1: i32) -> (i32, i32) {
    %c0_i32 = arith.constant 0 : i32
    %c0_i32_0 = arith.constant 0 : i32
    return %arg0, %c0_i32 : i32, i32
  }
}

module attributes {stable_mosaic.version = 11 : i64} {
  func.func @_decoder_kernel(%arg0: i32, %arg1: i32, %arg2: memref<16x128xf32, #tpu.memory_space<vmem>>, %arg3: memref<16x128xf32, #tpu.memory_space<vmem>>, %arg4: memref<1x128x384xbf16, #tpu.memory_space<vmem>>, %arg5: memref<1x1x384xf32, #tpu.memory_space<vmem>>, %arg6: memref<1x128x128xbf16, #tpu.memory_space<vmem>>, %arg7: memref<1x1x128xf32, #tpu.memory_space<vmem>>, %arg8: memref<1x128x128xbf16, #tpu.memory_space<vmem>>, %arg9: memref<1x1x128xf32, #tpu.memory_space<vmem>>, %arg10: memref<1x128x256xbf16, #tpu.memory_space<vmem>>, %arg11: memref<1x1x256xf32, #tpu.memory_space<vmem>>, %arg12: memref<1x128x128xbf16, #tpu.memory_space<vmem>>, %arg13: memref<1x1x128xf32, #tpu.memory_space<vmem>>, %arg14: memref<1x128x256xbf16, #tpu.memory_space<vmem>>, %arg15: memref<1x1x256xf32, #tpu.memory_space<vmem>>, %arg16: memref<1x256x128xbf16, #tpu.memory_space<vmem>>, %arg17: memref<1x1x128xf32, #tpu.memory_space<vmem>>, %arg18: memref<1x1x128xf32, #tpu.memory_space<vmem>>, %arg19: memref<1x1x128xf32, #tpu.memory_space<vmem>>, %arg20: memref<1x1x128xf32, #tpu.memory_space<vmem>>, %arg21: memref<1x1x128xf32, #tpu.memory_space<vmem>>, %arg22: memref<1x1x128xf32, #tpu.memory_space<vmem>>, %arg23: memref<1x1x128xf32, #tpu.memory_space<vmem>>, %arg24: memref<128x256xbf16, #tpu.memory_space<vmem>>, %arg25: memref<1x256xf32, #tpu.memory_space<vmem>>, %arg26: memref<16x256xf32, #tpu.memory_space<vmem>>, %arg27: memref<16x128xf32, #tpu.memory_space<vmem>>, %arg28: memref<16x128xf32, #tpu.memory_space<vmem>>) attributes {dimension_semantics = [#tpu.dimension_semantics<parallel>, #tpu.dimension_semantics<arbitrary>], iteration_bounds = array<i64: 4, 2>, scalar_prefetch = 0 : i64, scratch_operands = 2 : i64, tpu.core_type = #tpu.core_type<tc>, window_params = [{transform_indices = @transform_0, window_bounds = array<i64: 16, 128>}, {transform_indices = @transform_1, window_bounds = array<i64: 16, 128>}, {transform_indices = @transform_2, window_bounds = array<i64: 1, 128, 384>}, {transform_indices = @transform_3, window_bounds = array<i64: 1, 1, 384>}, {transform_indices = @transform_4, window_bounds = array<i64: 1, 128, 128>}, {transform_indices = @transform_5, window_bounds = array<i64: 1, 1, 128>}, {transform_indices = @transform_6, window_bounds = array<i64: 1, 128, 128>}, {transform_indices = @transform_7, window_bounds = array<i64: 1, 1, 128>}, {transform_indices = @transform_8, window_bounds = array<i64: 1, 128, 256>}, {transform_indices = @transform_9, window_bounds = array<i64: 1, 1, 256>}, {transform_indices = @transform_10, window_bounds = array<i64: 1, 128, 128>}, {transform_indices = @transform_11, window_bounds = array<i64: 1, 1, 128>}, {transform_indices = @transform_12, window_bounds = array<i64: 1, 128, 256>}, {transform_indices = @transform_13, window_bounds = array<i64: 1, 1, 256>}, {transform_indices = @transform_14, window_bounds = array<i64: 1, 256, 128>}, {transform_indices = @transform_15, window_bounds = array<i64: 1, 1, 128>}, {transform_indices = @transform_16, window_bounds = array<i64: 1, 1, 128>}, {transform_indices = @transform_17, window_bounds = array<i64: 1, 1, 128>}, {transform_indices = @transform_18, window_bounds = array<i64: 1, 1, 128>}, {transform_indices = @transform_19, window_bounds = array<i64: 1, 1, 128>}, {transform_indices = @transform_20, window_bounds = array<i64: 1, 1, 128>}, {transform_indices = @transform_21, window_bounds = array<i64: 1, 1, 128>}, {pipeline_mode = #tpu.pipeline_mode<synchronous>, transform_indices = @transform_22, window_bounds = array<i64: 128, 256>}, {pipeline_mode = #tpu.pipeline_mode<synchronous>, transform_indices = @transform_23, window_bounds = array<i64: 1, 256>}, {transform_indices = @transform_24, window_bounds = array<i64: 16, 256>}]} {
    %c0_i32 = arith.constant 0 : i32
    %0 = arith.cmpi eq, %arg1, %c0_i32 : i32
    %1 = arith.extui %0 : i1 to i32
    %c0_i32_0 = arith.constant 0 : i32
    %2 = arith.cmpi ne, %1, %c0_i32_0 : i32
    scf.if %2 {
      %c0_146 = arith.constant 0 : index
      %c0_147 = arith.constant 0 : index
      %313 = vector.load %arg2[%c0_146, %c0_147] : memref<16x128xf32, #tpu.memory_space<vmem>>, vector<16x128xf32>
      %c0_148 = arith.constant 0 : index
      %c0_149 = arith.constant 0 : index
      %314 = vector.load %arg27[%c0_148, %c0_149] : memref<16x128xf32, #tpu.memory_space<vmem>>, vector<16x128xf32>
      tpu.vector_store %arg27[%c0_148, %c0_149], %313 {strides = array<i32>} : memref<16x128xf32, #tpu.memory_space<vmem>>, vector<16x128xf32>,
    } else {
    }
    %c0 = arith.constant 0 : index
    %c0_1 = arith.constant 0 : index
    %3 = vector.load %arg27[%c0, %c0_1] : memref<16x128xf32, #tpu.memory_space<vmem>>, vector<16x128xf32>
    %4 = arith.truncf %3 : vector<16x128xf32> to vector<16x128xbf16>
    %c0_2 = arith.constant 0 : index
    %c0_3 = arith.constant 0 : index
    %5 = vector.load %arg3[%c0_2, %c0_3] : memref<16x128xf32, #tpu.memory_space<vmem>>, vector<16x128xf32>
    %6 = arith.truncf %5 : vector<16x128xf32> to vector<16x128xbf16>
    %c0_4 = arith.constant 0 : index
    %c0_5 = arith.constant 0 : index
    %c0_6 = arith.constant 0 : index
    %7 = vector.load %arg4[%c0_4, %c0_5, %c0_6] : memref<1x128x384xbf16, #tpu.memory_space<vmem>>, vector<1x128x384xbf16>
    %8 = vector.shape_cast %7 : vector<1x128x384xbf16> to vector<128x384xbf16>
    %cst = arith.constant dense<0.000000e+00> : vector<16x384xf32>
    %9 = tpu.matmul %4, %8, %cst {dimension_numbers = #tpu.dot_dimension_numbers<[1], [0], [0], [1], [0, 0, 1, 1], [], []>} : vector<16x128xbf16>, vector<128x384xbf16>, vector<16x384xf32> -> vector<16x384xf32>
    %c0_7 = arith.constant 0 : index
    %c0_8 = arith.constant 0 : index
    %c0_9 = arith.constant 0 : index
    %10 = vector.load %arg5[%c0_7, %c0_8, %c0_9] : memref<1x1x384xf32, #tpu.memory_space<vmem>>, vector<1x1x384xf32>
    %11 = vector.shape_cast %10 : vector<1x1x384xf32> to vector<1x384xf32>
    %12 = vector.broadcast %11 : vector<1x384xf32> to vector<16x384xf32>
    %13 = arith.addf %9, %12 : vector<16x384xf32>
    %14 = vector.extract_strided_slice %13 {offsets = [0, 0], sizes = [16, 128], strides = [1, 1]} : vector<16x384xf32> to vector<16x128xf32>
    %15 = vector.extract_strided_slice %13 {offsets = [0, 128], sizes = [16, 128], strides = [1, 1]} : vector<16x384xf32> to vector<16x128xf32>
    %16 = vector.extract_strided_slice %13 {offsets = [0, 256], sizes = [16, 128], strides = [1, 1]} : vector<16x384xf32> to vector<16x128xf32>
    %17 = arith.truncf %14 : vector<16x128xf32> to vector<16x128xbf16>
    %18 = arith.truncf %15 : vector<16x128xf32> to vector<16x128xbf16>
    %19 = arith.truncf %16 : vector<16x128xf32> to vector<16x128xbf16>
    %20 = vector.extract_strided_slice %17 {offsets = [0, 0], sizes = [16, 32], strides = [1, 1]} : vector<16x128xbf16> to vector<16x32xbf16>
    %21 = vector.extract_strided_slice %18 {offsets = [0, 0], sizes = [16, 32], strides = [1, 1]} : vector<16x128xbf16> to vector<16x32xbf16>
    %22 = vector.extract_strided_slice %19 {offsets = [0, 0], sizes = [16, 32], strides = [1, 1]} : vector<16x128xbf16> to vector<16x32xbf16>
    %cst_10 = arith.constant dense<0.000000e+00> : vector<16x16xf32>
    %23 = tpu.matmul %20, %21, %cst_10 {dimension_numbers = #tpu.dot_dimension_numbers<[1], [1], [0], [0], [0, 0, 1, 0], [], []>} : vector<16x32xbf16>, vector<16x32xbf16>, vector<16x16xf32> -> vector<16x16xf32>
    %cst_11 = arith.constant 0.176776692 : f32
    %24 = vector.broadcast %cst_11 : f32 to vector<16x16xf32>
    %25 = arith.mulf %23, %24 : vector<16x16xf32>
    %cst_12 = arith.constant dense<0xFF800000> : vector<16xf32>
    %26 = vector.multi_reduction <maximumf>, %25, %cst_12 [1] : vector<16x16xf32> to vector<16xf32>
    %27 = vector.shape_cast %26 : vector<16xf32> to vector<16x1xf32>
    %28 = vector.broadcast %27 : vector<16x1xf32> to vector<16x16xf32>
    %29 = arith.subf %25, %28 : vector<16x16xf32>
    %30 = math.exp %29 : vector<16x16xf32>
    %cst_13 = arith.constant dense<0.000000e+00> : vector<16xf32>
    %31 = vector.multi_reduction <add>, %30, %cst_13 [1] : vector<16x16xf32> to vector<16xf32>
    %32 = vector.shape_cast %31 : vector<16xf32> to vector<16x1xf32>
    %33 = tpu.reciprocal %32 {approx = true} : vector<16x1xf32> -> vector<16x1xf32>
    %34 = vector.broadcast %33 : vector<16x1xf32> to vector<16x16xf32>
    %35 = arith.mulf %30, %34 : vector<16x16xf32>
    %36 = arith.truncf %35 : vector<16x16xf32> to vector<16x16xbf16>
    %cst_14 = arith.constant dense<0.000000e+00> : vector<16x32xf32>
    %37 = tpu.matmul %36, %22, %cst_14 {dimension_numbers = #tpu.dot_dimension_numbers<[1], [0], [0], [1], [0, 0, 1, 1], [], []>} : vector<16x16xbf16>, vector<16x32xbf16>, vector<16x32xf32> -> vector<16x32xf32>
    %c0_15 = arith.constant 0 : index
    %c0_16 = arith.constant 0 : index
    %38 = vector.load %arg28[%c0_15, %c0_16] : memref<16x128xf32, #tpu.memory_space<vmem>>, vector<16x32xf32>
    tpu.vector_store %arg28[%c0_15, %c0_16], %37 {strides = array<i32>} : memref<16x128xf32, #tpu.memory_space<vmem>>, vector<16x32xf32>,
    %39 = vector.extract_strided_slice %17 {offsets = [0, 32], sizes = [16, 32], strides = [1, 1]} : vector<16x128xbf16> to vector<16x32xbf16>
    %40 = vector.extract_strided_slice %18 {offsets = [0, 32], sizes = [16, 32], strides = [1, 1]} : vector<16x128xbf16> to vector<16x32xbf16>
    %41 = vector.extract_strided_slice %19 {offsets = [0, 32], sizes = [16, 32], strides = [1, 1]} : vector<16x128xbf16> to vector<16x32xbf16>
    %cst_17 = arith.constant dense<0.000000e+00> : vector<16x16xf32>
    %42 = tpu.matmul %39, %40, %cst_17 {dimension_numbers = #tpu.dot_dimension_numbers<[1], [1], [0], [0], [0, 0, 1, 0], [], []>} : vector<16x32xbf16>, vector<16x32xbf16>, vector<16x16xf32> -> vector<16x16xf32>
    %cst_18 = arith.constant 0.176776692 : f32
    %43 = vector.broadcast %cst_18 : f32 to vector<16x16xf32>
    %44 = arith.mulf %42, %43 : vector<16x16xf32>
    %cst_19 = arith.constant dense<0xFF800000> : vector<16xf32>
    %45 = vector.multi_reduction <maximumf>, %44, %cst_19 [1] : vector<16x16xf32> to vector<16xf32>
    %46 = vector.shape_cast %45 : vector<16xf32> to vector<16x1xf32>
    %47 = vector.broadcast %46 : vector<16x1xf32> to vector<16x16xf32>
    %48 = arith.subf %44, %47 : vector<16x16xf32>
    %49 = math.exp %48 : vector<16x16xf32>
    %cst_20 = arith.constant dense<0.000000e+00> : vector<16xf32>
    %50 = vector.multi_reduction <add>, %49, %cst_20 [1] : vector<16x16xf32> to vector<16xf32>
    %51 = vector.shape_cast %50 : vector<16xf32> to vector<16x1xf32>
    %52 = tpu.reciprocal %51 {approx = true} : vector<16x1xf32> -> vector<16x1xf32>
    %53 = vector.broadcast %52 : vector<16x1xf32> to vector<16x16xf32>
    %54 = arith.mulf %49, %53 : vector<16x16xf32>
    %55 = arith.truncf %54 : vector<16x16xf32> to vector<16x16xbf16>
    %cst_21 = arith.constant dense<0.000000e+00> : vector<16x32xf32>
    %56 = tpu.matmul %55, %41, %cst_21 {dimension_numbers = #tpu.dot_dimension_numbers<[1], [0], [0], [1], [0, 0, 1, 1], [], []>} : vector<16x16xbf16>, vector<16x32xbf16>, vector<16x32xf32> -> vector<16x32xf32>
    %c0_22 = arith.constant 0 : index
    %c32 = arith.constant 32 : index
    %57 = vector.load %arg28[%c0_22, %c32] : memref<16x128xf32, #tpu.memory_space<vmem>>, vector<16x32xf32>
    tpu.vector_store %arg28[%c0_22, %c32], %56 {strides = array<i32>} : memref<16x128xf32, #tpu.memory_space<vmem>>, vector<16x32xf32>,
    %58 = vector.extract_strided_slice %17 {offsets = [0, 64], sizes = [16, 32], strides = [1, 1]} : vector<16x128xbf16> to vector<16x32xbf16>
    %59 = vector.extract_strided_slice %18 {offsets = [0, 64], sizes = [16, 32], strides = [1, 1]} : vector<16x128xbf16> to vector<16x32xbf16>
    %60 = vector.extract_strided_slice %19 {offsets = [0, 64], sizes = [16, 32], strides = [1, 1]} : vector<16x128xbf16> to vector<16x32xbf16>
    %cst_23 = arith.constant dense<0.000000e+00> : vector<16x16xf32>
    %61 = tpu.matmul %58, %59, %cst_23 {dimension_numbers = #tpu.dot_dimension_numbers<[1], [1], [0], [0], [0, 0, 1, 0], [], []>} : vector<16x32xbf16>, vector<16x32xbf16>, vector<16x16xf32> -> vector<16x16xf32>
    %cst_24 = arith.constant 0.176776692 : f32
    %62 = vector.broadcast %cst_24 : f32 to vector<16x16xf32>
    %63 = arith.mulf %61, %62 : vector<16x16xf32>
    %cst_25 = arith.constant dense<0xFF800000> : vector<16xf32>
    %64 = vector.multi_reduction <maximumf>, %63, %cst_25 [1] : vector<16x16xf32> to vector<16xf32>
    %65 = vector.shape_cast %64 : vector<16xf32> to vector<16x1xf32>
    %66 = vector.broadcast %65 : vector<16x1xf32> to vector<16x16xf32>
    %67 = arith.subf %63, %66 : vector<16x16xf32>
    %68 = math.exp %67 : vector<16x16xf32>
    %cst_26 = arith.constant dense<0.000000e+00> : vector<16xf32>
    %69 = vector.multi_reduction <add>, %68, %cst_26 [1] : vector<16x16xf32> to vector<16xf32>
    %70 = vector.shape_cast %69 : vector<16xf32> to vector<16x1xf32>
    %71 = tpu.reciprocal %70 {approx = true} : vector<16x1xf32> -> vector<16x1xf32>
    %72 = vector.broadcast %71 : vector<16x1xf32> to vector<16x16xf32>
    %73 = arith.mulf %68, %72 : vector<16x16xf32>
    %74 = arith.truncf %73 : vector<16x16xf32> to vector<16x16xbf16>
    %cst_27 = arith.constant dense<0.000000e+00> : vector<16x32xf32>
    %75 = tpu.matmul %74, %60, %cst_27 {dimension_numbers = #tpu.dot_dimension_numbers<[1], [0], [0], [1], [0, 0, 1, 1], [], []>} : vector<16x16xbf16>, vector<16x32xbf16>, vector<16x32xf32> -> vector<16x32xf32>
    %c0_28 = arith.constant 0 : index
    %c64 = arith.constant 64 : index
    %76 = vector.load %arg28[%c0_28, %c64] : memref<16x128xf32, #tpu.memory_space<vmem>>, vector<16x32xf32>
    tpu.vector_store %arg28[%c0_28, %c64], %75 {strides = array<i32>} : memref<16x128xf32, #tpu.memory_space<vmem>>, vector<16x32xf32>,
    %77 = vector.extract_strided_slice %17 {offsets = [0, 96], sizes = [16, 32], strides = [1, 1]} : vector<16x128xbf16> to vector<16x32xbf16>
    %78 = vector.extract_strided_slice %18 {offsets = [0, 96], sizes = [16, 32], strides = [1, 1]} : vector<16x128xbf16> to vector<16x32xbf16>
    %79 = vector.extract_strided_slice %19 {offsets = [0, 96], sizes = [16, 32], strides = [1, 1]} : vector<16x128xbf16> to vector<16x32xbf16>
    %cst_29 = arith.constant dense<0.000000e+00> : vector<16x16xf32>
    %80 = tpu.matmul %77, %78, %cst_29 {dimension_numbers = #tpu.dot_dimension_numbers<[1], [1], [0], [0], [0, 0, 1, 0], [], []>} : vector<16x32xbf16>, vector<16x32xbf16>, vector<16x16xf32> -> vector<16x16xf32>
    %cst_30 = arith.constant 0.176776692 : f32
    %81 = vector.broadcast %cst_30 : f32 to vector<16x16xf32>
    %82 = arith.mulf %80, %81 : vector<16x16xf32>
    %cst_31 = arith.constant dense<0xFF800000> : vector<16xf32>
    %83 = vector.multi_reduction <maximumf>, %82, %cst_31 [1] : vector<16x16xf32> to vector<16xf32>
    %84 = vector.shape_cast %83 : vector<16xf32> to vector<16x1xf32>
    %85 = vector.broadcast %84 : vector<16x1xf32> to vector<16x16xf32>
    %86 = arith.subf %82, %85 : vector<16x16xf32>
    %87 = math.exp %86 : vector<16x16xf32>
    %cst_32 = arith.constant dense<0.000000e+00> : vector<16xf32>
    %88 = vector.multi_reduction <add>, %87, %cst_32 [1] : vector<16x16xf32> to vector<16xf32>
    %89 = vector.shape_cast %88 : vector<16xf32> to vector<16x1xf32>
    %90 = tpu.reciprocal %89 {approx = true} : vector<16x1xf32> -> vector<16x1xf32>
    %91 = vector.broadcast %90 : vector<16x1xf32> to vector<16x16xf32>
    %92 = arith.mulf %87, %91 : vector<16x16xf32>
    %93 = arith.truncf %92 : vector<16x16xf32> to vector<16x16xbf16>
    %cst_33 = arith.constant dense<0.000000e+00> : vector<16x32xf32>
    %94 = tpu.matmul %93, %79, %cst_33 {dimension_numbers = #tpu.dot_dimension_numbers<[1], [0], [0], [1], [0, 0, 1, 1], [], []>} : vector<16x16xbf16>, vector<16x32xbf16>, vector<16x32xf32> -> vector<16x32xf32>
    %c0_34 = arith.constant 0 : index
    %c96 = arith.constant 96 : index
    %95 = vector.load %arg28[%c0_34, %c96] : memref<16x128xf32, #tpu.memory_space<vmem>>, vector<16x32xf32>
    tpu.vector_store %arg28[%c0_34, %c96], %94 {strides = array<i32>} : memref<16x128xf32, #tpu.memory_space<vmem>>, vector<16x32xf32>,
    %c0_35 = arith.constant 0 : index
    %c0_36 = arith.constant 0 : index
    %96 = vector.load %arg28[%c0_35, %c0_36] : memref<16x128xf32, #tpu.memory_space<vmem>>, vector<16x128xf32>
    %97 = arith.truncf %96 : vector<16x128xf32> to vector<16x128xbf16>
    %c0_37 = arith.constant 0 : index
    %c0_38 = arith.constant 0 : index
    %c0_39 = arith.constant 0 : index
    %98 = vector.load %arg6[%c0_37, %c0_38, %c0_39] : memref<1x128x128xbf16, #tpu.memory_space<vmem>>, vector<1x128x128xbf16>
    %99 = vector.shape_cast %98 : vector<1x128x128xbf16> to vector<128x128xbf16>
    %cst_40 = arith.constant dense<0.000000e+00> : vector<16x128xf32>
    %100 = tpu.matmul %97, %99, %cst_40 {dimension_numbers = #tpu.dot_dimension_numbers<[1], [0], [0], [1], [0, 0, 1, 1], [], []>} : vector<16x128xbf16>, vector<128x128xbf16>, vector<16x128xf32> -> vector<16x128xf32>
    %c0_41 = arith.constant 0 : index
    %c0_42 = arith.constant 0 : index
    %c0_43 = arith.constant 0 : index
    %101 = vector.load %arg7[%c0_41, %c0_42, %c0_43] : memref<1x1x128xf32, #tpu.memory_space<vmem>>, vector<1x1x128xf32>
    %102 = vector.shape_cast %101 : vector<1x1x128xf32> to vector<1x128xf32>
    %103 = vector.broadcast %102 : vector<1x128xf32> to vector<16x128xf32>
    %104 = arith.addf %100, %103 : vector<16x128xf32>
    %105 = arith.addf %3, %104 : vector<16x128xf32>
    %c0_44 = arith.constant 0 : index
    %c0_45 = arith.constant 0 : index
    %c0_46 = arith.constant 0 : index
    %106 = vector.load %arg18[%c0_44, %c0_45, %c0_46] : memref<1x1x128xf32, #tpu.memory_space<vmem>>, vector<1x1x128xf32>
    %107 = vector.shape_cast %106 : vector<1x1x128xf32> to vector<1x128xf32>
    %c0_47 = arith.constant 0 : index
    %c0_48 = arith.constant 0 : index
    %c0_49 = arith.constant 0 : index
    %108 = vector.load %arg19[%c0_47, %c0_48, %c0_49] : memref<1x1x128xf32, #tpu.memory_space<vmem>>, vector<1x1x128xf32>
    %109 = vector.shape_cast %108 : vector<1x1x128xf32> to vector<1x128xf32>
    %cst_50 = arith.constant dense<0.000000e+00> : vector<16xf32>
    %110 = vector.multi_reduction <add>, %105, %cst_50 [1] : vector<16x128xf32> to vector<16xf32>
    %111 = vector.shape_cast %110 : vector<16xf32> to vector<16x1xf32>
    %cst_51 = arith.constant 1.280000e+02 : f32
    %112 = vector.broadcast %cst_51 : f32 to vector<16x1xf32>
    %113 = arith.divf %111, %112 : vector<16x1xf32>
    %114 = vector.broadcast %113 : vector<16x1xf32> to vector<16x128xf32>
    %115 = arith.subf %105, %114 : vector<16x128xf32>
    %116 = arith.mulf %115, %115 : vector<16x128xf32>
    %cst_52 = arith.constant dense<0.000000e+00> : vector<16xf32>
    %117 = vector.multi_reduction <add>, %116, %cst_52 [1] : vector<16x128xf32> to vector<16xf32>
    %118 = vector.shape_cast %117 : vector<16xf32> to vector<16x1xf32>
    %cst_53 = arith.constant 1.280000e+02 : f32
    %119 = vector.broadcast %cst_53 : f32 to vector<16x1xf32>
    %120 = arith.divf %118, %119 : vector<16x1xf32>
    %121 = vector.broadcast %113 : vector<16x1xf32> to vector<16x128xf32>
    %122 = arith.subf %105, %121 : vector<16x128xf32>
    %cst_54 = arith.constant 9.99999974E-6 : f32
    %123 = vector.broadcast %cst_54 : f32 to vector<16x1xf32>
    %124 = arith.addf %120, %123 : vector<16x1xf32>
    %125 = math.rsqrt %124 : vector<16x1xf32>
    %126 = vector.broadcast %125 : vector<16x1xf32> to vector<16x128xf32>
    %127 = arith.mulf %122, %126 : vector<16x128xf32>
    %128 = vector.broadcast %107 : vector<1x128xf32> to vector<16x128xf32>
    %129 = arith.mulf %127, %128 : vector<16x128xf32>
    %130 = vector.broadcast %109 : vector<1x128xf32> to vector<16x128xf32>
    %131 = arith.addf %129, %130 : vector<16x128xf32>
    %132 = arith.truncf %131 : vector<16x128xf32> to vector<16x128xbf16>
    %c0_55 = arith.constant 0 : index
    %c0_56 = arith.constant 0 : index
    %c0_57 = arith.constant 0 : index
    %133 = vector.load %arg8[%c0_55, %c0_56, %c0_57] : memref<1x128x128xbf16, #tpu.memory_space<vmem>>, vector<1x128x128xbf16>
    %134 = vector.shape_cast %133 : vector<1x128x128xbf16> to vector<128x128xbf16>
    %cst_58 = arith.constant dense<0.000000e+00> : vector<16x128xf32>
    %135 = tpu.matmul %132, %134, %cst_58 {dimension_numbers = #tpu.dot_dimension_numbers<[1], [0], [0], [1], [0, 0, 1, 1], [], []>} : vector<16x128xbf16>, vector<128x128xbf16>, vector<16x128xf32> -> vector<16x128xf32>
    %c0_59 = arith.constant 0 : index
    %c0_60 = arith.constant 0 : index
    %c0_61 = arith.constant 0 : index
    %136 = vector.load %arg9[%c0_59, %c0_60, %c0_61] : memref<1x1x128xf32, #tpu.memory_space<vmem>>, vector<1x1x128xf32>
    %137 = vector.shape_cast %136 : vector<1x1x128xf32> to vector<1x128xf32>
    %138 = vector.broadcast %137 : vector<1x128xf32> to vector<16x128xf32>
    %139 = arith.addf %135, %138 : vector<16x128xf32>
    %c0_62 = arith.constant 0 : index
    %c0_63 = arith.constant 0 : index
    %c0_64 = arith.constant 0 : index
    %140 = vector.load %arg10[%c0_62, %c0_63, %c0_64] : memref<1x128x256xbf16, #tpu.memory_space<vmem>>, vector<1x128x256xbf16>
    %141 = vector.shape_cast %140 : vector<1x128x256xbf16> to vector<128x256xbf16>
    %cst_65 = arith.constant dense<0.000000e+00> : vector<16x256xf32>
    %142 = tpu.matmul %6, %141, %cst_65 {dimension_numbers = #tpu.dot_dimension_numbers<[1], [0], [0], [1], [0, 0, 1, 1], [], []>} : vector<16x128xbf16>, vector<128x256xbf16>, vector<16x256xf32> -> vector<16x256xf32>
    %c0_66 = arith.constant 0 : index
    %c0_67 = arith.constant 0 : index
    %c0_68 = arith.constant 0 : index
    %143 = vector.load %arg11[%c0_66, %c0_67, %c0_68] : memref<1x1x256xf32, #tpu.memory_space<vmem>>, vector<1x1x256xf32>
    %144 = vector.shape_cast %143 : vector<1x1x256xf32> to vector<1x256xf32>
    %145 = vector.broadcast %144 : vector<1x256xf32> to vector<16x256xf32>
    %146 = arith.addf %142, %145 : vector<16x256xf32>
    %147 = vector.extract_strided_slice %146 {offsets = [0, 0], sizes = [16, 128], strides = [1, 1]} : vector<16x256xf32> to vector<16x128xf32>
    %148 = vector.extract_strided_slice %146 {offsets = [0, 128], sizes = [16, 128], strides = [1, 1]} : vector<16x256xf32> to vector<16x128xf32>
    %149 = arith.truncf %139 : vector<16x128xf32> to vector<16x128xbf16>
    %150 = arith.truncf %147 : vector<16x128xf32> to vector<16x128xbf16>
    %151 = arith.truncf %148 : vector<16x128xf32> to vector<16x128xbf16>
    %152 = vector.extract_strided_slice %149 {offsets = [0, 0], sizes = [16, 32], strides = [1, 1]} : vector<16x128xbf16> to vector<16x32xbf16>
    %153 = vector.extract_strided_slice %150 {offsets = [0, 0], sizes = [16, 32], strides = [1, 1]} : vector<16x128xbf16> to vector<16x32xbf16>
    %154 = vector.extract_strided_slice %151 {offsets = [0, 0], sizes = [16, 32], strides = [1, 1]} : vector<16x128xbf16> to vector<16x32xbf16>
    %cst_69 = arith.constant dense<0.000000e+00> : vector<16x16xf32>
    %155 = tpu.matmul %152, %153, %cst_69 {dimension_numbers = #tpu.dot_dimension_numbers<[1], [1], [0], [0], [0, 0, 1, 0], [], []>} : vector<16x32xbf16>, vector<16x32xbf16>, vector<16x16xf32> -> vector<16x16xf32>
    %cst_70 = arith.constant 0.176776692 : f32
    %156 = vector.broadcast %cst_70 : f32 to vector<16x16xf32>
    %157 = arith.mulf %155, %156 : vector<16x16xf32>
    %cst_71 = arith.constant dense<0xFF800000> : vector<16xf32>
    %158 = vector.multi_reduction <maximumf>, %157, %cst_71 [1] : vector<16x16xf32> to vector<16xf32>
    %159 = vector.shape_cast %158 : vector<16xf32> to vector<16x1xf32>
    %160 = vector.broadcast %159 : vector<16x1xf32> to vector<16x16xf32>
    %161 = arith.subf %157, %160 : vector<16x16xf32>
    %162 = math.exp %161 : vector<16x16xf32>
    %cst_72 = arith.constant dense<0.000000e+00> : vector<16xf32>
    %163 = vector.multi_reduction <add>, %162, %cst_72 [1] : vector<16x16xf32> to vector<16xf32>
    %164 = vector.shape_cast %163 : vector<16xf32> to vector<16x1xf32>
    %165 = tpu.reciprocal %164 {approx = true} : vector<16x1xf32> -> vector<16x1xf32>
    %166 = vector.broadcast %165 : vector<16x1xf32> to vector<16x16xf32>
    %167 = arith.mulf %162, %166 : vector<16x16xf32>
    %168 = arith.truncf %167 : vector<16x16xf32> to vector<16x16xbf16>
    %cst_73 = arith.constant dense<0.000000e+00> : vector<16x32xf32>
    %169 = tpu.matmul %168, %154, %cst_73 {dimension_numbers = #tpu.dot_dimension_numbers<[1], [0], [0], [1], [0, 0, 1, 1], [], []>} : vector<16x16xbf16>, vector<16x32xbf16>, vector<16x32xf32> -> vector<16x32xf32>
    %c0_74 = arith.constant 0 : index
    %c0_75 = arith.constant 0 : index
    %170 = vector.load %arg28[%c0_74, %c0_75] : memref<16x128xf32, #tpu.memory_space<vmem>>, vector<16x32xf32>
    tpu.vector_store %arg28[%c0_74, %c0_75], %169 {strides = array<i32>} : memref<16x128xf32, #tpu.memory_space<vmem>>, vector<16x32xf32>,
    %171 = vector.extract_strided_slice %149 {offsets = [0, 32], sizes = [16, 32], strides = [1, 1]} : vector<16x128xbf16> to vector<16x32xbf16>
    %172 = vector.extract_strided_slice %150 {offsets = [0, 32], sizes = [16, 32], strides = [1, 1]} : vector<16x128xbf16> to vector<16x32xbf16>
    %173 = vector.extract_strided_slice %151 {offsets = [0, 32], sizes = [16, 32], strides = [1, 1]} : vector<16x128xbf16> to vector<16x32xbf16>
    %cst_76 = arith.constant dense<0.000000e+00> : vector<16x16xf32>
    %174 = tpu.matmul %171, %172, %cst_76 {dimension_numbers = #tpu.dot_dimension_numbers<[1], [1], [0], [0], [0, 0, 1, 0], [], []>} : vector<16x32xbf16>, vector<16x32xbf16>, vector<16x16xf32> -> vector<16x16xf32>
    %cst_77 = arith.constant 0.176776692 : f32
    %175 = vector.broadcast %cst_77 : f32 to vector<16x16xf32>
    %176 = arith.mulf %174, %175 : vector<16x16xf32>
    %cst_78 = arith.constant dense<0xFF800000> : vector<16xf32>
    %177 = vector.multi_reduction <maximumf>, %176, %cst_78 [1] : vector<16x16xf32> to vector<16xf32>
    %178 = vector.shape_cast %177 : vector<16xf32> to vector<16x1xf32>
    %179 = vector.broadcast %178 : vector<16x1xf32> to vector<16x16xf32>
    %180 = arith.subf %176, %179 : vector<16x16xf32>
    %181 = math.exp %180 : vector<16x16xf32>
    %cst_79 = arith.constant dense<0.000000e+00> : vector<16xf32>
    %182 = vector.multi_reduction <add>, %181, %cst_79 [1] : vector<16x16xf32> to vector<16xf32>
    %183 = vector.shape_cast %182 : vector<16xf32> to vector<16x1xf32>
    %184 = tpu.reciprocal %183 {approx = true} : vector<16x1xf32> -> vector<16x1xf32>
    %185 = vector.broadcast %184 : vector<16x1xf32> to vector<16x16xf32>
    %186 = arith.mulf %181, %185 : vector<16x16xf32>
    %187 = arith.truncf %186 : vector<16x16xf32> to vector<16x16xbf16>
    %cst_80 = arith.constant dense<0.000000e+00> : vector<16x32xf32>
    %188 = tpu.matmul %187, %173, %cst_80 {dimension_numbers = #tpu.dot_dimension_numbers<[1], [0], [0], [1], [0, 0, 1, 1], [], []>} : vector<16x16xbf16>, vector<16x32xbf16>, vector<16x32xf32> -> vector<16x32xf32>
    %c0_81 = arith.constant 0 : index
    %c32_82 = arith.constant 32 : index
    %189 = vector.load %arg28[%c0_81, %c32_82] : memref<16x128xf32, #tpu.memory_space<vmem>>, vector<16x32xf32>
    tpu.vector_store %arg28[%c0_81, %c32_82], %188 {strides = array<i32>} : memref<16x128xf32, #tpu.memory_space<vmem>>, vector<16x32xf32>,
    %190 = vector.extract_strided_slice %149 {offsets = [0, 64], sizes = [16, 32], strides = [1, 1]} : vector<16x128xbf16> to vector<16x32xbf16>
    %191 = vector.extract_strided_slice %150 {offsets = [0, 64], sizes = [16, 32], strides = [1, 1]} : vector<16x128xbf16> to vector<16x32xbf16>
    %192 = vector.extract_strided_slice %151 {offsets = [0, 64], sizes = [16, 32], strides = [1, 1]} : vector<16x128xbf16> to vector<16x32xbf16>
    %cst_83 = arith.constant dense<0.000000e+00> : vector<16x16xf32>
    %193 = tpu.matmul %190, %191, %cst_83 {dimension_numbers = #tpu.dot_dimension_numbers<[1], [1], [0], [0], [0, 0, 1, 0], [], []>} : vector<16x32xbf16>, vector<16x32xbf16>, vector<16x16xf32> -> vector<16x16xf32>
    %cst_84 = arith.constant 0.176776692 : f32
    %194 = vector.broadcast %cst_84 : f32 to vector<16x16xf32>
    %195 = arith.mulf %193, %194 : vector<16x16xf32>
    %cst_85 = arith.constant dense<0xFF800000> : vector<16xf32>
    %196 = vector.multi_reduction <maximumf>, %195, %cst_85 [1] : vector<16x16xf32> to vector<16xf32>
    %197 = vector.shape_cast %196 : vector<16xf32> to vector<16x1xf32>
    %198 = vector.broadcast %197 : vector<16x1xf32> to vector<16x16xf32>
    %199 = arith.subf %195, %198 : vector<16x16xf32>
    %200 = math.exp %199 : vector<16x16xf32>
    %cst_86 = arith.constant dense<0.000000e+00> : vector<16xf32>
    %201 = vector.multi_reduction <add>, %200, %cst_86 [1] : vector<16x16xf32> to vector<16xf32>
    %202 = vector.shape_cast %201 : vector<16xf32> to vector<16x1xf32>
    %203 = tpu.reciprocal %202 {approx = true} : vector<16x1xf32> -> vector<16x1xf32>
    %204 = vector.broadcast %203 : vector<16x1xf32> to vector<16x16xf32>
    %205 = arith.mulf %200, %204 : vector<16x16xf32>
    %206 = arith.truncf %205 : vector<16x16xf32> to vector<16x16xbf16>
    %cst_87 = arith.constant dense<0.000000e+00> : vector<16x32xf32>
    %207 = tpu.matmul %206, %192, %cst_87 {dimension_numbers = #tpu.dot_dimension_numbers<[1], [0], [0], [1], [0, 0, 1, 1], [], []>} : vector<16x16xbf16>, vector<16x32xbf16>, vector<16x32xf32> -> vector<16x32xf32>
    %c0_88 = arith.constant 0 : index
    %c64_89 = arith.constant 64 : index
    %208 = vector.load %arg28[%c0_88, %c64_89] : memref<16x128xf32, #tpu.memory_space<vmem>>, vector<16x32xf32>
    tpu.vector_store %arg28[%c0_88, %c64_89], %207 {strides = array<i32>} : memref<16x128xf32, #tpu.memory_space<vmem>>, vector<16x32xf32>,
    %209 = vector.extract_strided_slice %149 {offsets = [0, 96], sizes = [16, 32], strides = [1, 1]} : vector<16x128xbf16> to vector<16x32xbf16>
    %210 = vector.extract_strided_slice %150 {offsets = [0, 96], sizes = [16, 32], strides = [1, 1]} : vector<16x128xbf16> to vector<16x32xbf16>
    %211 = vector.extract_strided_slice %151 {offsets = [0, 96], sizes = [16, 32], strides = [1, 1]} : vector<16x128xbf16> to vector<16x32xbf16>
    %cst_90 = arith.constant dense<0.000000e+00> : vector<16x16xf32>
    %212 = tpu.matmul %209, %210, %cst_90 {dimension_numbers = #tpu.dot_dimension_numbers<[1], [1], [0], [0], [0, 0, 1, 0], [], []>} : vector<16x32xbf16>, vector<16x32xbf16>, vector<16x16xf32> -> vector<16x16xf32>
    %cst_91 = arith.constant 0.176776692 : f32
    %213 = vector.broadcast %cst_91 : f32 to vector<16x16xf32>
    %214 = arith.mulf %212, %213 : vector<16x16xf32>
    %cst_92 = arith.constant dense<0xFF800000> : vector<16xf32>
    %215 = vector.multi_reduction <maximumf>, %214, %cst_92 [1] : vector<16x16xf32> to vector<16xf32>
    %216 = vector.shape_cast %215 : vector<16xf32> to vector<16x1xf32>
    %217 = vector.broadcast %216 : vector<16x1xf32> to vector<16x16xf32>
    %218 = arith.subf %214, %217 : vector<16x16xf32>
    %219 = math.exp %218 : vector<16x16xf32>
    %cst_93 = arith.constant dense<0.000000e+00> : vector<16xf32>
    %220 = vector.multi_reduction <add>, %219, %cst_93 [1] : vector<16x16xf32> to vector<16xf32>
    %221 = vector.shape_cast %220 : vector<16xf32> to vector<16x1xf32>
    %222 = tpu.reciprocal %221 {approx = true} : vector<16x1xf32> -> vector<16x1xf32>
    %223 = vector.broadcast %222 : vector<16x1xf32> to vector<16x16xf32>
    %224 = arith.mulf %219, %223 : vector<16x16xf32>
    %225 = arith.truncf %224 : vector<16x16xf32> to vector<16x16xbf16>
    %cst_94 = arith.constant dense<0.000000e+00> : vector<16x32xf32>
    %226 = tpu.matmul %225, %211, %cst_94 {dimension_numbers = #tpu.dot_dimension_numbers<[1], [0], [0], [1], [0, 0, 1, 1], [], []>} : vector<16x16xbf16>, vector<16x32xbf16>, vector<16x32xf32> -> vector<16x32xf32>
    %c0_95 = arith.constant 0 : index
    %c96_96 = arith.constant 96 : index
    %227 = vector.load %arg28[%c0_95, %c96_96] : memref<16x128xf32, #tpu.memory_space<vmem>>, vector<16x32xf32>
    tpu.vector_store %arg28[%c0_95, %c96_96], %226 {strides = array<i32>} : memref<16x128xf32, #tpu.memory_space<vmem>>, vector<16x32xf32>,
    %c0_97 = arith.constant 0 : index
    %c0_98 = arith.constant 0 : index
    %228 = vector.load %arg28[%c0_97, %c0_98] : memref<16x128xf32, #tpu.memory_space<vmem>>, vector<16x128xf32>
    %229 = arith.truncf %228 : vector<16x128xf32> to vector<16x128xbf16>
    %c0_99 = arith.constant 0 : index
    %c0_100 = arith.constant 0 : index
    %c0_101 = arith.constant 0 : index
    %230 = vector.load %arg12[%c0_99, %c0_100, %c0_101] : memref<1x128x128xbf16, #tpu.memory_space<vmem>>, vector<1x128x128xbf16>
    %231 = vector.shape_cast %230 : vector<1x128x128xbf16> to vector<128x128xbf16>
    %cst_102 = arith.constant dense<0.000000e+00> : vector<16x128xf32>
    %232 = tpu.matmul %229, %231, %cst_102 {dimension_numbers = #tpu.dot_dimension_numbers<[1], [0], [0], [1], [0, 0, 1, 1], [], []>} : vector<16x128xbf16>, vector<128x128xbf16>, vector<16x128xf32> -> vector<16x128xf32>
    %c0_103 = arith.constant 0 : index
    %c0_104 = arith.constant 0 : index
    %c0_105 = arith.constant 0 : index
    %233 = vector.load %arg13[%c0_103, %c0_104, %c0_105] : memref<1x1x128xf32, #tpu.memory_space<vmem>>, vector<1x1x128xf32>
    %234 = vector.shape_cast %233 : vector<1x1x128xf32> to vector<1x128xf32>
    %235 = vector.broadcast %234 : vector<1x128xf32> to vector<16x128xf32>
    %236 = arith.addf %232, %235 : vector<16x128xf32>
    %237 = arith.addf %131, %236 : vector<16x128xf32>
    %c0_106 = arith.constant 0 : index
    %c0_107 = arith.constant 0 : index
    %c0_108 = arith.constant 0 : index
    %238 = vector.load %arg20[%c0_106, %c0_107, %c0_108] : memref<1x1x128xf32, #tpu.memory_space<vmem>>, vector<1x1x128xf32>
    %239 = vector.shape_cast %238 : vector<1x1x128xf32> to vector<1x128xf32>
    %c0_109 = arith.constant 0 : index
    %c0_110 = arith.constant 0 : index
    %c0_111 = arith.constant 0 : index
    %240 = vector.load %arg21[%c0_109, %c0_110, %c0_111] : memref<1x1x128xf32, #tpu.memory_space<vmem>>, vector<1x1x128xf32>
    %241 = vector.shape_cast %240 : vector<1x1x128xf32> to vector<1x128xf32>
    %cst_112 = arith.constant dense<0.000000e+00> : vector<16xf32>
    %242 = vector.multi_reduction <add>, %237, %cst_112 [1] : vector<16x128xf32> to vector<16xf32>
    %243 = vector.shape_cast %242 : vector<16xf32> to vector<16x1xf32>
    %cst_113 = arith.constant 1.280000e+02 : f32
    %244 = vector.broadcast %cst_113 : f32 to vector<16x1xf32>
    %245 = arith.divf %243, %244 : vector<16x1xf32>
    %246 = vector.broadcast %245 : vector<16x1xf32> to vector<16x128xf32>
    %247 = arith.subf %237, %246 : vector<16x128xf32>
    %248 = arith.mulf %247, %247 : vector<16x128xf32>
    %cst_114 = arith.constant dense<0.000000e+00> : vector<16xf32>
    %249 = vector.multi_reduction <add>, %248, %cst_114 [1] : vector<16x128xf32> to vector<16xf32>
    %250 = vector.shape_cast %249 : vector<16xf32> to vector<16x1xf32>
    %cst_115 = arith.constant 1.280000e+02 : f32
    %251 = vector.broadcast %cst_115 : f32 to vector<16x1xf32>
    %252 = arith.divf %250, %251 : vector<16x1xf32>
    %253 = vector.broadcast %245 : vector<16x1xf32> to vector<16x128xf32>
    %254 = arith.subf %237, %253 : vector<16x128xf32>
    %cst_116 = arith.constant 9.99999974E-6 : f32
    %255 = vector.broadcast %cst_116 : f32 to vector<16x1xf32>
    %256 = arith.addf %252, %255 : vector<16x1xf32>
    %257 = math.rsqrt %256 : vector<16x1xf32>
    %258 = vector.broadcast %257 : vector<16x1xf32> to vector<16x128xf32>
    %259 = arith.mulf %254, %258 : vector<16x128xf32>
    %260 = vector.broadcast %239 : vector<1x128xf32> to vector<16x128xf32>
    %261 = arith.mulf %259, %260 : vector<16x128xf32>
    %262 = vector.broadcast %241 : vector<1x128xf32> to vector<16x128xf32>
    %263 = arith.addf %261, %262 : vector<16x128xf32>
    %264 = arith.truncf %263 : vector<16x128xf32> to vector<16x128xbf16>
    %c0_117 = arith.constant 0 : index
    %c0_118 = arith.constant 0 : index
    %c0_119 = arith.constant 0 : index
    %265 = vector.load %arg14[%c0_117, %c0_118, %c0_119] : memref<1x128x256xbf16, #tpu.memory_space<vmem>>, vector<1x128x256xbf16>
    %266 = vector.shape_cast %265 : vector<1x128x256xbf16> to vector<128x256xbf16>
    %cst_120 = arith.constant dense<0.000000e+00> : vector<16x256xf32>
    %267 = tpu.matmul %264, %266, %cst_120 {dimension_numbers = #tpu.dot_dimension_numbers<[1], [0], [0], [1], [0, 0, 1, 1], [], []>} : vector<16x128xbf16>, vector<128x256xbf16>, vector<16x256xf32> -> vector<16x256xf32>
    %c0_121 = arith.constant 0 : index
    %c0_122 = arith.constant 0 : index
    %c0_123 = arith.constant 0 : index
    %268 = vector.load %arg15[%c0_121, %c0_122, %c0_123] : memref<1x1x256xf32, #tpu.memory_space<vmem>>, vector<1x1x256xf32>
    %269 = vector.shape_cast %268 : vector<1x1x256xf32> to vector<1x256xf32>
    %270 = vector.broadcast %269 : vector<1x256xf32> to vector<16x256xf32>
    %271 = arith.addf %267, %270 : vector<16x256xf32>
    %cst_124 = arith.constant 0.000000e+00 : f32
    %272 = vector.broadcast %cst_124 : f32 to vector<16x256xf32>
    %273 = arith.maximumf %271, %272 : vector<16x256xf32>
    %274 = arith.truncf %273 : vector<16x256xf32> to vector<16x256xbf16>
    %c0_125 = arith.constant 0 : index
    %c0_126 = arith.constant 0 : index
    %c0_127 = arith.constant 0 : index
    %275 = vector.load %arg16[%c0_125, %c0_126, %c0_127] : memref<1x256x128xbf16, #tpu.memory_space<vmem>>, vector<1x256x128xbf16>
    %276 = vector.shape_cast %275 : vector<1x256x128xbf16> to vector<256x128xbf16>
    %cst_128 = arith.constant dense<0.000000e+00> : vector<16x128xf32>
    %277 = tpu.matmul %274, %276, %cst_128 {dimension_numbers = #tpu.dot_dimension_numbers<[1], [0], [0], [1], [0, 0, 1, 1], [], []>} : vector<16x256xbf16>, vector<256x128xbf16>, vector<16x128xf32> -> vector<16x128xf32>
    %c0_129 = arith.constant 0 : index
    %c0_130 = arith.constant 0 : index
    %c0_131 = arith.constant 0 : index
    %278 = vector.load %arg17[%c0_129, %c0_130, %c0_131] : memref<1x1x128xf32, #tpu.memory_space<vmem>>, vector<1x1x128xf32>
    %279 = vector.shape_cast %278 : vector<1x1x128xf32> to vector<1x128xf32>
    %280 = vector.broadcast %279 : vector<1x128xf32> to vector<16x128xf32>
    %281 = arith.addf %277, %280 : vector<16x128xf32>
    %282 = arith.addf %263, %281 : vector<16x128xf32>
    %c0_132 = arith.constant 0 : index
    %c0_133 = arith.constant 0 : index
    %c0_134 = arith.constant 0 : index
    %283 = vector.load %arg22[%c0_132, %c0_133, %c0_134] : memref<1x1x128xf32, #tpu.memory_space<vmem>>, vector<1x1x128xf32>
    %284 = vector.shape_cast %283 : vector<1x1x128xf32> to vector<1x128xf32>
    %c0_135 = arith.constant 0 : index
    %c0_136 = arith.constant 0 : index
    %c0_137 = arith.constant 0 : index
    %285 = vector.load %arg23[%c0_135, %c0_136, %c0_137] : memref<1x1x128xf32, #tpu.memory_space<vmem>>, vector<1x1x128xf32>
    %286 = vector.shape_cast %285 : vector<1x1x128xf32> to vector<1x128xf32>
    %cst_138 = arith.constant dense<0.000000e+00> : vector<16xf32>
    %287 = vector.multi_reduction <add>, %282, %cst_138 [1] : vector<16x128xf32> to vector<16xf32>
    %288 = vector.shape_cast %287 : vector<16xf32> to vector<16x1xf32>
    %cst_139 = arith.constant 1.280000e+02 : f32
    %289 = vector.broadcast %cst_139 : f32 to vector<16x1xf32>
    %290 = arith.divf %288, %289 : vector<16x1xf32>
    %291 = vector.broadcast %290 : vector<16x1xf32> to vector<16x128xf32>
    %292 = arith.subf %282, %291 : vector<16x128xf32>
    %293 = arith.mulf %292, %292 : vector<16x128xf32>
    %cst_140 = arith.constant dense<0.000000e+00> : vector<16xf32>
    %294 = vector.multi_reduction <add>, %293, %cst_140 [1] : vector<16x128xf32> to vector<16xf32>
    %295 = vector.shape_cast %294 : vector<16xf32> to vector<16x1xf32>
    %cst_141 = arith.constant 1.280000e+02 : f32
    %296 = vector.broadcast %cst_141 : f32 to vector<16x1xf32>
    %297 = arith.divf %295, %296 : vector<16x1xf32>
    %298 = vector.broadcast %290 : vector<16x1xf32> to vector<16x128xf32>
    %299 = arith.subf %282, %298 : vector<16x128xf32>
    %cst_142 = arith.constant 9.99999974E-6 : f32
    %300 = vector.broadcast %cst_142 : f32 to vector<16x1xf32>
    %301 = arith.addf %297, %300 : vector<16x1xf32>
    %302 = math.rsqrt %301 : vector<16x1xf32>
    %303 = vector.broadcast %302 : vector<16x1xf32> to vector<16x128xf32>
    %304 = arith.mulf %299, %303 : vector<16x128xf32>
    %305 = vector.broadcast %284 : vector<1x128xf32> to vector<16x128xf32>
    %306 = arith.mulf %304, %305 : vector<16x128xf32>
    %307 = vector.broadcast %286 : vector<1x128xf32> to vector<16x128xf32>
    %308 = arith.addf %306, %307 : vector<16x128xf32>
    %c0_143 = arith.constant 0 : index
    %c0_144 = arith.constant 0 : index
    %309 = vector.load %arg27[%c0_143, %c0_144] : memref<16x128xf32, #tpu.memory_space<vmem>>, vector<16x128xf32>
    tpu.vector_store %arg27[%c0_143, %c0_144], %308 {strides = array<i32>} : memref<16x128xf32, #tpu.memory_space<vmem>>, vector<16x128xf32>,
    %c1_i32 = arith.constant 1 : i32
    %310 = arith.cmpi eq, %arg1, %c1_i32 : i32
    %311 = arith.extui %310 : i1 to i32
    %c0_i32_145 = arith.constant 0 : i32
    %312 = arith.cmpi ne, %311, %c0_i32_145 : i32
    scf.if %312 {
      %313 = arith.truncf %308 : vector<16x128xf32> to vector<16x128xbf16>
      %c0_146 = arith.constant 0 : index
      %c0_147 = arith.constant 0 : index
      %314 = vector.load %arg24[%c0_146, %c0_147] : memref<128x256xbf16, #tpu.memory_space<vmem>>, vector<128x256xbf16>
      %cst_148 = arith.constant dense<0.000000e+00> : vector<16x256xf32>
      %315 = tpu.matmul %313, %314, %cst_148 {dimension_numbers = #tpu.dot_dimension_numbers<[1], [0], [0], [1], [0, 0, 1, 1], [], []>} : vector<16x128xbf16>, vector<128x256xbf16>, vector<16x256xf32> -> vector<16x256xf32>
      %c0_149 = arith.constant 0 : index
      %c0_150 = arith.constant 0 : index
      %316 = vector.load %arg25[%c0_149, %c0_150] : memref<1x256xf32, #tpu.memory_space<vmem>>, vector<1x256xf32>
      %317 = vector.broadcast %316 : vector<1x256xf32> to vector<16x256xf32>
      %318 = arith.addf %315, %317 : vector<16x256xf32>
      %c0_151 = arith.constant 0 : index
      %c0_152 = arith.constant 0 : index
      %319 = vector.load %arg26[%c0_151, %c0_152] : memref<16x256xf32, #tpu.memory_space<vmem>>, vector<16x256xf32>
      tpu.vector_store %arg26[%c0_151, %c0_152], %318 {strides = array<i32>} : memref<16x256xf32, #tpu.memory_space<vmem>>, vector<16x256xf32>,
    } else {
    }
    return
  }
  func.func @transform_0(%arg0: i32, %arg1: i32) -> (i32, i32) {
    %c0_i32 = arith.constant 0 : i32
    %c0_i32_0 = arith.constant 0 : i32
    return %arg0, %c0_i32 : i32, i32
  }
  func.func @transform_1(%arg0: i32, %arg1: i32) -> (i32, i32) {
    %c0_i32 = arith.constant 0 : i32
    %c0_i32_0 = arith.constant 0 : i32
    return %arg0, %c0_i32 : i32, i32
  }
  func.func @transform_2(%arg0: i32, %arg1: i32) -> (i32, i32, i32) {
    %c0_i32 = arith.constant 0 : i32
    %c0_i32_0 = arith.constant 0 : i32
    %c0_i32_1 = arith.constant 0 : i32
    return %arg1, %c0_i32, %c0_i32_0 : i32, i32, i32
  }
  func.func @transform_3(%arg0: i32, %arg1: i32) -> (i32, i32, i32) {
    %c0_i32 = arith.constant 0 : i32
    %c0_i32_0 = arith.constant 0 : i32
    %c0_i32_1 = arith.constant 0 : i32
    return %arg1, %c0_i32, %c0_i32_0 : i32, i32, i32
  }
  func.func @transform_4(%arg0: i32, %arg1: i32) -> (i32, i32, i32) {
    %c0_i32 = arith.constant 0 : i32
    %c0_i32_0 = arith.constant 0 : i32
    %c0_i32_1 = arith.constant 0 : i32
    return %arg1, %c0_i32, %c0_i32_0 : i32, i32, i32
  }
  func.func @transform_5(%arg0: i32, %arg1: i32) -> (i32, i32, i32) {
    %c0_i32 = arith.constant 0 : i32
    %c0_i32_0 = arith.constant 0 : i32
    %c0_i32_1 = arith.constant 0 : i32
    return %arg1, %c0_i32, %c0_i32_0 : i32, i32, i32
  }
  func.func @transform_6(%arg0: i32, %arg1: i32) -> (i32, i32, i32) {
    %c0_i32 = arith.constant 0 : i32
    %c0_i32_0 = arith.constant 0 : i32
    %c0_i32_1 = arith.constant 0 : i32
    return %arg1, %c0_i32, %c0_i32_0 : i32, i32, i32
  }
  func.func @transform_7(%arg0: i32, %arg1: i32) -> (i32, i32, i32) {
    %c0_i32 = arith.constant 0 : i32
    %c0_i32_0 = arith.constant 0 : i32
    %c0_i32_1 = arith.constant 0 : i32
    return %arg1, %c0_i32, %c0_i32_0 : i32, i32, i32
  }
  func.func @transform_8(%arg0: i32, %arg1: i32) -> (i32, i32, i32) {
    %c0_i32 = arith.constant 0 : i32
    %c0_i32_0 = arith.constant 0 : i32
    %c0_i32_1 = arith.constant 0 : i32
    return %arg1, %c0_i32, %c0_i32_0 : i32, i32, i32
  }
  func.func @transform_9(%arg0: i32, %arg1: i32) -> (i32, i32, i32) {
    %c0_i32 = arith.constant 0 : i32
    %c0_i32_0 = arith.constant 0 : i32
    %c0_i32_1 = arith.constant 0 : i32
    return %arg1, %c0_i32, %c0_i32_0 : i32, i32, i32
  }
  func.func @transform_10(%arg0: i32, %arg1: i32) -> (i32, i32, i32) {
    %c0_i32 = arith.constant 0 : i32
    %c0_i32_0 = arith.constant 0 : i32
    %c0_i32_1 = arith.constant 0 : i32
    return %arg1, %c0_i32, %c0_i32_0 : i32, i32, i32
  }
  func.func @transform_11(%arg0: i32, %arg1: i32) -> (i32, i32, i32) {
    %c0_i32 = arith.constant 0 : i32
    %c0_i32_0 = arith.constant 0 : i32
    %c0_i32_1 = arith.constant 0 : i32
    return %arg1, %c0_i32, %c0_i32_0 : i32, i32, i32
  }
  func.func @transform_12(%arg0: i32, %arg1: i32) -> (i32, i32, i32) {
    %c0_i32 = arith.constant 0 : i32
    %c0_i32_0 = arith.constant 0 : i32
    %c0_i32_1 = arith.constant 0 : i32
    return %arg1, %c0_i32, %c0_i32_0 : i32, i32, i32
  }
  func.func @transform_13(%arg0: i32, %arg1: i32) -> (i32, i32, i32) {
    %c0_i32 = arith.constant 0 : i32
    %c0_i32_0 = arith.constant 0 : i32
    %c0_i32_1 = arith.constant 0 : i32
    return %arg1, %c0_i32, %c0_i32_0 : i32, i32, i32
  }
  func.func @transform_14(%arg0: i32, %arg1: i32) -> (i32, i32, i32) {
    %c0_i32 = arith.constant 0 : i32
    %c0_i32_0 = arith.constant 0 : i32
    %c0_i32_1 = arith.constant 0 : i32
    return %arg1, %c0_i32, %c0_i32_0 : i32, i32, i32
  }
  func.func @transform_15(%arg0: i32, %arg1: i32) -> (i32, i32, i32) {
    %c0_i32 = arith.constant 0 : i32
    %c0_i32_0 = arith.constant 0 : i32
    %c0_i32_1 = arith.constant 0 : i32
    return %arg1, %c0_i32, %c0_i32_0 : i32, i32, i32
  }
  func.func @transform_16(%arg0: i32, %arg1: i32) -> (i32, i32, i32) {
    %c0_i32 = arith.constant 0 : i32
    %c0_i32_0 = arith.constant 0 : i32
    %c0_i32_1 = arith.constant 0 : i32
    return %arg1, %c0_i32, %c0_i32_0 : i32, i32, i32
  }
  func.func @transform_17(%arg0: i32, %arg1: i32) -> (i32, i32, i32) {
    %c0_i32 = arith.constant 0 : i32
    %c0_i32_0 = arith.constant 0 : i32
    %c0_i32_1 = arith.constant 0 : i32
    return %arg1, %c0_i32, %c0_i32_0 : i32, i32, i32
  }
  func.func @transform_18(%arg0: i32, %arg1: i32) -> (i32, i32, i32) {
    %c0_i32 = arith.constant 0 : i32
    %c0_i32_0 = arith.constant 0 : i32
    %c0_i32_1 = arith.constant 0 : i32
    return %arg1, %c0_i32, %c0_i32_0 : i32, i32, i32
  }
  func.func @transform_19(%arg0: i32, %arg1: i32) -> (i32, i32, i32) {
    %c0_i32 = arith.constant 0 : i32
    %c0_i32_0 = arith.constant 0 : i32
    %c0_i32_1 = arith.constant 0 : i32
    return %arg1, %c0_i32, %c0_i32_0 : i32, i32, i32
  }
  func.func @transform_20(%arg0: i32, %arg1: i32) -> (i32, i32, i32) {
    %c0_i32 = arith.constant 0 : i32
    %c0_i32_0 = arith.constant 0 : i32
    %c0_i32_1 = arith.constant 0 : i32
    return %arg1, %c0_i32, %c0_i32_0 : i32, i32, i32
  }
  func.func @transform_21(%arg0: i32, %arg1: i32) -> (i32, i32, i32) {
    %c0_i32 = arith.constant 0 : i32
    %c0_i32_0 = arith.constant 0 : i32
    %c0_i32_1 = arith.constant 0 : i32
    return %arg1, %c0_i32, %c0_i32_0 : i32, i32, i32
  }
  func.func @transform_22(%arg0: i32, %arg1: i32) -> (i32, i32) {
    %c0_i32 = arith.constant 0 : i32
    %c0_i32_0 = arith.constant 0 : i32
    %c0_i32_1 = arith.constant 0 : i32
    return %c0_i32, %c0_i32_0 : i32, i32
  }
  func.func @transform_23(%arg0: i32, %arg1: i32) -> (i32, i32) {
    %c0_i32 = arith.constant 0 : i32
    %c0_i32_0 = arith.constant 0 : i32
    %c0_i32_1 = arith.constant 0 : i32
    return %c0_i32, %c0_i32_0 : i32, i32
  }
  func.func @transform_24(%arg0: i32, %arg1: i32) -> (i32, i32) {
    %c0_i32 = arith.constant 0 : i32
    %c0_i32_0 = arith.constant 0 : i32
    return %arg0, %c0_i32 : i32, i32
  }
}

</mosaic_0001>

<bundles_post_ra>
// kernel: basic_model_forward.3
= control target key start
LH: loop header
LB: loop body
LE: loop exit
PB: predicated region body
PF: predicated region fallthrough
CT: control target
= control target key end

     0   :  { %s2986_s0 = inlined_call_operand.vmem [shape: f32[64,128], index: 0, kind: input, shape index: {}]   ;;  %s2987_s1 = inlined_call_operand.vmem [shape: bf16[2,128,384], index: 1, kind: input, shape index: {}]   ;;  %s2988_s2 = inlined_call_operand.vmem [shape: f32[2,1,384], index: 2, kind: input, shape index: {}]   ;;  %s2989_s3 = inlined_call_operand.vmem [shape: bf16[2,128,128], index: 3, kind: input, shape index: {}]   ;;  %s2990_s4 = inlined_call_operand.vmem [shape: f32[2,1,128], index: 4, kind: input, shape index: {}]   ;;  %s2991_s5 = inlined_call_operand.vmem [shape: bf16[2,128,256], index: 5, kind: input, shape index: {}]   ;;  %s2992_s6 = inlined_call_operand.vmem [shape: f32[2,1,256], index: 6, kind: input, shape index: {}]   ;;  %s2993_s7 = inlined_call_operand.hbm [shape: bf16[2,256,128], index: 7, kind: input, shape index: {}]   ;;  %s2994_s8 = inlined_call_operand.vmem [shape: f32[2,1,128], index: 8, kind: input, shape index: {}]   ;;  %s2995_s9 = inlined_call_operand.vmem [shape: f32[2,1,128], index: 9, kind: input, shape index: {}]   ;;  %s2996_s10 = inlined_call_operand.vmem [shape: f32[2,1,128], index: 10, kind: input, shape index: {}]   ;;  %s2997_s11 = inlined_call_operand.vmem [shape: f32[2,1,128], index: 11, kind: input, shape index: {}]   ;;  %s2998_s12 = inlined_call_operand.vmem [shape: f32[2,1,128], index: 12, kind: input, shape index: {}]   ;;  %s2999_s13 = inlined_call_operand.vmem [shape: f32[64,128], index: 13, kind: output, shape index: {}]  }
   0x1   :  { %3007 = sst [smem:[#allocation17_spill]] %s2986_s0 }
   0x2   :  { %3008 = sst [smem:[#allocation18_spill]] %s2987_s1 }
   0x3   :  { %3009 = sst [smem:[#allocation19_spill]] %s2988_s2 }
   0x4   :  { %3010 = sst [smem:[#allocation20_spill]] %s2989_s3 }
   0x5   :  { %3011 = sst [smem:[#allocation21_spill]] %s2991_s5 }
   0x6   :  { %3012 = sst [smem:[#allocation22_spill]] %s2992_s6 }
   0x7   :  { %3013 = sst [smem:[#allocation23_spill]] %s2993_s7 }
   0x8   :  { %3014 = sst [smem:[#allocation24_spill]] %s2996_s10 }
   0x9   :  { %3015 = sst [smem:[#allocation25_spill]] %s2997_s11 }
   0xa   :  { %3016 = sst [smem:[#allocation26_spill]] %s2998_s12 }
   0xb   :  { %3017 = sst [smem:[#allocation27_spill]] %s2999_s13 }
   0xc   :  { %18 = vsyncpa [#allocation5], 0 }
   0xd   :  { %20 = vsyncpa [#allocation5 + $0x1], 0  ;;  %s2591_s25 = smov 0   ;;  %s2593_s26 = smov 0  }
   0xe   :  { %s2595_s27 = smov 0   ;;  %s2597_s28 = smov 0  }
   0xf   :  { %s2599_s29 = smov 0   ;;  %s2601_s30 = smov 0  }
  0x10   :  { %s2603_s14 = smov 0   ;;  %s2605_s15 = smov 0  }
  0x11 LB: > { %3018 = sst [smem:[#allocation7_spill]] %s2489_s26  ;;  %s1936_s16 = sadd.s32 4294967295, %s2513_s15   ;;  %s2513_s15 = sphi %s2605_s15, %s26_s15   ;;  %s2509_s14 = sphi %s2603_s14, %s3054_s14   ;;  %s2505_s30 = sphi %s2601_s30, %s3053_s30   ;;  %s2501_s29 = sphi %s2599_s29, %s3052_s29   ;;  %s2497_s28 = sphi %s2597_s28, %s3051_s28   ;;  %s2493_s27 = sphi %s2595_s27, %s3050_s27   ;;  %s2489_s26 = sphi %s2593_s26, %s3049_s26   ;;  %s2485_s25 = sphi %s2591_s25, %s3048_s25  }
  0x12   : > { %3019 = sst [smem:[#allocation8_spill]] %s2493_s27  ;;  %s35_s17 = sadd.s32 1, %s2505_s30 }
  0x13   : > { %3020 = sst [smem:[#allocation9_spill]] %s2505_s30  ;;  %p36_p0 = scmp.ge.s32.totalorder %s35_s17, 2 }
  0x14   : > { %3021 = sst [smem:[#allocation10_spill]] %s2509_s14  ;;  %s38_s18 = sadd.s32 1, %s2509_s14 }
  0x15   : > { %3022 = sst [smem:[#allocation11_spill]] %s2513_s15  ;;  %s227_s19 = sadd.s32 1, %s2493_s27 }
  0x16   : > { %p234_p1 = scmp.ne.s32.totalorder %s2493_s27, %s2489_s26  ;;  %s3056_s17 = smov (%p36_p0, %s35_s17), 0 }
  0x17   : > { %3023 = sst [smem:[#allocation12_spill]] %s3056_s17  ;;  %s3058_s18 = smov (!%p36_p0, %s38_s18), %s2509_s14 }
  0x18   : > { %s224_s20 = ssub.s32 %s2505_s30, %s3056_s17  ;;  %p235_p2 = scmp.eq.s32.totalorder %s2513_s15, 0 }
  0x19   : > { %p40_p3 = scmp.ge.s32.totalorder %s3058_s18, 4  ;;  %p225_p4 = scmp.eq.s32.totalorder %s224_s20, 0 }
  0x1a   : > { %p2641_p5 = por %p235_p2, %p234_p1  ;;  %p240_p6 = scmp.ne.s32.totalorder %s2489_s26, %s2485_s25 }
  0x1b   : > { %s3060_s18 = smov (%p40_p3, %s3058_s18), 0  ;;  %p241_p7 = scmp.eq.s32.totalorder %s1936_s16, 0 }
  0x1c   : > { %3025 = sst [smem:[#allocation13_spill]] %s3060_s18  ;;  %p2298_p8 = scmp.lt.s32.totalorder %s2513_s15, 8 }
  0x1d   : > { %s2649_s22 = scalar_select %p225_p4, %s2493_s27, %s227_s19  }
  0x1e   : > { %s473_s23 = sand.u32 1, %s2493_s27   ;;  %p2653_p9 = por %p241_p7, %p240_p6 }
  0x1f   : > { %3026 = sst [smem:[#allocation14_spill]] %s2649_s22  ;;  %s1940_s20 = sshll.u32 %s473_s23, 7 }
  0x20   : > { %s2223_s17 = sshll.u32 %s2505_s30, 7  ;;  %s3028_s7 = sld [smem:[#allocation23_spill]] }
  0x21   : > { %s477_s11 = scalar_lea.vmem [#allocation4], %s1940_s20  ;;  %p2295_p10 = pnand %p2298_p8, %p2641_p5 }
  0x22   : > { %s485_s10 = sshll.u32 %s477_s11, 4  ;;  %p1943_p11 = scmp.ge.s32.totalorder %s2513_s15, 1  ;;  %s486_s10 = int_to_ptr.vmem [resolvable:$true] %s485_s10 }
  0x23   : > { %p523_p12 = scmp.lt.s32.totalorder %s2513_s15, 9  ;;  %s474_s16 = scalar_lea.sflag [#allocation5], %s473_s23 }
  0x24   : > { %s2515_s19 = smov 64   ;;  %s2516_s18 = smov 4  }
  0x25   : > { %p524_p13 = pnand %p1943_p11, %p523_p12 }
  0x26   : > { %s482_s12 = scalar_lea.hbm %s3028_s7, %s2223_s17 }
  0x27   : > { %s483_s25 = sshll.u32 %s482_s12, 4  ;;  %527 = sbr.rel (%p524_p13) target bundleno = 2322 (0x912), region = 72  ;;  %s484_s25 = int_to_ptr.hbm [resolvable:$true] %s483_s25 }
  0x28   : > { %2297 = dma.hbm_to_vmem [thread:$0]  (!%p2295_p10), %s484_s25, 2048, %s486_s10, %s474_s16, %s2515_s19, %s2515_s19, %s2516_s18  }
  0x2c   : > { %s529_s30 = sand.u32 1, %s2489_s26  }
  0x2d   : > { %s1944_s13 = sshll.u32 %s529_s30, 7  ;;  %s530_s14 = scalar_lea.sflag [#allocation5], %s529_s30 }
  0x2e   : > { %s2666_s12 = scalar_lea.vmem [#allocation4], %s1944_s13 }
  0x2f   : > { %3029 = sst [smem:[#allocation15_spill]] %s2666_s12 }
  0x30   : > { %2480 = dma.done.wait (%p2653_p9), %s530_s14, 2048  }
  0x31   : > { %2482 = vsyncadd (%p2653_p9), %s530_s14, 4294965248  ;;  %s1945_s11 = sshll.u32 %s2501_s29, 1  ;;  %p629_p0 = scmp.lt.s32.totalorder %s2497_s28, 1 }
  0x32   : > { %p624_p1 = scmp.lt.s32.totalorder %s1945_s11, 7  ;;  %s3030_s0 = sld [smem:[#allocation17_spill]] }
  0x33   : > { %s2675_s10 = scalar_select %p629_p0, %s2497_s28, 1 }
  0x34   : > { %s3062_s11 = smov (!%p624_p1, %s1945_s11), 7  ;;  %s3031_s1 = sld [smem:[#allocation18_spill]] }
  0x35   : > { %s2290_s30 = smul.u32 192, %s2675_s10  ;;  %s2224_s17 = sshll.u32 %s2675_s10, 6 }
  0x36   : > { %s1946_s18 = sshll.u32 %s3062_s11, 3  ;;  %s2291_s29 = smul.u32 3, %s2675_s10 }
  0x37   : > { %s3032_s2 = sld [smem:[#allocation19_spill]]  ;;  %s2225_s23 = sshll.u32 %s2675_s10, 7 }
  0x38   : > { %s627_s24 = scalar_lea.vmem %s3030_s0, %s1946_s18  ;;  %s3033_s3 = sld [smem:[#allocation20_spill]] }
  0x39   : > { %s3034_s5 = sld [smem:[#allocation21_spill]]  ;;  %s1952_s20 = sshll.u32 %s2675_s10, 1 }
  0x3a   : > { %s2686_s16 = scalar_lea.vmem %s3031_s1, %s2290_s30  ;;  %s3035_s6 = sld [smem:[#allocation22_spill]] }
  0x3b   : > { %s657_s22 = scalar_lea.vmem %s2994_s8, %s2675_s10  ;;  %s660_s26 = scalar_lea.vmem %s2995_s9, %s2675_s10 }
  0x3c   : > { %s3040_s13 = sld [smem:[#allocation27_spill]]  ;;  %p1955_p2 = scmp.ne.s32.totalorder %s2497_s28, 0 }
  0x3d   : > { %s2691_s14 = scalar_lea.vmem %s3032_s2, %s2291_s29  ;;  %s3037_s2 = sld [smem:[#allocation24_spill]] }
  0x3e   : > { %s2696_s27 = scalar_lea.vmem %s3033_s3, %s2224_s17  ;;  %s3038_s3 = sld [smem:[#allocation25_spill]] }
  0x3f   : > { %s2706_s30 = scalar_lea.vmem %s3034_s5, %s2225_s23 }
  0x40   : > { %s2712_s29 = scalar_lea.vmem %s3035_s6, %s1952_s20  ;;  %s3039_s20 = sld [smem:[#allocation26_spill]] }
  0x41   : > { %3036 = sst [smem:[#allocation16_spill]] %s2712_s29 }
  0x42   : > { %s2737_s7 = scalar_lea.vmem %s3040_s13, %s1946_s18  ;;  %680 = sbr.rel (%p1955_p2) target bundleno = 74 (0x4a), region = 80 }
  0x43   : > { %s663_s0 = scalar_lea.vmem %s3037_s2, %s2675_s10 }
  0x44   : > { %s666_s5 = scalar_lea.vmem %s3038_s3, %s2675_s10 }
  0x46   : > { %s669_s19 = scalar_lea.vmem %s3039_s20, %s2675_s10 }
  0x47   : > { %v681_v0 = vld [vmem:[%s627_s24] sm:$0xff]  ;;  %v682_v1 = vld [vmem:[%s627_s24 + $0x8] sm:$0xff] }
  0x48   : > { %683 = vst [vmem:[#allocation2] sm:$0xff] %v681_v0 }
  0x49   : > { %684 = vst [vmem:[#allocation2 + $0x8] sm:$0xff] %v682_v1 }
  0x4a PF: > { %v2042_v2 = vld [vmem:[%s2686_s16 + $0xa8] sm:$0xf]  ;;  %v2248_v3 = vld [vmem:[%s2686_s16 + $0xb0] sm:$0xf0]  ;;  %v2247_v4 = vld [vmem:[%s2686_s16 + $0xac] sm:$0xf]  ;;  %s3041_s12 = scalar_lea.vmem %s2990_s4, %s2675_s10 }
  0x4b   : > { %v2043_v5 = vor.u32 %v2248_v3, %v2042_v2  ;;  %v2044_v6 = vld [vmem:[%s2686_s16 + $0xb4] sm:$0xf0]  ;;  %v2030_v7 = vld [vmem:[%s2686_s16 + $0x90] sm:$0xf]  ;;  %v2245_v8 = vld [vmem:[%s2686_s16 + $0x98] sm:$0xf0] }
  0x4c   : > { %v2047_v9 = vor.u32 %v2247_v4, %v2044_v6  ;;  %v2244_v10 = vld [vmem:[%s2686_s16 + $0x94] sm:$0xf]  ;;  %v2032_v11 = vld [vmem:[%s2686_s16 + $0x9c] sm:$0xf0]  ;;  %v2031_v12 = vor.u32 %v2245_v8, %v2030_v7  ;;  %v2018_v14 = vld [vmem:[%s2686_s16 + $0x78] sm:$0xf] }
  0x4d   : > { %856 = vmatpush.bf16.msra.mxu0 %v2043_v5  ;;  %v2035_v13 = vor.u32 %v2244_v10, %v2032_v11  ;;  %v2242_v15 = vld [vmem:[%s2686_s16 + $0x80] sm:$0xf0]  ;;  %v2241_v16 = vld [vmem:[%s2686_s16 + $0x7c] sm:$0xf]  ;;  %v2020_v17 = vld [vmem:[%s2686_s16 + $0x84] sm:$0xf0] }
  0x4e   : > { %870 = vmatpush.bf16.msra.mxu1 %v2047_v9  ;;  %v2019_v18 = vor.u32 %v2242_v15, %v2018_v14  ;;  %v2023_v19 = vor.u32 %v2241_v16, %v2020_v17  ;;  %v2006_v20 = vld [vmem:[%s2686_s16 + $0x60] sm:$0xf]  ;;  %v2239_v21 = vld [vmem:[%s2686_s16 + $0x68] sm:$0xf0]  ;;  %v2238_v22 = vld [vmem:[%s2686_s16 + $0x64] sm:$0xf] }
  0x4f   : > { %v2008_v23 = vld [vmem:[%s2686_s16 + $0x6c] sm:$0xf0]  ;;  %v2007_v24 = vor.u32 %v2239_v21, %v2006_v20  ;;  %v1994_v25 = vld [vmem:[%s2686_s16 + $0x48] sm:$0xf]  ;;  %v2249_v27 = vld [vmem:[%s2686_s16 + $0xb8] sm:$0xf0] }
  0x50   : > { %v2050_v26 = vld [vmem:[%s2686_s16 + $0xb0] sm:$0xf]  ;;  %v2011_v28 = vor.u32 %v2238_v22, %v2008_v23  ;;  %v2236_v29 = vld [vmem:[%s2686_s16 + $0x50] sm:$0xf0]  ;;  %v2038_v31 = vld [vmem:[%s2686_s16 + $0x98] sm:$0xf] }
  0x51   : > { %857 = vmatpush.bf16.msra.mxu0 %v2031_v12  ;;  %v2051_v30 = vor.u32 %v2249_v27, %v2050_v26  ;;  %v2246_v32 = vld [vmem:[%s2686_s16 + $0xa0] sm:$0xf0]  ;;  %v2235_v33 = vld [vmem:[%s2686_s16 + $0x4c] sm:$0xf]  ;;  %v1996_v34 = vld [vmem:[%s2686_s16 + $0x54] sm:$0xf0]  ;;  %v1995_v36 = vor.u32 %v2236_v29, %v1994_v25 }
  0x52   : > { %871 = vmatpush.bf16.msra.mxu1 %v2035_v13  ;;  %v2039_v35 = vor.u32 %v2246_v32, %v2038_v31  ;;  %v2026_v37 = vld [vmem:[%s2686_s16 + $0x80] sm:$0xf]  ;;  %v2243_v38 = vld [vmem:[%s2686_s16 + $0x88] sm:$0xf0]  ;;  %v1999_v39 = vor.u32 %v2235_v33, %v1996_v34  ;;  %v1982_v40 = vld [vmem:[%s2686_s16 + $0x30] sm:$0xf] }
  0x53   : > { %884 = vmatpush.bf16.msra.mxu2 %v2051_v30  ;;  %v2233_v41 = vld [vmem:[%s2686_s16 + $0x38] sm:$0xf0]  ;;  %v2232_v42 = vld [vmem:[%s2686_s16 + $0x34] sm:$0xf]  ;;  %v1984_v43 = vld [vmem:[%s2686_s16 + $0x3c] sm:$0xf0]  ;;  %v2027_v44 = vor.u32 %v2243_v38, %v2026_v37 }
  0x54   : > { %v1983_v45 = vor.u32 %v2233_v41, %v1982_v40  ;;  %v2014_v46 = vld [vmem:[%s2686_s16 + $0x68] sm:$0xf]  ;;  %v2240_v47 = vld [vmem:[%s2686_s16 + $0x70] sm:$0xf0]  ;;  %v1987_v48 = vor.u32 %v2232_v42, %v1984_v43  ;;  %v1970_v49 = vld [vmem:[%s2686_s16 + $0x18] sm:$0xf] }
  0x55   : > { %858 = vmatpush.bf16.msra.mxu0 %v2019_v18  ;;  %v2230_v50 = vld [vmem:[%s2686_s16 + $0x20] sm:$0xf0]  ;;  %v2229_v51 = vld [vmem:[%s2686_s16 + $0x1c] sm:$0xf]  ;;  %v1972_v52 = vld [vmem:[%s2686_s16 + $0x24] sm:$0xf0]  ;;  %v2015_v53 = vor.u32 %v2240_v47, %v2014_v46 }
  0x56   : > { %872 = vmatpush.bf16.msra.mxu1 %v2023_v19  ;;  %v1971_v54 = vor.u32 %v2230_v50, %v1970_v49  ;;  %v2002_v55 = vld [vmem:[%s2686_s16 + $0x50] sm:$0xf]  ;;  %v2237_v56 = vld [vmem:[%s2686_s16 + $0x58] sm:$0xf0]  ;;  %v1975_v57 = vor.u32 %v2229_v51, %v1972_v52  ;;  %v1958_v58 = vld [vmem:[%s2686_s16] sm:$0xf] }
  0x57   : > { %885 = vmatpush.bf16.msra.mxu2 %v2039_v35  ;;  %v2227_v59 = vld [vmem:[%s2686_s16 + $0x8] sm:$0xf0]  ;;  %v2226_v60 = vld [vmem:[%s2686_s16 + $0x4] sm:$0xf]  ;;  %v1960_v61 = vld [vmem:[%s2686_s16 + $0xc] sm:$0xf0]  ;;  %v2003_v63 = vor.u32 %v2237_v56, %v2002_v55 }
  0x58   : > { %v2782_v62 = vld [vmem:[#allocation2] sm:$0xff]  ;;  %v1959_v0 = vor.u32 %v2227_v59, %v1958_v58  ;;  %v2784_v1 = vld [vmem:[#allocation2 + $0x8] sm:$0xff]  ;;  %v1990_v2 = vld [vmem:[%s2686_s16 + $0x38] sm:$0xf]  ;;  %v1963_v4 = vor.u32 %v2226_v60, %v1960_v61  ;;  %vm914_vm0 = vcmask 261120   ;;  %s2517_s1 = smov 96  }
  0x59   : > { %859 = vmatpush.bf16.msra.mxu0 %v2007_v24  ;;  %v2234_v3 = vld [vmem:[%s2686_s16 + $0x40] sm:$0xf0]  ;;  %v687_v5 = vpack.c.bf16 %v2784_v1, %v2782_v62  ;;  %v1978_v7 = vld [vmem:[%s2686_s16 + $0x20] sm:$0xf]  ;;  %v2231_v8 = vld [vmem:[%s2686_s16 + $0x28] sm:$0xf0] }
  0x5a   : > { %873 = vmatpush.bf16.msra.mxu1 %v2011_v28  ;;  %v1991_v6 = vor.u32 %v2234_v3, %v1990_v2  ;;  %v1979_v9 = vor.u32 %v2231_v8, %v1978_v7  ;;  %v1966_v10 = vld [vmem:[%s2686_s16 + $0x8] sm:$0xf]  ;;  %v2228_v11 = vld [vmem:[%s2686_s16 + $0x10] sm:$0xf0]  ;;  %v720_v13 = vld [vmem:[%s2691_s14] sm:$0x7] }
  0x5b   : > { %886 = vmatpush.bf16.msra.mxu2 %v2027_v44  ;;  %v1967_v12 = vor.u32 %v2228_v11, %v1966_v10  ;;  %v723_v16 = vperm.slane %v720_v13, 1  ;;  %v722_v18 = vperm.slane %v720_v13, 0  ;;  %v724_v31 = vperm.slane %v720_v13, 2  ;;  %s2518_s2 = smov 64   ;;  %s2519_s3 = smov 32  }
  0x5c   : > { %vm937_vm1 = vcmask 130048   ;;  %vm1063_vm2 = vcmask 523520   ;;  %vm1143_vm3 = vcmask 785920   ;;  %vm1223_vm4 = vcmask 1048320   ;;  %s3042_s18 = sld [smem:[#allocation15_spill]]  ;;  %p2220_p3 = scmp.ne.s32.totalorder %s2497_s28, 1 }
  0x5d   : > { %860 = vmatpush.bf16.msra.mxu0 %v1995_v36  ;;  %s3044_s29 = sld [smem:[#allocation16_spill]] }
  0x5e   : > { %874 = vmatpush.bf16.msra.mxu1 %v1999_v39 }
  0x5f   : > { %887 = vmatpush.bf16.msra.mxu2 %v2015_v53 }
  0x61   : > { %861 = vmatpush.bf16.msra.mxu0 %v1983_v45 }
  0x62   : > { %875 = vmatpush.bf16.msra.mxu1 %v1987_v48 }
  0x63   : > { %888 = vmatpush.bf16.msra.mxu2 %v2003_v63 }
  0x65   : > { %862 = vmatpush.bf16.msra.mxu0 %v1971_v54 }
  0x66   : > { %876 = vmatpush.bf16.msra.mxu1 %v1975_v57 }
  0x67   : > { %889 = vmatpush.bf16.msra.mxu2 %v1991_v6 }
  0x69   : > { %863 = vmatpush.bf16.msra.mxu0 %v1959_v0 }
  0x6a   : > { %877 = vmatpush.bf16.msra.mxu1 %v1963_v4 }
  0x6b   : > { %890 = vmatpush.bf16.msra.mxu2 %v1979_v9 }
  0x6c   : > { %864 = vmatmul.bf16.vlgmr.msra.gmra.mxu0 %v687_v5 }
  0x6d   : > { %878 = vmatmul.bf16.vlgmr.msra.gmra.mxu1 %v687_v5 }
  0x6f   : > { %891 = vmatpush.bf16.msra.mxu2 %v1967_v12 }
  0x72   : > { %892 = vmatmul.bf16.vlgmr.msra.gmra.mxu2 %v687_v5 }
  0xe9   : > { %v865_v14 = vpop.f32.mrf.mxu0 }
  0xea   : > { %v879_v15 = vpop.f32.mrf.mxu1  ;;  %v866_v23 = vadd.f32 %v865_v14, %v722_v18 }
  0xeb   : > { %v880_v17 = vadd.f32 %v879_v15, %v723_v16 }
  0xec   : > { %v898_v28 = vpack.c.bf16 %v866_v23, %v866_v23 }
  0xed   : > { %v900_v21 = vpack.c.bf16 %v880_v17, %v880_v17 }
  0xee   : > { %v906_v34 = vunpack.c.l.b16 %v898_v28 }
  0xef   : > { %v911_v26 = vunpack.c.l.b16 %v900_v21 }
  0xf1   : > { %v867_v19 = vpop.f32.mrf.mxu0 }
  0xf2   : > { %v881_v20 = vpop.f32.mrf.mxu1  ;;  %v868_v24 = vadd.f32 %v867_v19, %v722_v18 }
  0xf3   : > { %v882_v22 = vadd.f32 %v881_v20, %v723_v16 }
  0xf4   : > { %v899_v29 = vpack.c.bf16 %v868_v24, %v868_v24 }
  0xf5   : > { %v901_v25 = vpack.c.bf16 %v882_v22, %v882_v22  ;;  %v893_v32 = vpop.f32.mrf.mxu2 }
  0xf6   : > { %v907_v35 = vunpack.c.l.b16 %v899_v29  ;;  %v894_v36 = vadd.f32 %v893_v32, %v724_v31 }
  0xf7   : > { %v912_v27 = vunpack.c.l.b16 %v901_v25 }
  0xf8   : > { %v908_v37 = vpack.c.b16 %v907_v35, %v906_v34  ;;  %v902_v38 = vpack.c.bf16 %v894_v36, %v894_v36 }
  0xf9   : > { %v913_v30 = vpack.c.b16 %v912_v27, %v911_v26 }
  0xfa   : > { %v963_v41 = vunpack.c.l.b16 %v902_v38 }
  0xfb   : > { %988 = vrot.lane.b32.xlu2 %v913_v30, %s2517_s1  ;;  %v919_v33 = vsel %vm914_vm0, %v913_v30, 0 }
  0xfc   : > { %928 = vmatpush.bf16.xpose.msra.mxu3 %v919_v33 }
  0xfd   : > { %v895_v39 = vpop.f32.mrf.mxu2 }
  0xfe   : > { %v896_v40 = vadd.f32 %v895_v39, %v724_v31 }
 0x100   : > { %v903_v42 = vpack.c.bf16 %v896_v40, %v896_v40 }
 0x102   : > { %v964_v43 = vunpack.c.l.b16 %v903_v42 }
 0x103   : > { %986 = vrot.lane.b32.xlu2 %v908_v37, %s2517_s1  ;;  %2052 = vmatmul.msk.bf16.vlgmr.msra.gmra.mxu3 %vm914_vm0, %v908_v37 }
 0x104   : > { %v2799_v44 = vpack.c.b16 %v964_v43, %v963_v41 }
 0x106   : > { %977 = vmatpush.bf16.msrb.mxu3 %v2799_v44 }
 0x10b   : > { %1066 = vrot.lane.b32.xlu2 %v908_v37, %s2518_s2 }
 0x113   : > { %1146 = vrot.lane.b32.xlu2 %v908_v37, %s2519_s3 }
 0x155   : > { %v989_v45 = vpop.permute.xlu2 %988 }
 0x156   : > { %v994_v46 = vsel %vm914_vm0, %v989_v45, 0 }
 0x157   : > { %1003 = vmatpush.bf16.xpose.msra.mxu3 %v994_v46 }
 0x15d   : > { %v987_v0 = vpop.permute.xlu2 %986 }
 0x165   : > { %v1067_v4 = vpop.permute.xlu2 %1066 }
 0x16d   : > { %v1147_v17 = vpop.permute.xlu2 %1146 }
 0x186   : > { %v930_v47 = vpop.f32.mrf.mxu3 }
 0x187   : > { %v935_v48 = vmul.f32 0.17677669, %v930_v47 }
 0x189   : > { %v938_v49 = vsel %vm937_vm1, %v935_v48, -inf }
 0x18a   : > { %939 = vmax.xlane.f32.xlu0 %v938_v49 }
 0x18e   : > { %v932_v50 = vpop.f32.mrf.mxu3 }
 0x18f   : > { %v936_v51 = vmul.f32 0.17677669, %v932_v50 }
 0x191   : > { %v941_v52 = vsel %vm937_vm1, %v936_v51, -inf }
 0x192   : > { %942 = vmax.xlane.f32.xlu0 %v941_v52 }
 0x1a6   : > { %1068 = vrot.lane.b32.xlu0 %v913_v30, %s2518_s2 }
 0x1fd   : > { %v940_v53 = vpop.xlane.xlu0 %939 }
 0x1fe   : > { %v944_v54 = vsub.f32 %v935_v48, %v940_v53 }
 0x200   : > { %v946_v55 = vmul.f32 1.442695, %v944_v54 }
 0x202   : > { %2375 = vpow2.f32 %v946_v55 }
 0x205   : > { %v943_v56 = vpop.xlane.xlu0 %942 }
 0x206   : > { %v945_v57 = vsub.f32 %v936_v51, %v943_v56 }
 0x208   : > { %v2376_v58 = vpop.eup %2375  ;;  %v948_v59 = vmul.f32 1.442695, %v945_v57 }
 0x209   : > { %v950_v60 = vsel %vm937_vm1, %v2376_v58, 0.0 }
 0x20a   : > { %2377 = vpow2.f32 %v948_v59  ;;  %951 = vadd.xlane.f32.xlu1 %v950_v60 }
 0x210   : > { %v2378_v61 = vpop.eup %2377 }
 0x211   : > { %v953_v63 = vsel %vm937_vm1, %v2378_v61, 0.0 }
 0x212   : > { %954 = vadd.xlane.f32.xlu1 %v953_v63 }
 0x218   : > { %v1069_v2 = vpop.permute.xlu0 %1068 }
 0x219   : > { %v1074_v3 = vsel %vm914_vm0, %v1069_v2, 0 }
 0x21a   : > { %1083 = vmatpush.bf16.xpose.msrb.mxu2 %v1074_v3 }
 0x221   : > { %2056 = vmatmul.msk.bf16.vlgmr.msrb.gmra.mxu2 %vm914_vm0, %v1067_v4 }
 0x22b   : > { %1148 = vrot.lane.b32.xlu1 %v913_v30, %s2519_s3 }
 0x27d   : > { %v952_v5 = vpop.xlane.xlu1 %951 }
 0x27e   : > { %2379 = vrcp.f32 %v952_v5 }
 0x284   : > { %v2380_v7 = vpop.eup %2379 }
 0x285   : > { %v955_v6 = vpop.xlane.xlu1 %954  ;;  %v958_v9 = vmul.f32 %v2380_v7, %v2376_v58 }
 0x286   : > { %2381 = vrcp.f32 %v955_v6 }
 0x28c   : > { %v2382_v8 = vpop.eup %2381 }
 0x28d   : > { %v959_v10 = vmul.f32 %v2382_v8, %v2378_v61 }
 0x28f   : > { %v960_v11 = vpack.c.bf16 %v959_v10, %v958_v9 }
 0x291   : > { %2053 = vmatmul.msk.bf16.vlgmr.msrb.gmra.mxu3 %vm937_vm1, %v960_v11 }
 0x29d   : > { %v1149_v12 = vpop.permute.xlu1 %1148 }
 0x29e   : > { %v1154_v13 = vsel %vm914_vm0, %v1149_v12, 0 }
 0x29f   : > { %1163 = vmatpush.bf16.xpose.msrb.mxu3 %v1154_v13 }
 0x2a1   : > { %2054 = vmatmul.msk.bf16.vlgmr.msra.gmra.mxu3 %vm914_vm0, %v987_v0 }
 0x2a4   : > { %v1085_v14 = vpop.f32.mrf.mxu2 }
 0x2a5   : > { %v1090_v15 = vmul.f32 0.17677669, %v1085_v14 }
 0x2a7   : > { %v1092_v16 = vsel %vm937_vm1, %v1090_v15, -inf }
 0x2a8   : > { %1093 = vmax.xlane.f32.xlu1 %v1092_v16 }
 0x2ac   : > { %v1087_v28 = vpop.f32.mrf.mxu2 }
 0x2ad   : > { %v1091_v29 = vmul.f32 0.17677669, %v1087_v28 }
 0x2af   : > { %v1095_v33 = vsel %vm937_vm1, %v1091_v29, -inf }
 0x2b1   : > { %2058 = vmatmul.msk.bf16.vlgmr.msrb.gmra.mxu3 %vm914_vm0, %v1147_v17 }
 0x314   : > { %v979_v18 = vpop.f32.mrf.mxu3 }
 0x315   : > { %984 = vst.msk [vmem:[#allocation3] sm:$0xff] %vm914_vm0, %v979_v18 }
 0x31b   : > { %v1094_v19 = vpop.xlane.xlu1 %1093 }
 0x31c   : > { %v1098_v20 = vsub.f32 %v1090_v15, %v1094_v19  ;;  %v981_v21 = vpop.f32.mrf.mxu3 }
 0x31d   : > { %985 = vst.msk [vmem:[#allocation3 + $0x8] sm:$0xff] %vm914_vm0, %v981_v21 }
 0x31e   : > { %v1100_v22 = vmul.f32 1.442695, %v1098_v20 }
 0x320   : > { %2383 = vpow2.f32 %v1100_v22 }
 0x324   : > { %v1005_v23 = vpop.f32.mrf.mxu3 }
 0x325   : > { %v1010_v24 = vmul.f32 0.17677669, %v1005_v23 }
 0x326   : > { %v2820_v25 = vpop.eup %2383 }
 0x327   : > { %v1012_v26 = vsel %vm937_vm1, %v1010_v24, -inf  ;;  %v1104_v27 = vsel %vm937_vm1, %v2820_v25, 0.0 }
 0x328   : > { %1013 = vmax.xlane.f32.xlu2 %v1012_v26  ;;  %1105 = vadd.xlane.f32.xlu1 %v1104_v27 }
 0x32c   : > { %v1007_v30 = vpop.f32.mrf.mxu3 }
 0x32d   : > { %v1011_v31 = vmul.f32 0.17677669, %v1007_v30 }
 0x32f   : > { %v1015_v32 = vsel %vm937_vm1, %v1011_v31, -inf }
 0x330   : > { %1016 = vmax.xlane.f32.xlu0 %v1015_v32  ;;  %1096 = vmax.xlane.f32.xlu2 %v1095_v33  ;;  %v2257_v33 = vld [vmem:[%s2696_s27 + $0x38] sm:$0xff] }
 0x331   : > { %1297 = vmatpush.bf16.msrb.mxu1 %v2257_v33  ;;  %v2265_v33 = vld [vmem:[%s2706_s30 + $0x34] sm:$0xf0] }
 0x334   : > { %v1165_v34 = vpop.f32.mrf.mxu3 }
 0x335   : > { %v1170_v35 = vmul.f32 0.17677669, %v1165_v34  ;;  %v2256_v34 = vld [vmem:[%s2696_s27 + $0x30] sm:$0xff] }
 0x336   : > { %1298 = vmatpush.bf16.msrb.mxu1 %v2256_v34  ;;  %v2264_v34 = vld [vmem:[%s2706_s30 + $0x34] sm:$0xf] }
 0x337   : > { %v1172_v36 = vsel %vm937_vm1, %v1170_v35, -inf }
 0x338   : > { %1173 = vmax.xlane.f32.xlu0 %v1172_v36  ;;  %v2254_v36 = vld [vmem:[%s2696_s27 + $0x20] sm:$0xff] }
 0x33c   : > { %v1167_v37 = vpop.f32.mrf.mxu3 }
 0x33d   : > { %v1171_v38 = vmul.f32 0.17677669, %v1167_v37  ;;  %v2253_v37 = vld [vmem:[%s2696_s27 + $0x18] sm:$0xff] }
 0x33f   : > { %v1175_v39 = vsel %vm937_vm1, %v1171_v38, -inf }
 0x340   : > { %1176 = vmax.xlane.f32.xlu2 %v1175_v39  ;;  %v2252_v39 = vld [vmem:[%s2696_s27 + $0x10] sm:$0xff] }
 0x358   : > { %1035 = vrot.lane.b32.xlu2 %v2799_v44, %s2517_s1 }
 0x39b   : > { %v1014_v40 = vpop.xlane.xlu2 %1013  ;;  %v1106_v5 = vpop.xlane.xlu1 %1105 }
 0x39c   : > { %v1018_v41 = vsub.f32 %v1010_v24, %v1014_v40  ;;  %v2251_v40 = vld [vmem:[%s2696_s27 + $0x8] sm:$0xff] }
 0x39e   : > { %v1020_v42 = vmul.f32 1.442695, %v1018_v41  ;;  %v2250_v41 = vld [vmem:[%s2696_s27] sm:$0xff] }
 0x3a0   : > { %2385 = vpow2.f32 %v1020_v42 }
 0x3a3   : > { %v1097_v43 = vpop.xlane.xlu2 %1096  ;;  %v1017_v45 = vpop.xlane.xlu0 %1016 }
 0x3a4   : > { %v1099_v46 = vsub.f32 %v1091_v29, %v1097_v43  ;;  %v1019_v49 = vsub.f32 %v1011_v31, %v1017_v45 }
 0x3a6   : > { %v2386_v47 = vpop.eup %2385  ;;  %v1102_v48 = vmul.f32 1.442695, %v1099_v46  ;;  %v1022_v51 = vmul.f32 1.442695, %v1019_v49 }
 0x3a7   : > { %v1024_v50 = vsel %vm937_vm1, %v2386_v47, 0.0 }
 0x3a8   : > { %2387 = vpow2.f32 %v1102_v48  ;;  %1025 = vadd.xlane.f32.xlu1 %v1024_v50 }
 0x3a9   : > { %2389 = vpow2.f32 %v1022_v51  ;;  %v2369_v51 = vld [vmem:[%s3041_s12] ss:$0 sm:$0xff] }
 0x3ab   : > { %v1174_v52 = vpop.xlane.xlu0 %1173 }
 0x3ac   : > { %v1178_v53 = vsub.f32 %v1170_v35, %v1174_v52  ;;  %v2255_v35 = vld [vmem:[%s2696_s27 + $0x28] sm:$0xff] }
 0x3ad   : > { %1299 = vmatpush.bf16.msrb.mxu1 %v2255_v35 }
 0x3ae   : > { %v2388_v54 = vpop.eup %2387  ;;  %v1180_v55 = vmul.f32 1.442695, %v1178_v53 }
 0x3af   : > { %v1107_v56 = vsel %vm937_vm1, %v2388_v54, 0.0  ;;  %v2390_v58 = vpop.eup %2389 }
 0x3b0   : > { %2391 = vpow2.f32 %v1180_v55  ;;  %1108 = vadd.xlane.f32.xlu0 %v1107_v56  ;;  %v1027_v63 = vsel %vm937_vm1, %v2390_v58, 0.0 }
 0x3b1   : > { %1300 = vmatpush.bf16.msrb.mxu1 %v2254_v36  ;;  %v2120_v36 = vld [vmem:[%s2706_s30 + $0x38] sm:$0xf0] }
 0x3b3   : > { %v1177_v57 = vpop.xlane.xlu2 %1176 }
 0x3b4   : > { %v1179_v59 = vsub.f32 %v1171_v38, %v1177_v57 }
 0x3b5   : > { %1301 = vmatpush.bf16.msrb.mxu1 %v2253_v37  ;;  %v2123_v37 = vor.u32 %v2264_v34, %v2120_v36  ;;  %v2275_v34 = vld [vmem:[%s3042_s18 + $0x8] sm:$0xff]  ;;  %v2274_v36 = vld [vmem:[%s3042_s18] sm:$0xff] }
 0x3b6   : > { %v2392_v60 = vpop.eup %2391  ;;  %v1182_v61 = vmul.f32 1.442695, %v1179_v59 }
 0x3b7   : > { %v1184_v0 = vsel %vm937_vm1, %v2392_v60, 0.0 }
 0x3b8   : > { %2393 = vpow2.f32 %v1182_v61  ;;  %1028 = vadd.xlane.f32.xlu0 %v1027_v63  ;;  %1185 = vadd.xlane.f32.xlu1 %v1184_v0 }
 0x3b9   : > { %1302 = vmatpush.bf16.msrb.mxu1 %v2252_v39  ;;  %v2263_v39 = vld [vmem:[%s2706_s30 + $0x24] sm:$0xf0] }
 0x3bb   : > { %v1036_v2 = vpop.permute.xlu2 %1035 }
 0x3bc   : > { %1048 = vmatpush.bf16.msrb.mxu0 %v1036_v2 }
 0x3bd   : > { %1303 = vmatpush.bf16.msrb.mxu1 %v2251_v40  ;;  %v2262_v40 = vld [vmem:[%s2706_s30 + $0x24] sm:$0xf] }
 0x3be   : > { %v2394_v3 = vpop.eup %2393 }
 0x3bf   : > { %v1187_v4 = vsel %vm937_vm1, %v2394_v3, 0.0 }
 0x3c0   : > { %1188 = vadd.xlane.f32.xlu0 %v1187_v4 }
 0x3c1   : > { %1304 = vmatpush.bf16.msrb.mxu1 %v2250_v41 }
 0x3d1   : > { %1115 = vrot.lane.b32.xlu1 %v2799_v44, %s2518_s2 }
 0x3d4   : > { %1195 = vrot.lane.b32.xlu0 %v2799_v44, %s2519_s3 }
 0x41b   : > { %v1026_v7 = vpop.xlane.xlu1 %1025 }
 0x41c   : > { %2395 = vrcp.f32 %v1026_v7 }
 0x422   : > { %v2396_v9 = vpop.eup %2395 }
 0x423   : > { %v1109_v6 = vpop.xlane.xlu0 %1108  ;;  %v1032_v11 = vmul.f32 %v2396_v9, %v2386_v47  ;;  %v2150_v9 = vld [vmem:[%s2706_s30 + $0x70] sm:$0xf] }
 0x42b   : > { %v1029_v8 = vpop.xlane.xlu0 %1028  ;;  %v1186_v15 = vpop.xlane.xlu1 %1185 }
 0x42c   : > { %2397 = vrcp.f32 %v1029_v8 }
 0x42d   : > { %2399 = vrcp.f32 %v1109_v6 }
 0x42e   : > { %2401 = vrcp.f32 %v1106_v5 }
 0x432   : > { %v2398_v10 = vpop.eup %2397 }
 0x433   : > { %v1033_v12 = vmul.f32 %v2398_v10, %v2390_v58  ;;  %v1189_v14 = vpop.xlane.xlu0 %1188  ;;  %v2400_v44 = vpop.eup %2399  ;;  %v2520_v58 = vmov 128.0   ;;  %v2273_v10 = vld [vmem:[%s2706_s30 + $0x74] sm:$0xf0] }
 0x434   : > { %2403 = vrcp.f32 %v1189_v14  ;;  %v2402_v16 = vpop.eup %2401  ;;  %v1113_v18 = vmul.f32 %v2400_v44, %v2388_v54  ;;  %v2271_v44 = vld [vmem:[%s2706_s30 + $0x64] sm:$0xf0] }
 0x435   : > { %v1034_v13 = vpack.c.bf16 %v1033_v12, %v1032_v11  ;;  %2405 = vrcp.f32 %v1186_v15  ;;  %v1112_v20 = vmul.f32 %v2402_v16, %v2820_v25  ;;  %v2272_v11 = vld [vmem:[%s2706_s30 + $0x74] sm:$0xf]  ;;  %v2151_v12 = vor.u32 %v2273_v10, %v2150_v9  ;;  %v2142_v15 = vld [vmem:[%s2706_s30 + $0x60] sm:$0xf]  ;;  %v2270_v16 = vld [vmem:[%s2706_s30 + $0x64] sm:$0xf] }
 0x436   : > { %2407 = vrcp.f32 %v2520_v58  ;;  %v2287_v9 = vld [vmem:[%s3042_s18 + $0x68] sm:$0xff] }
 0x437   : > { %2055 = vmatmul.msk.bf16.vlgmr.msrb.gmra.mxu0 %vm937_vm1, %v1034_v13  ;;  %v1114_v23 = vpack.c.bf16 %v1113_v18, %v1112_v20  ;;  %v2152_v13 = vld [vmem:[%s2706_s30 + $0x78] sm:$0xf0]  ;;  %v2144_v18 = vld [vmem:[%s2706_s30 + $0x68] sm:$0xf0]  ;;  %v2134_v20 = vld [vmem:[%s2706_s30 + $0x50] sm:$0xf] }
 0x438   : > { %v2155_v14 = vor.u32 %v2272_v11, %v2152_v13  ;;  %v2286_v13 = vld [vmem:[%s3042_s18 + $0x60] sm:$0xff] }
 0x43a   : > { %v2404_v17 = vpop.eup %2403  ;;  %1489 = vmatpush.bf16.msra.mxu3 %v2155_v14 }
 0x43b   : > { %v2406_v19 = vpop.eup %2405  ;;  %v1193_v22 = vmul.f32 %v2404_v17, %v2394_v3  ;;  %v2143_v17 = vor.u32 %v2271_v44, %v2142_v15 }
 0x43c   : > { %v1192_v24 = vmul.f32 %v2406_v19, %v2392_v60  ;;  %v2408_v59 = vpop.eup %2407  ;;  %v2147_v19 = vor.u32 %v2270_v16, %v2144_v18 }
 0x43d   : > { %v1320_v60 = vmul.f32 128.0, %v2408_v59  ;;  %vm1324_vm5 = vweird.f32 %v2408_v59 }
 0x43e   : > { %v1194_v27 = vpack.c.bf16 %v1193_v22, %v1192_v24  ;;  %1490 = vmatpush.bf16.msra.mxu3 %v2147_v19  ;;  %v2268_v22 = vld [vmem:[%s2706_s30 + $0x54] sm:$0xf]  ;;  %v2136_v24 = vld [vmem:[%s2706_s30 + $0x58] sm:$0xf0] }
 0x43f   : > { %v1321_v61 = vsub.f32 1.0, %v1320_v60  ;;  %v2281_v60 = vld [vmem:[%s3042_s18 + $0x38] sm:$0xff] }
 0x441   : > { %v1322_v63 = vmul.f32 %v2408_v59, %v1321_v61  ;;  %v2289_v61 = vld [vmem:[%s3042_s18 + $0x78] sm:$0xff] }
 0x442   : > { %1655 = vmatpush.bf16.msra.mxu1 %v2289_v61 }
 0x443   : > { %v1116_v21 = vpop.permute.xlu1 %1115  ;;  %v1323_v0 = vadd.f32 %v2408_v59, %v1322_v63 }
 0x444   : > { %1128 = vmatpush.bf16.msra.mxu2 %v1116_v21  ;;  %v2269_v21 = vld [vmem:[%s2706_s30 + $0x54] sm:$0xf0] }
 0x445   : > { %v2865_v2 = vsel %vm1324_vm5, %v2408_v59, %v1323_v0 }
 0x446   : > { %v1196_v26 = vpop.permute.xlu0 %1195 }
 0x447   : > { %2057 = vmatmul.msk.bf16.vlgmr.msra.gmra.mxu2 %vm937_vm1, %v1114_v23  ;;  %1208 = vmatpush.bf16.msra.mxu0 %v1196_v26  ;;  %v2135_v23 = vor.u32 %v2269_v21, %v2134_v20  ;;  %v2139_v26 = vor.u32 %v2268_v22, %v2136_v24  ;;  %v2370_v22 = vld [vmem:[%s660_s26] ss:$0 sm:$0xff] }
 0x448   : > { %1475 = vmatpush.bf16.msrb.mxu2 %v2151_v12  ;;  %v2278_v12 = vld [vmem:[%s3042_s18 + $0x20] sm:$0xff] }
 0x449   : > { %1491 = vmatpush.bf16.msra.mxu3 %v2139_v26 }
 0x44a   : > { %2059 = vmatmul.msk.bf16.vlgmr.msra.gmra.mxu0 %vm937_vm1, %v1194_v27  ;;  %v2126_v27 = vld [vmem:[%s2706_s30 + $0x40] sm:$0xf] }
 0x44b   : > { %1641 = vmatpush.bf16.msrb.mxu0 %v2281_v60 }
 0x44c   : > { %1476 = vmatpush.bf16.msrb.mxu2 %v2143_v17 }
 0x450   : > { %1477 = vmatpush.bf16.msrb.mxu2 %v2135_v23 }
 0x4b4   : > { %v1050_v28 = vpop.f32.mrf.mxu0 }
 0x4bc   : > { %v1052_v29 = vpop.f32.mrf.mxu0 }
 0x4c7   : > { %v1210_v30 = vpop.f32.mrf.mxu0 }
 0x4c8   : > { %1217 = vrot.lane.b32.xlu1 %v1210_v30, %s2517_s1 }
 0x4ca   : > { %v1130_v25 = vpop.f32.mrf.mxu2 }
 0x4cb   : > { %1137 = vrot.lane.b32.xlu2 %v1130_v25, %s2518_s2  ;;  %v2128_v25 = vld [vmem:[%s2706_s30 + $0x48] sm:$0xf0] }
 0x4cf   : > { %v1212_v32 = vpop.f32.mrf.mxu0 }
 0x4d2   : > { %v1132_v31 = vpop.f32.mrf.mxu2 }
 0x4d3   : > { %1139 = vrot.lane.b32.xlu0 %v1132_v31, %s2518_s2  ;;  %1057 = vrot.lane.b32.xlu2 %v1050_v28, %s2519_s3  ;;  %v2267_v28 = vld [vmem:[%s2706_s30 + $0x44] sm:$0xf0] }
 0x4d4   : > { %v2127_v30 = vor.u32 %v2267_v28, %v2126_v27 }
 0x4d6   : > { %1478 = vmatpush.bf16.msrb.mxu2 %v2127_v30 }
 0x4db   : > { %1059 = vrot.lane.b32.xlu2 %v1052_v29, %s2519_s3  ;;  %v2266_v29 = vld [vmem:[%s2706_s30 + $0x44] sm:$0xf] }
 0x4dc   : > { %v2131_v31 = vor.u32 %v2266_v29, %v2128_v25 }
 0x4de   : > { %1492 = vmatpush.bf16.msra.mxu3 %v2131_v31  ;;  %v2277_v31 = vld [vmem:[%s3042_s18 + $0x18] sm:$0xff] }
 0x4e2   : > { %1493 = vmatpush.bf16.msra.mxu3 %v2123_v37  ;;  %v2282_v37 = vld [vmem:[%s3042_s18 + $0x40] sm:$0xff] }
 0x4e3   : > { %1219 = vrot.lane.b32.xlu2 %v1212_v32, %s2517_s1  ;;  %v2118_v32 = vld [vmem:[%s2706_s30 + $0x30] sm:$0xf] }
 0x4e4   : > { %v2119_v35 = vor.u32 %v2265_v33, %v2118_v32  ;;  %v2285_v32 = vld [vmem:[%s3042_s18 + $0x58] sm:$0xff]  ;;  %v2284_v33 = vld [vmem:[%s3042_s18 + $0x50] sm:$0xff] }
 0x4e6   : > { %1479 = vmatpush.bf16.msrb.mxu2 %v2119_v35  ;;  %v2283_v35 = vld [vmem:[%s3042_s18 + $0x48] sm:$0xff] }
 0x525   : > { %v1138_v38 = vpop.permute.xlu2 %1137 }
 0x52d   : > { %v1058_v42 = vpop.permute.xlu2 %1057 }
 0x52e   : > { %1064 = vst.msk [vmem:[#allocation3] sm:$0xff] %vm1063_vm2, %v1058_v42  ;;  %v2112_v42 = vld [vmem:[%s2706_s30 + $0x28] sm:$0xf0] }
 0x52f   : > { %1144 = vst.msk [vmem:[#allocation3] sm:$0xff] %vm1143_vm3, %v1138_v38  ;;  %v2110_v38 = vld [vmem:[%s2706_s30 + $0x20] sm:$0xf] }
 0x530   : > { %v2111_v41 = vor.u32 %v2263_v39, %v2110_v38  ;;  %v1389_v38 = vld [vmem:[%s3044_s29] sm:$0x3] }
 0x532   : > { %1480 = vmatpush.bf16.msrb.mxu2 %v2111_v41  ;;  %v1391_v41 = vperm.slane %v1389_v38, 0 }
 0x535   : > { %v1060_v43 = vpop.permute.xlu2 %1059 }
 0x536   : > { %1065 = vst.msk [vmem:[#allocation3 + $0x8] sm:$0xff] %vm1063_vm2, %v1060_v43  ;;  %v2115_v43 = vor.u32 %v2262_v40, %v2112_v42  ;;  %v1392_v42 = vperm.slane %v1389_v38, 1 }
 0x538   : > { %1494 = vmatpush.bf16.msra.mxu3 %v2115_v43 }
 0x53a   : > { %v1218_v45 = vpop.permute.xlu1 %1217 }
 0x53b   : > { %1224 = vst.msk [vmem:[#allocation3] sm:$0xff] %vm1223_vm4, %v1218_v45  ;;  %v2102_v45 = vld [vmem:[%s2706_s30 + $0x10] sm:$0xf] }
 0x53d   : > { %v1220_v47 = vpop.permute.xlu2 %1219 }
 0x542   : > { %v1226_v48 = vld [vmem:[#allocation3] sm:$0xff] }
 0x545   : > { %v1140_v46 = vpop.permute.xlu0 %1139 }
 0x546   : > { %1145 = vst.msk [vmem:[#allocation3 + $0x8] sm:$0xff] %vm1143_vm3, %v1140_v46  ;;  %v2261_v46 = vld [vmem:[%s2706_s30 + $0x14] sm:$0xf0] }
 0x547   : > { %1225 = vst.msk [vmem:[#allocation3 + $0x8] sm:$0xff] %vm1223_vm4, %v1220_v47  ;;  %v2260_v47 = vld [vmem:[%s2706_s30 + $0x14] sm:$0xf] }
 0x54e   : > { %v1227_v49 = vld [vmem:[#allocation3 + $0x8] sm:$0xff] }
 0x54f   : > { %v1228_v50 = vpack.c.bf16 %v1227_v49, %v1226_v48  ;;  %v2103_v48 = vor.u32 %v2261_v46, %v2102_v45  ;;  %v2104_v49 = vld [vmem:[%s2706_s30 + $0x18] sm:$0xf0] }
 0x551   : > { %1305 = vmatmul.bf16.vlgmr.msrb.gmra.mxu1 %v1228_v50  ;;  %v2094_v50 = vld [vmem:[%s2706_s30] sm:$0xf]  ;;  %1481 = vmatpush.bf16.msrb.mxu2 %v2103_v48 }
 0x5ce   : > { %v1306_v52 = vpop.f32.mrf.mxu1 }
 0x5cf   : > { %v1307_v53 = vadd.f32 %v2369_v51, %v1306_v52 }
 0x5d1   : > { %v1311_v54 = vadd.f32 %v1307_v53, %v2782_v62  ;;  %v2107_v53 = vor.u32 %v2260_v47, %v2104_v49 }
 0x5d3   : > { %1315 = vadd.xlane.f32.xlu0 %v1311_v54  ;;  %1495 = vmatpush.bf16.msra.mxu3 %v2107_v53 }
 0x5d6   : > { %v1308_v55 = vpop.f32.mrf.mxu1 }
 0x5d7   : > { %v1309_v56 = vadd.f32 %v2369_v51, %v1308_v55  ;;  %v2259_v51 = vld [vmem:[%s2706_s30 + $0x4] sm:$0xf0]  ;;  %v2096_v55 = vld [vmem:[%s2706_s30 + $0x8] sm:$0xf0] }
 0x5d9   : > { %v1312_v57 = vadd.f32 %v1309_v56, %v2784_v1 }
 0x5db   : > { %1317 = vadd.xlane.f32.xlu1 %v1312_v57 }
 0x646   : > { %v1316_v62 = vpop.xlane.xlu0 %1315 }
 0x647   : > { %v1326_v3 = vmul.f32 %v2865_v2, %v1316_v62  ;;  %v2280_v62 = vld [vmem:[%s3042_s18 + $0x30] sm:$0xff] }
 0x648   : > { %1642 = vmatpush.bf16.msrb.mxu0 %v2280_v62 }
 0x649   : > { %v2868_v4 = vsub.f32 %v1311_v54, %v1326_v3  ;;  %v2258_v54 = vld [vmem:[%s2706_s30 + $0x4] sm:$0xf]  ;;  %v2288_v3 = vld [vmem:[%s3042_s18 + $0x70] sm:$0xff] }
 0x64a   : > { %v2099_v58 = vor.u32 %v2258_v54, %v2096_v55  ;;  %1656 = vmatpush.bf16.msra.mxu1 %v2288_v3 }
 0x64b   : > { %v1330_v1 = vmul.f32 %v2868_v4, %v2868_v4 }
 0x64c   : > { %1496 = vmatpush.bf16.msra.mxu3 %v2099_v58 }
 0x64d   : > { %1332 = vadd.xlane.f32.xlu2 %v1330_v1 }
 0x64e   : > { %v1318_v5 = vpop.xlane.xlu1 %1317  ;;  %1657 = vmatpush.bf16.msra.mxu1 %v2287_v9 }
 0x64f   : > { %v1327_v6 = vmul.f32 %v2865_v2, %v1318_v5 }
 0x651   : > { %v2873_v7 = vsub.f32 %v1312_v57, %v1327_v6  ;;  %v2095_v57 = vor.u32 %v2259_v51, %v2094_v50 }
 0x652   : > { %1658 = vmatpush.bf16.msra.mxu1 %v2286_v13 }
 0x653   : > { %v1331_v8 = vmul.f32 %v2873_v7, %v2873_v7  ;;  %1482 = vmatpush.bf16.msrb.mxu2 %v2095_v57 }
 0x655   : > { %1334 = vadd.xlane.f32.xlu0 %v1331_v8  ;;  %v2279_v8 = vld [vmem:[%s3042_s18 + $0x28] sm:$0xff] }
 0x656   : > { %1643 = vmatpush.bf16.msrb.mxu0 %v2279_v8  ;;  %1659 = vmatpush.bf16.msra.mxu1 %v2285_v32 }
 0x65a   : > { %1644 = vmatpush.bf16.msrb.mxu0 %v2278_v12  ;;  %1660 = vmatpush.bf16.msra.mxu1 %v2284_v33 }
 0x65e   : > { %1645 = vmatpush.bf16.msrb.mxu0 %v2277_v31  ;;  %1661 = vmatpush.bf16.msra.mxu1 %v2283_v35 }
 0x662   : > { %1662 = vmatpush.bf16.msra.mxu1 %v2282_v37 }
 0x6c0   : > { %v1333_v52 = vpop.xlane.xlu2 %1332 }
 0x6c1   : > { %v1336_v56 = vmul.f32 %v1333_v52, %v2865_v2 }
 0x6c3   : > { %v1338_v59 = vadd.f32 1e-05, %v1336_v56  ;;  %v2372_v56 = vld [vmem:[%s657_s22] ss:$0 sm:$0xff] }
 0x6c5   : > { %2409 = vrsqrt.f32 %v1338_v59  ;;  %vm1346_vm7 = vweird.f32 %v1338_v59 }
 0x6c8   : > { %v1335_v63 = vpop.xlane.xlu0 %1334 }
 0x6c9   : > { %v1337_v0 = vmul.f32 %v1335_v63, %v2865_v2 }
 0x6cb   : > { %v2410_v1 = vpop.eup %2409  ;;  %v1339_v5 = vadd.f32 1e-05, %v1337_v0 }
 0x6cc   : > { %v1341_v6 = vmul.f32 %v2410_v1, %v1338_v59  ;;  %vm1347_vm6 = vweird.f32 %v2410_v1 }
 0x6cd   : > { %2411 = vrsqrt.f32 %v1339_v5  ;;  %vm1348_vm8 = vmor %vm1346_vm7, %vm1347_vm6  ;;  %vm1356_vm10 = vweird.f32 %v1339_v5 }
 0x6ce   : > { %v1342_v10 = vmul.f32 %v2410_v1, %v1341_v6 }
 0x6d0   : > { %v1343_v11 = vmul.f32 0.5, %v1342_v10 }
 0x6d2   : > { %v1344_v14 = vsub.f32 1.5, %v1343_v11 }
 0x6d3   : > { %v2412_v15 = vpop.eup %2411 }
 0x6d4   : > { %v1345_v44 = vmul.f32 %v2410_v1, %v1344_v14  ;;  %v1351_v16 = vmul.f32 %v2412_v15, %v1339_v5  ;;  %vm1357_vm9 = vweird.f32 %v2412_v15 }
 0x6d5   : > { %vm1358_vm11 = vmor %vm1356_vm10, %vm1357_vm9 }
 0x6d6   : > { %v1352_v17 = vmul.f32 %v2412_v15, %v1351_v16  ;;  %v1349_v18 = vsel %vm1348_vm8, %v2410_v1, %v1345_v44 }
 0x6d7   : > { %v1360_v21 = vmul.f32 %v1349_v18, %v2868_v4  ;;  %v2371_v4 = vld [vmem:[%s663_s0] ss:$0 sm:$0xff] }
 0x6d8   : > { %v1353_v19 = vmul.f32 0.5, %v1352_v17 }
 0x6d9   : > { %v1365_v27 = vmul.f32 %v2370_v22, %v1360_v21 }
 0x6da   : > { %v1354_v20 = vsub.f32 1.5, %v1353_v19 }
 0x6db   : > { %v1370_v29 = vadd.f32 %v2371_v4, %v1365_v27 }
 0x6dc   : > { %v1355_v23 = vmul.f32 %v2412_v15, %v1354_v20 }
 0x6de   : > { %v1359_v24 = vsel %vm1358_vm11, %v2412_v15, %v1355_v23 }
 0x6df   : > { %v1361_v26 = vmul.f32 %v1359_v24, %v2873_v7  ;;  %v2276_v7 = vld [vmem:[%s3042_s18 + $0x10] sm:$0xff] }
 0x6e0   : > { %1646 = vmatpush.bf16.msrb.mxu0 %v2276_v7 }
 0x6e1   : > { %v1366_v28 = vmul.f32 %v2370_v22, %v1361_v26 }
 0x6e3   : > { %v1371_v30 = vadd.f32 %v2371_v4, %v1366_v28  ;;  %v2373_v4 = vld [vmem:[%s666_s5] ss:$0 sm:$0xff] }
 0x6e4   : > { %1647 = vmatpush.bf16.msrb.mxu0 %v2275_v34 }
 0x6e5   : > { %v1372_v25 = vpack.c.bf16 %v1371_v30, %v1370_v29 }
 0x6e7   : > { %1483 = vmatmul.bf16.vlgmr.msrb.gmra.mxu2 %v1372_v25  ;;  %1497 = vmatmul.bf16.vlgmr.msra.gmra.mxu3 %v1372_v25 }
 0x6e8   : > { %1648 = vmatpush.bf16.msrb.mxu0 %v2274_v36 }
 0x76a   : > { %v1484_v39 = vpop.f32.mrf.mxu2  ;;  %v1498_v40 = vpop.f32.mrf.mxu3 }
 0x76b   : > { %v1485_v43 = vadd.f32 %v1484_v39, %v1391_v41  ;;  %v1499_v45 = vadd.f32 %v1498_v40, %v1392_v42 }
 0x76d   : > { %v1503_v50 = vmax.f32 %v1485_v43, 0.0  ;;  %v1504_v51 = vmax.f32 %v1499_v45, 0.0 }
 0x772   : > { %v1486_v46 = vpop.f32.mrf.mxu2  ;;  %v1500_v47 = vpop.f32.mrf.mxu3 }
 0x773   : > { %v1487_v48 = vadd.f32 %v1486_v46, %v1391_v41  ;;  %v1501_v49 = vadd.f32 %v1500_v47, %v1392_v42 }
 0x775   : > { %v1505_v52 = vmax.f32 %v1487_v48, 0.0  ;;  %v1506_v53 = vmax.f32 %v1501_v49, 0.0 }
 0x777   : > { %v1507_v54 = vpack.c.bf16 %v1505_v52, %v1503_v50  ;;  %v1508_v55 = vpack.c.bf16 %v1506_v53, %v1504_v51 }
 0x779   : > { %1649 = vmatmul.bf16.vlgmr.msrb.gmra.mxu0 %v1507_v54  ;;  %1663 = vmatmul.bf16.vlgmr.msra.gmra.mxu1 %v1508_v55 }
 0x7f6   : > { %v1650_v57 = vpop.f32.mrf.mxu0  ;;  %v1664_v58 = vpop.f32.mrf.mxu1 }
 0x7f7   : > { %v1651_v59 = vadd.f32 %v2372_v56, %v1650_v57 }
 0x7f9   : > { %v1665_v60 = vadd.f32 %v1664_v58, %v1651_v59 }
 0x7fb   : > { %v1669_v61 = vadd.f32 %v1665_v60, %v1370_v29  ;;  %v2374_v29 = vld [vmem:[%s669_s19] ss:$0 sm:$0xff] }
 0x7fd   : > { %1673 = vadd.xlane.f32.xlu1 %v1669_v61 }
 0x7fe   : > { %v1652_v63 = vpop.f32.mrf.mxu0  ;;  %v1666_v62 = vpop.f32.mrf.mxu1 }
 0x7ff   : > { %v1653_v0 = vadd.f32 %v2372_v56, %v1652_v63 }
 0x801   : > { %v1667_v3 = vadd.f32 %v1666_v62, %v1653_v0 }
 0x803   : > { %v1670_v1 = vadd.f32 %v1667_v3, %v1371_v30 }
 0x805   : > { %1675 = vadd.xlane.f32.xlu2 %v1670_v1 }
 0x870   : > { %v1674_v5 = vpop.xlane.xlu1 %1673 }
 0x871   : > { %v1677_v6 = vmul.f32 %v1674_v5, %v2865_v2 }
 0x873   : > { %v1679_v8 = vsub.f32 %v1669_v61, %v1677_v6 }
 0x875   : > { %v1681_v9 = vmul.f32 %v1679_v8, %v1679_v8 }
 0x877   : > { %1683 = vadd.xlane.f32.xlu0 %v1681_v9 }
 0x878   : > { %v1676_v10 = vpop.xlane.xlu2 %1675 }
 0x879   : > { %v1678_v11 = vmul.f32 %v1676_v10, %v2865_v2 }
 0x87b   : > { %v1680_v12 = vsub.f32 %v1670_v1, %v1678_v11 }
 0x87d   : > { %v1682_v13 = vmul.f32 %v1680_v12, %v1680_v12 }
 0x87f   : > { %1685 = vadd.xlane.f32.xlu1 %v1682_v13 }
 0x8ea   : > { %v1684_v14 = vpop.xlane.xlu0 %1683 }
 0x8eb   : > { %v1687_v15 = vmul.f32 %v1684_v14, %v2865_v2 }
 0x8ed   : > { %v1689_v44 = vadd.f32 1e-05, %v1687_v15 }
 0x8ef   : > { %2413 = vrsqrt.f32 %v1689_v44  ;;  %vm1697_vm13 = vweird.f32 %v1689_v44 }
 0x8f2   : > { %v1686_v16 = vpop.xlane.xlu1 %1685 }
 0x8f3   : > { %v1688_v17 = vmul.f32 %v1686_v16, %v2865_v2 }
 0x8f5   : > { %v2414_v18 = vpop.eup %2413  ;;  %v1690_v19 = vadd.f32 1e-05, %v1688_v17 }
 0x8f6   : > { %v1692_v20 = vmul.f32 %v2414_v18, %v1689_v44  ;;  %vm1698_vm12 = vweird.f32 %v2414_v18 }
 0x8f7   : > { %2415 = vrsqrt.f32 %v1690_v19  ;;  %vm1699_vm14 = vmor %vm1697_vm13, %vm1698_vm12  ;;  %vm1707_vm0 = vweird.f32 %v1690_v19 }
 0x8f8   : > { %v1693_v21 = vmul.f32 %v2414_v18, %v1692_v20 }
 0x8fa   : > { %v1694_v22 = vmul.f32 0.5, %v1693_v21 }
 0x8fc   : > { %v1695_v23 = vsub.f32 1.5, %v1694_v22 }
 0x8fd   : > { %v2416_v24 = vpop.eup %2415 }
 0x8fe   : > { %v1696_v26 = vmul.f32 %v2414_v18, %v1695_v23  ;;  %v1702_v27 = vmul.f32 %v2416_v24, %v1690_v19  ;;  %vm1708_vm15 = vweird.f32 %v2416_v24 }
 0x8ff   : > { %vm1709_vm1 = vmor %vm1707_vm0, %vm1708_vm15 }
 0x900   : > { %v1700_v2 = vsel %vm1699_vm14, %v2414_v18, %v1696_v26  ;;  %v1703_v28 = vmul.f32 %v2416_v24, %v1702_v27 }
 0x901   : > { %v1711_v30 = vmul.f32 %v1700_v2, %v1679_v8 }
 0x902   : > { %v1704_v25 = vmul.f32 0.5, %v1703_v28 }
 0x903   : > { %v1716_v31 = vmul.f32 %v2373_v4, %v1711_v30 }
 0x904   : > { %v1705_v32 = vsub.f32 1.5, %v1704_v25 }
 0x905   : > { %v1721_v7 = vadd.f32 %v2374_v29, %v1716_v31 }
 0x906   : > { %v1706_v33 = vmul.f32 %v2416_v24, %v1705_v32 }
 0x907   : > { %1723 = vst [vmem:[#allocation2] sm:$0xff] %v1721_v7 }
 0x908   : > { %v1710_v34 = vsel %vm1709_vm1, %v2416_v24, %v1706_v33 }
 0x909   : > { %v1712_v35 = vmul.f32 %v1710_v34, %v1680_v12 }
 0x90b   : > { %v1717_v36 = vmul.f32 %v2373_v4, %v1712_v35  ;;  %1728 = sbr.rel (%p2220_p3) target bundleno = 2322 (0x912), region = 84 }
 0x90d   : > { %v1722_v37 = vadd.f32 %v2374_v29, %v1717_v36 }
 0x90f   : > { %1724 = vst [vmem:[#allocation2 + $0x8] sm:$0xff] %v1722_v37 }
 0x910   : > { %1729 = vst [vmem:[%s2737_s7] sm:$0xff] %v1721_v7 }
 0x911   : > { %1730 = vst [vmem:[%s2737_s7 + $0x8] sm:$0xff] %v1722_v37 }
 0x912 PF: > { %s3047_s5 = sld [smem:[#allocation11_spill]] }
 0x913   : > { %s3048_s25 = sld [smem:[#allocation7_spill]] }
 0x914   : > { %s3049_s26 = sld [smem:[#allocation8_spill]] }
 0x915   : > { %s3050_s27 = sld [smem:[#allocation14_spill]] }
 0x916   : > { %s3051_s28 = sld [smem:[#allocation9_spill]] }
 0x917   : > { %s3052_s29 = sld [smem:[#allocation10_spill]] }
 0x918   : > { %s26_s15 = sadd.s32 1, %s3047_s5   ;;  %s3053_s30 = sld [smem:[#allocation12_spill]] }
 0x919   : > { %p23_p4 = scmp.ge.s32.totalorder %s26_s15, 10   ;;  %s3054_s14 = sld [smem:[#allocation13_spill]] }
 0x91b   :  { %25 = sbr.rel (!%p23_p4) target bundleno = 17 (0x11), region = 156 }
 0x920   :  { %1753 = vsyncpa [#allocation5], 1 }
 0x921   :  { %1755 = vsyncpa [#allocation5 + $0x1], 1 }

// kernel: basic_model_forward.4
= control target key start
LH: loop header
LB: loop body
LE: loop exit
PB: predicated region body
PF: predicated region fallthrough
CT: control target
= control target key end

     0   :  { %s3078_s0 = inlined_call_operand.vmem [shape: f32[64,128], index: 0, kind: input, shape index: {}]   ;;  %s3079_s1 = inlined_call_operand.vmem [shape: bf16[2,128,384], index: 1, kind: input, shape index: {}]   ;;  %s3080_s2 = inlined_call_operand.vmem [shape: f32[2,1,384], index: 2, kind: input, shape index: {}]   ;;  %s3081_s3 = inlined_call_operand.hbm [shape: bf16[2,128,128], index: 3, kind: input, shape index: {}]   ;;  %s3082_s4 = inlined_call_operand.vmem [shape: f32[2,1,128], index: 4, kind: input, shape index: {}]   ;;  %s3083_s5 = inlined_call_operand.vmem [shape: bf16[2,128,256], index: 5, kind: input, shape index: {}]   ;;  %s3084_s6 = inlined_call_operand.vmem [shape: f32[2,1,256], index: 6, kind: input, shape index: {}]   ;;  %s3085_s7 = inlined_call_operand.hbm [shape: bf16[2,256,128], index: 7, kind: input, shape index: {}]   ;;  %s3086_s8 = inlined_call_operand.vmem [shape: f32[2,1,128], index: 8, kind: input, shape index: {}]   ;;  %s3087_s9 = inlined_call_operand.vmem [shape: f32[2,1,128], index: 9, kind: input, shape index: {}]   ;;  %s3088_s10 = inlined_call_operand.vmem [shape: f32[2,1,128], index: 10, kind: input, shape index: {}]   ;;  %s3089_s11 = inlined_call_operand.vmem [shape: f32[2,1,128], index: 11, kind: input, shape index: {}]   ;;  %s3090_s12 = inlined_call_operand.vmem [shape: f32[2,1,128], index: 12, kind: input, shape index: {}]   ;;  %s3091_s13 = inlined_call_operand.vmem [shape: f32[64,128], index: 13, kind: output, shape index: {}]  }
   0x1   :  { %3099 = sst [smem:[#allocation20_spill]] %s3078_s0 }
   0x2   :  { %3100 = sst [smem:[#allocation21_spill]] %s3079_s1 }
   0x3   :  { %3101 = sst [smem:[#allocation22_spill]] %s3080_s2 }
   0x4   :  { %3102 = sst [smem:[#allocation23_spill]] %s3081_s3 }
   0x5   :  { %3103 = sst [smem:[#allocation24_spill]] %s3083_s5 }
   0x6   :  { %3104 = sst [smem:[#allocation25_spill]] %s3084_s6 }
   0x7   :  { %3105 = sst [smem:[#allocation26_spill]] %s3085_s7 }
   0x8   :  { %3106 = sst [smem:[#allocation27_spill]] %s3088_s10 }
   0x9   :  { %3107 = sst [smem:[#allocation28_spill]] %s3089_s11 }
   0xa   :  { %3108 = sst [smem:[#allocation29_spill]] %s3090_s12 }
   0xb   :  { %3109 = sst [smem:[#allocation30_spill]] %s3091_s13 }
   0xc   :  { %18 = vsyncpa [#allocation5], 0 }
   0xd   :  { %20 = vsyncpa [#allocation5 + $0x1], 0 }
   0xe   :  { %21 = vsyncpa [#allocation7], 0 }
   0xf   :  { %23 = vsyncpa [#allocation7 + $0x1], 0  ;;  %s2665_s25 = smov 0   ;;  %s2667_s26 = smov 0  }
  0x10   :  { %s2669_s27 = smov 0   ;;  %s2671_s28 = smov 0  }
  0x11   :  { %s2673_s29 = smov 0   ;;  %s2675_s30 = smov 0  }
  0x12   :  { %s2677_s14 = smov 0   ;;  %s2679_s15 = smov 0  }
  0x13 LB: > { %3110 = sst [smem:[#allocation10_spill]] %s2563_s26  ;;  %s1969_s16 = sadd.s32 4294967295, %s2587_s15   ;;  %s2587_s15 = sphi %s2679_s15, %s29_s15   ;;  %s2583_s14 = sphi %s2677_s14, %s3147_s14   ;;  %s2579_s30 = sphi %s2675_s30, %s3146_s30   ;;  %s2575_s29 = sphi %s2673_s29, %s3145_s29   ;;  %s2571_s28 = sphi %s2671_s28, %s3144_s28   ;;  %s2567_s27 = sphi %s2669_s27, %s3143_s27   ;;  %s2563_s26 = sphi %s2667_s26, %s3142_s26   ;;  %s2559_s25 = sphi %s2665_s25, %s3141_s25  }
  0x14   : > { %3111 = sst [smem:[#allocation11_spill]] %s2567_s27  ;;  %s38_s17 = sadd.s32 1, %s2579_s30 }
  0x15   : > { %3112 = sst [smem:[#allocation12_spill]] %s2579_s30  ;;  %p39_p0 = scmp.ge.s32.totalorder %s38_s17, 2 }
  0x16   : > { %3113 = sst [smem:[#allocation13_spill]] %s2583_s14  ;;  %s41_s18 = sadd.s32 1, %s2583_s14 }
  0x17   : > { %3114 = sst [smem:[#allocation14_spill]] %s2587_s15  ;;  %s126_s19 = sadd.s32 1, %s2567_s27 }
  0x18   : > { %p133_p1 = scmp.ne.s32.totalorder %s2567_s27, %s2563_s26  ;;  %s3149_s17 = smov (%p39_p0, %s38_s17), 0 }
  0x19   : > { %3115 = sst [smem:[#allocation15_spill]] %s3149_s17  ;;  %s3151_s18 = smov (!%p39_p0, %s41_s18), %s2583_s14 }
  0x1a   : > { %s123_s20 = ssub.s32 %s2579_s30, %s3149_s17  ;;  %p134_p2 = scmp.eq.s32.totalorder %s2587_s15, 0 }
  0x1b   : > { %p43_p3 = scmp.ge.s32.totalorder %s3151_s18, 4  ;;  %p124_p4 = scmp.eq.s32.totalorder %s123_s20, 0 }
  0x1c   : > { %p2715_p5 = por %p134_p2, %p133_p1  ;;  %p139_p6 = scmp.ne.s32.totalorder %s2563_s26, %s2559_s25 }
  0x1d   : > { %s3153_s18 = smov (%p43_p3, %s3151_s18), 0  ;;  %p140_p7 = scmp.eq.s32.totalorder %s1969_s16, 0 }
  0x1e   : > { %3117 = sst [smem:[#allocation16_spill]] %s3153_s18  ;;  %p2338_p8 = scmp.lt.s32.totalorder %s2587_s15, 8 }
  0x1f   : > { %s2723_s22 = scalar_select %p124_p4, %s2567_s27, %s126_s19  }
  0x20   : > { %s2727_s23 = sand.u32 1, %s2567_s27   ;;  %p2729_p9 = por %p140_p7, %p139_p6 }
  0x21   : > { %3118 = sst [smem:[#allocation17_spill]] %s2723_s22  ;;  %s1973_s20 = sshll.u32 %s2727_s23, 6 }
  0x22   : > { %s2258_s17 = sshll.u32 %s2579_s30, 6  ;;  %s3120_s3 = sld [smem:[#allocation23_spill]] }
  0x23   : > { %s451_s22 = scalar_lea.vmem [#allocation4], %s1973_s20  ;;  %p2740_p10 = pnand %p2338_p8, %p2715_p5 }
  0x24   : > { %s459_s16 = sshll.u32 %s451_s22, 4  ;;  %p1979_p11 = scmp.ge.s32.totalorder %s2587_s15, 1  ;;  %s460_s16 = int_to_ptr.vmem [resolvable:$true] %s459_s16 }
  0x25   : > { %p540_p12 = scmp.lt.s32.totalorder %s2587_s15, 9  ;;  %s448_s13 = scalar_lea.sflag [#allocation5], %s2727_s23 }
  0x26   : > { %s2589_s12 = smov 64   ;;  %s2590_s14 = smov 4  }
  0x27   : > { %p541_p13 = pnand %p1979_p11, %p540_p12  ;;  %s3122_s7 = sld [smem:[#allocation26_spill]] }
  0x28   : > { %s456_s18 = scalar_lea.hbm %s3120_s3, %s2258_s17  ;;  %s1976_s17 = sshll.u32 %s2727_s23, 7 }
  0x29   : > { %s457_s19 = sshll.u32 %s456_s18, 4  ;;  %s2259_s18 = sshll.u32 %s2579_s30, 7  ;;  %s458_s19 = int_to_ptr.hbm [resolvable:$true] %s457_s19 }
  0x2a   : > { %2334 = dma.hbm_to_vmem [thread:$0]  (!%p2740_p10), %s458_s19, 1024, %s460_s16, %s448_s13, %s2589_s12, %s2589_s12, %s2590_s14  }
  0x2b   : > { %s494_s3 = scalar_lea.vmem [#allocation6], %s1976_s17  ;;  %s491_s10 = scalar_lea.sflag [#allocation7], %s2727_s23 }
  0x2c   : > { %s502_s11 = sshll.u32 %s494_s3, 4  ;;  %544 = sbr.rel (%p541_p13) target bundleno = 2329 (0x919), region = 72  ;;  %s503_s11 = int_to_ptr.vmem [resolvable:$true] %s502_s11 }
  0x2d   : > { %s499_s21 = scalar_lea.hbm %s3122_s7, %s2259_s18 }
  0x2e   : > { %s500_s25 = sshll.u32 %s499_s21, 4  ;;  %s501_s25 = int_to_ptr.hbm [resolvable:$true] %s500_s25 }
  0x2f   : > { %2337 = dma.hbm_to_vmem [thread:$0]  (!%p2740_p10), %s501_s25, 2048, %s503_s11, %s491_s10, %s2589_s12, %s2589_s12, %s2590_s14  }
  0x31   : > { %s546_s15 = sand.u32 1, %s2563_s26  }
  0x32   : > { %s1980_s13 = sshll.u32 %s546_s15, 6  ;;  %s547_s19 = scalar_lea.sflag [#allocation5], %s546_s15 }
  0x33   : > { %s2758_s16 = scalar_lea.vmem [#allocation4], %s1980_s13 }
  0x34   : > { %2550 = dma.done.wait (%p2729_p9), %s547_s19, 1024  }
  0x35   : > { %2552 = vsyncadd (%p2729_p9), %s547_s19, 4294966272  ;;  %s1981_s3 = sshll.u32 %s546_s15, 7  ;;  %s557_s17 = scalar_lea.sflag [#allocation7], %s546_s15 }
  0x36   : > { %s2764_s18 = scalar_lea.vmem [#allocation6], %s1981_s3 }
  0x37   : > { %3123 = sst [smem:[#allocation18_spill]] %s2764_s18 }
  0x38   : > { %2554 = dma.done.wait (%p2729_p9), %s557_s17, 2048  }
  0x39   : > { %2556 = vsyncadd (%p2729_p9), %s557_s17, 4294965248  ;;  %s1982_s10 = sshll.u32 %s2575_s29, 1  ;;  %p656_p0 = scmp.lt.s32.totalorder %s2571_s28, 1 }
  0x3a   : > { %p651_p1 = scmp.lt.s32.totalorder %s1982_s10, 7  ;;  %s3124_s0 = sld [smem:[#allocation20_spill]] }
  0x3b   : > { %s2773_s11 = scalar_select %p656_p0, %s2571_s28, 1 }
  0x3c   : > { %s3155_s10 = smov (!%p651_p1, %s1982_s10), 7  ;;  %s3125_s1 = sld [smem:[#allocation21_spill]] }
  0x3d   : > { %s2325_s12 = smul.u32 192, %s2773_s11  ;;  %s1983_s23 = sshll.u32 %s3155_s10, 3 }
  0x3e   : > { %s2326_s24 = smul.u32 3, %s2773_s11  ;;  %s3126_s2 = sld [smem:[#allocation22_spill]] }
  0x3f   : > { %s2260_s7 = sshll.u32 %s2773_s11, 7  ;;  %s3127_s5 = sld [smem:[#allocation24_spill]] }
  0x40   : > { %s654_s20 = scalar_lea.vmem %s3124_s0, %s1983_s23  ;;  %s1987_s15 = sshll.u32 %s2773_s11, 1 }
  0x41   : > { %s3128_s6 = sld [smem:[#allocation25_spill]]  ;;  %s679_s25 = scalar_lea.vmem %s3086_s8, %s2773_s11 }
  0x42   : > { %s2787_s13 = scalar_lea.vmem %s3125_s1, %s2325_s12  ;;  %s3133_s21 = sld [smem:[#allocation30_spill]] }
  0x43   : > { %p1990_p2 = scmp.ne.s32.totalorder %s2571_s28, 0 }
  0x44   : > { %s2792_s17 = scalar_lea.vmem %s3126_s2, %s2326_s24  ;;  %s682_s24 = scalar_lea.vmem %s3087_s9, %s2773_s11 }
  0x45   : > { %s2798_s10 = scalar_lea.vmem %s3127_s5, %s2260_s7  ;;  %s3130_s2 = sld [smem:[#allocation27_spill]] }
  0x46   : > { %s3131_s5 = sld [smem:[#allocation28_spill]] }
  0x47   : > { %s2804_s22 = scalar_lea.vmem %s3128_s6, %s1987_s15  ;;  %s3132_s15 = sld [smem:[#allocation29_spill]] }
  0x48   : > { %3129 = sst [smem:[#allocation19_spill]] %s2804_s22  ;;  %s2829_s12 = scalar_lea.vmem %s3133_s21, %s1983_s23 }
  0x49   : > { %702 = sbr.rel (%p1990_p2) target bundleno = 81 (0x51), region = 84 }
  0x4b   : > { %s685_s30 = scalar_lea.vmem %s3130_s2, %s2773_s11 }
  0x4c   : > { %s688_s26 = scalar_lea.vmem %s3131_s5, %s2773_s11 }
  0x4d   : > { %s691_s14 = scalar_lea.vmem %s3132_s15, %s2773_s11 }
  0x4e   : > { %v703_v0 = vld [vmem:[%s654_s20] sm:$0xff]  ;;  %v704_v1 = vld [vmem:[%s654_s20 + $0x8] sm:$0xff] }
  0x4f   : > { %705 = vst [vmem:[#allocation2] sm:$0xff] %v703_v0 }
  0x50   : > { %706 = vst [vmem:[#allocation2 + $0x8] sm:$0xff] %v704_v1 }
  0x51 PF: > { %v2077_v2 = vld [vmem:[%s2787_s13 + $0xa8] sm:$0xf]  ;;  %v2283_v3 = vld [vmem:[%s2787_s13 + $0xb0] sm:$0xf0]  ;;  %v2282_v4 = vld [vmem:[%s2787_s13 + $0xac] sm:$0xf] }
  0x52   : > { %v2078_v5 = vor.u32 %v2283_v3, %v2077_v2  ;;  %v2079_v6 = vld [vmem:[%s2787_s13 + $0xb4] sm:$0xf0]  ;;  %v2065_v7 = vld [vmem:[%s2787_s13 + $0x90] sm:$0xf]  ;;  %v2280_v8 = vld [vmem:[%s2787_s13 + $0x98] sm:$0xf0] }
  0x53   : > { %v2082_v9 = vor.u32 %v2282_v4, %v2079_v6  ;;  %v2279_v10 = vld [vmem:[%s2787_s13 + $0x94] sm:$0xf]  ;;  %v2067_v11 = vld [vmem:[%s2787_s13 + $0x9c] sm:$0xf0]  ;;  %v2066_v12 = vor.u32 %v2280_v8, %v2065_v7  ;;  %v2053_v14 = vld [vmem:[%s2787_s13 + $0x78] sm:$0xf] }
  0x54   : > { %878 = vmatpush.bf16.msra.mxu0 %v2078_v5  ;;  %v2070_v13 = vor.u32 %v2279_v10, %v2067_v11  ;;  %v2277_v15 = vld [vmem:[%s2787_s13 + $0x80] sm:$0xf0]  ;;  %v2276_v16 = vld [vmem:[%s2787_s13 + $0x7c] sm:$0xf]  ;;  %v2055_v17 = vld [vmem:[%s2787_s13 + $0x84] sm:$0xf0] }
  0x55   : > { %892 = vmatpush.bf16.msra.mxu1 %v2082_v9  ;;  %v2054_v18 = vor.u32 %v2277_v15, %v2053_v14  ;;  %v2058_v19 = vor.u32 %v2276_v16, %v2055_v17  ;;  %v2041_v20 = vld [vmem:[%s2787_s13 + $0x60] sm:$0xf]  ;;  %v2274_v21 = vld [vmem:[%s2787_s13 + $0x68] sm:$0xf0]  ;;  %v2273_v22 = vld [vmem:[%s2787_s13 + $0x64] sm:$0xf] }
  0x56   : > { %v2043_v23 = vld [vmem:[%s2787_s13 + $0x6c] sm:$0xf0]  ;;  %v2042_v24 = vor.u32 %v2274_v21, %v2041_v20  ;;  %v2029_v25 = vld [vmem:[%s2787_s13 + $0x48] sm:$0xf]  ;;  %v2284_v27 = vld [vmem:[%s2787_s13 + $0xb8] sm:$0xf0] }
  0x57   : > { %v2085_v26 = vld [vmem:[%s2787_s13 + $0xb0] sm:$0xf]  ;;  %v2046_v28 = vor.u32 %v2273_v22, %v2043_v23  ;;  %v2271_v29 = vld [vmem:[%s2787_s13 + $0x50] sm:$0xf0]  ;;  %v2073_v31 = vld [vmem:[%s2787_s13 + $0x98] sm:$0xf] }
  0x58   : > { %879 = vmatpush.bf16.msra.mxu0 %v2066_v12  ;;  %v2086_v30 = vor.u32 %v2284_v27, %v2085_v26  ;;  %v2281_v32 = vld [vmem:[%s2787_s13 + $0xa0] sm:$0xf0]  ;;  %v2270_v33 = vld [vmem:[%s2787_s13 + $0x4c] sm:$0xf]  ;;  %v2031_v34 = vld [vmem:[%s2787_s13 + $0x54] sm:$0xf0]  ;;  %v2030_v36 = vor.u32 %v2271_v29, %v2029_v25 }
  0x59   : > { %893 = vmatpush.bf16.msra.mxu1 %v2070_v13  ;;  %v2074_v35 = vor.u32 %v2281_v32, %v2073_v31  ;;  %v2061_v37 = vld [vmem:[%s2787_s13 + $0x80] sm:$0xf]  ;;  %v2278_v38 = vld [vmem:[%s2787_s13 + $0x88] sm:$0xf0]  ;;  %v2034_v39 = vor.u32 %v2270_v33, %v2031_v34  ;;  %v2017_v40 = vld [vmem:[%s2787_s13 + $0x30] sm:$0xf] }
  0x5a   : > { %906 = vmatpush.bf16.msra.mxu2 %v2086_v30  ;;  %v2268_v41 = vld [vmem:[%s2787_s13 + $0x38] sm:$0xf0]  ;;  %v2267_v42 = vld [vmem:[%s2787_s13 + $0x34] sm:$0xf]  ;;  %v2019_v43 = vld [vmem:[%s2787_s13 + $0x3c] sm:$0xf0]  ;;  %v2062_v44 = vor.u32 %v2278_v38, %v2061_v37 }
  0x5b   : > { %v2018_v45 = vor.u32 %v2268_v41, %v2017_v40  ;;  %v2049_v46 = vld [vmem:[%s2787_s13 + $0x68] sm:$0xf]  ;;  %v2275_v47 = vld [vmem:[%s2787_s13 + $0x70] sm:$0xf0]  ;;  %v2022_v48 = vor.u32 %v2267_v42, %v2019_v43  ;;  %v2005_v49 = vld [vmem:[%s2787_s13 + $0x18] sm:$0xf] }
  0x5c   : > { %880 = vmatpush.bf16.msra.mxu0 %v2054_v18  ;;  %v2265_v50 = vld [vmem:[%s2787_s13 + $0x20] sm:$0xf0]  ;;  %v2264_v51 = vld [vmem:[%s2787_s13 + $0x1c] sm:$0xf]  ;;  %v2007_v52 = vld [vmem:[%s2787_s13 + $0x24] sm:$0xf0]  ;;  %v2050_v53 = vor.u32 %v2275_v47, %v2049_v46 }
  0x5d   : > { %894 = vmatpush.bf16.msra.mxu1 %v2058_v19  ;;  %v2006_v54 = vor.u32 %v2265_v50, %v2005_v49  ;;  %v2037_v55 = vld [vmem:[%s2787_s13 + $0x50] sm:$0xf]  ;;  %v2272_v56 = vld [vmem:[%s2787_s13 + $0x58] sm:$0xf0]  ;;  %v2010_v57 = vor.u32 %v2264_v51, %v2007_v52  ;;  %v1993_v58 = vld [vmem:[%s2787_s13] sm:$0xf] }
  0x5e   : > { %907 = vmatpush.bf16.msra.mxu2 %v2074_v35  ;;  %v2262_v59 = vld [vmem:[%s2787_s13 + $0x8] sm:$0xf0]  ;;  %v2261_v60 = vld [vmem:[%s2787_s13 + $0x4] sm:$0xf]  ;;  %v1995_v61 = vld [vmem:[%s2787_s13 + $0xc] sm:$0xf0]  ;;  %v2038_v63 = vor.u32 %v2272_v56, %v2037_v55 }
  0x5f   : > { %v2874_v62 = vld [vmem:[#allocation2] sm:$0xff]  ;;  %v1994_v0 = vor.u32 %v2262_v59, %v1993_v58  ;;  %v2876_v1 = vld [vmem:[#allocation2 + $0x8] sm:$0xff]  ;;  %v2025_v2 = vld [vmem:[%s2787_s13 + $0x38] sm:$0xf]  ;;  %v1998_v4 = vor.u32 %v2261_v60, %v1995_v61  ;;  %vm936_vm0 = vcmask 261120   ;;  %s2591_s0 = smov 96  }
  0x60   : > { %881 = vmatpush.bf16.msra.mxu0 %v2042_v24  ;;  %v2269_v3 = vld [vmem:[%s2787_s13 + $0x40] sm:$0xf0]  ;;  %v709_v5 = vpack.c.bf16 %v2876_v1, %v2874_v62  ;;  %v2013_v7 = vld [vmem:[%s2787_s13 + $0x20] sm:$0xf]  ;;  %v2266_v8 = vld [vmem:[%s2787_s13 + $0x28] sm:$0xf0] }
  0x61   : > { %895 = vmatpush.bf16.msra.mxu1 %v2046_v28  ;;  %v2026_v6 = vor.u32 %v2269_v3, %v2025_v2  ;;  %v2014_v9 = vor.u32 %v2266_v8, %v2013_v7  ;;  %v2001_v10 = vld [vmem:[%s2787_s13 + $0x8] sm:$0xf]  ;;  %v2263_v11 = vld [vmem:[%s2787_s13 + $0x10] sm:$0xf0]  ;;  %v742_v13 = vld [vmem:[%s2792_s17] sm:$0x7] }
  0x62   : > { %908 = vmatpush.bf16.msra.mxu2 %v2062_v44  ;;  %v2002_v12 = vor.u32 %v2263_v11, %v2001_v10  ;;  %v745_v16 = vperm.slane %v742_v13, 1  ;;  %v744_v18 = vperm.slane %v742_v13, 0  ;;  %v746_v31 = vperm.slane %v742_v13, 2  ;;  %s2592_s1 = smov 64   ;;  %s2593_s2 = smov 32  }
  0x63   : > { %vm959_vm1 = vcmask 130048   ;;  %vm1085_vm2 = vcmask 523520   ;;  %vm1165_vm3 = vcmask 785920   ;;  %vm1245_vm4 = vcmask 1048320   ;;  %s3135_s18 = sld [smem:[#allocation18_spill]]  ;;  %p2255_p3 = scmp.ne.s32.totalorder %s2571_s28, 1 }
  0x64   : > { %882 = vmatpush.bf16.msra.mxu0 %v2030_v36  ;;  %s3137_s22 = sld [smem:[#allocation19_spill]] }
  0x65   : > { %896 = vmatpush.bf16.msra.mxu1 %v2034_v39 }
  0x66   : > { %909 = vmatpush.bf16.msra.mxu2 %v2050_v53 }
  0x68   : > { %883 = vmatpush.bf16.msra.mxu0 %v2018_v45 }
  0x69   : > { %897 = vmatpush.bf16.msra.mxu1 %v2022_v48 }
  0x6a   : > { %910 = vmatpush.bf16.msra.mxu2 %v2038_v63 }
  0x6c   : > { %884 = vmatpush.bf16.msra.mxu0 %v2006_v54 }
  0x6d   : > { %898 = vmatpush.bf16.msra.mxu1 %v2010_v57 }
  0x6e   : > { %911 = vmatpush.bf16.msra.mxu2 %v2026_v6 }
  0x70   : > { %885 = vmatpush.bf16.msra.mxu0 %v1994_v0 }
  0x71   : > { %899 = vmatpush.bf16.msra.mxu1 %v1998_v4 }
  0x72   : > { %912 = vmatpush.bf16.msra.mxu2 %v2014_v9 }
  0x73   : > { %886 = vmatmul.bf16.vlgmr.msra.gmra.mxu0 %v709_v5 }
  0x74   : > { %900 = vmatmul.bf16.vlgmr.msra.gmra.mxu1 %v709_v5 }
  0x76   : > { %913 = vmatpush.bf16.msra.mxu2 %v2002_v12 }
  0x79   : > { %914 = vmatmul.bf16.vlgmr.msra.gmra.mxu2 %v709_v5 }
  0xf0   : > { %v887_v14 = vpop.f32.mrf.mxu0 }
  0xf1   : > { %v901_v15 = vpop.f32.mrf.mxu1  ;;  %v888_v23 = vadd.f32 %v887_v14, %v744_v18 }
  0xf2   : > { %v902_v17 = vadd.f32 %v901_v15, %v745_v16 }
  0xf3   : > { %v920_v28 = vpack.c.bf16 %v888_v23, %v888_v23 }
  0xf4   : > { %v922_v21 = vpack.c.bf16 %v902_v17, %v902_v17 }
  0xf5   : > { %v928_v34 = vunpack.c.l.b16 %v920_v28 }
  0xf6   : > { %v933_v26 = vunpack.c.l.b16 %v922_v21 }
  0xf8   : > { %v889_v19 = vpop.f32.mrf.mxu0 }
  0xf9   : > { %v903_v20 = vpop.f32.mrf.mxu1  ;;  %v890_v24 = vadd.f32 %v889_v19, %v744_v18 }
  0xfa   : > { %v904_v22 = vadd.f32 %v903_v20, %v745_v16 }
  0xfb   : > { %v921_v29 = vpack.c.bf16 %v890_v24, %v890_v24 }
  0xfc   : > { %v923_v25 = vpack.c.bf16 %v904_v22, %v904_v22  ;;  %v915_v32 = vpop.f32.mrf.mxu2 }
  0xfd   : > { %v929_v35 = vunpack.c.l.b16 %v921_v29  ;;  %v916_v36 = vadd.f32 %v915_v32, %v746_v31 }
  0xfe   : > { %v934_v27 = vunpack.c.l.b16 %v923_v25 }
  0xff   : > { %v930_v37 = vpack.c.b16 %v929_v35, %v928_v34  ;;  %v924_v38 = vpack.c.bf16 %v916_v36, %v916_v36 }
 0x100   : > { %v935_v30 = vpack.c.b16 %v934_v27, %v933_v26 }
 0x101   : > { %v985_v41 = vunpack.c.l.b16 %v924_v38 }
 0x102   : > { %1010 = vrot.lane.b32.xlu2 %v935_v30, %s2591_s0  ;;  %v941_v33 = vsel %vm936_vm0, %v935_v30, 0 }
 0x103   : > { %950 = vmatpush.bf16.xpose.msra.mxu3 %v941_v33 }
 0x104   : > { %v917_v39 = vpop.f32.mrf.mxu2 }
 0x105   : > { %v918_v40 = vadd.f32 %v917_v39, %v746_v31 }
 0x107   : > { %v925_v42 = vpack.c.bf16 %v918_v40, %v918_v40 }
 0x109   : > { %v986_v43 = vunpack.c.l.b16 %v925_v42 }
 0x10a   : > { %1008 = vrot.lane.b32.xlu2 %v930_v37, %s2591_s0  ;;  %2087 = vmatmul.msk.bf16.vlgmr.msra.gmra.mxu3 %vm936_vm0, %v930_v37 }
 0x10b   : > { %v2891_v44 = vpack.c.b16 %v986_v43, %v985_v41 }
 0x10d   : > { %999 = vmatpush.bf16.msrb.mxu3 %v2891_v44 }
 0x112   : > { %1088 = vrot.lane.b32.xlu2 %v930_v37, %s2592_s1 }
 0x11a   : > { %1168 = vrot.lane.b32.xlu2 %v930_v37, %s2593_s2 }
 0x15c   : > { %v1011_v45 = vpop.permute.xlu2 %1010 }
 0x15d   : > { %v1016_v46 = vsel %vm936_vm0, %v1011_v45, 0 }
 0x15e   : > { %1025 = vmatpush.bf16.xpose.msra.mxu3 %v1016_v46 }
 0x164   : > { %v1009_v0 = vpop.permute.xlu2 %1008 }
 0x16c   : > { %v1089_v4 = vpop.permute.xlu2 %1088 }
 0x174   : > { %v1169_v17 = vpop.permute.xlu2 %1168 }
 0x18d   : > { %v952_v47 = vpop.f32.mrf.mxu3 }
 0x18e   : > { %v957_v48 = vmul.f32 0.17677669, %v952_v47 }
 0x190   : > { %v960_v49 = vsel %vm959_vm1, %v957_v48, -inf }
 0x191   : > { %961 = vmax.xlane.f32.xlu0 %v960_v49 }
 0x195   : > { %v954_v50 = vpop.f32.mrf.mxu3 }
 0x196   : > { %v958_v51 = vmul.f32 0.17677669, %v954_v50 }
 0x198   : > { %v963_v52 = vsel %vm959_vm1, %v958_v51, -inf }
 0x199   : > { %964 = vmax.xlane.f32.xlu0 %v963_v52 }
 0x1ad   : > { %1090 = vrot.lane.b32.xlu0 %v935_v30, %s2592_s1 }
 0x204   : > { %v962_v53 = vpop.xlane.xlu0 %961 }
 0x205   : > { %v966_v54 = vsub.f32 %v957_v48, %v962_v53 }
 0x207   : > { %v968_v55 = vmul.f32 1.442695, %v966_v54 }
 0x209   : > { %2415 = vpow2.f32 %v968_v55 }
 0x20c   : > { %v965_v56 = vpop.xlane.xlu0 %964 }
 0x20d   : > { %v967_v57 = vsub.f32 %v958_v51, %v965_v56 }
 0x20f   : > { %v2416_v58 = vpop.eup %2415  ;;  %v970_v59 = vmul.f32 1.442695, %v967_v57 }
 0x210   : > { %v972_v60 = vsel %vm959_vm1, %v2416_v58, 0.0 }
 0x211   : > { %2417 = vpow2.f32 %v970_v59  ;;  %973 = vadd.xlane.f32.xlu1 %v972_v60 }
 0x217   : > { %v2418_v61 = vpop.eup %2417 }
 0x218   : > { %v975_v63 = vsel %vm959_vm1, %v2418_v61, 0.0 }
 0x219   : > { %976 = vadd.xlane.f32.xlu1 %v975_v63 }
 0x21f   : > { %v1091_v2 = vpop.permute.xlu0 %1090 }
 0x220   : > { %v1096_v3 = vsel %vm936_vm0, %v1091_v2, 0 }
 0x221   : > { %1105 = vmatpush.bf16.xpose.msrb.mxu2 %v1096_v3 }
 0x228   : > { %2091 = vmatmul.msk.bf16.vlgmr.msrb.gmra.mxu2 %vm936_vm0, %v1089_v4 }
 0x232   : > { %1170 = vrot.lane.b32.xlu1 %v935_v30, %s2593_s2 }
 0x284   : > { %v974_v5 = vpop.xlane.xlu1 %973 }
 0x285   : > { %2419 = vrcp.f32 %v974_v5 }
 0x28b   : > { %v2420_v7 = vpop.eup %2419 }
 0x28c   : > { %v977_v6 = vpop.xlane.xlu1 %976  ;;  %v980_v9 = vmul.f32 %v2420_v7, %v2416_v58 }
 0x28d   : > { %2421 = vrcp.f32 %v977_v6 }
 0x293   : > { %v2422_v8 = vpop.eup %2421 }
 0x294   : > { %v981_v10 = vmul.f32 %v2422_v8, %v2418_v61 }
 0x296   : > { %v982_v11 = vpack.c.bf16 %v981_v10, %v980_v9 }
 0x298   : > { %2088 = vmatmul.msk.bf16.vlgmr.msrb.gmra.mxu3 %vm959_vm1, %v982_v11 }
 0x2a4   : > { %v1171_v12 = vpop.permute.xlu1 %1170 }
 0x2a5   : > { %v1176_v13 = vsel %vm936_vm0, %v1171_v12, 0 }
 0x2a6   : > { %1185 = vmatpush.bf16.xpose.msrb.mxu3 %v1176_v13 }
 0x2a8   : > { %2089 = vmatmul.msk.bf16.vlgmr.msra.gmra.mxu3 %vm936_vm0, %v1009_v0 }
 0x2ab   : > { %v1107_v14 = vpop.f32.mrf.mxu2 }
 0x2ac   : > { %v1112_v15 = vmul.f32 0.17677669, %v1107_v14 }
 0x2ae   : > { %v1114_v16 = vsel %vm959_vm1, %v1112_v15, -inf }
 0x2af   : > { %1115 = vmax.xlane.f32.xlu1 %v1114_v16 }
 0x2b3   : > { %v1109_v28 = vpop.f32.mrf.mxu2 }
 0x2b4   : > { %v1113_v29 = vmul.f32 0.17677669, %v1109_v28 }
 0x2b6   : > { %v1117_v33 = vsel %vm959_vm1, %v1113_v29, -inf }
 0x2b8   : > { %2093 = vmatmul.msk.bf16.vlgmr.msrb.gmra.mxu3 %vm936_vm0, %v1169_v17 }
 0x31b   : > { %v1001_v18 = vpop.f32.mrf.mxu3 }
 0x31c   : > { %1006 = vst.msk [vmem:[#allocation3] sm:$0xff] %vm936_vm0, %v1001_v18 }
 0x322   : > { %v1116_v19 = vpop.xlane.xlu1 %1115 }
 0x323   : > { %v1120_v20 = vsub.f32 %v1112_v15, %v1116_v19  ;;  %v1003_v21 = vpop.f32.mrf.mxu3 }
 0x324   : > { %1007 = vst.msk [vmem:[#allocation3 + $0x8] sm:$0xff] %vm936_vm0, %v1003_v21 }
 0x325   : > { %v1122_v22 = vmul.f32 1.442695, %v1120_v20 }
 0x327   : > { %2423 = vpow2.f32 %v1122_v22 }
 0x32b   : > { %v1027_v23 = vpop.f32.mrf.mxu3 }
 0x32c   : > { %v1032_v24 = vmul.f32 0.17677669, %v1027_v23 }
 0x32d   : > { %v2912_v25 = vpop.eup %2423 }
 0x32e   : > { %v1034_v26 = vsel %vm959_vm1, %v1032_v24, -inf  ;;  %v1126_v27 = vsel %vm959_vm1, %v2912_v25, 0.0 }
 0x32f   : > { %1035 = vmax.xlane.f32.xlu2 %v1034_v26  ;;  %1127 = vadd.xlane.f32.xlu1 %v1126_v27 }
 0x333   : > { %v1029_v30 = vpop.f32.mrf.mxu3 }
 0x334   : > { %v1033_v31 = vmul.f32 0.17677669, %v1029_v30 }
 0x336   : > { %v1037_v32 = vsel %vm959_vm1, %v1033_v31, -inf }
 0x337   : > { %1038 = vmax.xlane.f32.xlu0 %v1037_v32  ;;  %1118 = vmax.xlane.f32.xlu2 %v1117_v33  ;;  %v2292_v33 = vld [vmem:[%s2758_s16 + $0x38] sm:$0xff] }
 0x338   : > { %1319 = vmatpush.bf16.msrb.mxu1 %v2292_v33  ;;  %v2300_v33 = vld [vmem:[%s2798_s10 + $0x34] sm:$0xf0] }
 0x33b   : > { %v1187_v34 = vpop.f32.mrf.mxu3 }
 0x33c   : > { %v1192_v35 = vmul.f32 0.17677669, %v1187_v34  ;;  %v2291_v34 = vld [vmem:[%s2758_s16 + $0x30] sm:$0xff] }
 0x33d   : > { %1320 = vmatpush.bf16.msrb.mxu1 %v2291_v34  ;;  %v2299_v34 = vld [vmem:[%s2798_s10 + $0x34] sm:$0xf] }
 0x33e   : > { %v1194_v36 = vsel %vm959_vm1, %v1192_v35, -inf }
 0x33f   : > { %1195 = vmax.xlane.f32.xlu0 %v1194_v36  ;;  %v2289_v36 = vld [vmem:[%s2758_s16 + $0x20] sm:$0xff] }
 0x343   : > { %v1189_v37 = vpop.f32.mrf.mxu3 }
 0x344   : > { %v1193_v38 = vmul.f32 0.17677669, %v1189_v37  ;;  %v2288_v37 = vld [vmem:[%s2758_s16 + $0x18] sm:$0xff] }
 0x346   : > { %v1197_v39 = vsel %vm959_vm1, %v1193_v38, -inf }
 0x347   : > { %1198 = vmax.xlane.f32.xlu2 %v1197_v39  ;;  %v2287_v39 = vld [vmem:[%s2758_s16 + $0x10] sm:$0xff] }
 0x35f   : > { %1057 = vrot.lane.b32.xlu2 %v2891_v44, %s2591_s0 }
 0x3a2   : > { %v1036_v40 = vpop.xlane.xlu2 %1035  ;;  %v1128_v5 = vpop.xlane.xlu1 %1127 }
 0x3a3   : > { %v1040_v41 = vsub.f32 %v1032_v24, %v1036_v40  ;;  %v2286_v40 = vld [vmem:[%s2758_s16 + $0x8] sm:$0xff] }
 0x3a5   : > { %v1042_v42 = vmul.f32 1.442695, %v1040_v41  ;;  %v2285_v41 = vld [vmem:[%s2758_s16] sm:$0xff] }
 0x3a7   : > { %2425 = vpow2.f32 %v1042_v42 }
 0x3aa   : > { %v1119_v43 = vpop.xlane.xlu2 %1118  ;;  %v1039_v45 = vpop.xlane.xlu0 %1038 }
 0x3ab   : > { %v1121_v46 = vsub.f32 %v1113_v29, %v1119_v43  ;;  %v1041_v49 = vsub.f32 %v1033_v31, %v1039_v45 }
 0x3ad   : > { %v2426_v47 = vpop.eup %2425  ;;  %v1124_v48 = vmul.f32 1.442695, %v1121_v46  ;;  %v1044_v51 = vmul.f32 1.442695, %v1041_v49 }
 0x3ae   : > { %v1046_v50 = vsel %vm959_vm1, %v2426_v47, 0.0 }
 0x3af   : > { %2427 = vpow2.f32 %v1124_v48  ;;  %1047 = vadd.xlane.f32.xlu1 %v1046_v50 }
 0x3b0   : > { %2429 = vpow2.f32 %v1044_v51 }
 0x3b2   : > { %v1196_v52 = vpop.xlane.xlu0 %1195 }
 0x3b3   : > { %v1200_v53 = vsub.f32 %v1192_v35, %v1196_v52  ;;  %v2290_v35 = vld [vmem:[%s2758_s16 + $0x28] sm:$0xff]  ;;  %s3134_s16 = scalar_lea.vmem %s3082_s4, %s2773_s11 }
 0x3b4   : > { %1321 = vmatpush.bf16.msrb.mxu1 %v2290_v35  ;;  %v2409_v51 = vld [vmem:[%s3134_s16] ss:$0 sm:$0xff] }
 0x3b5   : > { %v2428_v54 = vpop.eup %2427  ;;  %v1202_v55 = vmul.f32 1.442695, %v1200_v53 }
 0x3b6   : > { %v1129_v56 = vsel %vm959_vm1, %v2428_v54, 0.0  ;;  %v2430_v58 = vpop.eup %2429 }
 0x3b7   : > { %2431 = vpow2.f32 %v1202_v55  ;;  %1130 = vadd.xlane.f32.xlu0 %v1129_v56  ;;  %v1049_v63 = vsel %vm959_vm1, %v2430_v58, 0.0 }
 0x3b8   : > { %1322 = vmatpush.bf16.msrb.mxu1 %v2289_v36  ;;  %v2155_v36 = vld [vmem:[%s2798_s10 + $0x38] sm:$0xf0] }
 0x3ba   : > { %v1199_v57 = vpop.xlane.xlu2 %1198 }
 0x3bb   : > { %v1201_v59 = vsub.f32 %v1193_v38, %v1199_v57 }
 0x3bc   : > { %1323 = vmatpush.bf16.msrb.mxu1 %v2288_v37  ;;  %v2158_v37 = vor.u32 %v2299_v34, %v2155_v36  ;;  %v2310_v34 = vld [vmem:[%s3135_s18 + $0x8] sm:$0xff]  ;;  %v2309_v36 = vld [vmem:[%s3135_s18] sm:$0xff] }
 0x3bd   : > { %v2432_v60 = vpop.eup %2431  ;;  %v1204_v61 = vmul.f32 1.442695, %v1201_v59 }
 0x3be   : > { %v1206_v0 = vsel %vm959_vm1, %v2432_v60, 0.0 }
 0x3bf   : > { %2433 = vpow2.f32 %v1204_v61  ;;  %1050 = vadd.xlane.f32.xlu0 %v1049_v63  ;;  %1207 = vadd.xlane.f32.xlu1 %v1206_v0 }
 0x3c0   : > { %1324 = vmatpush.bf16.msrb.mxu1 %v2287_v39  ;;  %v2298_v39 = vld [vmem:[%s2798_s10 + $0x24] sm:$0xf0] }
 0x3c2   : > { %v1058_v2 = vpop.permute.xlu2 %1057 }
 0x3c3   : > { %1070 = vmatpush.bf16.msrb.mxu0 %v1058_v2 }
 0x3c4   : > { %1325 = vmatpush.bf16.msrb.mxu1 %v2286_v40  ;;  %v2297_v40 = vld [vmem:[%s2798_s10 + $0x24] sm:$0xf] }
 0x3c5   : > { %v2434_v3 = vpop.eup %2433 }
 0x3c6   : > { %v1209_v4 = vsel %vm959_vm1, %v2434_v3, 0.0 }
 0x3c7   : > { %1210 = vadd.xlane.f32.xlu0 %v1209_v4 }
 0x3c8   : > { %1326 = vmatpush.bf16.msrb.mxu1 %v2285_v41 }
 0x3d8   : > { %1137 = vrot.lane.b32.xlu1 %v2891_v44, %s2592_s1 }
 0x3db   : > { %1217 = vrot.lane.b32.xlu0 %v2891_v44, %s2593_s2 }
 0x422   : > { %v1048_v7 = vpop.xlane.xlu1 %1047 }
 0x423   : > { %2435 = vrcp.f32 %v1048_v7 }
 0x429   : > { %v2436_v9 = vpop.eup %2435 }
 0x42a   : > { %v1131_v6 = vpop.xlane.xlu0 %1130  ;;  %v1054_v11 = vmul.f32 %v2436_v9, %v2426_v47  ;;  %v2185_v9 = vld [vmem:[%s2798_s10 + $0x70] sm:$0xf] }
 0x432   : > { %v1051_v8 = vpop.xlane.xlu0 %1050  ;;  %v1208_v15 = vpop.xlane.xlu1 %1207 }
 0x433   : > { %2437 = vrcp.f32 %v1051_v8 }
 0x434   : > { %2439 = vrcp.f32 %v1131_v6 }
 0x435   : > { %2441 = vrcp.f32 %v1128_v5 }
 0x439   : > { %v2438_v10 = vpop.eup %2437 }
 0x43a   : > { %v1055_v12 = vmul.f32 %v2438_v10, %v2430_v58  ;;  %v1211_v14 = vpop.xlane.xlu0 %1210  ;;  %v2440_v44 = vpop.eup %2439  ;;  %v2594_v58 = vmov 128.0   ;;  %v2308_v10 = vld [vmem:[%s2798_s10 + $0x74] sm:$0xf0] }
 0x43b   : > { %2443 = vrcp.f32 %v1211_v14  ;;  %v2442_v16 = vpop.eup %2441  ;;  %v1135_v18 = vmul.f32 %v2440_v44, %v2428_v54  ;;  %v2306_v44 = vld [vmem:[%s2798_s10 + $0x64] sm:$0xf0] }
 0x43c   : > { %v1056_v13 = vpack.c.bf16 %v1055_v12, %v1054_v11  ;;  %2445 = vrcp.f32 %v1208_v15  ;;  %v1134_v20 = vmul.f32 %v2442_v16, %v2912_v25  ;;  %v2307_v11 = vld [vmem:[%s2798_s10 + $0x74] sm:$0xf]  ;;  %v2186_v12 = vor.u32 %v2308_v10, %v2185_v9  ;;  %v2177_v15 = vld [vmem:[%s2798_s10 + $0x60] sm:$0xf]  ;;  %v2305_v16 = vld [vmem:[%s2798_s10 + $0x64] sm:$0xf] }
 0x43d   : > { %2447 = vrcp.f32 %v2594_v58  ;;  %v2322_v9 = vld [vmem:[%s3135_s18 + $0x68] sm:$0xff] }
 0x43e   : > { %2090 = vmatmul.msk.bf16.vlgmr.msrb.gmra.mxu0 %vm959_vm1, %v1056_v13  ;;  %v1136_v23 = vpack.c.bf16 %v1135_v18, %v1134_v20  ;;  %v2187_v13 = vld [vmem:[%s2798_s10 + $0x78] sm:$0xf0]  ;;  %v2179_v18 = vld [vmem:[%s2798_s10 + $0x68] sm:$0xf0]  ;;  %v2169_v20 = vld [vmem:[%s2798_s10 + $0x50] sm:$0xf] }
 0x43f   : > { %v2190_v14 = vor.u32 %v2307_v11, %v2187_v13  ;;  %v2321_v13 = vld [vmem:[%s3135_s18 + $0x60] sm:$0xff] }
 0x441   : > { %v2444_v17 = vpop.eup %2443  ;;  %1511 = vmatpush.bf16.msra.mxu3 %v2190_v14 }
 0x442   : > { %v2446_v19 = vpop.eup %2445  ;;  %v1215_v22 = vmul.f32 %v2444_v17, %v2434_v3  ;;  %v2178_v17 = vor.u32 %v2306_v44, %v2177_v15 }
 0x443   : > { %v1214_v24 = vmul.f32 %v2446_v19, %v2432_v60  ;;  %v2448_v59 = vpop.eup %2447  ;;  %v2182_v19 = vor.u32 %v2305_v16, %v2179_v18 }
 0x444   : > { %v1342_v60 = vmul.f32 128.0, %v2448_v59  ;;  %vm1346_vm5 = vweird.f32 %v2448_v59 }
 0x445   : > { %v1216_v27 = vpack.c.bf16 %v1215_v22, %v1214_v24  ;;  %1512 = vmatpush.bf16.msra.mxu3 %v2182_v19  ;;  %v2303_v22 = vld [vmem:[%s2798_s10 + $0x54] sm:$0xf]  ;;  %v2171_v24 = vld [vmem:[%s2798_s10 + $0x58] sm:$0xf0] }
 0x446   : > { %v1343_v61 = vsub.f32 1.0, %v1342_v60  ;;  %v2316_v60 = vld [vmem:[%s3135_s18 + $0x38] sm:$0xff] }
 0x448   : > { %v1344_v63 = vmul.f32 %v2448_v59, %v1343_v61  ;;  %v2324_v61 = vld [vmem:[%s3135_s18 + $0x78] sm:$0xff] }
 0x449   : > { %1677 = vmatpush.bf16.msra.mxu1 %v2324_v61 }
 0x44a   : > { %v1138_v21 = vpop.permute.xlu1 %1137  ;;  %v1345_v0 = vadd.f32 %v2448_v59, %v1344_v63 }
 0x44b   : > { %1150 = vmatpush.bf16.msra.mxu2 %v1138_v21  ;;  %v2304_v21 = vld [vmem:[%s2798_s10 + $0x54] sm:$0xf0] }
 0x44c   : > { %v2957_v2 = vsel %vm1346_vm5, %v2448_v59, %v1345_v0 }
 0x44d   : > { %v1218_v26 = vpop.permute.xlu0 %1217 }
 0x44e   : > { %2092 = vmatmul.msk.bf16.vlgmr.msra.gmra.mxu2 %vm959_vm1, %v1136_v23  ;;  %1230 = vmatpush.bf16.msra.mxu0 %v1218_v26  ;;  %v2170_v23 = vor.u32 %v2304_v21, %v2169_v20  ;;  %v2174_v26 = vor.u32 %v2303_v22, %v2171_v24  ;;  %v2410_v22 = vld [vmem:[%s682_s24] ss:$0 sm:$0xff] }
 0x44f   : > { %1497 = vmatpush.bf16.msrb.mxu2 %v2186_v12  ;;  %v2313_v12 = vld [vmem:[%s3135_s18 + $0x20] sm:$0xff] }
 0x450   : > { %1513 = vmatpush.bf16.msra.mxu3 %v2174_v26 }
 0x451   : > { %2094 = vmatmul.msk.bf16.vlgmr.msra.gmra.mxu0 %vm959_vm1, %v1216_v27  ;;  %v2161_v27 = vld [vmem:[%s2798_s10 + $0x40] sm:$0xf] }
 0x452   : > { %1663 = vmatpush.bf16.msrb.mxu0 %v2316_v60 }
 0x453   : > { %1498 = vmatpush.bf16.msrb.mxu2 %v2178_v17 }
 0x457   : > { %1499 = vmatpush.bf16.msrb.mxu2 %v2170_v23 }
 0x4bb   : > { %v1072_v28 = vpop.f32.mrf.mxu0 }
 0x4c3   : > { %v1074_v29 = vpop.f32.mrf.mxu0 }
 0x4ce   : > { %v1232_v30 = vpop.f32.mrf.mxu0 }
 0x4cf   : > { %1239 = vrot.lane.b32.xlu1 %v1232_v30, %s2591_s0 }
 0x4d1   : > { %v1152_v25 = vpop.f32.mrf.mxu2 }
 0x4d2   : > { %1159 = vrot.lane.b32.xlu2 %v1152_v25, %s2592_s1  ;;  %v2163_v25 = vld [vmem:[%s2798_s10 + $0x48] sm:$0xf0] }
 0x4d6   : > { %v1234_v32 = vpop.f32.mrf.mxu0 }
 0x4d9   : > { %v1154_v31 = vpop.f32.mrf.mxu2 }
 0x4da   : > { %1161 = vrot.lane.b32.xlu0 %v1154_v31, %s2592_s1  ;;  %1079 = vrot.lane.b32.xlu2 %v1072_v28, %s2593_s2  ;;  %v2302_v28 = vld [vmem:[%s2798_s10 + $0x44] sm:$0xf0] }
 0x4db   : > { %v2162_v30 = vor.u32 %v2302_v28, %v2161_v27 }
 0x4dd   : > { %1500 = vmatpush.bf16.msrb.mxu2 %v2162_v30 }
 0x4e2   : > { %1081 = vrot.lane.b32.xlu2 %v1074_v29, %s2593_s2  ;;  %v2301_v29 = vld [vmem:[%s2798_s10 + $0x44] sm:$0xf] }
 0x4e3   : > { %v2166_v31 = vor.u32 %v2301_v29, %v2163_v25 }
 0x4e5   : > { %1514 = vmatpush.bf16.msra.mxu3 %v2166_v31  ;;  %v2312_v31 = vld [vmem:[%s3135_s18 + $0x18] sm:$0xff] }
 0x4e9   : > { %1515 = vmatpush.bf16.msra.mxu3 %v2158_v37  ;;  %v2317_v37 = vld [vmem:[%s3135_s18 + $0x40] sm:$0xff] }
 0x4ea   : > { %1241 = vrot.lane.b32.xlu2 %v1234_v32, %s2591_s0  ;;  %v2153_v32 = vld [vmem:[%s2798_s10 + $0x30] sm:$0xf] }
 0x4eb   : > { %v2154_v35 = vor.u32 %v2300_v33, %v2153_v32  ;;  %v2320_v32 = vld [vmem:[%s3135_s18 + $0x58] sm:$0xff]  ;;  %v2319_v33 = vld [vmem:[%s3135_s18 + $0x50] sm:$0xff] }
 0x4ed   : > { %1501 = vmatpush.bf16.msrb.mxu2 %v2154_v35  ;;  %v2318_v35 = vld [vmem:[%s3135_s18 + $0x48] sm:$0xff] }
 0x52c   : > { %v1160_v38 = vpop.permute.xlu2 %1159 }
 0x534   : > { %v1080_v42 = vpop.permute.xlu2 %1079 }
 0x535   : > { %1086 = vst.msk [vmem:[#allocation3] sm:$0xff] %vm1085_vm2, %v1080_v42  ;;  %v2147_v42 = vld [vmem:[%s2798_s10 + $0x28] sm:$0xf0] }
 0x536   : > { %1166 = vst.msk [vmem:[#allocation3] sm:$0xff] %vm1165_vm3, %v1160_v38  ;;  %v2145_v38 = vld [vmem:[%s2798_s10 + $0x20] sm:$0xf] }
 0x537   : > { %v2146_v41 = vor.u32 %v2298_v39, %v2145_v38  ;;  %v1411_v38 = vld [vmem:[%s3137_s22] sm:$0x3] }
 0x539   : > { %1502 = vmatpush.bf16.msrb.mxu2 %v2146_v41  ;;  %v1413_v41 = vperm.slane %v1411_v38, 0 }
 0x53c   : > { %v1082_v43 = vpop.permute.xlu2 %1081 }
 0x53d   : > { %1087 = vst.msk [vmem:[#allocation3 + $0x8] sm:$0xff] %vm1085_vm2, %v1082_v43  ;;  %v2150_v43 = vor.u32 %v2297_v40, %v2147_v42  ;;  %v1414_v42 = vperm.slane %v1411_v38, 1 }
 0x53f   : > { %1516 = vmatpush.bf16.msra.mxu3 %v2150_v43 }
 0x541   : > { %v1240_v45 = vpop.permute.xlu1 %1239 }
 0x542   : > { %1246 = vst.msk [vmem:[#allocation3] sm:$0xff] %vm1245_vm4, %v1240_v45  ;;  %v2137_v45 = vld [vmem:[%s2798_s10 + $0x10] sm:$0xf] }
 0x544   : > { %v1242_v47 = vpop.permute.xlu2 %1241 }
 0x549   : > { %v1248_v48 = vld [vmem:[#allocation3] sm:$0xff] }
 0x54c   : > { %v1162_v46 = vpop.permute.xlu0 %1161 }
 0x54d   : > { %1167 = vst.msk [vmem:[#allocation3 + $0x8] sm:$0xff] %vm1165_vm3, %v1162_v46  ;;  %v2296_v46 = vld [vmem:[%s2798_s10 + $0x14] sm:$0xf0] }
 0x54e   : > { %1247 = vst.msk [vmem:[#allocation3 + $0x8] sm:$0xff] %vm1245_vm4, %v1242_v47  ;;  %v2295_v47 = vld [vmem:[%s2798_s10 + $0x14] sm:$0xf] }
 0x555   : > { %v1249_v49 = vld [vmem:[#allocation3 + $0x8] sm:$0xff] }
 0x556   : > { %v1250_v50 = vpack.c.bf16 %v1249_v49, %v1248_v48  ;;  %v2138_v48 = vor.u32 %v2296_v46, %v2137_v45  ;;  %v2139_v49 = vld [vmem:[%s2798_s10 + $0x18] sm:$0xf0] }
 0x558   : > { %1327 = vmatmul.bf16.vlgmr.msrb.gmra.mxu1 %v1250_v50  ;;  %v2129_v50 = vld [vmem:[%s2798_s10] sm:$0xf]  ;;  %1503 = vmatpush.bf16.msrb.mxu2 %v2138_v48 }
 0x5d5   : > { %v1328_v52 = vpop.f32.mrf.mxu1 }
 0x5d6   : > { %v1329_v53 = vadd.f32 %v2409_v51, %v1328_v52 }
 0x5d8   : > { %v1333_v54 = vadd.f32 %v1329_v53, %v2874_v62  ;;  %v2142_v53 = vor.u32 %v2295_v47, %v2139_v49 }
 0x5da   : > { %1337 = vadd.xlane.f32.xlu0 %v1333_v54  ;;  %1517 = vmatpush.bf16.msra.mxu3 %v2142_v53 }
 0x5dd   : > { %v1330_v55 = vpop.f32.mrf.mxu1 }
 0x5de   : > { %v1331_v56 = vadd.f32 %v2409_v51, %v1330_v55  ;;  %v2294_v51 = vld [vmem:[%s2798_s10 + $0x4] sm:$0xf0]  ;;  %v2131_v55 = vld [vmem:[%s2798_s10 + $0x8] sm:$0xf0] }
 0x5e0   : > { %v1334_v57 = vadd.f32 %v1331_v56, %v2876_v1 }
 0x5e2   : > { %1339 = vadd.xlane.f32.xlu1 %v1334_v57 }
 0x64d   : > { %v1338_v62 = vpop.xlane.xlu0 %1337 }
 0x64e   : > { %v1348_v3 = vmul.f32 %v2957_v2, %v1338_v62  ;;  %v2315_v62 = vld [vmem:[%s3135_s18 + $0x30] sm:$0xff] }
 0x64f   : > { %1664 = vmatpush.bf16.msrb.mxu0 %v2315_v62 }
 0x650   : > { %v2960_v4 = vsub.f32 %v1333_v54, %v1348_v3  ;;  %v2293_v54 = vld [vmem:[%s2798_s10 + $0x4] sm:$0xf]  ;;  %v2323_v3 = vld [vmem:[%s3135_s18 + $0x70] sm:$0xff] }
 0x651   : > { %v2134_v58 = vor.u32 %v2293_v54, %v2131_v55  ;;  %1678 = vmatpush.bf16.msra.mxu1 %v2323_v3 }
 0x652   : > { %v1352_v1 = vmul.f32 %v2960_v4, %v2960_v4 }
 0x653   : > { %1518 = vmatpush.bf16.msra.mxu3 %v2134_v58 }
 0x654   : > { %1354 = vadd.xlane.f32.xlu2 %v1352_v1 }
 0x655   : > { %v1340_v5 = vpop.xlane.xlu1 %1339  ;;  %1679 = vmatpush.bf16.msra.mxu1 %v2322_v9 }
 0x656   : > { %v1349_v6 = vmul.f32 %v2957_v2, %v1340_v5 }
 0x658   : > { %v2965_v7 = vsub.f32 %v1334_v57, %v1349_v6  ;;  %v2130_v57 = vor.u32 %v2294_v51, %v2129_v50 }
 0x659   : > { %1680 = vmatpush.bf16.msra.mxu1 %v2321_v13 }
 0x65a   : > { %v1353_v8 = vmul.f32 %v2965_v7, %v2965_v7  ;;  %1504 = vmatpush.bf16.msrb.mxu2 %v2130_v57 }
 0x65c   : > { %1356 = vadd.xlane.f32.xlu0 %v1353_v8  ;;  %v2314_v8 = vld [vmem:[%s3135_s18 + $0x28] sm:$0xff] }
 0x65d   : > { %1665 = vmatpush.bf16.msrb.mxu0 %v2314_v8  ;;  %1681 = vmatpush.bf16.msra.mxu1 %v2320_v32 }
 0x661   : > { %1666 = vmatpush.bf16.msrb.mxu0 %v2313_v12  ;;  %1682 = vmatpush.bf16.msra.mxu1 %v2319_v33 }
 0x665   : > { %1667 = vmatpush.bf16.msrb.mxu0 %v2312_v31  ;;  %1683 = vmatpush.bf16.msra.mxu1 %v2318_v35 }
 0x669   : > { %1684 = vmatpush.bf16.msra.mxu1 %v2317_v37 }
 0x6c7   : > { %v1355_v52 = vpop.xlane.xlu2 %1354 }
 0x6c8   : > { %v1358_v56 = vmul.f32 %v1355_v52, %v2957_v2 }
 0x6ca   : > { %v1360_v59 = vadd.f32 1e-05, %v1358_v56  ;;  %v2412_v56 = vld [vmem:[%s679_s25] ss:$0 sm:$0xff] }
 0x6cc   : > { %2449 = vrsqrt.f32 %v1360_v59  ;;  %vm1368_vm7 = vweird.f32 %v1360_v59 }
 0x6cf   : > { %v1357_v63 = vpop.xlane.xlu0 %1356 }
 0x6d0   : > { %v1359_v0 = vmul.f32 %v1357_v63, %v2957_v2 }
 0x6d2   : > { %v2450_v1 = vpop.eup %2449  ;;  %v1361_v5 = vadd.f32 1e-05, %v1359_v0 }
 0x6d3   : > { %v1363_v6 = vmul.f32 %v2450_v1, %v1360_v59  ;;  %vm1369_vm6 = vweird.f32 %v2450_v1 }
 0x6d4   : > { %2451 = vrsqrt.f32 %v1361_v5  ;;  %vm1370_vm8 = vmor %vm1368_vm7, %vm1369_vm6  ;;  %vm1378_vm10 = vweird.f32 %v1361_v5 }
 0x6d5   : > { %v1364_v10 = vmul.f32 %v2450_v1, %v1363_v6 }
 0x6d7   : > { %v1365_v11 = vmul.f32 0.5, %v1364_v10 }
 0x6d9   : > { %v1366_v14 = vsub.f32 1.5, %v1365_v11 }
 0x6da   : > { %v2452_v15 = vpop.eup %2451 }
 0x6db   : > { %v1367_v44 = vmul.f32 %v2450_v1, %v1366_v14  ;;  %v1373_v16 = vmul.f32 %v2452_v15, %v1361_v5  ;;  %vm1379_vm9 = vweird.f32 %v2452_v15 }
 0x6dc   : > { %vm1380_vm11 = vmor %vm1378_vm10, %vm1379_vm9 }
 0x6dd   : > { %v1374_v17 = vmul.f32 %v2452_v15, %v1373_v16  ;;  %v1371_v18 = vsel %vm1370_vm8, %v2450_v1, %v1367_v44 }
 0x6de   : > { %v1382_v21 = vmul.f32 %v1371_v18, %v2960_v4  ;;  %v2411_v4 = vld [vmem:[%s685_s30] ss:$0 sm:$0xff] }
 0x6df   : > { %v1375_v19 = vmul.f32 0.5, %v1374_v17 }
 0x6e0   : > { %v1387_v27 = vmul.f32 %v2410_v22, %v1382_v21 }
 0x6e1   : > { %v1376_v20 = vsub.f32 1.5, %v1375_v19 }
 0x6e2   : > { %v1392_v29 = vadd.f32 %v2411_v4, %v1387_v27 }
 0x6e3   : > { %v1377_v23 = vmul.f32 %v2452_v15, %v1376_v20 }
 0x6e5   : > { %v1381_v24 = vsel %vm1380_vm11, %v2452_v15, %v1377_v23 }
 0x6e6   : > { %v1383_v26 = vmul.f32 %v1381_v24, %v2965_v7  ;;  %v2311_v7 = vld [vmem:[%s3135_s18 + $0x10] sm:$0xff] }
 0x6e7   : > { %1668 = vmatpush.bf16.msrb.mxu0 %v2311_v7 }
 0x6e8   : > { %v1388_v28 = vmul.f32 %v2410_v22, %v1383_v26 }
 0x6ea   : > { %v1393_v30 = vadd.f32 %v2411_v4, %v1388_v28  ;;  %v2413_v4 = vld [vmem:[%s688_s26] ss:$0 sm:$0xff] }
 0x6eb   : > { %1669 = vmatpush.bf16.msrb.mxu0 %v2310_v34 }
 0x6ec   : > { %v1394_v25 = vpack.c.bf16 %v1393_v30, %v1392_v29 }
 0x6ee   : > { %1505 = vmatmul.bf16.vlgmr.msrb.gmra.mxu2 %v1394_v25  ;;  %1519 = vmatmul.bf16.vlgmr.msra.gmra.mxu3 %v1394_v25 }
 0x6ef   : > { %1670 = vmatpush.bf16.msrb.mxu0 %v2309_v36 }
 0x771   : > { %v1506_v39 = vpop.f32.mrf.mxu2  ;;  %v1520_v40 = vpop.f32.mrf.mxu3 }
 0x772   : > { %v1507_v43 = vadd.f32 %v1506_v39, %v1413_v41  ;;  %v1521_v45 = vadd.f32 %v1520_v40, %v1414_v42 }
 0x774   : > { %v1525_v50 = vmax.f32 %v1507_v43, 0.0  ;;  %v1526_v51 = vmax.f32 %v1521_v45, 0.0 }
 0x779   : > { %v1508_v46 = vpop.f32.mrf.mxu2  ;;  %v1522_v47 = vpop.f32.mrf.mxu3 }
 0x77a   : > { %v1509_v48 = vadd.f32 %v1508_v46, %v1413_v41  ;;  %v1523_v49 = vadd.f32 %v1522_v47, %v1414_v42 }
 0x77c   : > { %v1527_v52 = vmax.f32 %v1509_v48, 0.0  ;;  %v1528_v53 = vmax.f32 %v1523_v49, 0.0 }
 0x77e   : > { %v1529_v54 = vpack.c.bf16 %v1527_v52, %v1525_v50  ;;  %v1530_v55 = vpack.c.bf16 %v1528_v53, %v1526_v51 }
 0x780   : > { %1671 = vmatmul.bf16.vlgmr.msrb.gmra.mxu0 %v1529_v54  ;;  %1685 = vmatmul.bf16.vlgmr.msra.gmra.mxu1 %v1530_v55 }
 0x7fd   : > { %v1672_v57 = vpop.f32.mrf.mxu0  ;;  %v1686_v58 = vpop.f32.mrf.mxu1 }
 0x7fe   : > { %v1673_v59 = vadd.f32 %v2412_v56, %v1672_v57 }
 0x800   : > { %v1687_v60 = vadd.f32 %v1686_v58, %v1673_v59 }
 0x802   : > { %v1691_v61 = vadd.f32 %v1687_v60, %v1392_v29  ;;  %v2414_v29 = vld [vmem:[%s691_s14] ss:$0 sm:$0xff] }
 0x804   : > { %1695 = vadd.xlane.f32.xlu1 %v1691_v61 }
 0x805   : > { %v1674_v63 = vpop.f32.mrf.mxu0  ;;  %v1688_v62 = vpop.f32.mrf.mxu1 }
 0x806   : > { %v1675_v0 = vadd.f32 %v2412_v56, %v1674_v63 }
 0x808   : > { %v1689_v3 = vadd.f32 %v1688_v62, %v1675_v0 }
 0x80a   : > { %v1692_v1 = vadd.f32 %v1689_v3, %v1393_v30 }
 0x80c   : > { %1697 = vadd.xlane.f32.xlu2 %v1692_v1 }
 0x877   : > { %v1696_v5 = vpop.xlane.xlu1 %1695 }
 0x878   : > { %v1699_v6 = vmul.f32 %v1696_v5, %v2957_v2 }
 0x87a   : > { %v1701_v8 = vsub.f32 %v1691_v61, %v1699_v6 }
 0x87c   : > { %v1703_v9 = vmul.f32 %v1701_v8, %v1701_v8 }
 0x87e   : > { %1705 = vadd.xlane.f32.xlu0 %v1703_v9 }
 0x87f   : > { %v1698_v10 = vpop.xlane.xlu2 %1697 }
 0x880   : > { %v1700_v11 = vmul.f32 %v1698_v10, %v2957_v2 }
 0x882   : > { %v1702_v12 = vsub.f32 %v1692_v1, %v1700_v11 }
 0x884   : > { %v1704_v13 = vmul.f32 %v1702_v12, %v1702_v12 }
 0x886   : > { %1707 = vadd.xlane.f32.xlu1 %v1704_v13 }
 0x8f1   : > { %v1706_v14 = vpop.xlane.xlu0 %1705 }
 0x8f2   : > { %v1709_v15 = vmul.f32 %v1706_v14, %v2957_v2 }
 0x8f4   : > { %v1711_v44 = vadd.f32 1e-05, %v1709_v15 }
 0x8f6   : > { %2453 = vrsqrt.f32 %v1711_v44  ;;  %vm1719_vm13 = vweird.f32 %v1711_v44 }
 0x8f9   : > { %v1708_v16 = vpop.xlane.xlu1 %1707 }
 0x8fa   : > { %v1710_v17 = vmul.f32 %v1708_v16, %v2957_v2 }
 0x8fc   : > { %v2454_v18 = vpop.eup %2453  ;;  %v1712_v19 = vadd.f32 1e-05, %v1710_v17 }
 0x8fd   : > { %v1714_v20 = vmul.f32 %v2454_v18, %v1711_v44  ;;  %vm1720_vm12 = vweird.f32 %v2454_v18 }
 0x8fe   : > { %2455 = vrsqrt.f32 %v1712_v19  ;;  %vm1721_vm14 = vmor %vm1719_vm13, %vm1720_vm12  ;;  %vm1729_vm0 = vweird.f32 %v1712_v19 }
 0x8ff   : > { %v1715_v21 = vmul.f32 %v2454_v18, %v1714_v20 }
 0x901   : > { %v1716_v22 = vmul.f32 0.5, %v1715_v21 }
 0x903   : > { %v1717_v23 = vsub.f32 1.5, %v1716_v22 }
 0x904   : > { %v2456_v24 = vpop.eup %2455 }
 0x905   : > { %v1718_v26 = vmul.f32 %v2454_v18, %v1717_v23  ;;  %v1724_v27 = vmul.f32 %v2456_v24, %v1712_v19  ;;  %vm1730_vm15 = vweird.f32 %v2456_v24 }
 0x906   : > { %vm1731_vm1 = vmor %vm1729_vm0, %vm1730_vm15 }
 0x907   : > { %v1722_v2 = vsel %vm1721_vm14, %v2454_v18, %v1718_v26  ;;  %v1725_v28 = vmul.f32 %v2456_v24, %v1724_v27 }
 0x908   : > { %v1733_v30 = vmul.f32 %v1722_v2, %v1701_v8 }
 0x909   : > { %v1726_v25 = vmul.f32 0.5, %v1725_v28 }
 0x90a   : > { %v1738_v31 = vmul.f32 %v2413_v4, %v1733_v30 }
 0x90b   : > { %v1727_v32 = vsub.f32 1.5, %v1726_v25 }
 0x90c   : > { %v1743_v7 = vadd.f32 %v2414_v29, %v1738_v31 }
 0x90d   : > { %v1728_v33 = vmul.f32 %v2456_v24, %v1727_v32 }
 0x90e   : > { %1745 = vst [vmem:[#allocation2] sm:$0xff] %v1743_v7 }
 0x90f   : > { %v1732_v34 = vsel %vm1731_vm1, %v2456_v24, %v1728_v33 }
 0x910   : > { %v1734_v35 = vmul.f32 %v1732_v34, %v1702_v12 }
 0x912   : > { %v1739_v36 = vmul.f32 %v2413_v4, %v1734_v35  ;;  %1750 = sbr.rel (%p2255_p3) target bundleno = 2329 (0x919), region = 88 }
 0x914   : > { %v1744_v37 = vadd.f32 %v2414_v29, %v1739_v36 }
 0x916   : > { %1746 = vst [vmem:[#allocation2 + $0x8] sm:$0xff] %v1744_v37 }
 0x917   : > { %1751 = vst [vmem:[%s2829_s12] sm:$0xff] %v1743_v7 }
 0x918   : > { %1752 = vst [vmem:[%s2829_s12 + $0x8] sm:$0xff] %v1744_v37 }
 0x919 PF: > { %s3140_s26 = sld [smem:[#allocation14_spill]] }
 0x91a   : > { %s3141_s25 = sld [smem:[#allocation10_spill]] }
 0x91b   : > { %s3143_s27 = sld [smem:[#allocation17_spill]] }
 0x91c   : > { %s3144_s28 = sld [smem:[#allocation12_spill]] }
 0x91d   : > { %s3145_s29 = sld [smem:[#allocation13_spill]] }
 0x91e   : > { %s3146_s30 = sld [smem:[#allocation15_spill]] }
 0x91f   : > { %s29_s15 = sadd.s32 1, %s3140_s26   ;;  %s3142_s26 = sld [smem:[#allocation11_spill]] }
 0x920   : > { %p26_p4 = scmp.ge.s32.totalorder %s29_s15, 10   ;;  %s3147_s14 = sld [smem:[#allocation16_spill]] }
 0x922   :  { %28 = sbr.rel (!%p26_p4) target bundleno = 19 (0x13), region = 166 }
 0x927   :  { %1775 = vsyncpa [#allocation5], 1 }
 0x928   :  { %1777 = vsyncpa [#allocation5 + $0x1], 1 }
 0x929   :  { %1778 = vsyncpa [#allocation7], 1 }
 0x92a   :  { %1780 = vsyncpa [#allocation7 + $0x1], 1 }

// kernel: basic_model_forward.5
= control target key start
LH: loop header
LB: loop body
LE: loop exit
PB: predicated region body
PF: predicated region fallthrough
CT: control target
= control target key end

     0   :  { %s5276_s0 = inlined_call_operand.vmem [shape: f32[64,128], index: 0, kind: input, shape index: {}]   ;;  %s5277_s1 = inlined_call_operand.vmem [shape: f32[64,128], index: 1, kind: input, shape index: {}]   ;;  %s5278_s2 = inlined_call_operand.vmem [shape: bf16[2,128,384], index: 2, kind: input, shape index: {}]   ;;  %s5279_s3 = inlined_call_operand.vmem [shape: f32[2,1,384], index: 3, kind: input, shape index: {}]   ;;  %s5280_s4 = inlined_call_operand.hbm [shape: bf16[2,128,128], index: 4, kind: input, shape index: {}]   ;;  %s5281_s5 = inlined_call_operand.vmem [shape: f32[2,1,128], index: 5, kind: input, shape index: {}]   ;;  %s5282_s6 = inlined_call_operand.hbm [shape: bf16[2,128,128], index: 6, kind: input, shape index: {}]   ;;  %s5283_s7 = inlined_call_operand.vmem [shape: f32[2,1,128], index: 7, kind: input, shape index: {}]   ;;  %s5284_s8 = inlined_call_operand.vmem [shape: bf16[2,128,256], index: 8, kind: input, shape index: {}]   ;;  %s5285_s9 = inlined_call_operand.vmem [shape: f32[2,1,256], index: 9, kind: input, shape index: {}]   ;;  %s5286_s10 = inlined_call_operand.hbm [shape: bf16[2,128,128], index: 10, kind: input, shape index: {}]   ;;  %s5287_s11 = inlined_call_operand.vmem [shape: f32[2,1,128], index: 11, kind: input, shape index: {}]   ;;  %s5288_s12 = inlined_call_operand.vmem [shape: bf16[2,128,256], index: 12, kind: input, shape index: {}]   ;;  %s5289_s13 = inlined_call_operand.vmem [shape: f32[2,1,256], index: 13, kind: input, shape index: {}]   ;;  %s5290_s14 = inlined_call_operand.hbm [shape: bf16[2,256,128], index: 14, kind: input, shape index: {}]   ;;  %s5291_s15 = inlined_call_operand.vmem [shape: f32[2,1,128], index: 15, kind: input, shape index: {}]   ;;  %s5292_s16 = inlined_call_operand.vmem [shape: f32[2,1,128], index: 16, kind: input, shape index: {}]   ;;  %s5293_s17 = inlined_call_operand.vmem [shape: f32[2,1,128], index: 17, kind: input, shape index: {}]   ;;  %s5294_s18 = inlined_call_operand.vmem [shape: f32[2,1,128], index: 18, kind: input, shape index: {}]   ;;  %s5295_s19 = inlined_call_operand.vmem [shape: f32[2,1,128], index: 19, kind: input, shape index: {}]   ;;  %s5296_s20 = inlined_call_operand.vmem [shape: f32[2,1,128], index: 20, kind: input, shape index: {}]   ;;  %s5297_s21 = inlined_call_operand.vmem [shape: f32[2,1,128], index: 21, kind: input, shape index: {}]   ;;  %s5298_s22 = inlined_call_operand.hbm [shape: bf16[128,256], index: 22, kind: input, shape index: {}]   ;;  %s5299_s23 = inlined_call_operand.vmem [shape: f32[1,256], index: 23, kind: input, shape index: {}]   ;;  %s5300_s24 = inlined_call_operand.vmem [shape: f32[64,256], index: 24, kind: output, shape index: {}]  }
   0x1   :  { %5313 = sst [smem:[#allocation30_spill]] %s5276_s0 }
   0x2   :  { %5314 = sst [smem:[#allocation31_spill]] %s5277_s1 }
   0x3   :  { %5315 = sst [smem:[#allocation32_spill]] %s5278_s2 }
   0x4   :  { %5316 = sst [smem:[#allocation33_spill]] %s5279_s3 }
   0x5   :  { %5317 = sst [smem:[#allocation34_spill]] %s5280_s4 }
   0x6   :  { %5318 = sst [smem:[#allocation35_spill]] %s5281_s5 }
   0x7   :  { %5319 = sst [smem:[#allocation36_spill]] %s5282_s6 }
   0x8   :  { %5320 = sst [smem:[#allocation37_spill]] %s5283_s7 }
   0x9   :  { %5321 = sst [smem:[#allocation38_spill]] %s5284_s8 }
   0xa   :  { %5322 = sst [smem:[#allocation39_spill]] %s5285_s9 }
   0xb   :  { %5323 = sst [smem:[#allocation40_spill]] %s5286_s10 }
   0xc   :  { %5324 = sst [smem:[#allocation41_spill]] %s5287_s11 }
   0xd   :  { %5325 = sst [smem:[#allocation42_spill]] %s5288_s12 }
   0xe   :  { %5326 = sst [smem:[#allocation43_spill]] %s5289_s13 }
   0xf   :  { %5327 = sst [smem:[#allocation44_spill]] %s5290_s14 }
  0x10   :  { %5328 = sst [smem:[#allocation45_spill]] %s5291_s15 }
  0x11   :  { %5329 = sst [smem:[#allocation46_spill]] %s5292_s16 }
  0x12   :  { %5330 = sst [smem:[#allocation47_spill]] %s5293_s17 }
  0x13   :  { %5331 = sst [smem:[#allocation48_spill]] %s5294_s18 }
  0x14   :  { %5332 = sst [smem:[#allocation49_spill]] %s5295_s19 }
  0x15   :  { %5333 = sst [smem:[#allocation50_spill]] %s5296_s20 }
  0x16   :  { %5334 = sst [smem:[#allocation51_spill]] %s5297_s21 }
  0x17   :  { %5335 = sst [smem:[#allocation52_spill]] %s5298_s22 }
  0x18   :  { %5336 = sst [smem:[#allocation53_spill]] %s5299_s23 }
  0x19   :  { %5337 = sst [smem:[#allocation54_spill]] %s5300_s24 }
  0x1a   :  { %29 = vsyncpa [#allocation5], 0 }
  0x1b   :  { %31 = vsyncpa [#allocation5 + $0x1], 0 }
  0x1c   :  { %32 = vsyncpa [#allocation7], 0 }
  0x1d   :  { %34 = vsyncpa [#allocation7 + $0x1], 0 }
  0x1e   :  { %35 = vsyncpa [#allocation10], 0 }
  0x1f   :  { %37 = vsyncpa [#allocation10 + $0x1], 0  ;;  %s4600_s5 = smov 0   ;;  %s4602_s26 = smov 0  }
  0x20   :  { %s4604_s27 = smov 0   ;;  %s4606_s28 = smov 0  }
  0x21   :  { %s4608_s6 = smov 0   ;;  %s4610_s2 = smov 0  }
  0x22   :  { %s4612_s29 = smov 0   ;;  %s4614_s0 = smov 0  }
  0x23 LB: > { %5338 = sst [smem:[#allocation16_spill]] %s4440_s26  ;;  %s5301_s7 = sadd.s32 4294967295, %s4464_s0   ;;  %s4464_s0 = sphi %s4614_s0, %s43_s0   ;;  %s4460_s29 = sphi %s4612_s29, %s5411_s29   ;;  %s4456_s2 = sphi %s4610_s2, %s5410_s2   ;;  %s4452_s6 = sphi %s4608_s6, %s5409_s6   ;;  %s4448_s28 = sphi %s4606_s28, %s5408_s28   ;;  %s4444_s27 = sphi %s4604_s27, %s5407_s27   ;;  %s4440_s26 = sphi %s4602_s26, %s5406_s26   ;;  %s4436_s5 = sphi %s4600_s5, %s5405_s5  }
  0x24   : > { %5339 = sst [smem:[#allocation17_spill]] %s4444_s27  ;;  %p179_p0 = scmp.ne.s32.totalorder %s4440_s26, %s4436_s5 }
  0x25   : > { %5340 = sst [smem:[#allocation18_spill]] %s4456_s2  ;;  %p4642_p1 = scmp.eq.s32.totalorder %s5301_s7, 0 }
  0x26   : > { %5341 = sst [smem:[#allocation19_spill]] %s4460_s29  ;;  %p3419_p2 = scmp.ge.s32.totalorder %s4464_s0, 1 }
  0x27   : > { %5342 = sst [smem:[#allocation20_spill]] %s4464_s0  ;;  %p700_p3 = scmp.lt.s32.totalorder %s4464_s0, 9 }
  0x28   : > { %p4650_p4 = por %p4642_p1, %p179_p0  ;;  %s5345_s22 = sld [smem:[#allocation52_spill]] }
  0x29   : > { %p4657_p5 = pnand %p3419_p2, %p700_p3  ;;  %s4466_s5 = smov [#allocation11]  }
  0x2a   : > { %s713_s7 = sshll.u32 %s4466_s5, 4  ;;  %s4467_s25 = smov 128   ;;  %s714_s7 = int_to_ptr.vmem [resolvable:$true] %s713_s7 }
  0x2b   : > { %p4055_p6 = pneg %p4657_p5  ;;  %s4468_s8 = smov 8  }
  0x2c   : > { %s55_s23 = sadd.s32 1, %s4460_s29  ;;  %s166_s24 = sadd.s32 1, %s4444_s27 }
  0x2d   : > { %p4056_p7 = pnand %p4055_p6, %p4642_p1  ;;  %p173_p9 = scmp.ne.s32.totalorder %s4444_s27, %s4440_s26 }
  0x2e   : > { %s711_s4 = sshll.u32 %s5345_s22, 4  ;;  %s52_s22 = sadd.s32 1, %s4456_s2  ;;  %s712_s4 = int_to_ptr.hbm [resolvable:$true] %s711_s4 }
  0x2f   : > { %4058 = dma.hbm_to_vmem [thread:$0]  (!%p4056_p7), %s712_s4, 2048, %s714_s7, [#allocation10], %s4467_s25, %s4467_s25, %s4468_s8  }
  0x30   : > { %p53_p8 = scmp.ge.s32.totalorder %s52_s22, 2  ;;  %p174_p10 = scmp.eq.s32.totalorder %s4464_s0, 0 }
  0x31   : > { %p4073_p0 = scmp.lt.s32.totalorder %s4464_s0, 8  ;;  %s4683_s4 = sand.u32 1, %s4444_s27  }
  0x32   : > { %s5413_s22 = smov (%p53_p8, %s52_s22), 0  ;;  %s5415_s23 = smov (!%p53_p8, %s55_s23), %s4460_s29 }
  0x33   : > { %5347 = sst [smem:[#allocation21_spill]] %s5413_s22  ;;  %s163_s5 = ssub.s32 %s4456_s2, %s5413_s22 }
  0x34   : > { %p57_p11 = scmp.ge.s32.totalorder %s5415_s23, 4  ;;  %p164_p12 = scmp.eq.s32.totalorder %s163_s5, 0 }
  0x35   : > { %p175_p13 = por %p174_p10, %p173_p9  ;;  %s3922_s25 = sshll.u32 %s4456_s2, 6 }
  0x36   : > { %s5417_s23 = smov (%p57_p11, %s5415_s23), 0  ;;  %s3422_s8 = sshll.u32 %s4683_s4, 6 }
  0x37   : > { %5348 = sst [smem:[#allocation22_spill]] %s5417_s23  ;;  %p4687_p2 = pnand %p4073_p0, %p175_p13 }
  0x38   : > { %s4680_s7 = scalar_select %p164_p12, %s4444_s27, %s166_s24  }
  0x39   : > { %s5305_s22 = sand.u32 1, %s4464_s0   ;;  %s5351_s20 = sld [smem:[#allocation36_spill]] }
  0x3a   : > { %5349 = sst [smem:[#allocation23_spill]] %s4680_s7  ;;  %s795_s18 = scalar_lea.vmem [#allocation6], %s3422_s8 }
  0x3b   : > { %s803_s24 = sshll.u32 %s795_s18, 4  ;;  %s792_s7 = scalar_lea.sflag [#allocation7], %s5305_s22  ;;  %s804_s24 = int_to_ptr.vmem [resolvable:$true] %s803_s24 }
  0x3c   : > { %s4469_s27 = smov 64   ;;  %s4470_s17 = smov 4  }
  0x3d   : > { %s767_s18 = scalar_lea.vmem [#allocation4], %s3422_s8  ;;  %s764_s22 = scalar_lea.sflag [#allocation5], %s4683_s4 }
  0x3e   : > { %s5353_s10 = sld [smem:[#allocation40_spill]]  ;;  %s838_s16 = scalar_lea.vmem [#allocation8], %s3422_s8 }
  0x3f   : > { %s800_s19 = scalar_lea.hbm %s5351_s20, %s3922_s25  ;;  %s5352_s20 = sld [smem:[#allocation34_spill]] }
  0x40   : > { %s801_s23 = sshll.u32 %s800_s19, 4  ;;  %s775_s19 = sshll.u32 %s767_s18, 4  ;;  %s802_s23 = int_to_ptr.hbm [resolvable:$true] %s801_s23  ;;  %s776_s19 = int_to_ptr.vmem [resolvable:$true] %s775_s19 }
  0x41   : > { %4065 = dma.hbm_to_vmem [thread:$0]  (!%p4687_p2), %s802_s23, 1024, %s804_s24, %s792_s7, %s4469_s27, %s4469_s27, %s4470_s17  }
  0x42   : > { %s846_s24 = sshll.u32 %s838_s16, 4  ;;  %s5354_s14 = sld [smem:[#allocation44_spill]]  ;;  %s847_s24 = int_to_ptr.vmem [resolvable:$true] %s846_s24 }
  0x43   : > { %s5355_s8 = sand.u32 1, %s4464_s0  }
  0x44   : > { %s843_s23 = scalar_lea.hbm %s5353_s10, %s3922_s25 }
  0x45   : > { %s772_s5 = scalar_lea.hbm %s5352_s20, %s3922_s25  ;;  %s844_s29 = sshll.u32 %s843_s23, 4  ;;  %s845_s29 = int_to_ptr.hbm [resolvable:$true] %s844_s29 }
  0x46   : > { %s773_s15 = sshll.u32 %s772_s5, 4  ;;  %s3431_s20 = sshll.u32 %s4683_s4, 7  ;;  %s774_s15 = int_to_ptr.hbm [resolvable:$true] %s773_s15 }
  0x47   : > { %4062 = dma.hbm_to_vmem [thread:$0]  (!%p4687_p2), %s774_s15, 1024, %s776_s19, %s764_s22, %s4469_s27, %s4469_s27, %s4470_s17  }
  0x48   : > { %4068 = dma.hbm_to_vmem [thread:$0]  (!%p4687_p2), %s845_s29, 1024, %s847_s24, %s792_s7, %s4469_s27, %s4469_s27, %s4470_s17  }
  0x49   : > { %s3925_s5 = sshll.u32 %s4456_s2, 7  ;;  %s881_s12 = scalar_lea.vmem [#allocation9], %s3431_s20 }
  0x4a   : > { %s886_s22 = scalar_lea.hbm %s5354_s14, %s3925_s5  ;;  %s889_s13 = sshll.u32 %s881_s12, 4  ;;  %s890_s13 = int_to_ptr.vmem [resolvable:$true] %s889_s13 }
  0x4b   : > { %s887_s25 = sshll.u32 %s886_s22, 4  ;;  %s878_s19 = scalar_lea.sflag [#allocation10], %s5355_s8  ;;  %s888_s25 = int_to_ptr.hbm [resolvable:$true] %s887_s25 }
  0x4c   : > { %4071 = dma.hbm_to_vmem [thread:$0]  (!%p4687_p2), %s888_s25, 2048, %s890_s13, %s878_s19, %s4469_s27, %s4469_s27, %s4470_s17  }
  0x4d   : > { %943 = sbr.rel (%p4657_p5) target bundleno = 3891 (0xf33), region = 116 }
  0x52   : > { %s945_s7 = sand.u32 1, %s4440_s26  }
  0x53   : > { %s3435_s4 = sshll.u32 %s945_s7, 6  ;;  %s946_s23 = scalar_lea.sflag [#allocation5], %s945_s7 }
  0x54   : > { %s4734_s16 = scalar_lea.vmem [#allocation4], %s3435_s4 }
  0x55   : > { %4419 = dma.done.wait (%p4650_p4), %s946_s23, 1024  }
  0x56   : > { %4421 = vsyncadd (%p4650_p4), %s946_s23, 4294966272  ;;  %s5356_s21 = sadd.s32 4294967295, %s4464_s0   ;;  %s4742_s27 = scalar_lea.vmem [#allocation6], %s3435_s4 }
  0x57   : > { %s955_s24 = sand.u32 1, %s5356_s21   ;;  %5357 = sst [smem:[#allocation24_spill]] %s4742_s27 }
  0x58   : > { %s956_s17 = scalar_lea.sflag [#allocation7], %s955_s24 }
  0x59   : > { %4423 = dma.done.wait (%p4650_p4), %s956_s17, 2048  }
  0x5a   : > { %4425 = vsyncadd (%p4650_p4), %s956_s17, 4294965248  ;;  %s3438_s1 = sshll.u32 %s945_s7, 7  ;;  %s4748_s29 = scalar_lea.vmem [#allocation8], %s3435_s4 }
  0x5b   : > { %5358 = sst [smem:[#allocation25_spill]] %s4748_s29  ;;  %s976_s20 = scalar_lea.sflag [#allocation10], %s955_s24 }
  0x5c   : > { %s4750_s5 = scalar_lea.vmem [#allocation9], %s3438_s1 }
  0x5d   : > { %5359 = sst [smem:[#allocation26_spill]] %s4750_s5 }
  0x5e   : > { %4427 = dma.done.wait (%p4650_p4), %s976_s20, 2048  }
  0x5f   : > { %4429 = vsyncadd (%p4650_p4), %s976_s20, 4294965248 }
  0x60   : > { %4431 = dma.done.wait (%p4642_p1), [#allocation10], 2048  }
  0x61   : > { %4433 = vsyncadd (%p4642_p1), [#allocation10], 4294965248  ;;  %s3440_s18 = sshll.u32 %s4452_s6, 1  ;;  %p1145_p3 = scmp.lt.s32.totalorder %s4448_s28, 1 }
  0x62   : > { %p1134_p5 = scmp.lt.s32.totalorder %s3440_s18, 7  ;;  %s5361_s7 = sld [smem:[#allocation30_spill]] }
  0x63   : > { %s4763_s15 = scalar_select %p1145_p3, %s4448_s28, 1 }
  0x64   : > { %s5419_s18 = smov (!%p1134_p5, %s3440_s18), 7  ;;  %s5362_s24 = sld [smem:[#allocation31_spill]] }
  0x65   : > { %s4041_s3 = smul.u32 192, %s4763_s15  ;;  %s3441_s6 = sshll.u32 %s5419_s18, 3 }
  0x66   : > { %s4042_s25 = smul.u32 3, %s4763_s15  ;;  %s5363_s22 = sld [smem:[#allocation32_spill]] }
  0x67   : > { %s5364_s10 = sld [smem:[#allocation33_spill]]  ;;  %s3926_s23 = sshll.u32 %s4763_s15, 7 }
  0x68   : > { %s1137_s4 = scalar_lea.vmem %s5361_s7, %s3441_s6  ;;  %s3447_s1 = sshll.u32 %s4763_s15, 1 }
  0x69   : > { %s5367_s9 = sld [smem:[#allocation39_spill]]  ;;  %p3454_p1 = scmp.ne.s32.totalorder %s4448_s28, 0 }
  0x6a   : > { %s4777_s17 = scalar_lea.vmem %s5362_s24, %s3441_s6  ;;  %s5366_s24 = sld [smem:[#allocation38_spill]] }
  0x6b   : > { %s5370_s8 = sld [smem:[#allocation42_spill]] }
  0x6c   : > { %s4782_s30 = scalar_lea.vmem %s5363_s22, %s4041_s3  ;;  %s5372_s21 = sld [smem:[#allocation43_spill]] }
  0x6d   : > { %s4787_s14 = scalar_lea.vmem %s5364_s10, %s4042_s25  ;;  %s5376_s10 = sld [smem:[#allocation47_spill]] }
  0x6e   : > { %s5377_s25 = sld [smem:[#allocation48_spill]]  ;;  %s3928_s3 = sshll.u32 %s5419_s18, 4 }
  0x6f   : > { %s4803_s22 = scalar_lea.vmem %s5367_s9, %s3447_s1  ;;  %s5379_s5 = sld [smem:[#allocation50_spill]] }
  0x70   : > { %s4797_s26 = scalar_lea.vmem %s5366_s24, %s3926_s23  ;;  %5368 = sst [smem:[#allocation27_spill]] %s4803_s22 }
  0x71   : > { %s4812_s19 = scalar_lea.vmem %s5370_s8, %s3926_s23  ;;  %s5380_s9 = sld [smem:[#allocation51_spill]] }
  0x72   : > { %5371 = sst [smem:[#allocation28_spill]] %s4812_s19  ;;  %s4817_s6 = scalar_lea.vmem %s5372_s21, %s3447_s1 }
  0x73   : > { %5373 = sst [smem:[#allocation29_spill]] %s4817_s6  ;;  %s1189_s11 = scalar_lea.vmem %s5376_s10, %s4763_s15 }
  0x74   : > { %s1192_s8 = scalar_lea.vmem %s5377_s25, %s4763_s15  ;;  %s5378_s1 = sld [smem:[#allocation49_spill]] }
  0x75   : > { %s1198_s29 = scalar_lea.vmem %s5379_s5, %s4763_s15  ;;  %s5381_s10 = sld [smem:[#allocation54_spill]] }
  0x77   : > { %s1201_s22 = scalar_lea.vmem %s5380_s9, %s4763_s15  ;;  %1213 = sbr.rel (%p3454_p1) target bundleno = 127 (0x7f), region = 140 }
  0x7a   : > { %s1195_s7 = scalar_lea.vmem %s5378_s1, %s4763_s15 }
  0x7b   : > { %s4850_s12 = scalar_lea.vmem %s5381_s10, %s3928_s3 }
  0x7c   : > { %v1214_v0 = vld [vmem:[%s1137_s4] sm:$0xff]  ;;  %v1215_v1 = vld [vmem:[%s1137_s4 + $0x8] sm:$0xff] }
  0x7d   : > { %1216 = vst [vmem:[#allocation2] sm:$0xff] %v1214_v0 }
  0x7e   : > { %1217 = vst [vmem:[#allocation2 + $0x8] sm:$0xff] %v1215_v1 }
  0x7f PF: > { %v3541_v2 = vld [vmem:[%s4782_s30 + $0xa8] sm:$0xf]  ;;  %v3951_v3 = vld [vmem:[%s4782_s30 + $0xb0] sm:$0xf0]  ;;  %v3950_v4 = vld [vmem:[%s4782_s30 + $0xac] sm:$0xf] }
  0x80   : > { %v3542_v5 = vor.u32 %v3951_v3, %v3541_v2  ;;  %v3543_v6 = vld [vmem:[%s4782_s30 + $0xb4] sm:$0xf0]  ;;  %v3529_v7 = vld [vmem:[%s4782_s30 + $0x90] sm:$0xf]  ;;  %v3948_v8 = vld [vmem:[%s4782_s30 + $0x98] sm:$0xf0] }
  0x81   : > { %v3546_v9 = vor.u32 %v3950_v4, %v3543_v6  ;;  %v3947_v10 = vld [vmem:[%s4782_s30 + $0x94] sm:$0xf]  ;;  %v3531_v11 = vld [vmem:[%s4782_s30 + $0x9c] sm:$0xf0]  ;;  %v3530_v12 = vor.u32 %v3948_v8, %v3529_v7  ;;  %v3517_v14 = vld [vmem:[%s4782_s30 + $0x78] sm:$0xf] }
  0x82   : > { %1392 = vmatpush.bf16.msra.mxu0 %v3542_v5  ;;  %v3534_v13 = vor.u32 %v3947_v10, %v3531_v11  ;;  %v3945_v15 = vld [vmem:[%s4782_s30 + $0x80] sm:$0xf0]  ;;  %v3944_v16 = vld [vmem:[%s4782_s30 + $0x7c] sm:$0xf]  ;;  %v3519_v17 = vld [vmem:[%s4782_s30 + $0x84] sm:$0xf0] }
  0x83   : > { %1406 = vmatpush.bf16.msra.mxu1 %v3546_v9  ;;  %v3518_v18 = vor.u32 %v3945_v15, %v3517_v14  ;;  %v3522_v19 = vor.u32 %v3944_v16, %v3519_v17  ;;  %v3505_v20 = vld [vmem:[%s4782_s30 + $0x60] sm:$0xf]  ;;  %v3942_v21 = vld [vmem:[%s4782_s30 + $0x68] sm:$0xf0]  ;;  %v3941_v22 = vld [vmem:[%s4782_s30 + $0x64] sm:$0xf] }
  0x84   : > { %v3507_v23 = vld [vmem:[%s4782_s30 + $0x6c] sm:$0xf0]  ;;  %v3506_v24 = vor.u32 %v3942_v21, %v3505_v20  ;;  %v3493_v25 = vld [vmem:[%s4782_s30 + $0x48] sm:$0xf]  ;;  %v3952_v27 = vld [vmem:[%s4782_s30 + $0xb8] sm:$0xf0] }
  0x85   : > { %v3549_v26 = vld [vmem:[%s4782_s30 + $0xb0] sm:$0xf]  ;;  %v3510_v28 = vor.u32 %v3941_v22, %v3507_v23  ;;  %v3939_v29 = vld [vmem:[%s4782_s30 + $0x50] sm:$0xf0]  ;;  %v3537_v31 = vld [vmem:[%s4782_s30 + $0x98] sm:$0xf] }
  0x86   : > { %1393 = vmatpush.bf16.msra.mxu0 %v3530_v12  ;;  %v3550_v30 = vor.u32 %v3952_v27, %v3549_v26  ;;  %v3949_v32 = vld [vmem:[%s4782_s30 + $0xa0] sm:$0xf0]  ;;  %v3938_v33 = vld [vmem:[%s4782_s30 + $0x4c] sm:$0xf]  ;;  %v3495_v34 = vld [vmem:[%s4782_s30 + $0x54] sm:$0xf0]  ;;  %v3494_v36 = vor.u32 %v3939_v29, %v3493_v25 }
  0x87   : > { %1407 = vmatpush.bf16.msra.mxu1 %v3534_v13  ;;  %v3538_v35 = vor.u32 %v3949_v32, %v3537_v31  ;;  %v3481_v37 = vld [vmem:[%s4782_s30 + $0x30] sm:$0xf]  ;;  %v3525_v38 = vld [vmem:[%s4782_s30 + $0x80] sm:$0xf]  ;;  %v3946_v39 = vld [vmem:[%s4782_s30 + $0x88] sm:$0xf0]  ;;  %v3498_v40 = vor.u32 %v3938_v33, %v3495_v34 }
  0x88   : > { %1420 = vmatpush.bf16.msra.mxu2 %v3550_v30  ;;  %v3936_v41 = vld [vmem:[%s4782_s30 + $0x38] sm:$0xf0]  ;;  %v3935_v42 = vld [vmem:[%s4782_s30 + $0x34] sm:$0xf]  ;;  %v3483_v43 = vld [vmem:[%s4782_s30 + $0x3c] sm:$0xf0]  ;;  %v3526_v47 = vor.u32 %v3946_v39, %v3525_v38 }
  0x89   : > { %v3513_v44 = vld [vmem:[%s4782_s30 + $0x68] sm:$0xf]  ;;  %v3943_v45 = vld [vmem:[%s4782_s30 + $0x70] sm:$0xf0]  ;;  %v3469_v46 = vld [vmem:[%s4782_s30 + $0x18] sm:$0xf]  ;;  %v3482_v48 = vor.u32 %v3936_v41, %v3481_v37  ;;  %v3486_v49 = vor.u32 %v3935_v42, %v3483_v43 }
  0x8a   : > { %1394 = vmatpush.bf16.msra.mxu0 %v3518_v18  ;;  %v3933_v50 = vld [vmem:[%s4782_s30 + $0x20] sm:$0xf0]  ;;  %v3932_v51 = vld [vmem:[%s4782_s30 + $0x1c] sm:$0xf]  ;;  %v3471_v52 = vld [vmem:[%s4782_s30 + $0x24] sm:$0xf0]  ;;  %v3514_v53 = vor.u32 %v3943_v45, %v3513_v44 }
  0x8b   : > { %1408 = vmatpush.bf16.msra.mxu1 %v3522_v19  ;;  %v3470_v54 = vor.u32 %v3933_v50, %v3469_v46  ;;  %v3501_v55 = vld [vmem:[%s4782_s30 + $0x50] sm:$0xf]  ;;  %v3940_v56 = vld [vmem:[%s4782_s30 + $0x58] sm:$0xf0]  ;;  %v3474_v57 = vor.u32 %v3932_v51, %v3471_v52  ;;  %v3457_v58 = vld [vmem:[%s4782_s30] sm:$0xf] }
  0x8c   : > { %1421 = vmatpush.bf16.msra.mxu2 %v3538_v35  ;;  %v3930_v59 = vld [vmem:[%s4782_s30 + $0x8] sm:$0xf0]  ;;  %v3929_v60 = vld [vmem:[%s4782_s30 + $0x4] sm:$0xf]  ;;  %v3459_v61 = vld [vmem:[%s4782_s30 + $0xc] sm:$0xf0]  ;;  %v3502_v63 = vor.u32 %v3940_v56, %v3501_v55 }
  0x8d   : > { %v4895_v62 = vld [vmem:[#allocation2] sm:$0xff]  ;;  %v3458_v0 = vor.u32 %v3930_v59, %v3457_v58  ;;  %v4897_v1 = vld [vmem:[#allocation2 + $0x8] sm:$0xff]  ;;  %v3489_v2 = vld [vmem:[%s4782_s30 + $0x38] sm:$0xf]  ;;  %v3462_v4 = vor.u32 %v3929_v60, %v3459_v61  ;;  %vm1450_vm0 = vcmask 261120   ;;  %s4472_s27 = smov 64  }
  0x8e   : > { %1395 = vmatpush.bf16.msra.mxu0 %v3506_v24  ;;  %v3937_v3 = vld [vmem:[%s4782_s30 + $0x40] sm:$0xf0]  ;;  %v1220_v5 = vpack.c.bf16 %v4897_v1, %v4895_v62  ;;  %v3477_v7 = vld [vmem:[%s4782_s30 + $0x20] sm:$0xf]  ;;  %v3934_v8 = vld [vmem:[%s4782_s30 + $0x28] sm:$0xf0] }
  0x8f   : > { %1409 = vmatpush.bf16.msra.mxu1 %v3510_v28  ;;  %v3490_v6 = vor.u32 %v3937_v3, %v3489_v2  ;;  %v3478_v9 = vor.u32 %v3934_v8, %v3477_v7  ;;  %v3465_v10 = vld [vmem:[%s4782_s30 + $0x8] sm:$0xf]  ;;  %v3931_v11 = vld [vmem:[%s4782_s30 + $0x10] sm:$0xf0]  ;;  %v1256_v13 = vld [vmem:[%s4787_s14] sm:$0x7] }
  0x90   : > { %1422 = vmatpush.bf16.msra.mxu2 %v3526_v47  ;;  %v3466_v12 = vor.u32 %v3931_v11, %v3465_v10  ;;  %v1259_v16 = vperm.slane %v1256_v13, 1  ;;  %v1258_v18 = vperm.slane %v1256_v13, 0  ;;  %v1260_v31 = vperm.slane %v1256_v13, 2  ;;  %s4471_s14 = smov 96   ;;  %s4473_s18 = smov 32  }
  0x91   : > { %vm1473_vm1 = vcmask 130048   ;;  %vm1599_vm2 = vcmask 523520   ;;  %vm1679_vm3 = vcmask 785920   ;;  %vm1759_vm4 = vcmask 1048320   ;;  %s5382_s30 = sld [smem:[#allocation35_spill]]  ;;  %p3855_p4 = scmp.ne.s32.totalorder %s4448_s28, 1 }
  0x92   : > { %1396 = vmatpush.bf16.msra.mxu0 %v3494_v36  ;;  %s5384_s6 = sld [smem:[#allocation24_spill]] }
  0x93   : > { %1410 = vmatpush.bf16.msra.mxu1 %v3498_v40  ;;  %s5386_s23 = sld [smem:[#allocation46_spill]] }
  0x94   : > { %1423 = vmatpush.bf16.msra.mxu2 %v3514_v53  ;;  %s5389_s24 = sld [smem:[#allocation37_spill]] }
  0x95   : > { %s5392_s10 = sld [smem:[#allocation41_spill]] }
  0x96   : > { %1397 = vmatpush.bf16.msra.mxu0 %v3482_v48  ;;  %s5399_s0 = sld [smem:[#allocation45_spill]] }
  0x97   : > { %1411 = vmatpush.bf16.msra.mxu1 %v3486_v49  ;;  %s5383_s19 = scalar_lea.vmem %s5382_s30, %s4763_s15 }
  0x98   : > { %1424 = vmatpush.bf16.msra.mxu2 %v3502_v63 }
  0x99   : > { %s5387_s25 = scalar_lea.vmem %s5386_s23, %s4763_s15 }
  0x9a   : > { %1398 = vmatpush.bf16.msra.mxu0 %v3470_v54  ;;  %s5390_s9 = scalar_lea.vmem %s5389_s24, %s4763_s15 }
  0x9b   : > { %1412 = vmatpush.bf16.msra.mxu1 %v3474_v57 }
  0x9c   : > { %1425 = vmatpush.bf16.msra.mxu2 %v3490_v6  ;;  %s5400_s23 = scalar_lea.vmem %s5399_s0, %s4763_s15 }
  0x9e   : > { %1399 = vmatpush.bf16.msra.mxu0 %v3458_v0 }
  0x9f   : > { %1413 = vmatpush.bf16.msra.mxu1 %v3462_v4 }
  0xa0   : > { %1426 = vmatpush.bf16.msra.mxu2 %v3478_v9 }
  0xa1   : > { %1400 = vmatmul.bf16.vlgmr.msra.gmra.mxu0 %v1220_v5 }
  0xa2   : > { %1414 = vmatmul.bf16.vlgmr.msra.gmra.mxu1 %v1220_v5 }
  0xa4   : > { %1427 = vmatpush.bf16.msra.mxu2 %v3466_v12 }
  0xa7   : > { %1428 = vmatmul.bf16.vlgmr.msra.gmra.mxu2 %v1220_v5 }
 0x11e   : > { %v1401_v14 = vpop.f32.mrf.mxu0 }
 0x11f   : > { %v1415_v15 = vpop.f32.mrf.mxu1  ;;  %v1402_v23 = vadd.f32 %v1401_v14, %v1258_v18 }
 0x120   : > { %v1416_v17 = vadd.f32 %v1415_v15, %v1259_v16 }
 0x121   : > { %v1434_v28 = vpack.c.bf16 %v1402_v23, %v1402_v23 }
 0x122   : > { %v1436_v21 = vpack.c.bf16 %v1416_v17, %v1416_v17 }
 0x123   : > { %v1442_v34 = vunpack.c.l.b16 %v1434_v28 }
 0x124   : > { %v1447_v26 = vunpack.c.l.b16 %v1436_v21 }
 0x126   : > { %v1403_v19 = vpop.f32.mrf.mxu0 }
 0x127   : > { %v1417_v20 = vpop.f32.mrf.mxu1  ;;  %v1404_v24 = vadd.f32 %v1403_v19, %v1258_v18 }
 0x128   : > { %v1418_v22 = vadd.f32 %v1417_v20, %v1259_v16 }
 0x129   : > { %v1435_v29 = vpack.c.bf16 %v1404_v24, %v1404_v24 }
 0x12a   : > { %v1437_v25 = vpack.c.bf16 %v1418_v22, %v1418_v22  ;;  %v1429_v32 = vpop.f32.mrf.mxu2 }
 0x12b   : > { %v1443_v35 = vunpack.c.l.b16 %v1435_v29  ;;  %v1430_v36 = vadd.f32 %v1429_v32, %v1260_v31 }
 0x12c   : > { %v1448_v27 = vunpack.c.l.b16 %v1437_v25 }
 0x12d   : > { %v1444_v37 = vpack.c.b16 %v1443_v35, %v1442_v34  ;;  %v1438_v38 = vpack.c.bf16 %v1430_v36, %v1430_v36 }
 0x12e   : > { %v1449_v30 = vpack.c.b16 %v1448_v27, %v1447_v26 }
 0x12f   : > { %v1499_v41 = vunpack.c.l.b16 %v1438_v38 }
 0x130   : > { %1524 = vrot.lane.b32.xlu2 %v1449_v30, %s4471_s14  ;;  %v1455_v33 = vsel %vm1450_vm0, %v1449_v30, 0 }
 0x131   : > { %1464 = vmatpush.bf16.xpose.msra.mxu3 %v1455_v33 }
 0x132   : > { %v1431_v39 = vpop.f32.mrf.mxu2 }
 0x133   : > { %v1432_v40 = vadd.f32 %v1431_v39, %v1260_v31 }
 0x135   : > { %v1439_v42 = vpack.c.bf16 %v1432_v40, %v1432_v40 }
 0x137   : > { %v1500_v43 = vunpack.c.l.b16 %v1439_v42 }
 0x138   : > { %1522 = vrot.lane.b32.xlu2 %v1444_v37, %s4471_s14  ;;  %3551 = vmatmul.msk.bf16.vlgmr.msra.gmra.mxu3 %vm1450_vm0, %v1444_v37 }
 0x139   : > { %v4912_v44 = vpack.c.b16 %v1500_v43, %v1499_v41 }
 0x13b   : > { %1513 = vmatpush.bf16.msrb.mxu3 %v4912_v44 }
 0x140   : > { %1602 = vrot.lane.b32.xlu2 %v1444_v37, %s4472_s27 }
 0x148   : > { %1682 = vrot.lane.b32.xlu2 %v1444_v37, %s4473_s18 }
 0x18a   : > { %v1525_v45 = vpop.permute.xlu2 %1524 }
 0x18b   : > { %v1530_v46 = vsel %vm1450_vm0, %v1525_v45, 0 }
 0x18c   : > { %1539 = vmatpush.bf16.xpose.msra.mxu3 %v1530_v46 }
 0x192   : > { %v1523_v0 = vpop.permute.xlu2 %1522 }
 0x19a   : > { %v1603_v4 = vpop.permute.xlu2 %1602 }
 0x1a2   : > { %v1683_v17 = vpop.permute.xlu2 %1682 }
 0x1bb   : > { %v1466_v47 = vpop.f32.mrf.mxu3 }
 0x1bc   : > { %v1471_v48 = vmul.f32 0.17677669, %v1466_v47 }
 0x1be   : > { %v1474_v49 = vsel %vm1473_vm1, %v1471_v48, -inf }
 0x1bf   : > { %1475 = vmax.xlane.f32.xlu0 %v1474_v49 }
 0x1c3   : > { %v1468_v50 = vpop.f32.mrf.mxu3 }
 0x1c4   : > { %v1472_v51 = vmul.f32 0.17677669, %v1468_v50 }
 0x1c6   : > { %v1477_v52 = vsel %vm1473_vm1, %v1472_v51, -inf }
 0x1c7   : > { %1478 = vmax.xlane.f32.xlu0 %v1477_v52 }
 0x1db   : > { %1604 = vrot.lane.b32.xlu0 %v1449_v30, %s4472_s27 }
 0x232   : > { %v1476_v53 = vpop.xlane.xlu0 %1475 }
 0x233   : > { %v1480_v54 = vsub.f32 %v1471_v48, %v1476_v53 }
 0x235   : > { %v1482_v55 = vmul.f32 1.442695, %v1480_v54 }
 0x237   : > { %4158 = vpow2.f32 %v1482_v55 }
 0x23a   : > { %v1479_v56 = vpop.xlane.xlu0 %1478 }
 0x23b   : > { %v1481_v57 = vsub.f32 %v1472_v51, %v1479_v56 }
 0x23d   : > { %v4159_v58 = vpop.eup %4158  ;;  %v1484_v59 = vmul.f32 1.442695, %v1481_v57 }
 0x23e   : > { %v1486_v60 = vsel %vm1473_vm1, %v4159_v58, 0.0 }
 0x23f   : > { %4160 = vpow2.f32 %v1484_v59  ;;  %1487 = vadd.xlane.f32.xlu1 %v1486_v60 }
 0x245   : > { %v4161_v61 = vpop.eup %4160 }
 0x246   : > { %v1489_v63 = vsel %vm1473_vm1, %v4161_v61, 0.0 }
 0x247   : > { %1490 = vadd.xlane.f32.xlu1 %v1489_v63 }
 0x24d   : > { %v1605_v2 = vpop.permute.xlu0 %1604 }
 0x24e   : > { %v1610_v3 = vsel %vm1450_vm0, %v1605_v2, 0 }
 0x24f   : > { %1619 = vmatpush.bf16.xpose.msrb.mxu2 %v1610_v3 }
 0x256   : > { %3555 = vmatmul.msk.bf16.vlgmr.msrb.gmra.mxu2 %vm1450_vm0, %v1603_v4 }
 0x260   : > { %1684 = vrot.lane.b32.xlu1 %v1449_v30, %s4473_s18 }
 0x2b2   : > { %v1488_v5 = vpop.xlane.xlu1 %1487 }
 0x2b3   : > { %4162 = vrcp.f32 %v1488_v5 }
 0x2b9   : > { %v4163_v7 = vpop.eup %4162 }
 0x2ba   : > { %v1491_v6 = vpop.xlane.xlu1 %1490  ;;  %v1494_v9 = vmul.f32 %v4163_v7, %v4159_v58 }
 0x2bb   : > { %4164 = vrcp.f32 %v1491_v6 }
 0x2c1   : > { %v4165_v8 = vpop.eup %4164 }
 0x2c2   : > { %v1495_v10 = vmul.f32 %v4165_v8, %v4161_v61 }
 0x2c4   : > { %v1496_v11 = vpack.c.bf16 %v1495_v10, %v1494_v9 }
 0x2c6   : > { %3552 = vmatmul.msk.bf16.vlgmr.msrb.gmra.mxu3 %vm1473_vm1, %v1496_v11 }
 0x2d2   : > { %v1685_v12 = vpop.permute.xlu1 %1684 }
 0x2d3   : > { %v1690_v13 = vsel %vm1450_vm0, %v1685_v12, 0 }
 0x2d4   : > { %1699 = vmatpush.bf16.xpose.msrb.mxu3 %v1690_v13 }
 0x2d6   : > { %3553 = vmatmul.msk.bf16.vlgmr.msra.gmra.mxu3 %vm1450_vm0, %v1523_v0 }
 0x2d9   : > { %v1621_v14 = vpop.f32.mrf.mxu2 }
 0x2da   : > { %v1626_v15 = vmul.f32 0.17677669, %v1621_v14 }
 0x2dc   : > { %v1628_v16 = vsel %vm1473_vm1, %v1626_v15, -inf }
 0x2dd   : > { %1629 = vmax.xlane.f32.xlu1 %v1628_v16 }
 0x2e1   : > { %v1623_v28 = vpop.f32.mrf.mxu2 }
 0x2e2   : > { %v1627_v29 = vmul.f32 0.17677669, %v1623_v28 }
 0x2e4   : > { %v1631_v33 = vsel %vm1473_vm1, %v1627_v29, -inf }
 0x2e6   : > { %3557 = vmatmul.msk.bf16.vlgmr.msrb.gmra.mxu3 %vm1450_vm0, %v1683_v17 }
 0x349   : > { %v1515_v18 = vpop.f32.mrf.mxu3 }
 0x34a   : > { %1520 = vst.msk [vmem:[#allocation3] sm:$0xff] %vm1450_vm0, %v1515_v18 }
 0x350   : > { %v1630_v19 = vpop.xlane.xlu1 %1629 }
 0x351   : > { %v1634_v20 = vsub.f32 %v1626_v15, %v1630_v19  ;;  %v1517_v21 = vpop.f32.mrf.mxu3 }
 0x352   : > { %1521 = vst.msk [vmem:[#allocation3 + $0x8] sm:$0xff] %vm1450_vm0, %v1517_v21 }
 0x353   : > { %v1636_v22 = vmul.f32 1.442695, %v1634_v20 }
 0x355   : > { %4166 = vpow2.f32 %v1636_v22 }
 0x359   : > { %v1541_v23 = vpop.f32.mrf.mxu3 }
 0x35a   : > { %v1546_v24 = vmul.f32 0.17677669, %v1541_v23 }
 0x35b   : > { %v4933_v25 = vpop.eup %4166 }
 0x35c   : > { %v1548_v26 = vsel %vm1473_vm1, %v1546_v24, -inf  ;;  %v1640_v27 = vsel %vm1473_vm1, %v4933_v25, 0.0 }
 0x35d   : > { %1549 = vmax.xlane.f32.xlu2 %v1548_v26  ;;  %1641 = vadd.xlane.f32.xlu1 %v1640_v27 }
 0x361   : > { %v1543_v30 = vpop.f32.mrf.mxu3 }
 0x362   : > { %v1547_v31 = vmul.f32 0.17677669, %v1543_v30 }
 0x364   : > { %v1551_v32 = vsel %vm1473_vm1, %v1547_v31, -inf }
 0x365   : > { %1552 = vmax.xlane.f32.xlu0 %v1551_v32  ;;  %1632 = vmax.xlane.f32.xlu2 %v1631_v33  ;;  %v3960_v33 = vld [vmem:[%s4734_s16 + $0x38] sm:$0xff] }
 0x366   : > { %1833 = vmatpush.bf16.msrb.mxu1 %v3960_v33  ;;  %v1222_v33 = vld [vmem:[%s4777_s17 + $0x8] sm:$0xff] }
 0x369   : > { %v1701_v34 = vpop.f32.mrf.mxu3 }
 0x36a   : > { %v1706_v35 = vmul.f32 0.17677669, %v1701_v34  ;;  %v3959_v34 = vld [vmem:[%s4734_s16 + $0x30] sm:$0xff] }
 0x36b   : > { %1834 = vmatpush.bf16.msrb.mxu1 %v3959_v34 }
 0x36c   : > { %v1708_v36 = vsel %vm1473_vm1, %v1706_v35, -inf }
 0x36d   : > { %1709 = vmax.xlane.f32.xlu0 %v1708_v36  ;;  %v3957_v36 = vld [vmem:[%s4734_s16 + $0x20] sm:$0xff] }
 0x371   : > { %v1703_v37 = vpop.f32.mrf.mxu3 }
 0x372   : > { %v1707_v38 = vmul.f32 0.17677669, %v1703_v37  ;;  %v3956_v37 = vld [vmem:[%s4734_s16 + $0x18] sm:$0xff] }
 0x374   : > { %v1711_v39 = vsel %vm1473_vm1, %v1707_v38, -inf }
 0x375   : > { %1712 = vmax.xlane.f32.xlu2 %v1711_v39  ;;  %v3955_v39 = vld [vmem:[%s4734_s16 + $0x10] sm:$0xff] }
 0x38d   : > { %1571 = vrot.lane.b32.xlu2 %v4912_v44, %s4471_s14 }
 0x3d0   : > { %v1550_v40 = vpop.xlane.xlu2 %1549  ;;  %v1642_v5 = vpop.xlane.xlu1 %1641 }
 0x3d1   : > { %v1554_v41 = vsub.f32 %v1546_v24, %v1550_v40  ;;  %v3954_v40 = vld [vmem:[%s4734_s16 + $0x8] sm:$0xff] }
 0x3d3   : > { %v1556_v42 = vmul.f32 1.442695, %v1554_v41  ;;  %v3953_v41 = vld [vmem:[%s4734_s16] sm:$0xff] }
 0x3d5   : > { %4168 = vpow2.f32 %v1556_v42 }
 0x3d8   : > { %v1633_v43 = vpop.xlane.xlu2 %1632  ;;  %v1553_v45 = vpop.xlane.xlu0 %1552 }
 0x3d9   : > { %v1635_v46 = vsub.f32 %v1627_v29, %v1633_v43  ;;  %v1555_v49 = vsub.f32 %v1547_v31, %v1553_v45 }
 0x3db   : > { %v4169_v47 = vpop.eup %4168  ;;  %v1638_v48 = vmul.f32 1.442695, %v1635_v46  ;;  %v1558_v51 = vmul.f32 1.442695, %v1555_v49 }
 0x3dc   : > { %v1560_v50 = vsel %vm1473_vm1, %v4169_v47, 0.0 }
 0x3dd   : > { %4170 = vpow2.f32 %v1638_v48  ;;  %1561 = vadd.xlane.f32.xlu1 %v1560_v50 }
 0x3de   : > { %4172 = vpow2.f32 %v1558_v51  ;;  %v4148_v51 = vld [vmem:[%s5383_s19] ss:$0 sm:$0xff] }
 0x3e0   : > { %v1710_v52 = vpop.xlane.xlu0 %1709 }
 0x3e1   : > { %v1714_v53 = vsub.f32 %v1706_v35, %v1710_v52  ;;  %v3958_v35 = vld [vmem:[%s4734_s16 + $0x28] sm:$0xff] }
 0x3e2   : > { %1835 = vmatpush.bf16.msrb.mxu1 %v3958_v35  ;;  %v3968_v35 = vld [vmem:[%s5384_s6 + $0x38] sm:$0xff] }
 0x3e3   : > { %v4171_v54 = vpop.eup %4170  ;;  %v1716_v55 = vmul.f32 1.442695, %v1714_v53 }
 0x3e4   : > { %v1643_v56 = vsel %vm1473_vm1, %v4171_v54, 0.0  ;;  %v4173_v58 = vpop.eup %4172 }
 0x3e5   : > { %4174 = vpow2.f32 %v1716_v55  ;;  %1644 = vadd.xlane.f32.xlu0 %v1643_v56  ;;  %v1563_v63 = vsel %vm1473_vm1, %v4173_v58, 0.0 }
 0x3e6   : > { %1836 = vmatpush.bf16.msrb.mxu1 %v3957_v36  ;;  %v3967_v36 = vld [vmem:[%s5384_s6 + $0x30] sm:$0xff] }
 0x3e8   : > { %v1713_v57 = vpop.xlane.xlu2 %1712 }
 0x3e9   : > { %v1715_v59 = vsub.f32 %v1707_v38, %v1713_v57 }
 0x3ea   : > { %1837 = vmatpush.bf16.msrb.mxu1 %v3956_v37  ;;  %v3966_v37 = vld [vmem:[%s5384_s6 + $0x28] sm:$0xff] }
 0x3eb   : > { %v4175_v60 = vpop.eup %4174  ;;  %v1718_v61 = vmul.f32 1.442695, %v1715_v59 }
 0x3ec   : > { %v1720_v0 = vsel %vm1473_vm1, %v4175_v60, 0.0 }
 0x3ed   : > { %4176 = vpow2.f32 %v1718_v61  ;;  %1564 = vadd.xlane.f32.xlu0 %v1563_v63  ;;  %1721 = vadd.xlane.f32.xlu1 %v1720_v0  ;;  %v3681_v61 = vld [vmem:[%s4797_s26 + $0x70] sm:$0xf]  ;;  %v3984_v63 = vld [vmem:[%s4797_s26 + $0x74] sm:$0xf0]  ;;  %v3673_v0 = vld [vmem:[%s4797_s26 + $0x60] sm:$0xf] }
 0x3ee   : > { %1838 = vmatpush.bf16.msrb.mxu1 %v3955_v39  ;;  %v3964_v39 = vld [vmem:[%s5384_s6 + $0x18] sm:$0xff] }
 0x3f0   : > { %v1572_v2 = vpop.permute.xlu2 %1571 }
 0x3f1   : > { %1584 = vmatpush.bf16.msrb.mxu0 %v1572_v2  ;;  %v3682_v2 = vor.u32 %v3984_v63, %v3681_v61 }
 0x3f2   : > { %1839 = vmatpush.bf16.msrb.mxu1 %v3954_v40  ;;  %v3963_v40 = vld [vmem:[%s5384_s6 + $0x10] sm:$0xff] }
 0x3f3   : > { %v4177_v3 = vpop.eup %4176  ;;  %2093 = vmatpush.bf16.msra.mxu3 %v3682_v2 }
 0x3f4   : > { %v1723_v4 = vsel %vm1473_vm1, %v4177_v3, 0.0 }
 0x3f5   : > { %1724 = vadd.xlane.f32.xlu0 %v1723_v4 }
 0x3f6   : > { %1840 = vmatpush.bf16.msrb.mxu1 %v3953_v41  ;;  %v3962_v41 = vld [vmem:[%s5384_s6 + $0x8] sm:$0xff] }
 0x406   : > { %1651 = vrot.lane.b32.xlu1 %v4912_v44, %s4472_s27 }
 0x409   : > { %1731 = vrot.lane.b32.xlu0 %v4912_v44, %s4473_s18 }
 0x450   : > { %v1562_v7 = vpop.xlane.xlu1 %1561 }
 0x451   : > { %4178 = vrcp.f32 %v1562_v7 }
 0x457   : > { %v4179_v9 = vpop.eup %4178 }
 0x458   : > { %v1645_v6 = vpop.xlane.xlu0 %1644  ;;  %v1568_v11 = vmul.f32 %v4179_v9, %v4169_v47  ;;  %v3978_v9 = vld [vmem:[%s4797_s26 + $0x44] sm:$0xf0] }
 0x460   : > { %v1565_v8 = vpop.xlane.xlu0 %1564  ;;  %v1722_v15 = vpop.xlane.xlu1 %1721 }
 0x461   : > { %4180 = vrcp.f32 %v1565_v8  ;;  %v3657_v8 = vld [vmem:[%s4797_s26 + $0x40] sm:$0xf] }
 0x462   : > { %4182 = vrcp.f32 %v1645_v6 }
 0x463   : > { %4184 = vrcp.f32 %v1642_v5  ;;  %v3665_v5 = vld [vmem:[%s4797_s26 + $0x50] sm:$0xf] }
 0x467   : > { %v4181_v10 = vpop.eup %4180 }
 0x468   : > { %v1569_v12 = vmul.f32 %v4181_v10, %v4173_v58  ;;  %v1725_v14 = vpop.xlane.xlu0 %1724  ;;  %v4183_v44 = vpop.eup %4182  ;;  %v4474_v58 = vmov 128.0  }
 0x469   : > { %4186 = vrcp.f32 %v1725_v14  ;;  %v4185_v16 = vpop.eup %4184  ;;  %v1649_v18 = vmul.f32 %v4183_v44, %v4171_v54  ;;  %v3641_v44 = vld [vmem:[%s4797_s26 + $0x20] sm:$0xf] }
 0x46a   : > { %v1570_v13 = vpack.c.bf16 %v1569_v12, %v1568_v11  ;;  %4188 = vrcp.f32 %v1722_v15  ;;  %v1648_v20 = vmul.f32 %v4185_v16, %v4933_v25  ;;  %v3658_v11 = vor.u32 %v3978_v9, %v3657_v8  ;;  %v3649_v12 = vld [vmem:[%s4797_s26 + $0x30] sm:$0xf]  ;;  %v3974_v16 = vld [vmem:[%s4797_s26 + $0x24] sm:$0xf0] }
 0x46b   : > { %4190 = vrcp.f32 %v4474_v58 }
 0x46c   : > { %3554 = vmatmul.msk.bf16.vlgmr.msrb.gmra.mxu0 %vm1473_vm1, %v1570_v13  ;;  %v1650_v23 = vpack.c.bf16 %v1649_v18, %v1648_v20  ;;  %v3976_v13 = vld [vmem:[%s4797_s26 + $0x34] sm:$0xf0] }
 0x46d   : > { %v3650_v15 = vor.u32 %v3976_v13, %v3649_v12 }
 0x46f   : > { %v4187_v17 = vpop.eup %4186 }
 0x470   : > { %v4189_v19 = vpop.eup %4188  ;;  %v1729_v22 = vmul.f32 %v4187_v17, %v4177_v3 }
 0x471   : > { %v1728_v24 = vmul.f32 %v4189_v19, %v4175_v60  ;;  %v4191_v59 = vpop.eup %4190  ;;  %v3642_v19 = vor.u32 %v3974_v16, %v3641_v44 }
 0x472   : > { %v1856_v60 = vmul.f32 128.0, %v4191_v59  ;;  %vm1860_vm5 = vweird.f32 %v4191_v59 }
 0x473   : > { %v1730_v27 = vpack.c.bf16 %v1729_v22, %v1728_v24  ;;  %v3972_v22 = vld [vmem:[%s4797_s26 + $0x14] sm:$0xf0] }
 0x474   : > { %v1857_v3 = vsub.f32 1.0, %v1856_v60 }
 0x476   : > { %v1858_v6 = vmul.f32 %v4191_v59, %v1857_v3 }
 0x478   : > { %v1652_v21 = vpop.permute.xlu1 %1651  ;;  %v1859_v10 = vadd.f32 %v4191_v59, %v1858_v6 }
 0x479   : > { %1664 = vmatpush.bf16.msra.mxu2 %v1652_v21  ;;  %v3633_v21 = vld [vmem:[%s4797_s26 + $0x10] sm:$0xf] }
 0x47a   : > { %v4994_v14 = vsel %vm1860_vm5, %v4191_v59, %v1859_v10  ;;  %v3634_v24 = vor.u32 %v3972_v22, %v3633_v21  ;;  %v4151_v22 = vld [vmem:[%s5390_s9] ss:$0 sm:$0xff] }
 0x47b   : > { %v1732_v26 = vpop.permute.xlu0 %1731 }
 0x47c   : > { %3556 = vmatmul.msk.bf16.vlgmr.msra.gmra.mxu2 %vm1473_vm1, %v1650_v23  ;;  %1744 = vmatpush.bf16.msra.mxu0 %v1732_v26 }
 0x47d   : > { %1977 = vmatpush.bf16.msrb.mxu2 %v3968_v35 }
 0x47f   : > { %3558 = vmatmul.msk.bf16.vlgmr.msra.gmra.mxu0 %vm1473_vm1, %v1730_v27 }
 0x481   : > { %1978 = vmatpush.bf16.msrb.mxu2 %v3967_v36 }
 0x485   : > { %1979 = vmatpush.bf16.msrb.mxu2 %v3966_v37 }
 0x4e9   : > { %v1586_v28 = vpop.f32.mrf.mxu0 }
 0x4f1   : > { %v1588_v29 = vpop.f32.mrf.mxu0 }
 0x4fc   : > { %v1746_v30 = vpop.f32.mrf.mxu0 }
 0x4fd   : > { %1753 = vrot.lane.b32.xlu1 %v1746_v30, %s4471_s14  ;;  %v3625_v30 = vld [vmem:[%s4797_s26] sm:$0xf] }
 0x4ff   : > { %v1666_v25 = vpop.f32.mrf.mxu2 }
 0x500   : > { %1673 = vrot.lane.b32.xlu2 %v1666_v25, %s4472_s27  ;;  %v3970_v25 = vld [vmem:[%s4797_s26 + $0x4] sm:$0xf0] }
 0x504   : > { %v1748_v32 = vpop.f32.mrf.mxu0 }
 0x507   : > { %v1668_v31 = vpop.f32.mrf.mxu2 }
 0x508   : > { %1675 = vrot.lane.b32.xlu0 %v1668_v31, %s4472_s27  ;;  %1593 = vrot.lane.b32.xlu2 %v1586_v28, %s4473_s18  ;;  %v3626_v31 = vor.u32 %v3970_v25, %v3625_v30 }
 0x510   : > { %1595 = vrot.lane.b32.xlu2 %v1588_v29, %s4473_s18 }
 0x518   : > { %1755 = vrot.lane.b32.xlu2 %v1748_v32, %s4471_s14  ;;  %v1221_v32 = vld [vmem:[%s4777_s17] sm:$0xff]  ;;  %s5385_s17 = sld [smem:[#allocation27_spill]] }
 0x519   : > { %v5006_v34 = vpack.c.bf16 %v1222_v33, %v1221_v32 }
 0x51e   : > { %v5036_v9 = vld [vmem:[%s5385_s17] sm:$0x3] }
 0x51f   : > { %v2009_v10 = vperm.slane %v5036_v9, 0 }
 0x55a   : > { %v1674_v38 = vpop.permute.xlu2 %1673 }
 0x562   : > { %v1594_v42 = vpop.permute.xlu2 %1593 }
 0x563   : > { %1600 = vst.msk [vmem:[#allocation3] sm:$0xff] %vm1599_vm2, %v1594_v42 }
 0x564   : > { %1680 = vst.msk [vmem:[#allocation3] sm:$0xff] %vm1679_vm3, %v1674_v38  ;;  %v3965_v38 = vld [vmem:[%s5384_s6 + $0x20] sm:$0xff] }
 0x565   : > { %1980 = vmatpush.bf16.msrb.mxu2 %v3965_v38 }
 0x569   : > { %1981 = vmatpush.bf16.msrb.mxu2 %v3964_v39 }
 0x56a   : > { %v1596_v43 = vpop.permute.xlu2 %1595 }
 0x56b   : > { %1601 = vst.msk [vmem:[#allocation3 + $0x8] sm:$0xff] %vm1599_vm2, %v1596_v43 }
 0x56d   : > { %1982 = vmatpush.bf16.msrb.mxu2 %v3963_v40  ;;  %v3983_v40 = vld [vmem:[%s4797_s26 + $0x74] sm:$0xf] }
 0x56f   : > { %v1754_v45 = vpop.permute.xlu1 %1753 }
 0x570   : > { %1760 = vst.msk [vmem:[#allocation3] sm:$0xff] %vm1759_vm4, %v1754_v45  ;;  %v3961_v45 = vld [vmem:[%s5384_s6] sm:$0xff] }
 0x571   : > { %1983 = vmatpush.bf16.msrb.mxu2 %v3962_v41  ;;  %v3683_v41 = vld [vmem:[%s4797_s26 + $0x78] sm:$0xf0] }
 0x572   : > { %v1756_v47 = vpop.permute.xlu2 %1755 }
 0x575   : > { %1984 = vmatpush.bf16.msrb.mxu2 %v3961_v45  ;;  %v3675_v45 = vld [vmem:[%s4797_s26 + $0x68] sm:$0xf0] }
 0x577   : > { %v1762_v48 = vld [vmem:[#allocation3] sm:$0xff] }
 0x57a   : > { %v1676_v46 = vpop.permute.xlu0 %1675 }
 0x57b   : > { %1681 = vst.msk [vmem:[#allocation3 + $0x8] sm:$0xff] %vm1679_vm3, %v1676_v46 }
 0x57c   : > { %1761 = vst.msk [vmem:[#allocation3 + $0x8] sm:$0xff] %vm1759_vm4, %v1756_v47 }
 0x583   : > { %v1763_v49 = vld [vmem:[#allocation3 + $0x8] sm:$0xff] }
 0x584   : > { %v1764_v50 = vpack.c.bf16 %v1763_v49, %v1762_v48 }
 0x586   : > { %1841 = vmatmul.bf16.vlgmr.msrb.gmra.mxu1 %v1764_v50 }
 0x603   : > { %v1842_v52 = vpop.f32.mrf.mxu1 }
 0x604   : > { %v1843_v53 = vadd.f32 %v4148_v51, %v1842_v52 }
 0x606   : > { %v1847_v54 = vadd.f32 %v1843_v53, %v4895_v62  ;;  %v3982_v62 = vld [vmem:[%s4797_s26 + $0x64] sm:$0xf0] }
 0x607   : > { %v3674_v4 = vor.u32 %v3982_v62, %v3673_v0  ;;  %v4149_v0 = vld [vmem:[%s5387_s25] ss:$0 sm:$0xff] }
 0x608   : > { %1851 = vadd.xlane.f32.xlu0 %v1847_v54 }
 0x609   : > { %2094 = vmatpush.bf16.msra.mxu3 %v3674_v4 }
 0x60b   : > { %v1844_v55 = vpop.f32.mrf.mxu1 }
 0x60c   : > { %v1845_v56 = vadd.f32 %v4148_v51, %v1844_v55 }
 0x60e   : > { %v1848_v57 = vadd.f32 %v1845_v56, %v4897_v1  ;;  %v3980_v1 = vld [vmem:[%s4797_s26 + $0x54] sm:$0xf0] }
 0x60f   : > { %v3666_v7 = vor.u32 %v3980_v1, %v3665_v5  ;;  %v4150_v5 = vld [vmem:[%s1189_s11] ss:$0 sm:$0xff] }
 0x610   : > { %1853 = vadd.xlane.f32.xlu1 %v1848_v57 }
 0x611   : > { %2095 = vmatpush.bf16.msra.mxu3 %v3666_v7 }
 0x615   : > { %2096 = vmatpush.bf16.msra.mxu3 %v3658_v11 }
 0x619   : > { %2097 = vmatpush.bf16.msra.mxu3 %v3650_v15 }
 0x61d   : > { %2098 = vmatpush.bf16.msra.mxu3 %v3642_v19 }
 0x621   : > { %2099 = vmatpush.bf16.msra.mxu3 %v3634_v24 }
 0x625   : > { %2100 = vmatpush.bf16.msra.mxu3 %v3626_v31 }
 0x628   : > { %2101 = vmatmul.bf16.vlgmr.msra.gmra.mxu3 %v5006_v34 }
 0x67b   : > { %v1852_v17 = vpop.xlane.xlu0 %1851 }
 0x67c   : > { %v1862_v18 = vmul.f32 %v4994_v14, %v1852_v17 }
 0x67e   : > { %v1864_v20 = vsub.f32 %v1847_v54, %v1862_v18 }
 0x680   : > { %v1866_v23 = vmul.f32 %v1864_v20, %v1864_v20 }
 0x682   : > { %1868 = vadd.xlane.f32.xlu2 %v1866_v23 }
 0x683   : > { %v1854_v26 = vpop.xlane.xlu1 %1853 }
 0x684   : > { %v1863_v27 = vmul.f32 %v4994_v14, %v1854_v26 }
 0x686   : > { %v1865_v28 = vsub.f32 %v1848_v57, %v1863_v27 }
 0x688   : > { %v1867_v29 = vmul.f32 %v1865_v28, %v1865_v28 }
 0x68a   : > { %1870 = vadd.xlane.f32.xlu0 %v1867_v29 }
 0x6ab   : > { %v2102_v11 = vpop.f32.mrf.mxu3 }
 0x6ac   : > { %v2103_v12 = vadd.f32 %v2102_v11, %v2009_v10 }
 0x6ae   : > { %v2123_v13 = vpack.c.bf16 %v2103_v12, %v2103_v12 }
 0x6b0   : > { %v2134_v16 = vunpack.c.l.b16 %v2123_v13 }
 0x6b3   : > { %v2104_v15 = vpop.f32.mrf.mxu3 }
 0x6b4   : > { %v2105_v44 = vadd.f32 %v2104_v15, %v2009_v10 }
 0x6b6   : > { %v2124_v17 = vpack.c.bf16 %v2105_v44, %v2105_v44 }
 0x6b8   : > { %v2135_v18 = vunpack.c.l.b16 %v2124_v17 }
 0x6ba   : > { %v2136_v19 = vpack.c.b16 %v2135_v18, %v2134_v16 }
 0x6bc   : > { %2209 = vrot.lane.b32.xlu1 %v2136_v19, %s4471_s14  ;;  %2288 = vrot.lane.b32.xlu0 %v2136_v19, %s4472_s27 }
 0x6c4   : > { %2367 = vrot.lane.b32.xlu1 %v2136_v19, %s4473_s18 }
 0x6f5   : > { %v1869_v42 = vpop.xlane.xlu2 %1868 }
 0x6f6   : > { %v1872_v43 = vmul.f32 %v1869_v42, %v4994_v14  ;;  %v3981_v42 = vld [vmem:[%s4797_s26 + $0x64] sm:$0xf] }
 0x6f8   : > { %v1874_v46 = vadd.f32 1e-05, %v1872_v43  ;;  %v3686_v43 = vor.u32 %v3983_v40, %v3683_v41 }
 0x6fa   : > { %4192 = vrsqrt.f32 %v1874_v46  ;;  %vm1882_vm7 = vweird.f32 %v1874_v46  ;;  %2107 = vmatpush.bf16.msrb.mxu0 %v3686_v43 }
 0x6fd   : > { %v1871_v47 = vpop.xlane.xlu0 %1870 }
 0x6fe   : > { %v1873_v48 = vmul.f32 %v1871_v47, %v4994_v14 }
 0x700   : > { %v4193_v49 = vpop.eup %4192  ;;  %v1875_v50 = vadd.f32 1e-05, %v1873_v48 }
 0x701   : > { %v1877_v51 = vmul.f32 %v4193_v49, %v1874_v46  ;;  %vm1883_vm6 = vweird.f32 %v4193_v49  ;;  %v3678_v46 = vor.u32 %v3981_v42, %v3675_v45 }
 0x702   : > { %4194 = vrsqrt.f32 %v1875_v50  ;;  %vm1884_vm8 = vmor %vm1882_vm7, %vm1883_vm6  ;;  %vm1892_vm10 = vweird.f32 %v1875_v50 }
 0x703   : > { %v1878_v52 = vmul.f32 %v4193_v49, %v1877_v51  ;;  %2108 = vmatpush.bf16.msrb.mxu0 %v3678_v46 }
 0x705   : > { %v1879_v53 = vmul.f32 0.5, %v1878_v52 }
 0x707   : > { %v1880_v54 = vsub.f32 1.5, %v1879_v53 }
 0x708   : > { %v4195_v55 = vpop.eup %4194 }
 0x709   : > { %v1881_v56 = vmul.f32 %v4193_v49, %v1880_v54  ;;  %v1887_v57 = vmul.f32 %v4195_v55, %v1875_v50  ;;  %vm1893_vm9 = vweird.f32 %v4195_v55  ;;  %v3979_v54 = vld [vmem:[%s4797_s26 + $0x54] sm:$0xf] }
 0x70a   : > { %vm1894_vm11 = vmor %vm1892_vm10, %vm1893_vm9 }
 0x70b   : > { %v1888_v58 = vmul.f32 %v4195_v55, %v1887_v57  ;;  %v1885_v59 = vsel %vm1884_vm8, %v4193_v49, %v1881_v56  ;;  %v3977_v57 = vld [vmem:[%s4797_s26 + $0x44] sm:$0xf] }
 0x70c   : > { %v1896_v63 = vmul.f32 %v1885_v59, %v1864_v20  ;;  %v2141_v20 = vsel %vm1450_vm0, %v2136_v19, 0 }
 0x70d   : > { %v1889_v60 = vmul.f32 0.5, %v1888_v58  ;;  %2150 = vmatpush.bf16.xpose.msra.mxu1 %v2141_v20  ;;  %v3659_v58 = vld [vmem:[%s4797_s26 + $0x48] sm:$0xf0] }
 0x70e   : > { %v1901_v4 = vmul.f32 %v4149_v0, %v1896_v63  ;;  %v3662_v59 = vor.u32 %v3977_v57, %v3659_v58 }
 0x70f   : > { %v1890_v61 = vsub.f32 1.5, %v1889_v60  ;;  %v3975_v60 = vld [vmem:[%s4797_s26 + $0x34] sm:$0xf] }
 0x710   : > { %v5029_v6 = vadd.f32 %v4150_v5, %v1901_v4  ;;  %v3635_v4 = vld [vmem:[%s4797_s26 + $0x18] sm:$0xf0] }
 0x711   : > { %v1891_v2 = vmul.f32 %v4195_v55, %v1890_v61  ;;  %v3651_v61 = vld [vmem:[%s4797_s26 + $0x38] sm:$0xf0] }
 0x712   : > { %v3654_v63 = vor.u32 %v3975_v60, %v3651_v61 }
 0x713   : > { %v1895_v62 = vsel %vm1894_vm11, %v4195_v55, %v1891_v2  ;;  %v3667_v55 = vld [vmem:[%s4797_s26 + $0x58] sm:$0xf0]  ;;  %v3643_v2 = vld [vmem:[%s4797_s26 + $0x28] sm:$0xf0] }
 0x714   : > { %v1897_v3 = vmul.f32 %v1895_v62, %v1865_v28  ;;  %v3670_v56 = vor.u32 %v3979_v54, %v3667_v55 }
 0x716   : > { %v1902_v1 = vmul.f32 %v4149_v0, %v1897_v3  ;;  %2109 = vmatpush.bf16.msrb.mxu0 %v3670_v56  ;;  %v3973_v0 = vld [vmem:[%s4797_s26 + $0x24] sm:$0xf]  ;;  %v3971_v3 = vld [vmem:[%s4797_s26 + $0x14] sm:$0xf] }
 0x717   : > { %v3646_v62 = vor.u32 %v3973_v0, %v3643_v2 }
 0x718   : > { %v5031_v7 = vadd.f32 %v4150_v5, %v1902_v1  ;;  %v3638_v5 = vor.u32 %v3971_v3, %v3635_v4  ;;  %v3969_v1 = vld [vmem:[%s4797_s26 + $0x4] sm:$0xf] }
 0x71a   : > { %v1908_v8 = vpack.c.bf16 %v5031_v7, %v5029_v6  ;;  %2110 = vmatpush.bf16.msrb.mxu0 %v3662_v59 }
 0x71c   : > { %1985 = vmatmul.bf16.vlgmr.msrb.gmra.mxu2 %v1908_v8  ;;  %v3627_v8 = vld [vmem:[%s4797_s26 + $0x8] sm:$0xf0]  ;;  %s5391_s26 = sld [smem:[#allocation25_spill]] }
 0x71d   : > { %v3630_v10 = vor.u32 %v3969_v1, %v3627_v8 }
 0x71e   : > { %2111 = vmatpush.bf16.msrb.mxu0 %v3654_v63 }
 0x722   : > { %2112 = vmatpush.bf16.msrb.mxu0 %v3646_v62 }
 0x726   : > { %2113 = vmatpush.bf16.msrb.mxu0 %v3638_v5 }
 0x72a   : > { %2114 = vmatpush.bf16.msrb.mxu0 %v3630_v10 }
 0x72d   : > { %2115 = vmatmul.bf16.vlgmr.msrb.gmra.mxu0 %v5006_v34 }
 0x72e   : > { %v2210_v31 = vpop.permute.xlu1 %2209  ;;  %v2289_v35 = vpop.permute.xlu0 %2288 }
 0x72f   : > { %v2215_v32 = vsel %vm1450_vm0, %v2210_v31, 0  ;;  %v2294_v37 = vsel %vm1450_vm0, %v2289_v35, 0 }
 0x730   : > { %2224 = vmatpush.bf16.xpose.msrb.mxu3 %v2215_v32  ;;  %2303 = vmatpush.bf16.xpose.msrb.mxu1 %v2294_v37 }
 0x736   : > { %v2368_v33 = vpop.permute.xlu1 %2367 }
 0x737   : > { %v2373_v36 = vsel %vm1450_vm0, %v2368_v33, 0 }
 0x738   : > { %2382 = vmatpush.bf16.xpose.msra.mxu3 %v2373_v36 }
 0x79f   : > { %v1986_v21 = vpop.f32.mrf.mxu2 }
 0x7a0   : > { %v1987_v23 = vadd.f32 %v4151_v22, %v1986_v21 }
 0x7a2   : > { %v2121_v26 = vpack.c.bf16 %v1987_v23, %v1987_v23 }
 0x7a4   : > { %v2129_v29 = vunpack.c.l.b16 %v2121_v26 }
 0x7a7   : > { %v1988_v24 = vpop.f32.mrf.mxu2 }
 0x7a8   : > { %v1989_v27 = vadd.f32 %v4151_v22, %v1988_v24 }
 0x7aa   : > { %v2122_v28 = vpack.c.bf16 %v1989_v27, %v1989_v27  ;;  %v2116_v40 = vpop.f32.mrf.mxu0 }
 0x7ac   : > { %v2130_v30 = vunpack.c.l.b16 %v2122_v28 }
 0x7ae   : > { %v2131_v25 = vpack.c.b16 %v2130_v30, %v2129_v29 }
 0x7b0   : > { %2286 = vrot.lane.b32.xlu0 %v2131_v25, %s4472_s27  ;;  %2207 = vrot.lane.b32.xlu2 %v2131_v25, %s4471_s14 }
 0x7b1   : > { %3687 = vmatmul.msk.bf16.vlgmr.msra.gmra.mxu1 %vm1450_vm0, %v2131_v25 }
 0x7b2   : > { %v2118_v43 = vpop.f32.mrf.mxu0 }
 0x7b8   : > { %2365 = vrot.lane.b32.xlu2 %v2131_v25, %s4473_s18 }
 0x80a   : > { %v2208_v38 = vpop.permute.xlu2 %2207 }
 0x80b   : > { %3689 = vmatmul.msk.bf16.vlgmr.msrb.gmra.mxu3 %vm1450_vm0, %v2208_v38 }
 0x812   : > { %v2366_v39 = vpop.permute.xlu2 %2365 }
 0x81b   : > { %3693 = vmatmul.msk.bf16.vlgmr.msra.gmra.mxu3 %vm1450_vm0, %v2366_v39  ;;  %v2010_v39 = vperm.slane %v5036_v9, 1 }
 0x81d   : > { %v2117_v41 = vadd.f32 %v2116_v40, %v2010_v39  ;;  %v2119_v45 = vadd.f32 %v2118_v43, %v2010_v39 }
 0x81f   : > { %v2125_v42 = vpack.c.bf16 %v2117_v41, %v2117_v41 }
 0x821   : > { %v2184_v46 = vunpack.c.l.b16 %v2125_v42 }
 0x822   : > { %v2287_v47 = vpop.permute.xlu0 %2286 }
 0x823   : > { %3691 = vmatmul.msk.bf16.vlgmr.msrb.gmra.mxu1 %vm1450_vm0, %v2287_v47  ;;  %v2126_v47 = vpack.c.bf16 %v2119_v45, %v2119_v45 }
 0x82e   : > { %v2152_v48 = vpop.f32.mrf.mxu1 }
 0x82f   : > { %v2157_v49 = vmul.f32 0.17677669, %v2152_v48  ;;  %v2185_v48 = vunpack.c.l.b16 %v2126_v47 }
 0x831   : > { %v2159_v50 = vsel %vm1473_vm1, %v2157_v49, -inf }
 0x832   : > { %2160 = vmax.xlane.f32.xlu1 %v2159_v50 }
 0x836   : > { %v2154_v51 = vpop.f32.mrf.mxu1 }
 0x837   : > { %v2158_v52 = vmul.f32 0.17677669, %v2154_v51 }
 0x839   : > { %v2162_v53 = vsel %vm1473_vm1, %v2158_v52, -inf }
 0x83a   : > { %2163 = vmax.xlane.f32.xlu0 %v2162_v53 }
 0x88e   : > { %v2226_v11 = vpop.f32.mrf.mxu3 }
 0x88f   : > { %v2231_v12 = vmul.f32 0.17677669, %v2226_v11 }
 0x891   : > { %v2233_v13 = vsel %vm1473_vm1, %v2231_v12, -inf }
 0x892   : > { %2234 = vmax.xlane.f32.xlu2 %v2233_v13 }
 0x896   : > { %v2228_v15 = vpop.f32.mrf.mxu3 }
 0x897   : > { %v5078_v44 = vmul.f32 0.17677669, %v2228_v15 }
 0x899   : > { %v2236_v16 = vsel %vm1473_vm1, %v5078_v44, -inf }
 0x89a   : > { %2237 = vmax.xlane.f32.xlu1 %v2236_v16 }
 0x89e   : > { %v2384_v17 = vpop.f32.mrf.mxu3 }
 0x89f   : > { %v2389_v18 = vmul.f32 0.17677669, %v2384_v17 }
 0x8a0   : > { %v2305_v19 = vpop.f32.mrf.mxu1 }
 0x8a1   : > { %v2310_v20 = vmul.f32 0.17677669, %v2305_v19  ;;  %v2391_v21 = vsel %vm1473_vm1, %v2389_v18, -inf }
 0x8a2   : > { %2392 = vmax.xlane.f32.xlu1 %v2391_v21 }
 0x8a3   : > { %v2312_v34 = vsel %vm1473_vm1, %v2310_v20, -inf }
 0x8a4   : > { %2313 = vmax.xlane.f32.xlu0 %v2312_v34 }
 0x8a5   : > { %v2161_v22 = vpop.xlane.xlu1 %2160 }
 0x8a6   : > { %v2165_v23 = vsub.f32 %v2157_v49, %v2161_v22  ;;  %v2386_v24 = vpop.f32.mrf.mxu3  ;;  %v2186_v49 = vpack.c.b16 %v2185_v48, %v2184_v46 }
 0x8a7   : > { %v5084_v26 = vmul.f32 0.17677669, %v2386_v24 }
 0x8a8   : > { %v2167_v27 = vmul.f32 1.442695, %v2165_v23  ;;  %v2307_v28 = vpop.f32.mrf.mxu1  ;;  %2198 = vmatpush.bf16.msra.mxu2 %v2186_v49 }
 0x8a9   : > { %v2311_v29 = vmul.f32 0.17677669, %v2307_v28  ;;  %v2394_v30 = vsel %vm1473_vm1, %v5084_v26, -inf }
 0x8aa   : > { %4196 = vpow2.f32 %v2167_v27 }
 0x8ab   : > { %v2315_v25 = vsel %vm1473_vm1, %v2311_v29, -inf }
 0x8ac   : > { %2395 = vmax.xlane.f32.xlu0 %v2394_v30  ;;  %2316 = vmax.xlane.f32.xlu2 %v2315_v25 }
 0x8ad   : > { %v2164_v31 = vpop.xlane.xlu0 %2163 }
 0x8ae   : > { %v2166_v32 = vsub.f32 %v2158_v52, %v2164_v31 }
 0x8b0   : > { %v5089_v33 = vpop.eup %4196  ;;  %v2169_v35 = vmul.f32 1.442695, %v2166_v32 }
 0x8b1   : > { %v2171_v36 = vsel %vm1473_vm1, %v5089_v33, 0.0 }
 0x8b2   : > { %4198 = vpow2.f32 %v2169_v35 }
 0x8b4   : > { %2172 = vadd.xlane.f32.xlu2 %v2171_v36 }
 0x8b8   : > { %v4199_v37 = vpop.eup %4198 }
 0x8b9   : > { %v2174_v38 = vsel %vm1473_vm1, %v4199_v37, 0.0 }
 0x8ba   : > { %2175 = vadd.xlane.f32.xlu1 %v2174_v38 }
 0x8d3   : > { %2256 = vrot.lane.b32.xlu1 %v2186_v49, %s4471_s14 }
 0x905   : > { %v2235_v51 = vpop.xlane.xlu2 %2234 }
 0x906   : > { %v2239_v54 = vsub.f32 %v2231_v12, %v2235_v51 }
 0x908   : > { %v2241_v9 = vmul.f32 1.442695, %v2239_v54 }
 0x90d   : > { %v2238_v50 = vpop.xlane.xlu1 %2237 }
 0x90e   : > { %v2240_v59 = vsub.f32 %v5078_v44, %v2238_v50 }
 0x910   : > { %v2243_v2 = vmul.f32 1.442695, %v2240_v59  ;;  %v3990_v59 = vld [vmem:[%s5391_s26 + $0x28] sm:$0xff] }
 0x915   : > { %v2393_v56 = vpop.xlane.xlu1 %2392 }
 0x916   : > { %v2397_v61 = vsub.f32 %v2389_v18, %v2393_v56 }
 0x917   : > { %v2314_v52 = vpop.xlane.xlu0 %2313 }
 0x918   : > { %v2318_v53 = vsub.f32 %v2310_v20, %v2314_v52  ;;  %v2399_v62 = vmul.f32 1.442695, %v2397_v61  ;;  %v3988_v61 = vld [vmem:[%s5391_s26 + $0x18] sm:$0xff] }
 0x91a   : > { %v2320_v55 = vmul.f32 1.442695, %v2318_v53 }
 0x91c   : > { %4200 = vpow2.f32 %v2320_v55 }
 0x91d   : > { %4202 = vpow2.f32 %v2241_v9 }
 0x91f   : > { %v2317_v57 = vpop.xlane.xlu2 %2316  ;;  %v2396_v3 = vpop.xlane.xlu0 %2395 }
 0x920   : > { %v2319_v58 = vsub.f32 %v2311_v29, %v2317_v57  ;;  %v2398_v8 = vsub.f32 %v5084_v26, %v2396_v3  ;;  %v3992_v57 = vld [vmem:[%s5391_s26 + $0x38] sm:$0xff] }
 0x921   : > { %2515 = vmatpush.bf16.msra.mxu1 %v3992_v57 }
 0x922   : > { %v5097_v60 = vpop.eup %4200  ;;  %v2322_v63 = vmul.f32 1.442695, %v2319_v58  ;;  %v2401_v13 = vmul.f32 1.442695, %v2398_v8  ;;  %v3991_v58 = vld [vmem:[%s5391_s26 + $0x30] sm:$0xff] }
 0x923   : > { %v2324_v0 = vsel %vm1473_vm1, %v5097_v60, 0.0  ;;  %v4203_v4 = vpop.eup %4202 }
 0x924   : > { %4204 = vpow2.f32 %v2322_v63  ;;  %2325 = vadd.xlane.f32.xlu0 %v2324_v0  ;;  %v2245_v11 = vsel %vm1473_vm1, %v4203_v4, 0.0  ;;  %v3987_v63 = vld [vmem:[%s5391_s26 + $0x10] sm:$0xff]  ;;  %v3986_v0 = vld [vmem:[%s5391_s26 + $0x8] sm:$0xff] }
 0x925   : > { %4206 = vpow2.f32 %v2243_v2  ;;  %2516 = vmatpush.bf16.msra.mxu1 %v3991_v58  ;;  %v3985_v2 = vld [vmem:[%s5391_s26] sm:$0xff] }
 0x926   : > { %4208 = vpow2.f32 %v2399_v62 }
 0x927   : > { %v2173_v5 = vpop.xlane.xlu2 %2172 }
 0x928   : > { %4210 = vrcp.f32 %v2173_v5 }
 0x929   : > { %2517 = vmatpush.bf16.msra.mxu1 %v3990_v59 }
 0x92a   : > { %v4205_v1 = vpop.eup %4204 }
 0x92b   : > { %v2327_v10 = vsel %vm1473_vm1, %v4205_v1, 0.0  ;;  %v4207_v15 = vpop.eup %4206 }
 0x92c   : > { %2328 = vadd.xlane.f32.xlu2 %v2327_v10  ;;  %2246 = vadd.xlane.f32.xlu0 %v2245_v11  ;;  %v4209_v44 = vpop.eup %4208  ;;  %v2248_v17 = vsel %vm1473_vm1, %v4207_v15, 0.0 }
 0x92d   : > { %v2176_v12 = vpop.xlane.xlu1 %2175  ;;  %v2403_v18 = vsel %vm1473_vm1, %v4209_v44, 0.0 }
 0x92e   : > { %4212 = vrcp.f32 %v2176_v12  ;;  %v4211_v16 = vpop.eup %4210 }
 0x92f   : > { %4214 = vpow2.f32 %v2401_v13  ;;  %v2179_v20 = vmul.f32 %v4211_v16, %v5089_v33 }
 0x934   : > { %v4213_v19 = vpop.eup %4212  ;;  %2249 = vadd.xlane.f32.xlu2 %v2248_v17  ;;  %2404 = vadd.xlane.f32.xlu0 %v2403_v18 }
 0x935   : > { %v2180_v21 = vmul.f32 %v4213_v19, %v4199_v37  ;;  %v4215_v22 = vpop.eup %4214 }
 0x936   : > { %v2406_v23 = vsel %vm1473_vm1, %v4215_v22, 0.0 }
 0x937   : > { %v2181_v34 = vpack.c.bf16 %v2180_v21, %v2179_v20 }
 0x939   : > { %3688 = vmatmul.msk.bf16.vlgmr.msra.gmra.mxu2 %vm1473_vm1, %v2181_v34 }
 0x93c   : > { %2407 = vadd.xlane.f32.xlu2 %v2406_v23 }
 0x945   : > { %v2257_v24 = vpop.permute.xlu1 %2256 }
 0x946   : > { %2269 = vmatpush.bf16.msra.mxu0 %v2257_v24 }
 0x948   : > { %2335 = vrot.lane.b32.xlu0 %v2186_v49, %s4472_s27 }
 0x954   : > { %2414 = vrot.lane.b32.xlu2 %v2186_v49, %s4473_s18 }
 0x997   : > { %v2326_v26 = vpop.xlane.xlu0 %2325 }
 0x99f   : > { %v2329_v27 = vpop.xlane.xlu2 %2328  ;;  %v2247_v28 = vpop.xlane.xlu0 %2246 }
 0x9a0   : > { %4216 = vrcp.f32 %v2247_v28 }
 0x9a6   : > { %v4217_v30 = vpop.eup %4216 }
 0x9a7   : > { %v2250_v29 = vpop.xlane.xlu2 %2249  ;;  %v2253_v31 = vmul.f32 %v4217_v30, %v4203_v4  ;;  %v2405_v36 = vpop.xlane.xlu0 %2404 }
 0x9a8   : > { %4218 = vrcp.f32 %v2250_v29 }
 0x9a9   : > { %4220 = vrcp.f32 %v2329_v27 }
 0x9aa   : > { %4222 = vrcp.f32 %v2326_v26 }
 0x9ae   : > { %v4219_v25 = vpop.eup %4218 }
 0x9af   : > { %v2254_v32 = vmul.f32 %v4219_v25, %v4207_v15  ;;  %v2408_v33 = vpop.xlane.xlu2 %2407  ;;  %v4221_v37 = vpop.eup %4220 }
 0x9b0   : > { %4224 = vrcp.f32 %v2408_v33  ;;  %v4223_v38 = vpop.eup %4222  ;;  %v2333_v40 = vmul.f32 %v4221_v37, %v4205_v1 }
 0x9b1   : > { %v2255_v35 = vpack.c.bf16 %v2254_v32, %v2253_v31  ;;  %4226 = vrcp.f32 %v2405_v36  ;;  %v2332_v42 = vmul.f32 %v4223_v38, %v5097_v60  ;;  %v3989_v60 = vld [vmem:[%s5391_s26 + $0x20] sm:$0xff] }
 0x9b2   : > { %2518 = vmatpush.bf16.msra.mxu1 %v3989_v60 }
 0x9b3   : > { %3690 = vmatmul.msk.bf16.vlgmr.msra.gmra.mxu0 %vm1473_vm1, %v2255_v35  ;;  %v2334_v46 = vpack.c.bf16 %v2333_v40, %v2332_v42 }
 0x9b6   : > { %v4225_v41 = vpop.eup %4224  ;;  %2519 = vmatpush.bf16.msra.mxu1 %v3988_v61 }
 0x9b7   : > { %v2415_v39 = vpop.permute.xlu2 %2414  ;;  %v4227_v45 = vpop.eup %4226  ;;  %v2412_v48 = vmul.f32 %v4225_v41, %v4215_v22 }
 0x9b8   : > { %2427 = vmatpush.bf16.msrb.mxu0 %v2415_v39  ;;  %v2411_v49 = vmul.f32 %v4227_v45, %v4209_v44 }
 0x9ba   : > { %v2336_v43 = vpop.permute.xlu0 %2335  ;;  %v2413_v50 = vpack.c.bf16 %v2412_v48, %v2411_v49  ;;  %2520 = vmatpush.bf16.msra.mxu1 %v3987_v63 }
 0x9bb   : > { %2348 = vmatpush.bf16.msrb.mxu2 %v2336_v43 }
 0x9bc   : > { %v2200_v47 = vpop.f32.mrf.mxu2 }
 0x9bd   : > { %2205 = vst.msk [vmem:[#allocation3] sm:$0xff] %vm1450_vm0, %v2200_v47 }
 0x9be   : > { %3692 = vmatmul.msk.bf16.vlgmr.msrb.gmra.mxu2 %vm1473_vm1, %v2334_v46  ;;  %2521 = vmatpush.bf16.msra.mxu1 %v3986_v0 }
 0x9c2   : > { %2522 = vmatpush.bf16.msra.mxu1 %v3985_v2 }
 0x9c3   : > { %3694 = vmatmul.msk.bf16.vlgmr.msrb.gmra.mxu0 %vm1473_vm1, %v2413_v50 }
 0x9c4   : > { %v2202_v51 = vpop.f32.mrf.mxu2 }
 0x9c5   : > { %2206 = vst.msk [vmem:[#allocation3 + $0x8] sm:$0xff] %vm1450_vm0, %v2202_v51 }
 0xa30   : > { %v2271_v52 = vpop.f32.mrf.mxu0 }
 0xa31   : > { %2278 = vrot.lane.b32.xlu1 %v2271_v52, %s4473_s18 }
 0xa38   : > { %v2273_v53 = vpop.f32.mrf.mxu0 }
 0xa39   : > { %2280 = vrot.lane.b32.xlu1 %v2273_v53, %s4473_s18  ;;  %s5395_s18 = sld [smem:[#allocation26_spill]] }
 0xa40   : > { %v2429_v54 = vpop.f32.mrf.mxu0 }
 0xa41   : > { %2436 = vrot.lane.b32.xlu2 %v2429_v54, %s4471_s14  ;;  %v2350_v55 = vpop.f32.mrf.mxu2 }
 0xa42   : > { %2357 = vrot.lane.b32.xlu0 %v2350_v55, %s4472_s27 }
 0xa48   : > { %v2431_v9 = vpop.f32.mrf.mxu0 }
 0xa49   : > { %v2352_v56 = vpop.f32.mrf.mxu2 }
 0xa4a   : > { %2438 = vrot.lane.b32.xlu0 %v2431_v9, %s4471_s14  ;;  %2359 = vrot.lane.b32.xlu1 %v2352_v56, %s4472_s27  ;;  %s5393_s14 = scalar_lea.vmem %s5392_s10, %s4763_s15  ;;  %s5394_s27 = sld [smem:[#allocation28_spill]] }
 0xa4b   : > { %v4152_v13 = vld [vmem:[%s5393_s14] ss:$0 sm:$0xff] }
 0xa50   : > { %v3785_v26 = vld [vmem:[%s5394_s27 + $0x70] sm:$0xf]  ;;  %v4008_v27 = vld [vmem:[%s5394_s27 + $0x74] sm:$0xf0]  ;;  %v4007_v28 = vld [vmem:[%s5394_s27 + $0x74] sm:$0xf] }
 0xa51   : > { %v3786_v29 = vor.u32 %v4008_v27, %v3785_v26  ;;  %v3787_v30 = vld [vmem:[%s5394_s27 + $0x78] sm:$0xf0]  ;;  %v3777_v31 = vld [vmem:[%s5394_s27 + $0x60] sm:$0xf]  ;;  %v4006_v32 = vld [vmem:[%s5394_s27 + $0x64] sm:$0xf0] }
 0xa52   : > { %v3790_v25 = vor.u32 %v4007_v28, %v3787_v30  ;;  %v4005_v33 = vld [vmem:[%s5394_s27 + $0x64] sm:$0xf]  ;;  %v3778_v35 = vor.u32 %v4006_v32, %v3777_v31  ;;  %v3779_v36 = vld [vmem:[%s5394_s27 + $0x68] sm:$0xf0]  ;;  %v3769_v38 = vld [vmem:[%s5394_s27 + $0x50] sm:$0xf] }
 0xa53   : > { %2686 = vmatpush.bf16.msra.mxu2 %v3786_v29  ;;  %v3782_v37 = vor.u32 %v4005_v33, %v3779_v36  ;;  %v4004_v39 = vld [vmem:[%s5394_s27 + $0x54] sm:$0xf0]  ;;  %v4003_v40 = vld [vmem:[%s5394_s27 + $0x54] sm:$0xf]  ;;  %v3771_v42 = vld [vmem:[%s5394_s27 + $0x58] sm:$0xf0] }
 0xa54   : > { %2700 = vmatpush.bf16.msrb.mxu3 %v3790_v25  ;;  %v3770_v41 = vor.u32 %v4004_v39, %v3769_v38  ;;  %v3774_v43 = vor.u32 %v4003_v40, %v3771_v42  ;;  %v3761_v45 = vld [vmem:[%s5394_s27 + $0x40] sm:$0xf]  ;;  %v4002_v46 = vld [vmem:[%s5394_s27 + $0x44] sm:$0xf0]  ;;  %v4001_v47 = vld [vmem:[%s5394_s27 + $0x44] sm:$0xf] }
 0xa55   : > { %v3762_v48 = vor.u32 %v4002_v46, %v3761_v45  ;;  %v3763_v49 = vld [vmem:[%s5394_s27 + $0x48] sm:$0xf0]  ;;  %v3753_v51 = vld [vmem:[%s5394_s27 + $0x30] sm:$0xf]  ;;  %v4000_v52 = vld [vmem:[%s5394_s27 + $0x34] sm:$0xf0] }
 0xa56   : > { %v3766_v50 = vor.u32 %v4001_v47, %v3763_v49  ;;  %v3999_v53 = vld [vmem:[%s5394_s27 + $0x34] sm:$0xf]  ;;  %v3754_v54 = vor.u32 %v4000_v52, %v3753_v51  ;;  %v3755_v55 = vld [vmem:[%s5394_s27 + $0x38] sm:$0xf0]  ;;  %v3745_v56 = vld [vmem:[%s5394_s27 + $0x20] sm:$0xf] }
 0xa57   : > { %2687 = vmatpush.bf16.msra.mxu2 %v3778_v35  ;;  %v3758_v9 = vor.u32 %v3999_v53, %v3755_v55  ;;  %v3998_v57 = vld [vmem:[%s5394_s27 + $0x24] sm:$0xf0]  ;;  %v3997_v58 = vld [vmem:[%s5394_s27 + $0x24] sm:$0xf]  ;;  %v3747_v60 = vld [vmem:[%s5394_s27 + $0x28] sm:$0xf0] }
 0xa58   : > { %2701 = vmatpush.bf16.msrb.mxu3 %v3782_v37  ;;  %v3746_v59 = vor.u32 %v3998_v57, %v3745_v56  ;;  %v3750_v61 = vor.u32 %v3997_v58, %v3747_v60  ;;  %v3737_v63 = vld [vmem:[%s5394_s27 + $0x10] sm:$0xf]  ;;  %v3996_v0 = vld [vmem:[%s5394_s27 + $0x14] sm:$0xf0]  ;;  %v3995_v2 = vld [vmem:[%s5394_s27 + $0x14] sm:$0xf] }
 0xa59   : > { %v4022_v26 = vld [vmem:[%s5395_s18 + $0x68] sm:$0xff]  ;;  %v4013_v29 = vld [vmem:[%s5395_s18 + $0x20] sm:$0xff]  ;;  %v4020_v51 = vld [vmem:[%s5395_s18 + $0x58] sm:$0xff] }
 0xa5a   : > { %v4021_v30 = vld [vmem:[%s5395_s18 + $0x60] sm:$0xff]  ;;  %v4019_v52 = vld [vmem:[%s5395_s18 + $0x50] sm:$0xff]  ;;  %v4010_v53 = vld [vmem:[%s5395_s18 + $0x8] sm:$0xff] }
 0xa5b   : > { %2688 = vmatpush.bf16.msra.mxu2 %v3770_v41  ;;  %v4153_v40 = vld [vmem:[%s1192_s8] ss:$0 sm:$0xff]  ;;  %s5398_s8 = sld [smem:[#allocation29_spill]] }
 0xa5c   : > { %2702 = vmatpush.bf16.msrb.mxu3 %v3774_v43  ;;  %v4009_v55 = vld [vmem:[%s5395_s18] sm:$0xff] }
 0xa5f   : > { %2689 = vmatpush.bf16.msra.mxu2 %v3762_v48 }
 0xa60   : > { %2703 = vmatpush.bf16.msrb.mxu3 %v3766_v50  ;;  %v4012_v50 = vld [vmem:[%s5395_s18 + $0x18] sm:$0xff] }
 0xa61   : > { %v2600_v56 = vld [vmem:[%s5398_s8] sm:$0x3] }
 0xa62   : > { %v2603_v60 = vperm.slane %v2600_v56, 1 }
 0xa63   : > { %2690 = vmatpush.bf16.msra.mxu2 %v3754_v54  ;;  %v4018_v54 = vld [vmem:[%s5395_s18 + $0x48] sm:$0xff] }
 0xa64   : > { %2704 = vmatpush.bf16.msrb.mxu3 %v3758_v9  ;;  %v4017_v9 = vld [vmem:[%s5395_s18 + $0x40] sm:$0xff] }
 0xa67   : > { %2691 = vmatpush.bf16.msra.mxu2 %v3746_v59  ;;  %v2602_v59 = vperm.slane %v2600_v56, 0 }
 0xa68   : > { %2705 = vmatpush.bf16.msrb.mxu3 %v3750_v61 }
 0xa9b   : > { %v2437_v5 = vpop.permute.xlu2 %2436 }
 0xaa3   : > { %v2279_v62 = vpop.permute.xlu1 %2278 }
 0xaa4   : > { %2284 = vst.msk [vmem:[#allocation3] sm:$0xff] %vm1599_vm2, %v2279_v62  ;;  %v3738_v62 = vor.u32 %v3996_v0, %v3737_v63 }
 0xaa6   : > { %2692 = vmatpush.bf16.msra.mxu2 %v3738_v62 }
 0xaab   : > { %v2281_v3 = vpop.permute.xlu1 %2280 }
 0xaac   : > { %2285 = vst.msk [vmem:[#allocation3 + $0x8] sm:$0xff] %vm1599_vm2, %v2281_v3  ;;  %v3739_v3 = vld [vmem:[%s5394_s27 + $0x18] sm:$0xf0] }
 0xab4   : > { %v2358_v4 = vpop.permute.xlu0 %2357 }
 0xab5   : > { %2363 = vst.msk [vmem:[#allocation3] sm:$0xff] %vm1679_vm3, %v2358_v4  ;;  %v3729_v4 = vld [vmem:[%s5394_s27] sm:$0xf] }
 0xab6   : > { %2442 = vst.msk [vmem:[#allocation3] sm:$0xff] %vm1759_vm4, %v2437_v5  ;;  %v3994_v5 = vld [vmem:[%s5394_s27 + $0x4] sm:$0xf0] }
 0xabc   : > { %v2439_v1 = vpop.permute.xlu0 %2438  ;;  %v2360_v8 = vpop.permute.xlu1 %2359 }
 0xabd   : > { %2364 = vst.msk [vmem:[#allocation3 + $0x8] sm:$0xff] %vm1679_vm3, %v2360_v8  ;;  %v2444_v10 = vld [vmem:[#allocation3] sm:$0xff]  ;;  %v3742_v8 = vor.u32 %v3995_v2, %v3739_v3 }
 0xabe   : > { %2443 = vst.msk [vmem:[#allocation3 + $0x8] sm:$0xff] %vm1759_vm4, %v2439_v1 }
 0xabf   : > { %2706 = vmatpush.bf16.msrb.mxu3 %v3742_v8 }
 0xac5   : > { %v2445_v11 = vld [vmem:[#allocation3 + $0x8] sm:$0xff] }
 0xac6   : > { %v2446_v12 = vpack.c.bf16 %v2445_v11, %v2444_v10  ;;  %v3993_v10 = vld [vmem:[%s5394_s27 + $0x4] sm:$0xf]  ;;  %v3731_v11 = vld [vmem:[%s5394_s27 + $0x8] sm:$0xf0] }
 0xac8   : > { %2523 = vmatmul.bf16.vlgmr.msra.gmra.mxu1 %v2446_v12 }
 0xb45   : > { %v2524_v15 = vpop.f32.mrf.mxu1 }
 0xb46   : > { %v2525_v44 = vadd.f32 %v4152_v13, %v2524_v15  ;;  %v3734_v15 = vor.u32 %v3993_v10, %v3731_v11 }
 0xb48   : > { %v2529_v16 = vadd.f32 %v2525_v44, %v5029_v6  ;;  %2707 = vmatpush.bf16.msrb.mxu3 %v3734_v15 }
 0xb4a   : > { %2533 = vadd.xlane.f32.xlu1 %v2529_v16 }
 0xb4d   : > { %v2526_v17 = vpop.f32.mrf.mxu1 }
 0xb4e   : > { %v2527_v18 = vadd.f32 %v4152_v13, %v2526_v17  ;;  %v3730_v13 = vor.u32 %v3994_v5, %v3729_v4  ;;  %v4024_v17 = vld [vmem:[%s5395_s18 + $0x78] sm:$0xff] }
 0xb4f   : > { %2866 = vmatpush.bf16.msrb.mxu1 %v4024_v17 }
 0xb50   : > { %v2530_v19 = vadd.f32 %v2527_v18, %v5031_v7  ;;  %2693 = vmatpush.bf16.msra.mxu2 %v3730_v13 }
 0xb52   : > { %2535 = vadd.xlane.f32.xlu2 %v2530_v19 }
 0xbbd   : > { %v2534_v20 = vpop.xlane.xlu1 %2533 }
 0xbbe   : > { %v2537_v21 = vmul.f32 %v2534_v20, %v4994_v14  ;;  %v4015_v20 = vld [vmem:[%s5395_s18 + $0x30] sm:$0xff] }
 0xbc0   : > { %v5145_v34 = vsub.f32 %v2529_v16, %v2537_v21  ;;  %v4016_v16 = vld [vmem:[%s5395_s18 + $0x38] sm:$0xff]  ;;  %v4023_v21 = vld [vmem:[%s5395_s18 + $0x70] sm:$0xff] }
 0xbc1   : > { %2852 = vmatpush.bf16.msra.mxu0 %v4016_v16  ;;  %2867 = vmatpush.bf16.msrb.mxu1 %v4023_v21 }
 0xbc2   : > { %v2541_v22 = vmul.f32 %v5145_v34, %v5145_v34 }
 0xbc4   : > { %2543 = vadd.xlane.f32.xlu0 %v2541_v22 }
 0xbc5   : > { %v2536_v6 = vpop.xlane.xlu2 %2535  ;;  %2853 = vmatpush.bf16.msra.mxu0 %v4015_v20  ;;  %2868 = vmatpush.bf16.msrb.mxu1 %v4022_v26 }
 0xbc6   : > { %v2538_v23 = vmul.f32 %v2536_v6, %v4994_v14 }
 0xbc8   : > { %v5150_v24 = vsub.f32 %v2530_v19, %v2538_v23 }
 0xbc9   : > { %2869 = vmatpush.bf16.msrb.mxu1 %v4021_v30 }
 0xbca   : > { %v2542_v7 = vmul.f32 %v5150_v24, %v5150_v24 }
 0xbcc   : > { %2545 = vadd.xlane.f32.xlu1 %v2542_v7  ;;  %v4014_v7 = vld [vmem:[%s5395_s18 + $0x28] sm:$0xff] }
 0xbcd   : > { %2854 = vmatpush.bf16.msra.mxu0 %v4014_v7  ;;  %2870 = vmatpush.bf16.msrb.mxu1 %v4020_v51 }
 0xbd1   : > { %2855 = vmatpush.bf16.msra.mxu0 %v4013_v29  ;;  %2871 = vmatpush.bf16.msrb.mxu1 %v4019_v52 }
 0xbd5   : > { %2856 = vmatpush.bf16.msra.mxu0 %v4012_v50  ;;  %2872 = vmatpush.bf16.msrb.mxu1 %v4018_v54 }
 0xbd9   : > { %2873 = vmatpush.bf16.msrb.mxu1 %v4017_v9 }
 0xc37   : > { %v2544_v1 = vpop.xlane.xlu0 %2543 }
 0xc38   : > { %v2547_v12 = vmul.f32 %v2544_v1, %v4994_v14 }
 0xc3a   : > { %v2549_v44 = vadd.f32 1e-05, %v2547_v12  ;;  %v4155_v12 = vld [vmem:[%s5400_s23] ss:$0 sm:$0xff] }
 0xc3c   : > { %4228 = vrsqrt.f32 %v2549_v44  ;;  %vm2557_vm13 = vweird.f32 %v2549_v44 }
 0xc3f   : > { %v2546_v18 = vpop.xlane.xlu1 %2545 }
 0xc40   : > { %v2548_v19 = vmul.f32 %v2546_v18, %v4994_v14 }
 0xc42   : > { %v4229_v22 = vpop.eup %4228  ;;  %v2550_v6 = vadd.f32 1e-05, %v2548_v19 }
 0xc43   : > { %v2552_v23 = vmul.f32 %v4229_v22, %v2549_v44  ;;  %vm2558_vm12 = vweird.f32 %v4229_v22 }
 0xc44   : > { %4230 = vrsqrt.f32 %v2550_v6  ;;  %vm2559_vm14 = vmor %vm2557_vm13, %vm2558_vm12  ;;  %vm2567_vm0 = vweird.f32 %v2550_v6 }
 0xc45   : > { %v2553_v27 = vmul.f32 %v4229_v22, %v2552_v23 }
 0xc47   : > { %v2554_v28 = vmul.f32 0.5, %v2553_v27 }
 0xc49   : > { %v2555_v25 = vsub.f32 1.5, %v2554_v28 }
 0xc4a   : > { %v4231_v31 = vpop.eup %4230 }
 0xc4b   : > { %v2556_v32 = vmul.f32 %v4229_v22, %v2555_v25  ;;  %v2562_v33 = vmul.f32 %v4231_v31, %v2550_v6  ;;  %vm2568_vm15 = vweird.f32 %v4231_v31 }
 0xc4c   : > { %vm2569_vm1 = vmor %vm2567_vm0, %vm2568_vm15 }
 0xc4d   : > { %v2563_v35 = vmul.f32 %v4231_v31, %v2562_v33  ;;  %v2560_v36 = vsel %vm2559_vm14, %v4229_v22, %v2556_v32 }
 0xc4e   : > { %v2571_v39 = vmul.f32 %v2560_v36, %v5145_v34  ;;  %v4154_v34 = vld [vmem:[%s1195_s7] ss:$0 sm:$0xff] }
 0xc4f   : > { %v2564_v37 = vmul.f32 0.5, %v2563_v35 }
 0xc50   : > { %v2576_v45 = vmul.f32 %v4153_v40, %v2571_v39 }
 0xc51   : > { %v2565_v38 = vsub.f32 1.5, %v2564_v37 }
 0xc52   : > { %v2581_v47 = vadd.f32 %v4154_v34, %v2576_v45 }
 0xc53   : > { %v2566_v41 = vmul.f32 %v4231_v31, %v2565_v38 }
 0xc55   : > { %v2570_v42 = vsel %vm2569_vm1, %v4231_v31, %v2566_v41 }
 0xc56   : > { %v2572_v43 = vmul.f32 %v2570_v42, %v5150_v24  ;;  %v4011_v24 = vld [vmem:[%s5395_s18 + $0x10] sm:$0xff] }
 0xc57   : > { %2857 = vmatpush.bf16.msra.mxu0 %v4011_v24 }
 0xc58   : > { %v2577_v46 = vmul.f32 %v4153_v40, %v2572_v43 }
 0xc5a   : > { %v2582_v48 = vadd.f32 %v4154_v34, %v2577_v46  ;;  %v4156_v34 = vld [vmem:[%s1198_s29] ss:$0 sm:$0xff]  ;;  %s5403_s29 = sld [smem:[#allocation53_spill]] (!%p3855_p4) }
 0xc5b   : > { %2858 = vmatpush.bf16.msra.mxu0 %v4010_v53 }
 0xc5c   : > { %v2583_v49 = vpack.c.bf16 %v2582_v48, %v2581_v47 }
 0xc5e   : > { %2694 = vmatmul.bf16.vlgmr.msra.gmra.mxu2 %v2583_v49  ;;  %2708 = vmatmul.bf16.vlgmr.msrb.gmra.mxu3 %v2583_v49 }
 0xc5f   : > { %2859 = vmatpush.bf16.msra.mxu0 %v4009_v55 }
 0xce1   : > { %v2695_v57 = vpop.f32.mrf.mxu2  ;;  %v2709_v58 = vpop.f32.mrf.mxu3 }
 0xce2   : > { %v2696_v61 = vadd.f32 %v2695_v57, %v2602_v59  ;;  %v2710_v63 = vadd.f32 %v2709_v58, %v2603_v60 }
 0xce4   : > { %v2714_v4 = vmax.f32 %v2696_v61, 0.0  ;;  %v2715_v5 = vmax.f32 %v2710_v63, 0.0 }
 0xce9   : > { %v2697_v0 = vpop.f32.mrf.mxu2  ;;  %v2711_v2 = vpop.f32.mrf.mxu3 }
 0xcea   : > { %v2698_v62 = vadd.f32 %v2697_v0, %v2602_v59  ;;  %v2712_v3 = vadd.f32 %v2711_v2, %v2603_v60 }
 0xcec   : > { %v2716_v1 = vmax.f32 %v2698_v62, 0.0  ;;  %v2717_v8 = vmax.f32 %v2712_v3, 0.0 }
 0xcee   : > { %v2718_v10 = vpack.c.bf16 %v2716_v1, %v2714_v4  ;;  %v2719_v11 = vpack.c.bf16 %v2717_v8, %v2715_v5 }
 0xcf0   : > { %2860 = vmatmul.bf16.vlgmr.msra.gmra.mxu0 %v2718_v10  ;;  %2874 = vmatmul.bf16.vlgmr.msrb.gmra.mxu1 %v2719_v11 }
 0xd6d   : > { %v2861_v13 = vpop.f32.mrf.mxu0  ;;  %v2875_v15 = vpop.f32.mrf.mxu1 }
 0xd6e   : > { %v2862_v44 = vadd.f32 %v4155_v12, %v2861_v13 }
 0xd70   : > { %v2876_v16 = vadd.f32 %v2875_v15, %v2862_v44 }
 0xd72   : > { %v2880_v17 = vadd.f32 %v2876_v16, %v2581_v47  ;;  %v4157_v47 = vld [vmem:[%s1201_s22] ss:$0 sm:$0xff] }
 0xd74   : > { %2884 = vadd.xlane.f32.xlu2 %v2880_v17 }
 0xd75   : > { %v2863_v18 = vpop.f32.mrf.mxu0  ;;  %v2877_v20 = vpop.f32.mrf.mxu1 }
 0xd76   : > { %v2864_v19 = vadd.f32 %v4155_v12, %v2863_v18 }
 0xd78   : > { %v2878_v21 = vadd.f32 %v2877_v20, %v2864_v19 }
 0xd7a   : > { %v2881_v22 = vadd.f32 %v2878_v21, %v2582_v48 }
 0xd7c   : > { %2886 = vadd.xlane.f32.xlu0 %v2881_v22 }
 0xde7   : > { %v2885_v6 = vpop.xlane.xlu2 %2884 }
 0xde8   : > { %v2888_v23 = vmul.f32 %v2885_v6, %v4994_v14 }
 0xdea   : > { %v2890_v7 = vsub.f32 %v2880_v17, %v2888_v23 }
 0xdec   : > { %v2892_v26 = vmul.f32 %v2890_v7, %v2890_v7 }
 0xdee   : > { %2894 = vadd.xlane.f32.xlu1 %v2892_v26 }
 0xdef   : > { %v2887_v27 = vpop.xlane.xlu0 %2886 }
 0xdf0   : > { %v2889_v28 = vmul.f32 %v2887_v27, %v4994_v14 }
 0xdf2   : > { %v2891_v29 = vsub.f32 %v2881_v22, %v2889_v28 }
 0xdf4   : > { %v2893_v30 = vmul.f32 %v2891_v29, %v2891_v29 }
 0xdf6   : > { %2896 = vadd.xlane.f32.xlu2 %v2893_v30 }
 0xe61   : > { %v2895_v25 = vpop.xlane.xlu1 %2894 }
 0xe62   : > { %v2898_v31 = vmul.f32 %v2895_v25, %v4994_v14 }
 0xe64   : > { %v2900_v32 = vadd.f32 1e-05, %v2898_v31 }
 0xe66   : > { %4232 = vrsqrt.f32 %v2900_v32  ;;  %vm2908_vm3 = vweird.f32 %v2900_v32 }
 0xe69   : > { %v2897_v33 = vpop.xlane.xlu2 %2896 }
 0xe6a   : > { %v2899_v35 = vmul.f32 %v2897_v33, %v4994_v14 }
 0xe6c   : > { %v4233_v36 = vpop.eup %4232  ;;  %v2901_v37 = vadd.f32 1e-05, %v2899_v35 }
 0xe6d   : > { %v2903_v38 = vmul.f32 %v4233_v36, %v2900_v32  ;;  %vm2909_vm2 = vweird.f32 %v4233_v36 }
 0xe6e   : > { %4234 = vrsqrt.f32 %v2901_v37  ;;  %vm2910_vm4 = vmor %vm2908_vm3, %vm2909_vm2  ;;  %vm2918_vm6 = vweird.f32 %v2901_v37 }
 0xe6f   : > { %v2904_v39 = vmul.f32 %v4233_v36, %v2903_v38 }
 0xe71   : > { %v2905_v40 = vmul.f32 0.5, %v2904_v39 }
 0xe73   : > { %v2906_v41 = vsub.f32 1.5, %v2905_v40 }
 0xe74   : > { %v4235_v42 = vpop.eup %4234 }
 0xe75   : > { %v2907_v43 = vmul.f32 %v4233_v36, %v2906_v41  ;;  %v2913_v45 = vmul.f32 %v4235_v42, %v2901_v37  ;;  %vm2919_vm5 = vweird.f32 %v4235_v42 }
 0xe76   : > { %vm2920_vm7 = vmor %vm2918_vm6, %vm2919_vm5 }
 0xe77   : > { %v2911_v14 = vsel %vm2910_vm4, %v4233_v36, %v2907_v43  ;;  %v2914_v46 = vmul.f32 %v4235_v42, %v2913_v45 }
 0xe78   : > { %v2922_v48 = vmul.f32 %v2911_v14, %v2890_v7 }
 0xe79   : > { %v2915_v49 = vmul.f32 0.5, %v2914_v46 }
 0xe7a   : > { %v2927_v50 = vmul.f32 %v4156_v34, %v2922_v48 }
 0xe7b   : > { %v2916_v51 = vsub.f32 1.5, %v2915_v49 }
 0xe7c   : > { %v5236_v24 = vadd.f32 %v4157_v47, %v2927_v50 }
 0xe7d   : > { %v2917_v52 = vmul.f32 %v4235_v42, %v2916_v51 }
 0xe7e   : > { %2934 = vst [vmem:[#allocation2] sm:$0xff] %v5236_v24 }
 0xe7f   : > { %v2921_v53 = vsel %vm2920_vm7, %v4235_v42, %v2917_v52 }
 0xe80   : > { %v2923_v54 = vmul.f32 %v2921_v53, %v2891_v29 }
 0xe82   : > { %v2928_v55 = vmul.f32 %v4156_v34, %v2923_v54  ;;  %2939 = sbr.rel (%p3855_p4) target bundleno = 3891 (0xf33), region = 144 }
 0xe84   : > { %v5239_v9 = vadd.f32 %v4157_v47, %v2928_v55 }
 0xe86   : > { %2935 = vst [vmem:[#allocation2 + $0x8] sm:$0xff] %v5239_v9 }
 0xe87   : > { %v3914_v56 = vld [vmem:[#allocation11 + $0x70] sm:$0xf]  ;;  %v4040_v57 = vld [vmem:[#allocation11 + $0x74] sm:$0xf0]  ;;  %v4039_v58 = vld [vmem:[#allocation11 + $0x74] sm:$0xf]  ;;  %v2940_v43 = vpack.c.bf16 %v5239_v9, %v5236_v24 }
 0xe88   : > { %v3915_v59 = vor.u32 %v4040_v57, %v3914_v56  ;;  %v3916_v60 = vld [vmem:[#allocation11 + $0x78] sm:$0xf0]  ;;  %v3906_v61 = vld [vmem:[#allocation11 + $0x60] sm:$0xf]  ;;  %v4038_v63 = vld [vmem:[#allocation11 + $0x64] sm:$0xf0] }
 0xe89   : > { %v3919_v0 = vor.u32 %v4039_v58, %v3916_v60  ;;  %v4037_v2 = vld [vmem:[#allocation11 + $0x64] sm:$0xf]  ;;  %v3908_v62 = vld [vmem:[#allocation11 + $0x68] sm:$0xf0]  ;;  %v3907_v3 = vor.u32 %v4038_v63, %v3906_v61  ;;  %v3898_v5 = vld [vmem:[#allocation11 + $0x50] sm:$0xf] }
 0xe8a   : > { %3043 = vmatpush.bf16.msra.mxu0 %v3915_v59  ;;  %v3911_v4 = vor.u32 %v4037_v2, %v3908_v62  ;;  %v4036_v1 = vld [vmem:[#allocation11 + $0x54] sm:$0xf0]  ;;  %v4035_v8 = vld [vmem:[#allocation11 + $0x54] sm:$0xf]  ;;  %v3900_v10 = vld [vmem:[#allocation11 + $0x58] sm:$0xf0] }
 0xe8b   : > { %3057 = vmatpush.bf16.msra.mxu1 %v3919_v0  ;;  %v3899_v11 = vor.u32 %v4036_v1, %v3898_v5  ;;  %v3903_v12 = vor.u32 %v4035_v8, %v3900_v10  ;;  %v3890_v13 = vld [vmem:[#allocation11 + $0x40] sm:$0xf]  ;;  %v4034_v15 = vld [vmem:[#allocation11 + $0x44] sm:$0xf0]  ;;  %v4033_v44 = vld [vmem:[#allocation11 + $0x44] sm:$0xf] }
 0xe8c   : > { %v3892_v16 = vld [vmem:[#allocation11 + $0x48] sm:$0xf0]  ;;  %v3891_v17 = vor.u32 %v4034_v15, %v3890_v13  ;;  %v3882_v19 = vld [vmem:[#allocation11 + $0x30] sm:$0xf]  ;;  %v4032_v20 = vld [vmem:[#allocation11 + $0x34] sm:$0xf0] }
 0xe8d   : > { %v3895_v18 = vor.u32 %v4033_v44, %v3892_v16  ;;  %v4031_v21 = vld [vmem:[#allocation11 + $0x34] sm:$0xf]  ;;  %v3884_v22 = vld [vmem:[#allocation11 + $0x38] sm:$0xf0]  ;;  %v3883_v6 = vor.u32 %v4032_v20, %v3882_v19  ;;  %v3874_v7 = vld [vmem:[#allocation11 + $0x20] sm:$0xf] }
 0xe8e   : > { %3044 = vmatpush.bf16.msra.mxu0 %v3907_v3  ;;  %v3887_v23 = vor.u32 %v4031_v21, %v3884_v22  ;;  %v4030_v26 = vld [vmem:[#allocation11 + $0x24] sm:$0xf0]  ;;  %v4029_v27 = vld [vmem:[#allocation11 + $0x24] sm:$0xf]  ;;  %v3876_v28 = vld [vmem:[#allocation11 + $0x28] sm:$0xf0] }
 0xe8f   : > { %3058 = vmatpush.bf16.msra.mxu1 %v3911_v4  ;;  %v3875_v29 = vor.u32 %v4030_v26, %v3874_v7  ;;  %v3879_v30 = vor.u32 %v4029_v27, %v3876_v28  ;;  %v3866_v25 = vld [vmem:[#allocation11 + $0x10] sm:$0xf]  ;;  %v4028_v31 = vld [vmem:[#allocation11 + $0x14] sm:$0xf0]  ;;  %v4027_v32 = vld [vmem:[#allocation11 + $0x14] sm:$0xf] }
 0xe90   : > { %v3868_v33 = vld [vmem:[#allocation11 + $0x18] sm:$0xf0]  ;;  %v3867_v35 = vor.u32 %v4028_v31, %v3866_v25  ;;  %v3858_v37 = vld [vmem:[#allocation11] sm:$0xf]  ;;  %v4026_v38 = vld [vmem:[#allocation11 + $0x4] sm:$0xf0] }
 0xe91   : > { %v3871_v36 = vor.u32 %v4027_v32, %v3868_v33  ;;  %v4025_v39 = vld [vmem:[#allocation11 + $0x4] sm:$0xf]  ;;  %v3860_v40 = vld [vmem:[#allocation11 + $0x8] sm:$0xf0]  ;;  %v3859_v41 = vor.u32 %v4026_v38, %v3858_v37  ;;  %v2957_v45 = vld [vmem:[%s5403_s29] sm:$0x3] }
 0xe92   : > { %3045 = vmatpush.bf16.msra.mxu0 %v3899_v11  ;;  %v3863_v42 = vor.u32 %v4025_v39, %v3860_v40  ;;  %v2959_v34 = vperm.slane %v2957_v45, 0  ;;  %v2960_v14 = vperm.slane %v2957_v45, 1 }
 0xe93   : > { %3059 = vmatpush.bf16.msra.mxu1 %v3903_v12 }
 0xe96   : > { %3046 = vmatpush.bf16.msra.mxu0 %v3891_v17 }
 0xe97   : > { %3060 = vmatpush.bf16.msra.mxu1 %v3895_v18 }
 0xe9a   : > { %3047 = vmatpush.bf16.msra.mxu0 %v3883_v6 }
 0xe9b   : > { %3061 = vmatpush.bf16.msra.mxu1 %v3887_v23 }
 0xe9e   : > { %3048 = vmatpush.bf16.msra.mxu0 %v3875_v29 }
 0xe9f   : > { %3062 = vmatpush.bf16.msra.mxu1 %v3879_v30 }
 0xea2   : > { %3049 = vmatpush.bf16.msra.mxu0 %v3867_v35 }
 0xea3   : > { %3063 = vmatpush.bf16.msra.mxu1 %v3871_v36 }
 0xea6   : > { %3050 = vmatpush.bf16.msra.mxu0 %v3859_v41 }
 0xea7   : > { %3064 = vmatpush.bf16.msra.mxu1 %v3863_v42 }
 0xea9   : > { %3051 = vmatmul.bf16.vlgmr.msra.gmra.mxu0 %v2940_v43 }
 0xeaa   : > { %3065 = vmatmul.bf16.vlgmr.msra.gmra.mxu1 %v2940_v43 }
 0xf26   : > { %v3052_v46 = vpop.f32.mrf.mxu0 }
 0xf27   : > { %v3053_v47 = vadd.f32 %v3052_v46, %v2959_v34  ;;  %v3066_v48 = vpop.f32.mrf.mxu1 }
 0xf28   : > { %v3067_v49 = vadd.f32 %v3066_v48, %v2960_v14 }
 0xf29   : > { %3071 = vst [vmem:[%s4850_s12] sm:$0xff] %v3053_v47 }
 0xf2a   : > { %3072 = vst [vmem:[%s4850_s12 + $0x8] sm:$0xff] %v3067_v49 }
 0xf2e   : > { %v3054_v50 = vpop.f32.mrf.mxu0 }
 0xf2f   : > { %v3055_v51 = vadd.f32 %v3054_v50, %v2959_v34  ;;  %v3068_v24 = vpop.f32.mrf.mxu1 }
 0xf30   : > { %v3069_v52 = vadd.f32 %v3068_v24, %v2960_v14 }
 0xf31   : > { %3073 = vst [vmem:[%s4850_s12 + $0x10] sm:$0xff] %v3055_v51 }
 0xf32   : > { %3074 = vst [vmem:[%s4850_s12 + $0x18] sm:$0xff] %v3069_v52 }
 0xf33 PF: > { %s5404_s22 = sld [smem:[#allocation20_spill]] }
 0xf34   : > { %s5405_s5 = sld [smem:[#allocation16_spill]] }
 0xf35   : > { %s5406_s26 = sld [smem:[#allocation17_spill]] }
 0xf36   : > { %s5407_s27 = sld [smem:[#allocation23_spill]] }
 0xf37   : > { %s5408_s28 = sld [smem:[#allocation18_spill]] }
 0xf38   : > { %s5409_s6 = sld [smem:[#allocation19_spill]] }
 0xf39   : > { %s43_s0 = sadd.s32 1, %s5404_s22   ;;  %s5410_s2 = sld [smem:[#allocation21_spill]] }
 0xf3a   : > { %p40_p6 = scmp.ge.s32.totalorder %s43_s0, 10   ;;  %s5411_s29 = sld [smem:[#allocation22_spill]] }
 0xf3c   :  { %42 = sbr.rel (!%p40_p6) target bundleno = 35 (0x23), region = 259 }
 0xf41   :  { %3099 = vsyncpa [#allocation5], 1 }
 0xf42   :  { %3101 = vsyncpa [#allocation5 + $0x1], 1 }
 0xf43   :  { %3102 = vsyncpa [#allocation7], 1 }
 0xf44   :  { %3104 = vsyncpa [#allocation7 + $0x1], 1 }
 0xf45   :  { %3105 = vsyncpa [#allocation10], 1 }
 0xf46   :  { %3107 = vsyncpa [#allocation10 + $0x1], 1 }

</bundles_post_ra>
